<compile_context>
chip_gen: v5e
topology: v5e:2x2
jax: 0.10.0
libtpu: 0.0.40
codegen_flags: <defaults>
</compile_context>

<pallas_src>
import jax
import jax.numpy as jnp
from jax.experimental import pallas as pl
from jax.experimental.pallas import tpu as pltpu


# ---------------------------------------------------------------- Pallas part
def _make_double_conv_kernel(H, W, Cout):
    """Fused double_conv over the virtual concat [x2, x1].

    refs order: x2 (1,H+2,W+2,c2), x1 (1,H+2,W+2,c1),
                w1a (9,c2,Cout), w1b (9,c1,Cout), s1 (1,Cout), b1 (1,Cout),
                w2 (9,Cout,Cout), s2 (1,Cout), b2 (1,Cout),
                out (1,H,W,Cout), scratch y1p (H+2,W+2,Cout) f32.
    """
    def kernel(x2_ref, x1_ref, w1a_ref, w1b_ref, s1_ref, b1_ref,
               w2_ref, s2_ref, b2_ref, o_ref, y1p_ref):
        # ---- conv1 over concat([x2, x1]) (fused via weight split) + BN + ReLU
        acc = jnp.zeros((H * W, Cout), jnp.float32)
        for x_ref, w_ref in ((x2_ref, w1a_ref), (x1_ref, w1b_ref)):
            x = x_ref[0]                                      # (H+2, W+2, Ci)
            for dy in range(3):
                for dx in range(3):
                    xt = x[dy:dy + H, dx:dx + W, :].reshape(H * W, -1)
                    acc = acc + jnp.dot(xt, w_ref[dy * 3 + dx],   # MXU, f32
                                        preferred_element_type=jnp.float32)
        y1 = jnp.maximum(acc * s1_ref[...] + b1_ref[...], 0.0)   # BN + ReLU

        # ---- stage intermediate in VMEM with a 1-pixel zero halo (no HBM trip)
        y1p_ref[...] = jnp.zeros_like(y1p_ref)
        y1p_ref[1:H + 1, 1:W + 1, :] = y1.reshape(H, W, Cout)

        # ---- conv2 + BN + ReLU, reading shifted windows of the VMEM scratch
        acc2 = jnp.zeros((H * W, Cout), jnp.float32)
        for dy in range(3):
            for dx in range(3):
                xt = y1p_ref[dy:dy + H, dx:dx + W, :].reshape(H * W, Cout)
                acc2 = acc2 + jnp.dot(xt, w2_ref[dy * 3 + dx],
                                      preferred_element_type=jnp.float32)
        y2 = jnp.maximum(acc2 * s2_ref[...] + b2_ref[...], 0.0)
        o_ref[...] = y2.reshape(1, H, W, Cout).astype(o_ref.dtype)

    return kernel


def double_conv_fused(x2p, x1p, w1a, w1b, s1, b1, w2, s2, b2):
    """x2p/x1p: (N, H+2, W+2, Ci) halo-padded NHWC inputs;
    w1a/w1b/w2: (9, Ci, Cout) tap weights; s*/b*: (1, Cout) folded BN.
    Returns (N, H, W, Cout)."""
    n, hp, wp, c2 = x2p.shape
    c1 = x1p.shape[-1]
    H, W = hp - 2, wp - 2
    Cout = w2.shape[-1]

    in_specs = [
        pl.BlockSpec((1, hp, wp, c2), lambda i: (i, 0, 0, 0)),
        pl.BlockSpec((1, hp, wp, c1), lambda i: (i, 0, 0, 0)),
        pl.BlockSpec(w1a.shape, lambda i: (0, 0, 0)),
        pl.BlockSpec(w1b.shape, lambda i: (0, 0, 0)),
        pl.BlockSpec((1, Cout), lambda i: (0, 0)),
        pl.BlockSpec((1, Cout), lambda i: (0, 0)),
        pl.BlockSpec(w2.shape, lambda i: (0, 0, 0)),
        pl.BlockSpec((1, Cout), lambda i: (0, 0)),
        pl.BlockSpec((1, Cout), lambda i: (0, 0)),
    ]

    return pl.pallas_call(
        _make_double_conv_kernel(H, W, Cout),
        out_shape=jax.ShapeDtypeStruct((n, H, W, Cout), x2p.dtype),
        grid_spec=pltpu.PrefetchScalarGridSpec(
            num_scalar_prefetch=0,
            grid=(n,),                          # one parallel step per sample
            in_specs=in_specs,
            out_specs=pl.BlockSpec((1, H, W, Cout), lambda i: (i, 0, 0, 0)),
            scratch_shapes=[pltpu.VMEM((H + 2, W + 2, Cout), jnp.float32)],
        ),
        compiler_params=pltpu.CompilerParams(
            dimension_semantics=("parallel",)),
    )(x2p, x1p, w1a, w1b, s1, b1, w2, s2, b2)


# ------------------------------------------------------------------ JAX glue
def _interp_coords(size_in, size_out):
    # align_corners=True source coordinates for 1-D linear interpolation.
    if size_in == 1:
        z = jnp.zeros((size_out,), jnp.int32)
        return z, z, jnp.zeros((size_out,), jnp.float32)
    src = jnp.arange(size_out, dtype=jnp.float32) * ((size_in - 1) / (size_out - 1))
    lo = jnp.clip(jnp.floor(src).astype(jnp.int32), 0, size_in - 2)
    return lo, lo + 1, src - lo.astype(jnp.float32)


def upsample_bilinear_2x(x):                   # NHWC, align_corners=True
    n, h, w, c = x.shape
    y0, y1, fy = _interp_coords(h, 2 * h)
    x0, x1, fx = _interp_coords(w, 2 * w)
    xw = (x[:, :, x0, :] * (1.0 - fx)[None, None, :, None]
          + x[:, :, x1, :] * fx[None, None, :, None])
    return (xw[:, y0, :, :] * (1.0 - fy)[None, :, None, None]
            + xw[:, y1, :, :] * fy[None, :, None, None])


def _fold_bn(conv_bias, gamma, beta, mean, var, eps=1e-5):
    scale = gamma / jnp.sqrt(var + eps)
    bias = beta + (conv_bias - mean) * scale
    return scale.reshape(1, -1), bias.reshape(1, -1)


def _w_to_taps(w_oihw):                        # (Cout, Cin, 3, 3) -> (9, Cin, Cout)
    cout, cin = w_oihw.shape[0], w_oihw.shape[1]
    return jnp.transpose(w_oihw, (2, 3, 1, 0)).reshape(9, cin, cout)


def upconv_forward(x1_nchw, x2_nchw, p):
    """Matches upconv.forward(x1, x2) (bilinear=True, BN in eval mode)."""
    x1 = jnp.transpose(x1_nchw, (0, 2, 3, 1))  # NCHW -> NHWC (lane-dense C)
    x2 = jnp.transpose(x2_nchw, (0, 2, 3, 1))
    c2 = x2.shape[-1]

    x1u = upsample_bilinear_2x(x1)
    dY = x2.shape[1] - x1u.shape[1]
    dX = x2.shape[2] - x1u.shape[2]
    assert dY >= 0 and dX >= 0
    # F.pad alignment pad + conv halo pad of 1, fused into a single jnp.pad
    x1p = jnp.pad(x1u, ((0, 0),
                        (1 + dY // 2, 1 + dY - dY // 2),
                        (1 + dX // 2, 1 + dX - dX // 2),
                        (0, 0)))
    x2p = jnp.pad(x2, ((0, 0), (1, 1), (1, 1), (0, 0)))

    # conv1: concat([x2, x1]) fused by splitting the weight along Cin
    w1 = _w_to_taps(p["w1"])                   # (9, c2 + c1, Cout)
    s1, b1 = _fold_bn(p["b1"], p["g1"], p["beta1"], p["m1"], p["v1"])
    w2 = _w_to_taps(p["w2"])
    s2, b2 = _fold_bn(p["b2"], p["g2"], p["beta2"], p["m2"], p["v2"])

    y = double_conv_fused(x2p, x1p, w1[:, :c2, :], w1[:, c2:, :],
                          s1, b1, w2, s2, b2)
    return jnp.transpose(y, (0, 3, 1, 2))      # back to NCHW


# -------------------------------------------------------- pure-JAX reference
def upconv_reference(x1_nchw, x2_nchw, p, eps=1e-5):
    x1 = jnp.transpose(x1_nchw, (0, 2, 3, 1))
    x2 = jnp.transpose(x2_nchw, (0, 2, 3, 1))
    x1u = upsample_bilinear_2x(x1)
    dY = x2.shape[1] - x1u.shape[1]
    dX = x2.shape[2] - x1u.shape[2]
    x1p = jnp.pad(x1u, ((0, 0), (dY // 2, dY - dY // 2),
                        (dX // 2, dX - dX // 2), (0, 0)))
    x = jnp.concatenate([x2, x1p], axis=-1)

    def conv_bn_relu(x, w_oihw, cb, g, be, m, v):
        w = jnp.transpose(w_oihw, (2, 3, 1, 0))
        y = jax.lax.conv_general_dilated(
            x, w, (1, 1), ((1, 1), (1, 1)),
            dimension_numbers=("NHWC", "HWIO", "NHWC")) + cb
        y = (y - m) * (g / jnp.sqrt(v + eps)) + be
        return jnp.maximum(y, 0.0)

    y = conv_bn_relu(x, p["w1"], p["b1"], p["g1"], p["beta1"], p["m1"], p["v1"])
    y = conv_bn_relu(y, p["w2"], p["b2"], p["g2"], p["beta2"], p["m2"], p["v2"])
    return jnp.transpose(y, (0, 3, 1, 2))


# -------------------------------------------------------------------- main --
if __name__ == "__main__":
    key = jax.random.PRNGKey(0)
    ks = jax.random.split(key, 14)

    N = 2
    in_ch, out_ch = 8, 4                       # upconv(in_ch=8, out_ch=4)
    c1 = c2 = in_ch // 2                       # x1 carries in_ch//2, x2 the skip
    H2 = W2 = 16
    H1 = W1 = H2 // 2

    x1 = jax.random.normal(ks[0], (N, c1, H1, W1), jnp.float32)
    x2 = jax.random.normal(ks[1], (N, c2, H2, W2), jnp.float32)

    p = {
        "w1": jax.random.normal(ks[2], (out_ch, in_ch, 3, 3), jnp.float32) * 0.2,
        "b1": jax.random.normal(ks[3], (out_ch,), jnp.float32) * 0.1,
        "g1": 1.0 + 0.1 * jax.random.normal(ks[4], (out_ch,), jnp.float32),
        "beta1": 0.1 * jax.random.normal(ks[5], (out_ch,), jnp.float32),
        "m1": 0.1 * jax.random.normal(ks[6], (out_ch,), jnp.float32),
        "v1": 0.9 + 0.1 * jnp.abs(jax.random.normal(ks[7], (out_ch,), jnp.float32)),
        "w2": jax.random.normal(ks[8], (out_ch, out_ch, 3, 3), jnp.float32) * 0.2,
        "b2": 0.1 * jax.random.normal(ks[9], (out_ch,), jnp.float32),
        "g2": 1.0 + 0.1 * jax.random.normal(ks[10], (out_ch,), jnp.float32),
        "beta2": 0.1 * jax.random.normal(ks[11], (out_ch,), jnp.float32),
        "m2": 0.1 * jax.random.normal(ks[12], (out_ch,), jnp.float32),
        "v2": 0.9 + 0.1 * jnp.abs(jax.random.normal(ks[13], (out_ch,), jnp.float32)),
    }

    out = upconv_forward(x1, x2, p)
    out = jax.block_until_ready(out)
    assert out.shape == (N, out_ch, H2, W2)

    ref = upconv_reference(x1, x2, p)
    assert jnp.allclose(out, ref, atol=1e-4, rtol=1e-4), \
        float(jnp.max(jnp.abs(out - ref)))
    print("KERNEL_OK")
</pallas_src>

<mosaic_0001>
module attributes {stable_mosaic.version = 11 : i64} {
  func.func @kernel(%arg0: i32, %arg1: memref<1x18x18x4xf32, #tpu.memory_space<vmem>>, %arg2: memref<1x18x18x4xf32, #tpu.memory_space<vmem>>, %arg3: memref<9x4x4xf32, #tpu.memory_space<vmem>>, %arg4: memref<9x4x4xf32, #tpu.memory_space<vmem>>, %arg5: memref<1x4xf32, #tpu.memory_space<vmem>>, %arg6: memref<1x4xf32, #tpu.memory_space<vmem>>, %arg7: memref<9x4x4xf32, #tpu.memory_space<vmem>>, %arg8: memref<1x4xf32, #tpu.memory_space<vmem>>, %arg9: memref<1x4xf32, #tpu.memory_space<vmem>>, %arg10: memref<1x16x16x4xf32, #tpu.memory_space<vmem>>, %arg11: memref<18x18x4xf32, #tpu.memory_space<vmem>>) attributes {dimension_semantics = [#tpu.dimension_semantics<parallel>], iteration_bounds = array<i64: 2>, scalar_prefetch = 0 : i64, scratch_operands = 1 : i64, tpu.core_type = #tpu.core_type<tc>, window_params = [{transform_indices = @transform_0, window_bounds = array<i64: 1, 18, 18, 4>}, {transform_indices = @transform_1, window_bounds = array<i64: 1, 18, 18, 4>}, {pipeline_mode = #tpu.pipeline_mode<synchronous>, transform_indices = @transform_2, window_bounds = array<i64: 9, 4, 4>}, {pipeline_mode = #tpu.pipeline_mode<synchronous>, transform_indices = @transform_3, window_bounds = array<i64: 9, 4, 4>}, {pipeline_mode = #tpu.pipeline_mode<synchronous>, transform_indices = @transform_4, window_bounds = array<i64: 1, 4>}, {pipeline_mode = #tpu.pipeline_mode<synchronous>, transform_indices = @transform_5, window_bounds = array<i64: 1, 4>}, {pipeline_mode = #tpu.pipeline_mode<synchronous>, transform_indices = @transform_6, window_bounds = array<i64: 9, 4, 4>}, {pipeline_mode = #tpu.pipeline_mode<synchronous>, transform_indices = @transform_7, window_bounds = array<i64: 1, 4>}, {pipeline_mode = #tpu.pipeline_mode<synchronous>, transform_indices = @transform_8, window_bounds = array<i64: 1, 4>}, {transform_indices = @transform_9, window_bounds = array<i64: 1, 16, 16, 4>}]} {
    %cst = arith.constant 0.000000e+00 : f32
    %0 = vector.broadcast %cst : f32 to vector<256x4xf32>
    %c0 = arith.constant 0 : index
    %c0_0 = arith.constant 0 : index
    %c0_1 = arith.constant 0 : index
    %c0_2 = arith.constant 0 : index
    %1 = vector.load %arg1[%c0, %c0_0, %c0_1, %c0_2] : memref<1x18x18x4xf32, #tpu.memory_space<vmem>>, vector<1x18x18x4xf32>
    %2 = vector.shape_cast %1 : vector<1x18x18x4xf32> to vector<18x18x4xf32>
    %3 = vector.extract_strided_slice %2 {offsets = [0, 0, 0], sizes = [16, 16, 4], strides = [1, 1, 1]} : vector<18x18x4xf32> to vector<16x16x4xf32>
    %4 = vector.shape_cast %3 : vector<16x16x4xf32> to vector<256x4xf32>
    %c0_3 = arith.constant 0 : index
    %c0_4 = arith.constant 0 : index
    %c0_5 = arith.constant 0 : index
    %5 = vector.load %arg3[%c0_3, %c0_4, %c0_5] : memref<9x4x4xf32, #tpu.memory_space<vmem>>, vector<1x4x4xf32>
    %6 = vector.shape_cast %5 : vector<1x4x4xf32> to vector<4x4xf32>
    %cst_6 = arith.constant dense<0.000000e+00> : vector<256x4xf32>
    %7 = tpu.matmul %4, %6, %cst_6 {dimension_numbers = #tpu.dot_dimension_numbers<[1], [0], [0], [1], [0, 0, 1, 1], [], []>} : vector<256x4xf32>, vector<4x4xf32>, vector<256x4xf32> -> vector<256x4xf32>
    %8 = arith.addf %0, %7 : vector<256x4xf32>
    %9 = vector.extract_strided_slice %2 {offsets = [0, 1, 0], sizes = [16, 16, 4], strides = [1, 1, 1]} : vector<18x18x4xf32> to vector<16x16x4xf32>
    %10 = vector.shape_cast %9 : vector<16x16x4xf32> to vector<256x4xf32>
    %c1 = arith.constant 1 : index
    %c0_7 = arith.constant 0 : index
    %c0_8 = arith.constant 0 : index
    %11 = vector.load %arg3[%c1, %c0_7, %c0_8] : memref<9x4x4xf32, #tpu.memory_space<vmem>>, vector<1x4x4xf32>
    %12 = vector.shape_cast %11 : vector<1x4x4xf32> to vector<4x4xf32>
    %cst_9 = arith.constant dense<0.000000e+00> : vector<256x4xf32>
    %13 = tpu.matmul %10, %12, %cst_9 {dimension_numbers = #tpu.dot_dimension_numbers<[1], [0], [0], [1], [0, 0, 1, 1], [], []>} : vector<256x4xf32>, vector<4x4xf32>, vector<256x4xf32> -> vector<256x4xf32>
    %14 = arith.addf %8, %13 : vector<256x4xf32>
    %15 = vector.extract_strided_slice %2 {offsets = [0, 2, 0], sizes = [16, 16, 4], strides = [1, 1, 1]} : vector<18x18x4xf32> to vector<16x16x4xf32>
    %16 = vector.shape_cast %15 : vector<16x16x4xf32> to vector<256x4xf32>
    %c2 = arith.constant 2 : index
    %c0_10 = arith.constant 0 : index
    %c0_11 = arith.constant 0 : index
    %17 = vector.load %arg3[%c2, %c0_10, %c0_11] : memref<9x4x4xf32, #tpu.memory_space<vmem>>, vector<1x4x4xf32>
    %18 = vector.shape_cast %17 : vector<1x4x4xf32> to vector<4x4xf32>
    %cst_12 = arith.constant dense<0.000000e+00> : vector<256x4xf32>
    %19 = tpu.matmul %16, %18, %cst_12 {dimension_numbers = #tpu.dot_dimension_numbers<[1], [0], [0], [1], [0, 0, 1, 1], [], []>} : vector<256x4xf32>, vector<4x4xf32>, vector<256x4xf32> -> vector<256x4xf32>
    %20 = arith.addf %14, %19 : vector<256x4xf32>
    %21 = vector.extract_strided_slice %2 {offsets = [1, 0, 0], sizes = [16, 16, 4], strides = [1, 1, 1]} : vector<18x18x4xf32> to vector<16x16x4xf32>
    %22 = vector.shape_cast %21 : vector<16x16x4xf32> to vector<256x4xf32>
    %c3 = arith.constant 3 : index
    %c0_13 = arith.constant 0 : index
    %c0_14 = arith.constant 0 : index
    %23 = vector.load %arg3[%c3, %c0_13, %c0_14] : memref<9x4x4xf32, #tpu.memory_space<vmem>>, vector<1x4x4xf32>
    %24 = vector.shape_cast %23 : vector<1x4x4xf32> to vector<4x4xf32>
    %cst_15 = arith.constant dense<0.000000e+00> : vector<256x4xf32>
    %25 = tpu.matmul %22, %24, %cst_15 {dimension_numbers = #tpu.dot_dimension_numbers<[1], [0], [0], [1], [0, 0, 1, 1], [], []>} : vector<256x4xf32>, vector<4x4xf32>, vector<256x4xf32> -> vector<256x4xf32>
    %26 = arith.addf %20, %25 : vector<256x4xf32>
    %27 = vector.extract_strided_slice %2 {offsets = [1, 1, 0], sizes = [16, 16, 4], strides = [1, 1, 1]} : vector<18x18x4xf32> to vector<16x16x4xf32>
    %28 = vector.shape_cast %27 : vector<16x16x4xf32> to vector<256x4xf32>
    %c4 = arith.constant 4 : index
    %c0_16 = arith.constant 0 : index
    %c0_17 = arith.constant 0 : index
    %29 = vector.load %arg3[%c4, %c0_16, %c0_17] : memref<9x4x4xf32, #tpu.memory_space<vmem>>, vector<1x4x4xf32>
    %30 = vector.shape_cast %29 : vector<1x4x4xf32> to vector<4x4xf32>
    %cst_18 = arith.constant dense<0.000000e+00> : vector<256x4xf32>
    %31 = tpu.matmul %28, %30, %cst_18 {dimension_numbers = #tpu.dot_dimension_numbers<[1], [0], [0], [1], [0, 0, 1, 1], [], []>} : vector<256x4xf32>, vector<4x4xf32>, vector<256x4xf32> -> vector<256x4xf32>
    %32 = arith.addf %26, %31 : vector<256x4xf32>
    %33 = vector.extract_strided_slice %2 {offsets = [1, 2, 0], sizes = [16, 16, 4], strides = [1, 1, 1]} : vector<18x18x4xf32> to vector<16x16x4xf32>
    %34 = vector.shape_cast %33 : vector<16x16x4xf32> to vector<256x4xf32>
    %c5 = arith.constant 5 : index
    %c0_19 = arith.constant 0 : index
    %c0_20 = arith.constant 0 : index
    %35 = vector.load %arg3[%c5, %c0_19, %c0_20] : memref<9x4x4xf32, #tpu.memory_space<vmem>>, vector<1x4x4xf32>
    %36 = vector.shape_cast %35 : vector<1x4x4xf32> to vector<4x4xf32>
    %cst_21 = arith.constant dense<0.000000e+00> : vector<256x4xf32>
    %37 = tpu.matmul %34, %36, %cst_21 {dimension_numbers = #tpu.dot_dimension_numbers<[1], [0], [0], [1], [0, 0, 1, 1], [], []>} : vector<256x4xf32>, vector<4x4xf32>, vector<256x4xf32> -> vector<256x4xf32>
    %38 = arith.addf %32, %37 : vector<256x4xf32>
    %39 = vector.extract_strided_slice %2 {offsets = [2, 0, 0], sizes = [16, 16, 4], strides = [1, 1, 1]} : vector<18x18x4xf32> to vector<16x16x4xf32>
    %40 = vector.shape_cast %39 : vector<16x16x4xf32> to vector<256x4xf32>
    %c6 = arith.constant 6 : index
    %c0_22 = arith.constant 0 : index
    %c0_23 = arith.constant 0 : index
    %41 = vector.load %arg3[%c6, %c0_22, %c0_23] : memref<9x4x4xf32, #tpu.memory_space<vmem>>, vector<1x4x4xf32>
    %42 = vector.shape_cast %41 : vector<1x4x4xf32> to vector<4x4xf32>
    %cst_24 = arith.constant dense<0.000000e+00> : vector<256x4xf32>
    %43 = tpu.matmul %40, %42, %cst_24 {dimension_numbers = #tpu.dot_dimension_numbers<[1], [0], [0], [1], [0, 0, 1, 1], [], []>} : vector<256x4xf32>, vector<4x4xf32>, vector<256x4xf32> -> vector<256x4xf32>
    %44 = arith.addf %38, %43 : vector<256x4xf32>
    %45 = vector.extract_strided_slice %2 {offsets = [2, 1, 0], sizes = [16, 16, 4], strides = [1, 1, 1]} : vector<18x18x4xf32> to vector<16x16x4xf32>
    %46 = vector.shape_cast %45 : vector<16x16x4xf32> to vector<256x4xf32>
    %c7 = arith.constant 7 : index
    %c0_25 = arith.constant 0 : index
    %c0_26 = arith.constant 0 : index
    %47 = vector.load %arg3[%c7, %c0_25, %c0_26] : memref<9x4x4xf32, #tpu.memory_space<vmem>>, vector<1x4x4xf32>
    %48 = vector.shape_cast %47 : vector<1x4x4xf32> to vector<4x4xf32>
    %cst_27 = arith.constant dense<0.000000e+00> : vector<256x4xf32>
    %49 = tpu.matmul %46, %48, %cst_27 {dimension_numbers = #tpu.dot_dimension_numbers<[1], [0], [0], [1], [0, 0, 1, 1], [], []>} : vector<256x4xf32>, vector<4x4xf32>, vector<256x4xf32> -> vector<256x4xf32>
    %50 = arith.addf %44, %49 : vector<256x4xf32>
    %51 = vector.extract_strided_slice %2 {offsets = [2, 2, 0], sizes = [16, 16, 4], strides = [1, 1, 1]} : vector<18x18x4xf32> to vector<16x16x4xf32>
    %52 = vector.shape_cast %51 : vector<16x16x4xf32> to vector<256x4xf32>
    %c8 = arith.constant 8 : index
    %c0_28 = arith.constant 0 : index
    %c0_29 = arith.constant 0 : index
    %53 = vector.load %arg3[%c8, %c0_28, %c0_29] : memref<9x4x4xf32, #tpu.memory_space<vmem>>, vector<1x4x4xf32>
    %54 = vector.shape_cast %53 : vector<1x4x4xf32> to vector<4x4xf32>
    %cst_30 = arith.constant dense<0.000000e+00> : vector<256x4xf32>
    %55 = tpu.matmul %52, %54, %cst_30 {dimension_numbers = #tpu.dot_dimension_numbers<[1], [0], [0], [1], [0, 0, 1, 1], [], []>} : vector<256x4xf32>, vector<4x4xf32>, vector<256x4xf32> -> vector<256x4xf32>
    %56 = arith.addf %50, %55 : vector<256x4xf32>
    %c0_31 = arith.constant 0 : index
    %c0_32 = arith.constant 0 : index
    %c0_33 = arith.constant 0 : index
    %c0_34 = arith.constant 0 : index
    %57 = vector.load %arg2[%c0_31, %c0_32, %c0_33, %c0_34] : memref<1x18x18x4xf32, #tpu.memory_space<vmem>>, vector<1x18x18x4xf32>
    %58 = vector.shape_cast %57 : vector<1x18x18x4xf32> to vector<18x18x4xf32>
    %59 = vector.extract_strided_slice %58 {offsets = [0, 0, 0], sizes = [16, 16, 4], strides = [1, 1, 1]} : vector<18x18x4xf32> to vector<16x16x4xf32>
    %60 = vector.shape_cast %59 : vector<16x16x4xf32> to vector<256x4xf32>
    %c0_35 = arith.constant 0 : index
    %c0_36 = arith.constant 0 : index
    %c0_37 = arith.constant 0 : index
    %61 = vector.load %arg4[%c0_35, %c0_36, %c0_37] : memref<9x4x4xf32, #tpu.memory_space<vmem>>, vector<1x4x4xf32>
    %62 = vector.shape_cast %61 : vector<1x4x4xf32> to vector<4x4xf32>
    %cst_38 = arith.constant dense<0.000000e+00> : vector<256x4xf32>
    %63 = tpu.matmul %60, %62, %cst_38 {dimension_numbers = #tpu.dot_dimension_numbers<[1], [0], [0], [1], [0, 0, 1, 1], [], []>} : vector<256x4xf32>, vector<4x4xf32>, vector<256x4xf32> -> vector<256x4xf32>
    %64 = arith.addf %56, %63 : vector<256x4xf32>
    %65 = vector.extract_strided_slice %58 {offsets = [0, 1, 0], sizes = [16, 16, 4], strides = [1, 1, 1]} : vector<18x18x4xf32> to vector<16x16x4xf32>
    %66 = vector.shape_cast %65 : vector<16x16x4xf32> to vector<256x4xf32>
    %c1_39 = arith.constant 1 : index
    %c0_40 = arith.constant 0 : index
    %c0_41 = arith.constant 0 : index
    %67 = vector.load %arg4[%c1_39, %c0_40, %c0_41] : memref<9x4x4xf32, #tpu.memory_space<vmem>>, vector<1x4x4xf32>
    %68 = vector.shape_cast %67 : vector<1x4x4xf32> to vector<4x4xf32>
    %cst_42 = arith.constant dense<0.000000e+00> : vector<256x4xf32>
    %69 = tpu.matmul %66, %68, %cst_42 {dimension_numbers = #tpu.dot_dimension_numbers<[1], [0], [0], [1], [0, 0, 1, 1], [], []>} : vector<256x4xf32>, vector<4x4xf32>, vector<256x4xf32> -> vector<256x4xf32>
    %70 = arith.addf %64, %69 : vector<256x4xf32>
    %71 = vector.extract_strided_slice %58 {offsets = [0, 2, 0], sizes = [16, 16, 4], strides = [1, 1, 1]} : vector<18x18x4xf32> to vector<16x16x4xf32>
    %72 = vector.shape_cast %71 : vector<16x16x4xf32> to vector<256x4xf32>
    %c2_43 = arith.constant 2 : index
    %c0_44 = arith.constant 0 : index
    %c0_45 = arith.constant 0 : index
    %73 = vector.load %arg4[%c2_43, %c0_44, %c0_45] : memref<9x4x4xf32, #tpu.memory_space<vmem>>, vector<1x4x4xf32>
    %74 = vector.shape_cast %73 : vector<1x4x4xf32> to vector<4x4xf32>
    %cst_46 = arith.constant dense<0.000000e+00> : vector<256x4xf32>
    %75 = tpu.matmul %72, %74, %cst_46 {dimension_numbers = #tpu.dot_dimension_numbers<[1], [0], [0], [1], [0, 0, 1, 1], [], []>} : vector<256x4xf32>, vector<4x4xf32>, vector<256x4xf32> -> vector<256x4xf32>
    %76 = arith.addf %70, %75 : vector<256x4xf32>
    %77 = vector.extract_strided_slice %58 {offsets = [1, 0, 0], sizes = [16, 16, 4], strides = [1, 1, 1]} : vector<18x18x4xf32> to vector<16x16x4xf32>
    %78 = vector.shape_cast %77 : vector<16x16x4xf32> to vector<256x4xf32>
    %c3_47 = arith.constant 3 : index
    %c0_48 = arith.constant 0 : index
    %c0_49 = arith.constant 0 : index
    %79 = vector.load %arg4[%c3_47, %c0_48, %c0_49] : memref<9x4x4xf32, #tpu.memory_space<vmem>>, vector<1x4x4xf32>
    %80 = vector.shape_cast %79 : vector<1x4x4xf32> to vector<4x4xf32>
    %cst_50 = arith.constant dense<0.000000e+00> : vector<256x4xf32>
    %81 = tpu.matmul %78, %80, %cst_50 {dimension_numbers = #tpu.dot_dimension_numbers<[1], [0], [0], [1], [0, 0, 1, 1], [], []>} : vector<256x4xf32>, vector<4x4xf32>, vector<256x4xf32> -> vector<256x4xf32>
    %82 = arith.addf %76, %81 : vector<256x4xf32>
    %83 = vector.extract_strided_slice %58 {offsets = [1, 1, 0], sizes = [16, 16, 4], strides = [1, 1, 1]} : vector<18x18x4xf32> to vector<16x16x4xf32>
    %84 = vector.shape_cast %83 : vector<16x16x4xf32> to vector<256x4xf32>
    %c4_51 = arith.constant 4 : index
    %c0_52 = arith.constant 0 : index
    %c0_53 = arith.constant 0 : index
    %85 = vector.load %arg4[%c4_51, %c0_52, %c0_53] : memref<9x4x4xf32, #tpu.memory_space<vmem>>, vector<1x4x4xf32>
    %86 = vector.shape_cast %85 : vector<1x4x4xf32> to vector<4x4xf32>
    %cst_54 = arith.constant dense<0.000000e+00> : vector<256x4xf32>
    %87 = tpu.matmul %84, %86, %cst_54 {dimension_numbers = #tpu.dot_dimension_numbers<[1], [0], [0], [1], [0, 0, 1, 1], [], []>} : vector<256x4xf32>, vector<4x4xf32>, vector<256x4xf32> -> vector<256x4xf32>
    %88 = arith.addf %82, %87 : vector<256x4xf32>
    %89 = vector.extract_strided_slice %58 {offsets = [1, 2, 0], sizes = [16, 16, 4], strides = [1, 1, 1]} : vector<18x18x4xf32> to vector<16x16x4xf32>
    %90 = vector.shape_cast %89 : vector<16x16x4xf32> to vector<256x4xf32>
    %c5_55 = arith.constant 5 : index
    %c0_56 = arith.constant 0 : index
    %c0_57 = arith.constant 0 : index
    %91 = vector.load %arg4[%c5_55, %c0_56, %c0_57] : memref<9x4x4xf32, #tpu.memory_space<vmem>>, vector<1x4x4xf32>
    %92 = vector.shape_cast %91 : vector<1x4x4xf32> to vector<4x4xf32>
    %cst_58 = arith.constant dense<0.000000e+00> : vector<256x4xf32>
    %93 = tpu.matmul %90, %92, %cst_58 {dimension_numbers = #tpu.dot_dimension_numbers<[1], [0], [0], [1], [0, 0, 1, 1], [], []>} : vector<256x4xf32>, vector<4x4xf32>, vector<256x4xf32> -> vector<256x4xf32>
    %94 = arith.addf %88, %93 : vector<256x4xf32>
    %95 = vector.extract_strided_slice %58 {offsets = [2, 0, 0], sizes = [16, 16, 4], strides = [1, 1, 1]} : vector<18x18x4xf32> to vector<16x16x4xf32>
    %96 = vector.shape_cast %95 : vector<16x16x4xf32> to vector<256x4xf32>
    %c6_59 = arith.constant 6 : index
    %c0_60 = arith.constant 0 : index
    %c0_61 = arith.constant 0 : index
    %97 = vector.load %arg4[%c6_59, %c0_60, %c0_61] : memref<9x4x4xf32, #tpu.memory_space<vmem>>, vector<1x4x4xf32>
    %98 = vector.shape_cast %97 : vector<1x4x4xf32> to vector<4x4xf32>
    %cst_62 = arith.constant dense<0.000000e+00> : vector<256x4xf32>
    %99 = tpu.matmul %96, %98, %cst_62 {dimension_numbers = #tpu.dot_dimension_numbers<[1], [0], [0], [1], [0, 0, 1, 1], [], []>} : vector<256x4xf32>, vector<4x4xf32>, vector<256x4xf32> -> vector<256x4xf32>
    %100 = arith.addf %94, %99 : vector<256x4xf32>
    %101 = vector.extract_strided_slice %58 {offsets = [2, 1, 0], sizes = [16, 16, 4], strides = [1, 1, 1]} : vector<18x18x4xf32> to vector<16x16x4xf32>
    %102 = vector.shape_cast %101 : vector<16x16x4xf32> to vector<256x4xf32>
    %c7_63 = arith.constant 7 : index
    %c0_64 = arith.constant 0 : index
    %c0_65 = arith.constant 0 : index
    %103 = vector.load %arg4[%c7_63, %c0_64, %c0_65] : memref<9x4x4xf32, #tpu.memory_space<vmem>>, vector<1x4x4xf32>
    %104 = vector.shape_cast %103 : vector<1x4x4xf32> to vector<4x4xf32>
    %cst_66 = arith.constant dense<0.000000e+00> : vector<256x4xf32>
    %105 = tpu.matmul %102, %104, %cst_66 {dimension_numbers = #tpu.dot_dimension_numbers<[1], [0], [0], [1], [0, 0, 1, 1], [], []>} : vector<256x4xf32>, vector<4x4xf32>, vector<256x4xf32> -> vector<256x4xf32>
    %106 = arith.addf %100, %105 : vector<256x4xf32>
    %107 = vector.extract_strided_slice %58 {offsets = [2, 2, 0], sizes = [16, 16, 4], strides = [1, 1, 1]} : vector<18x18x4xf32> to vector<16x16x4xf32>
    %108 = vector.shape_cast %107 : vector<16x16x4xf32> to vector<256x4xf32>
    %c8_67 = arith.constant 8 : index
    %c0_68 = arith.constant 0 : index
    %c0_69 = arith.constant 0 : index
    %109 = vector.load %arg4[%c8_67, %c0_68, %c0_69] : memref<9x4x4xf32, #tpu.memory_space<vmem>>, vector<1x4x4xf32>
    %110 = vector.shape_cast %109 : vector<1x4x4xf32> to vector<4x4xf32>
    %cst_70 = arith.constant dense<0.000000e+00> : vector<256x4xf32>
    %111 = tpu.matmul %108, %110, %cst_70 {dimension_numbers = #tpu.dot_dimension_numbers<[1], [0], [0], [1], [0, 0, 1, 1], [], []>} : vector<256x4xf32>, vector<4x4xf32>, vector<256x4xf32> -> vector<256x4xf32>
    %112 = arith.addf %106, %111 : vector<256x4xf32>
    %c0_71 = arith.constant 0 : index
    %c0_72 = arith.constant 0 : index
    %113 = vector.load %arg5[%c0_71, %c0_72] : memref<1x4xf32, #tpu.memory_space<vmem>>, vector<1x4xf32>
    %114 = vector.broadcast %113 : vector<1x4xf32> to vector<256x4xf32>
    %115 = arith.mulf %112, %114 : vector<256x4xf32>
    %c0_73 = arith.constant 0 : index
    %c0_74 = arith.constant 0 : index
    %116 = vector.load %arg6[%c0_73, %c0_74] : memref<1x4xf32, #tpu.memory_space<vmem>>, vector<1x4xf32>
    %117 = vector.broadcast %116 : vector<1x4xf32> to vector<256x4xf32>
    %118 = arith.addf %115, %117 : vector<256x4xf32>
    %cst_75 = arith.constant 0.000000e+00 : f32
    %119 = vector.broadcast %cst_75 : f32 to vector<256x4xf32>
    %120 = arith.maximumf %118, %119 : vector<256x4xf32>
    %cst_76 = arith.constant 0.000000e+00 : f32
    %121 = vector.broadcast %cst_76 : f32 to vector<18x18x4xf32>
    %c0_77 = arith.constant 0 : index
    %c0_78 = arith.constant 0 : index
    %c0_79 = arith.constant 0 : index
    %122 = vector.load %arg11[%c0_77, %c0_78, %c0_79] : memref<18x18x4xf32, #tpu.memory_space<vmem>>, vector<18x18x4xf32>
    tpu.vector_store %arg11[%c0_77, %c0_78, %c0_79], %121 {strides = array<i32>} : memref<18x18x4xf32, #tpu.memory_space<vmem>>, vector<18x18x4xf32>,
    %123 = vector.shape_cast %120 : vector<256x4xf32> to vector<16x16x4xf32>
    %c1_80 = arith.constant 1 : index
    %c1_81 = arith.constant 1 : index
    %c0_82 = arith.constant 0 : index
    %124 = vector.load %arg11[%c1_80, %c1_81, %c0_82] : memref<18x18x4xf32, #tpu.memory_space<vmem>>, vector<16x16x4xf32>
    tpu.vector_store %arg11[%c1_80, %c1_81, %c0_82], %123 {strides = array<i32>} : memref<18x18x4xf32, #tpu.memory_space<vmem>>, vector<16x16x4xf32>,
    %cst_83 = arith.constant 0.000000e+00 : f32
    %125 = vector.broadcast %cst_83 : f32 to vector<256x4xf32>
    %c0_84 = arith.constant 0 : index
    %c0_85 = arith.constant 0 : index
    %c0_86 = arith.constant 0 : index
    %126 = vector.load %arg11[%c0_84, %c0_85, %c0_86] : memref<18x18x4xf32, #tpu.memory_space<vmem>>, vector<16x16x4xf32>
    %127 = vector.shape_cast %126 : vector<16x16x4xf32> to vector<256x4xf32>
    %c0_87 = arith.constant 0 : index
    %c0_88 = arith.constant 0 : index
    %c0_89 = arith.constant 0 : index
    %128 = vector.load %arg7[%c0_87, %c0_88, %c0_89] : memref<9x4x4xf32, #tpu.memory_space<vmem>>, vector<1x4x4xf32>
    %129 = vector.shape_cast %128 : vector<1x4x4xf32> to vector<4x4xf32>
    %cst_90 = arith.constant dense<0.000000e+00> : vector<256x4xf32>
    %130 = tpu.matmul %127, %129, %cst_90 {dimension_numbers = #tpu.dot_dimension_numbers<[1], [0], [0], [1], [0, 0, 1, 1], [], []>} : vector<256x4xf32>, vector<4x4xf32>, vector<256x4xf32> -> vector<256x4xf32>
    %131 = arith.addf %125, %130 : vector<256x4xf32>
    %c0_91 = arith.constant 0 : index
    %c1_92 = arith.constant 1 : index
    %c0_93 = arith.constant 0 : index
    %132 = vector.load %arg11[%c0_91, %c1_92, %c0_93] : memref<18x18x4xf32, #tpu.memory_space<vmem>>, vector<16x16x4xf32>
    %133 = vector.shape_cast %132 : vector<16x16x4xf32> to vector<256x4xf32>
    %c1_94 = arith.constant 1 : index
    %c0_95 = arith.constant 0 : index
    %c0_96 = arith.constant 0 : index
    %134 = vector.load %arg7[%c1_94, %c0_95, %c0_96] : memref<9x4x4xf32, #tpu.memory_space<vmem>>, vector<1x4x4xf32>
    %135 = vector.shape_cast %134 : vector<1x4x4xf32> to vector<4x4xf32>
    %cst_97 = arith.constant dense<0.000000e+00> : vector<256x4xf32>
    %136 = tpu.matmul %133, %135, %cst_97 {dimension_numbers = #tpu.dot_dimension_numbers<[1], [0], [0], [1], [0, 0, 1, 1], [], []>} : vector<256x4xf32>, vector<4x4xf32>, vector<256x4xf32> -> vector<256x4xf32>
    %137 = arith.addf %131, %136 : vector<256x4xf32>
    %c0_98 = arith.constant 0 : index
    %c2_99 = arith.constant 2 : index
    %c0_100 = arith.constant 0 : index
    %138 = vector.load %arg11[%c0_98, %c2_99, %c0_100] : memref<18x18x4xf32, #tpu.memory_space<vmem>>, vector<16x16x4xf32>
    %139 = vector.shape_cast %138 : vector<16x16x4xf32> to vector<256x4xf32>
    %c2_101 = arith.constant 2 : index
    %c0_102 = arith.constant 0 : index
    %c0_103 = arith.constant 0 : index
    %140 = vector.load %arg7[%c2_101, %c0_102, %c0_103] : memref<9x4x4xf32, #tpu.memory_space<vmem>>, vector<1x4x4xf32>
    %141 = vector.shape_cast %140 : vector<1x4x4xf32> to vector<4x4xf32>
    %cst_104 = arith.constant dense<0.000000e+00> : vector<256x4xf32>
    %142 = tpu.matmul %139, %141, %cst_104 {dimension_numbers = #tpu.dot_dimension_numbers<[1], [0], [0], [1], [0, 0, 1, 1], [], []>} : vector<256x4xf32>, vector<4x4xf32>, vector<256x4xf32> -> vector<256x4xf32>
    %143 = arith.addf %137, %142 : vector<256x4xf32>
    %c1_105 = arith.constant 1 : index
    %c0_106 = arith.constant 0 : index
    %c0_107 = arith.constant 0 : index
    %144 = vector.load %arg11[%c1_105, %c0_106, %c0_107] : memref<18x18x4xf32, #tpu.memory_space<vmem>>, vector<16x16x4xf32>
    %145 = vector.shape_cast %144 : vector<16x16x4xf32> to vector<256x4xf32>
    %c3_108 = arith.constant 3 : index
    %c0_109 = arith.constant 0 : index
    %c0_110 = arith.constant 0 : index
    %146 = vector.load %arg7[%c3_108, %c0_109, %c0_110] : memref<9x4x4xf32, #tpu.memory_space<vmem>>, vector<1x4x4xf32>
    %147 = vector.shape_cast %146 : vector<1x4x4xf32> to vector<4x4xf32>
    %cst_111 = arith.constant dense<0.000000e+00> : vector<256x4xf32>
    %148 = tpu.matmul %145, %147, %cst_111 {dimension_numbers = #tpu.dot_dimension_numbers<[1], [0], [0], [1], [0, 0, 1, 1], [], []>} : vector<256x4xf32>, vector<4x4xf32>, vector<256x4xf32> -> vector<256x4xf32>
    %149 = arith.addf %143, %148 : vector<256x4xf32>
    %c1_112 = arith.constant 1 : index
    %c1_113 = arith.constant 1 : index
    %c0_114 = arith.constant 0 : index
    %150 = vector.load %arg11[%c1_112, %c1_113, %c0_114] : memref<18x18x4xf32, #tpu.memory_space<vmem>>, vector<16x16x4xf32>
    %151 = vector.shape_cast %150 : vector<16x16x4xf32> to vector<256x4xf32>
    %c4_115 = arith.constant 4 : index
    %c0_116 = arith.constant 0 : index
    %c0_117 = arith.constant 0 : index
    %152 = vector.load %arg7[%c4_115, %c0_116, %c0_117] : memref<9x4x4xf32, #tpu.memory_space<vmem>>, vector<1x4x4xf32>
    %153 = vector.shape_cast %152 : vector<1x4x4xf32> to vector<4x4xf32>
    %cst_118 = arith.constant dense<0.000000e+00> : vector<256x4xf32>
    %154 = tpu.matmul %151, %153, %cst_118 {dimension_numbers = #tpu.dot_dimension_numbers<[1], [0], [0], [1], [0, 0, 1, 1], [], []>} : vector<256x4xf32>, vector<4x4xf32>, vector<256x4xf32> -> vector<256x4xf32>
    %155 = arith.addf %149, %154 : vector<256x4xf32>
    %c1_119 = arith.constant 1 : index
    %c2_120 = arith.constant 2 : index
    %c0_121 = arith.constant 0 : index
    %156 = vector.load %arg11[%c1_119, %c2_120, %c0_121] : memref<18x18x4xf32, #tpu.memory_space<vmem>>, vector<16x16x4xf32>
    %157 = vector.shape_cast %156 : vector<16x16x4xf32> to vector<256x4xf32>
    %c5_122 = arith.constant 5 : index
    %c0_123 = arith.constant 0 : index
    %c0_124 = arith.constant 0 : index
    %158 = vector.load %arg7[%c5_122, %c0_123, %c0_124] : memref<9x4x4xf32, #tpu.memory_space<vmem>>, vector<1x4x4xf32>
    %159 = vector.shape_cast %158 : vector<1x4x4xf32> to vector<4x4xf32>
    %cst_125 = arith.constant dense<0.000000e+00> : vector<256x4xf32>
    %160 = tpu.matmul %157, %159, %cst_125 {dimension_numbers = #tpu.dot_dimension_numbers<[1], [0], [0], [1], [0, 0, 1, 1], [], []>} : vector<256x4xf32>, vector<4x4xf32>, vector<256x4xf32> -> vector<256x4xf32>
    %161 = arith.addf %155, %160 : vector<256x4xf32>
    %c2_126 = arith.constant 2 : index
    %c0_127 = arith.constant 0 : index
    %c0_128 = arith.constant 0 : index
    %162 = vector.load %arg11[%c2_126, %c0_127, %c0_128] : memref<18x18x4xf32, #tpu.memory_space<vmem>>, vector<16x16x4xf32>
    %163 = vector.shape_cast %162 : vector<16x16x4xf32> to vector<256x4xf32>
    %c6_129 = arith.constant 6 : index
    %c0_130 = arith.constant 0 : index
    %c0_131 = arith.constant 0 : index
    %164 = vector.load %arg7[%c6_129, %c0_130, %c0_131] : memref<9x4x4xf32, #tpu.memory_space<vmem>>, vector<1x4x4xf32>
    %165 = vector.shape_cast %164 : vector<1x4x4xf32> to vector<4x4xf32>
    %cst_132 = arith.constant dense<0.000000e+00> : vector<256x4xf32>
    %166 = tpu.matmul %163, %165, %cst_132 {dimension_numbers = #tpu.dot_dimension_numbers<[1], [0], [0], [1], [0, 0, 1, 1], [], []>} : vector<256x4xf32>, vector<4x4xf32>, vector<256x4xf32> -> vector<256x4xf32>
    %167 = arith.addf %161, %166 : vector<256x4xf32>
    %c2_133 = arith.constant 2 : index
    %c1_134 = arith.constant 1 : index
    %c0_135 = arith.constant 0 : index
    %168 = vector.load %arg11[%c2_133, %c1_134, %c0_135] : memref<18x18x4xf32, #tpu.memory_space<vmem>>, vector<16x16x4xf32>
    %169 = vector.shape_cast %168 : vector<16x16x4xf32> to vector<256x4xf32>
    %c7_136 = arith.constant 7 : index
    %c0_137 = arith.constant 0 : index
    %c0_138 = arith.constant 0 : index
    %170 = vector.load %arg7[%c7_136, %c0_137, %c0_138] : memref<9x4x4xf32, #tpu.memory_space<vmem>>, vector<1x4x4xf32>
    %171 = vector.shape_cast %170 : vector<1x4x4xf32> to vector<4x4xf32>
    %cst_139 = arith.constant dense<0.000000e+00> : vector<256x4xf32>
    %172 = tpu.matmul %169, %171, %cst_139 {dimension_numbers = #tpu.dot_dimension_numbers<[1], [0], [0], [1], [0, 0, 1, 1], [], []>} : vector<256x4xf32>, vector<4x4xf32>, vector<256x4xf32> -> vector<256x4xf32>
    %173 = arith.addf %167, %172 : vector<256x4xf32>
    %c2_140 = arith.constant 2 : index
    %c2_141 = arith.constant 2 : index
    %c0_142 = arith.constant 0 : index
    %174 = vector.load %arg11[%c2_140, %c2_141, %c0_142] : memref<18x18x4xf32, #tpu.memory_space<vmem>>, vector<16x16x4xf32>
    %175 = vector.shape_cast %174 : vector<16x16x4xf32> to vector<256x4xf32>
    %c8_143 = arith.constant 8 : index
    %c0_144 = arith.constant 0 : index
    %c0_145 = arith.constant 0 : index
    %176 = vector.load %arg7[%c8_143, %c0_144, %c0_145] : memref<9x4x4xf32, #tpu.memory_space<vmem>>, vector<1x4x4xf32>
    %177 = vector.shape_cast %176 : vector<1x4x4xf32> to vector<4x4xf32>
    %cst_146 = arith.constant dense<0.000000e+00> : vector<256x4xf32>
    %178 = tpu.matmul %175, %177, %cst_146 {dimension_numbers = #tpu.dot_dimension_numbers<[1], [0], [0], [1], [0, 0, 1, 1], [], []>} : vector<256x4xf32>, vector<4x4xf32>, vector<256x4xf32> -> vector<256x4xf32>
    %179 = arith.addf %173, %178 : vector<256x4xf32>
    %c0_147 = arith.constant 0 : index
    %c0_148 = arith.constant 0 : index
    %180 = vector.load %arg8[%c0_147, %c0_148] : memref<1x4xf32, #tpu.memory_space<vmem>>, vector<1x4xf32>
    %181 = vector.broadcast %180 : vector<1x4xf32> to vector<256x4xf32>
    %182 = arith.mulf %179, %181 : vector<256x4xf32>
    %c0_149 = arith.constant 0 : index
    %c0_150 = arith.constant 0 : index
    %183 = vector.load %arg9[%c0_149, %c0_150] : memref<1x4xf32, #tpu.memory_space<vmem>>, vector<1x4xf32>
    %184 = vector.broadcast %183 : vector<1x4xf32> to vector<256x4xf32>
    %185 = arith.addf %182, %184 : vector<256x4xf32>
    %cst_151 = arith.constant 0.000000e+00 : f32
    %186 = vector.broadcast %cst_151 : f32 to vector<256x4xf32>
    %187 = arith.maximumf %185, %186 : vector<256x4xf32>
    %188 = vector.shape_cast %187 : vector<256x4xf32> to vector<1x16x16x4xf32>
    %c0_152 = arith.constant 0 : index
    %c0_153 = arith.constant 0 : index
    %c0_154 = arith.constant 0 : index
    %c0_155 = arith.constant 0 : index
    %189 = vector.load %arg10[%c0_152, %c0_153, %c0_154, %c0_155] : memref<1x16x16x4xf32, #tpu.memory_space<vmem>>, vector<1x16x16x4xf32>
    tpu.vector_store %arg10[%c0_152, %c0_153, %c0_154, %c0_155], %188 {strides = array<i32>} : memref<1x16x16x4xf32, #tpu.memory_space<vmem>>, vector<1x16x16x4xf32>,
    return
  }
  func.func @transform_0(%arg0: i32) -> (i32, i32, i32, i32) {
    %c0_i32 = arith.constant 0 : i32
    %c0_i32_0 = arith.constant 0 : i32
    %c0_i32_1 = arith.constant 0 : i32
    %c0_i32_2 = arith.constant 0 : i32
    return %arg0, %c0_i32, %c0_i32_0, %c0_i32_1 : i32, i32, i32, i32
  }
  func.func @transform_1(%arg0: i32) -> (i32, i32, i32, i32) {
    %c0_i32 = arith.constant 0 : i32
    %c0_i32_0 = arith.constant 0 : i32
    %c0_i32_1 = arith.constant 0 : i32
    %c0_i32_2 = arith.constant 0 : i32
    return %arg0, %c0_i32, %c0_i32_0, %c0_i32_1 : i32, i32, i32, i32
  }
  func.func @transform_2(%arg0: i32) -> (i32, i32, i32) {
    %c0_i32 = arith.constant 0 : i32
    %c0_i32_0 = arith.constant 0 : i32
    %c0_i32_1 = arith.constant 0 : i32
    %c0_i32_2 = arith.constant 0 : i32
    return %c0_i32, %c0_i32_0, %c0_i32_1 : i32, i32, i32
  }
  func.func @transform_3(%arg0: i32) -> (i32, i32, i32) {
    %c0_i32 = arith.constant 0 : i32
    %c0_i32_0 = arith.constant 0 : i32
    %c0_i32_1 = arith.constant 0 : i32
    %c0_i32_2 = arith.constant 0 : i32
    return %c0_i32, %c0_i32_0, %c0_i32_1 : i32, i32, i32
  }
  func.func @transform_4(%arg0: i32) -> (i32, i32) {
    %c0_i32 = arith.constant 0 : i32
    %c0_i32_0 = arith.constant 0 : i32
    %c0_i32_1 = arith.constant 0 : i32
    return %c0_i32, %c0_i32_0 : i32, i32
  }
  func.func @transform_5(%arg0: i32) -> (i32, i32) {
    %c0_i32 = arith.constant 0 : i32
    %c0_i32_0 = arith.constant 0 : i32
    %c0_i32_1 = arith.constant 0 : i32
    return %c0_i32, %c0_i32_0 : i32, i32
  }
  func.func @transform_6(%arg0: i32) -> (i32, i32, i32) {
    %c0_i32 = arith.constant 0 : i32
    %c0_i32_0 = arith.constant 0 : i32
    %c0_i32_1 = arith.constant 0 : i32
    %c0_i32_2 = arith.constant 0 : i32
    return %c0_i32, %c0_i32_0, %c0_i32_1 : i32, i32, i32
  }
  func.func @transform_7(%arg0: i32) -> (i32, i32) {
    %c0_i32 = arith.constant 0 : i32
    %c0_i32_0 = arith.constant 0 : i32
    %c0_i32_1 = arith.constant 0 : i32
    return %c0_i32, %c0_i32_0 : i32, i32
  }
  func.func @transform_8(%arg0: i32) -> (i32, i32) {
    %c0_i32 = arith.constant 0 : i32
    %c0_i32_0 = arith.constant 0 : i32
    %c0_i32_1 = arith.constant 0 : i32
    return %c0_i32, %c0_i32_0 : i32, i32
  }
  func.func @transform_9(%arg0: i32) -> (i32, i32, i32, i32) {
    %c0_i32 = arith.constant 0 : i32
    %c0_i32_0 = arith.constant 0 : i32
    %c0_i32_1 = arith.constant 0 : i32
    %c0_i32_2 = arith.constant 0 : i32
    return %arg0, %c0_i32, %c0_i32_0, %c0_i32_1 : i32, i32, i32, i32
  }
}

</mosaic_0001>

<bundles_post_ra>
// kernel: tpu_custom_call.1
= control target key start
LH: loop header
LB: loop body
LE: loop exit
PB: predicated region body
PF: predicated region fallthrough
CT: control target
= control target key end

     0   :  { %s7878_s30 = smov 0   ;;  %s11922_s0 = inlined_call_operand.vmem [shape: f32[2,18,18,4], index: 0, kind: input, shape index: {}]   ;;  %s11923_s1 = inlined_call_operand.vmem [shape: f32[2,18,18,4], index: 1, kind: input, shape index: {}]   ;;  %s11924_s2 = inlined_call_operand.vmem [shape: f32[9,4,4], index: 2, kind: input, shape index: {}]   ;;  %s11925_s3 = inlined_call_operand.vmem [shape: f32[9,4,4], index: 3, kind: input, shape index: {}]   ;;  %s11926_s4 = inlined_call_operand.vmem [shape: f32[1,4], index: 4, kind: input, shape index: {}]   ;;  %s11927_s5 = inlined_call_operand.vmem [shape: f32[1,4], index: 5, kind: input, shape index: {}]   ;;  %s11928_s6 = inlined_call_operand.vmem [shape: f32[9,4,4], index: 6, kind: input, shape index: {}]   ;;  %s11929_s7 = inlined_call_operand.vmem [shape: f32[1,4], index: 7, kind: input, shape index: {}]   ;;  %s11930_s8 = inlined_call_operand.vmem [shape: f32[1,4], index: 8, kind: input, shape index: {}]   ;;  %s11931_s9 = inlined_call_operand.vmem [shape: f32[2,16,16,4], index: 9, kind: output, shape index: {}]  }
   0x1 LB: > { %s6832_s10 = sadd.s32 4294967295, %s7825_s30   ;;  %p6836_p0 = scmp.ge.s32.totalorder %s7825_s30, 1  ;;  %s7825_s30 = sphi %s7878_s30, %s19_s30  }
   0x2   : > { %p297_p1 = scmp.lt.s32.totalorder %s7825_s30, 3 }
   0x4   : > { %p298_p2 = pnand %p6836_p0, %p297_p1 }
   0x6   : > { %301 = sbr.rel (%p298_p2) target bundleno = 2020 (0x7e4), region = 56 }
   0xb   : > { %v407_v0 = vld [vmem:[%s11924_s2] sm:$0xf]  ;;  %vm604_vm0 = vcmask 1043456   ;;  %p338_p3 = scmp.lt.s32.totalorder %s6832_s10, 1  ;;  %v6841_v1 = vld [vmem:[%s11924_s2 + $0x4] sm:$0xf] }
   0xc   : > { %6875 = vmatpush.msk.msra.mxu1 %vm604_vm0, %v407_v0  ;;  %v6908_v2 = vld [vmem:[%s11924_s2 + $0x8] sm:$0xf]  ;;  %6842 = vmatpush.msk.msra.mxu0 %vm604_vm0, %v6841_v1  ;;  %v6976_v3 = vld [vmem:[%s11924_s2 + $0x10] sm:$0xf]  ;;  %v7010_v4 = vld [vmem:[%s11924_s2 + $0x14] sm:$0xf] }
   0xd   : > { %s12658_s10 = smov (!%p338_p3, %s6832_s10), 1  ;;  %7759 = vmatpush.msk.msra.mxu3 %vm604_vm0, %v6841_v1  ;;  %6909 = vmatpush.msk.msra.mxu2 %vm604_vm0, %v6908_v2  ;;  %vm539_vm1 = vcmask 31744   ;;  %vm456_vm2 = vcmask 1046528   ;;  %vm901_vm3 = vcmask 1045504   ;;  %vm4105_vm4 = vcmask 25600  }
   0xe   : > { %s7762_s21 = smul.u32 432, %s12658_s10  ;;  %6977 = vmatpush.msk.msrb.mxu0 %vm604_vm0, %v6976_v3  ;;  %7011 = vmatpush.msk.msrb.mxu1 %vm604_vm0, %v7010_v4  ;;  %s7758_s29 = sshll.u32 %s12658_s10, 8 }
   0xf   : > { %7760 = vmatpush.msk.msrb.mxu3 %vm604_vm0, %v407_v0 }
  0x10   : > { %s7916_s24 = scalar_lea.vmem %s11922_s0, %s7762_s21  ;;  %s8926_s28 = scalar_lea.vmem %s11923_s1, %s7762_s21 }
  0x11   : > { %v353_v5 = vld [vmem:[%s7916_s24] sm:$0xff]  ;;  %v354_v6 = vld [vmem:[%s7916_s24 + $0x8] sm:$0xff]  ;;  %v355_v15 = vld [vmem:[%s7916_s24 + $0x10] sm:$0x3] }
  0x12   : > { %v7921_v7 = vld [vmem:[%s7916_s24 + $0x120] sm:$0xff]  ;;  %v457_v8 = vrot.slane %v353_v5, 1  ;;  %6876 = vmatmul.msk.f32.vlgmr.msra.gmra.mxu1 %vm539_vm1, %v353_v5  ;;  %v902_v9 = vrot.slane %v353_v5, 2  ;;  %v458_v10 = vrot.slane %v354_v6, 1  ;;  %v7925_v11 = vld [vmem:[%s7916_s24 + $0x128] sm:$0xff]  ;;  %v903_v14 = vrot.slane %v354_v6, 2 }
  0x13   : > { %v517_v12 = vrot.slane %v7921_v7, 1  ;;  %v518_v13 = vrot.slane %v7925_v11, 1  ;;  %v7932_v17 = vld [vmem:[%s7916_s24 + $0x130] sm:$0x3]  ;;  %v460_v20 = vrot.slane %v355_v15, 1  ;;  %v905_v22 = vrot.slane %v355_v15, 2 }
  0x14   : > { %v459_v16 = vsel %vm456_vm2, %v457_v8, %v458_v10  ;;  %v904_v19 = vsel %vm901_vm3, %v902_v9, %v903_v14  ;;  %v520_v21 = vrot.slane %v7932_v17, 1  ;;  %v7951_v26 = vld [vmem:[%s7916_s24 + $0x18] sm:$0xff]  ;;  %v7954_v27 = vld [vmem:[%s7916_s24 + $0x20] sm:$0xff]  ;;  %v358_v39 = vld [vmem:[%s7916_s24 + $0x28] sm:$0x3] }
  0x15   : > { %6843 = vmatmul.msk.f32.vlgmr.msra.gmra.mxu0 %vm539_vm1, %v459_v16  ;;  %v7936_v18 = vsel %vm456_vm2, %v517_v12, %v518_v13  ;;  %6910 = vmatmul.msk.f32.vlgmr.msra.gmra.mxu2 %vm539_vm1, %v904_v19  ;;  %v461_v23 = vsel %vm456_vm2, %v458_v10, %v460_v20  ;;  %v906_v25 = vsel %vm901_vm3, %v903_v14, %v905_v22  ;;  %v7957_v28 = vld [vmem:[%s7916_s24 + $0x138] sm:$0xff]  ;;  %v7960_v29 = vld [vmem:[%s7916_s24 + $0x140] sm:$0xff]  ;;  %v462_v30 = vrot.slane %v7951_v26, 1  ;;  %v7985_v40 = vld [vmem:[%s7916_s24 + $0x148] sm:$0x3] }
  0x16   : > { %12150 = vst [vmem:[#allocation3_spill] sm:$0xff] %v7936_v18  ;;  %6867 = vmatmul.msk.f32.vlgmr.msra.gmra.mxu3 %vm539_vm1, %v7936_v18  ;;  %v7947_v24 = vsel %vm456_vm2, %v518_v13, %v520_v21  ;;  %v463_v31 = vrot.slane %v7954_v27, 1  ;;  %v522_v32 = vrot.slane %v7957_v28, 1  ;;  %v523_v33 = vrot.slane %v7960_v29, 1  ;;  %v8006_v47 = vld [vmem:[%s7916_s24 + $0x30] sm:$0xff]  ;;  %v8009_v48 = vld [vmem:[%s7916_s24 + $0x38] sm:$0xff] }
  0x17   : > { %7761 = vmatpush.msk.msra.mxu3 %vm604_vm0, %v6908_v2  ;;  %12151 = vst [vmem:[#allocation4_spill] sm:$0xff] %v7947_v24  ;;  %v907_v34 = vrot.slane %v7951_v26, 2  ;;  %v908_v35 = vrot.slane %v7954_v27, 2  ;;  %v465_v41 = vrot.slane %v358_v39, 1  ;;  %v525_v42 = vrot.slane %v7985_v40, 1  ;;  %v8012_v49 = vld [vmem:[%s7916_s24 + $0x150] sm:$0xff] }
  0x18   : > { %v7975_v36 = vsel %vm456_vm2, %v462_v30, %v463_v31  ;;  %v7978_v37 = vsel %vm456_vm2, %v522_v32, %v523_v33  ;;  %v910_v43 = vrot.slane %v358_v39, 2  ;;  %v8015_v50 = vld [vmem:[%s7916_s24 + $0x158] sm:$0xff]  ;;  %v467_v51 = vrot.slane %v8006_v47, 1  ;;  %v361_v60 = vld [vmem:[%s7916_s24 + $0x40] sm:$0x3]  ;;  %v8063_v4 = vld [vmem:[%s7916_s24 + $0x48] sm:$0xff] }
  0x19   : > { %12152 = vst [vmem:[#allocation5_spill] sm:$0xff] %v7978_v37  ;;  %v7981_v38 = vsel %vm901_vm3, %v907_v34, %v908_v35  ;;  %v7997_v44 = vsel %vm456_vm2, %v463_v31, %v465_v41  ;;  %v8000_v45 = vsel %vm456_vm2, %v523_v33, %v525_v42  ;;  %v468_v52 = vrot.slane %v8009_v48, 1  ;;  %v8042_v61 = vld [vmem:[%s7916_s24 + $0x160] sm:$0x3]  ;;  %v8066_v5 = vld [vmem:[%s7916_s24 + $0x50] sm:$0xff] }
  0x1a   : > { %6877 = vmatmul.msk.f32.gmra.mxu1 %vm539_vm1, %v354_v6  ;;  %12153 = vst [vmem:[#allocation6_spill] sm:$0xff] %v8000_v45  ;;  %v8003_v46 = vsel %vm901_vm3, %v908_v35, %v910_v43  ;;  %v527_v53 = vrot.slane %v8012_v49, 1  ;;  %v528_v54 = vrot.slane %v8015_v50, 1  ;;  %v912_v55 = vrot.slane %v8006_v47, 2  ;;  %v8069_v6 = vld [vmem:[%s7916_s24 + $0x168] sm:$0xff]  ;;  %v8072_v8 = vld [vmem:[%s7916_s24 + $0x170] sm:$0xff] }
  0x1b   : > { %v913_v56 = vrot.slane %v8009_v48, 2  ;;  %v8032_v57 = vsel %vm456_vm2, %v467_v51, %v468_v52  ;;  %v470_v62 = vrot.slane %v361_v60, 1  ;;  %v530_v63 = vrot.slane %v8042_v61, 1  ;;  %v364_v21 = vld [vmem:[%s7916_s24 + $0x58] sm:$0x3]  ;;  %v8120_v34 = vld [vmem:[%s7916_s24 + $0x60] sm:$0xff] }
  0x1c   : > { %v8035_v58 = vsel %vm456_vm2, %v527_v53, %v528_v54  ;;  %v915_v0 = vrot.slane %v361_v60, 2  ;;  %v472_v9 = vrot.slane %v8063_v4, 1  ;;  %v473_v10 = vrot.slane %v8066_v5, 1  ;;  %v8099_v22 = vld [vmem:[%s7916_s24 + $0x178] sm:$0x3]  ;;  %v8123_v35 = vld [vmem:[%s7916_s24 + $0x68] sm:$0xff] }
  0x1d   : > { %6844 = vmatmul.msk.f32.gmra.mxu0 %vm539_vm1, %v461_v23  ;;  %6911 = vmatmul.msk.f32.gmra.mxu2 %vm539_vm1, %v906_v25  ;;  %12154 = vst [vmem:[#allocation7_spill] sm:$0xff] %v8035_v58  ;;  %v8038_v59 = vsel %vm901_vm3, %v912_v55, %v913_v56  ;;  %v8054_v1 = vsel %vm456_vm2, %v468_v52, %v470_v62  ;;  %v532_v12 = vrot.slane %v8069_v6, 1  ;;  %v533_v13 = vrot.slane %v8072_v8, 1  ;;  %v367_v53 = vld [vmem:[%s7916_s24 + $0x70] sm:$0x3]  ;;  %v8159_v62 = vld [vmem:[%s7916_s24 + $0x78] sm:$0xff] }
  0x1e   : > { %6868 = vmatmul.msk.f32.gmra.mxu3 %vm539_vm1, %v7947_v24  ;;  %v8057_v2 = vsel %vm456_vm2, %v528_v54, %v530_v63  ;;  %v8060_v3 = vsel %vm901_vm3, %v913_v56, %v915_v0  ;;  %v917_v14 = vrot.slane %v8063_v4, 2  ;;  %v918_v15 = vrot.slane %v8066_v5, 2  ;;  %v8162_v63 = vld [vmem:[%s7916_s24 + $0x80] sm:$0xff] }
  0x1f   : > { %12155 = vst [vmem:[#allocation8_spill] sm:$0xff] %v8057_v2  ;;  %v8089_v16 = vsel %vm456_vm2, %v472_v9, %v473_v10  ;;  %v8092_v19 = vsel %vm456_vm2, %v532_v12, %v533_v13  ;;  %v475_v23 = vrot.slane %v364_v21, 1  ;;  %v535_v25 = vrot.slane %v8099_v22, 1 }
  0x20   : > { %12156 = vst [vmem:[#allocation9_spill] sm:$0xff] %v8092_v19  ;;  %v8095_v20 = vsel %vm901_vm3, %v917_v14, %v918_v15  ;;  %v920_v30 = vrot.slane %v364_v21, 2  ;;  %v477_v39 = vrot.slane %v8120_v34, 1  ;;  %v478_v41 = vrot.slane %v8123_v35, 1 }
  0x21   : > { %v8111_v31 = vsel %vm456_vm2, %v473_v10, %v475_v23  ;;  %v8114_v32 = vsel %vm456_vm2, %v533_v13, %v535_v25  ;;  %v922_v42 = vrot.slane %v8120_v34, 2  ;;  %v923_v43 = vrot.slane %v8123_v35, 2 }
  0x22   : > { %6878 = vmatmul.msk.f32.gmra.mxu1 %vm539_vm1, %v7951_v26  ;;  %12157 = vst [vmem:[#allocation10_spill] sm:$0xff] %v8114_v32  ;;  %v8117_v33 = vsel %vm901_vm3, %v918_v15, %v920_v30  ;;  %v8138_v51 = vsel %vm456_vm2, %v477_v39, %v478_v41  ;;  %v480_v54 = vrot.slane %v367_v53, 1  ;;  %v925_v55 = vrot.slane %v367_v53, 2  ;;  %v370_v15 = vld [vmem:[%s7916_s24 + $0x88] sm:$0x3]  ;;  %v8198_v39 = vld [vmem:[%s7916_s24 + $0x90] sm:$0xff] }
  0x23   : > { %v8141_v52 = vsel %vm901_vm3, %v922_v42, %v923_v43  ;;  %v482_v0 = vrot.slane %v8159_v62, 1  ;;  %v483_v9 = vrot.slane %v8162_v63, 1  ;;  %v927_v10 = vrot.slane %v8159_v62, 2 }
  0x24   : > { %v8153_v56 = vsel %vm456_vm2, %v478_v41, %v480_v54  ;;  %v8156_v60 = vsel %vm901_vm3, %v923_v43, %v925_v55  ;;  %v928_v12 = vrot.slane %v8162_v63, 2  ;;  %v485_v21 = vrot.slane %v370_v15, 1  ;;  %v8201_v41 = vld [vmem:[%s7916_s24 + $0x98] sm:$0xff] }
  0x25   : > { %6845 = vmatmul.msk.f32.gmra.mxu0 %vm539_vm1, %v7975_v36  ;;  %6912 = vmatmul.msk.f32.gmra.mxu2 %vm539_vm1, %v7981_v38  ;;  %v8177_v13 = vsel %vm456_vm2, %v482_v0, %v483_v9  ;;  %v930_v23 = vrot.slane %v370_v15, 2  ;;  %v487_v42 = vrot.slane %v8198_v39, 1  ;;  %v488_v43 = vrot.slane %v8201_v41, 1 }
  0x26   : > { %6869 = vmatmul.msk.f32.gmra.mxu3 %vm539_vm1, %v7978_v37  ;;  %v8180_v14 = vsel %vm901_vm3, %v927_v10, %v928_v12  ;;  %v8192_v25 = vsel %vm456_vm2, %v483_v9, %v485_v21  ;;  %v932_v53 = vrot.slane %v8198_v39, 2  ;;  %v933_v54 = vrot.slane %v8201_v41, 2  ;;  %v373_v9 = vld [vmem:[%s7916_s24 + $0xa0] sm:$0x3] }
  0x27   : > { %v8195_v30 = vsel %vm901_vm3, %v928_v12, %v930_v23  ;;  %v8216_v55 = vsel %vm456_vm2, %v487_v42, %v488_v43  ;;  %v490_v10 = vrot.slane %v373_v9, 1  ;;  %v6942_v12 = vld [vmem:[%s11924_s2 + $0xc] sm:$0xf]  ;;  %v935_v15 = vrot.slane %v373_v9, 2 }
  0x28   : > { %v8219_v0 = vsel %vm901_vm3, %v932_v53, %v933_v54  ;;  %v8241_v42 = vld [vmem:[%s7916_s24 + $0xa8] sm:$0xff]  ;;  %v8244_v53 = vld [vmem:[%s7916_s24 + $0xb0] sm:$0xff] }
  0x29   : > { %v8235_v21 = vsel %vm456_vm2, %v488_v43, %v490_v10  ;;  %v8238_v23 = vsel %vm901_vm3, %v933_v54, %v935_v15  ;;  %12159 = vst [vmem:[#allocation12_spill] sm:$0xff] %v8244_v53  ;;  %v492_v43 = vrot.slane %v8241_v42, 1  ;;  %v493_v9 = vrot.slane %v8244_v53, 1  ;;  %v7044_v54 = vld [vmem:[%s11924_s2 + $0x18] sm:$0xf] }
  0x2a   : > { %6879 = vmatmul.msk.f32.gmra.mxu1 %vm539_vm1, %v7954_v27  ;;  %12158 = vst [vmem:[#allocation11_spill] sm:$0xff] %v8235_v21  ;;  %v937_v10 = vrot.slane %v8241_v42, 2  ;;  %7045 = vmatpush.msk.msrb.mxu2 %vm604_vm0, %v7044_v54 }
  0x2b   : > { %v8263_v15 = vsel %vm456_vm2, %v492_v43, %v493_v9 }
  0x2c   : > { %12160 = vst [vmem:[#allocation13_spill] sm:$0xff] %v8263_v15 }
  0x2d   : > { %6846 = vmatmul.msk.f32.gmra.mxu0 %vm539_vm1, %v7997_v44  ;;  %6913 = vmatmul.msk.f32.gmra.mxu2 %vm539_vm1, %v8003_v46 }
  0x2e   : > { %6870 = vmatmul.msk.f32.gmra.mxu3 %vm539_vm1, %v8000_v45  ;;  %v8287_v45 = vld [vmem:[%s7916_s24 + $0xc8] sm:$0xff] }
  0x2f   : > { %v943_v24 = vrot.slane %v8287_v45, 2 }
  0x32   : > { %6880 = vmatmul.msk.f32.gmra.mxu1 %vm539_vm1, %v8006_v47 }
  0x35   : > { %6847 = vmatmul.msk.f32.gmra.mxu0 %vm539_vm1, %v8032_v57  ;;  %6914 = vmatmul.msk.f32.gmra.mxu2 %vm539_vm1, %v8038_v59 }
  0x36   : > { %6871 = vmatmul.msk.f32.gmra.mxu3 %vm539_vm1, %v8035_v58  ;;  %v8284_v58 = vld [vmem:[%s7916_s24 + $0xc0] sm:$0xff] }
  0x37   : > { %12164 = vst [vmem:[#allocation17_spill] sm:$0xff] %v8284_v58  ;;  %v942_v37 = vrot.slane %v8284_v58, 2 }
  0x3a   : > { %6881 = vmatmul.msk.f32.gmra.mxu1 %vm539_vm1, %v8009_v48 }
  0x3d   : > { %6848 = vmatmul.msk.f32.gmra.mxu0 %vm539_vm1, %v8054_v1  ;;  %6915 = vmatmul.msk.f32.gmra.mxu2 %vm539_vm1, %v8060_v3 }
  0x3e   : > { %6872 = vmatmul.msk.f32.gmra.mxu3 %vm539_vm1, %v8057_v2 }
  0x42   : > { %6882 = vmatmul.msk.f32.gmra.mxu1 %vm539_vm1, %v8063_v4 }
  0x45   : > { %6849 = vmatmul.msk.f32.gmra.mxu0 %vm539_vm1, %v8089_v16  ;;  %6916 = vmatmul.msk.f32.gmra.mxu2 %vm539_vm1, %v8095_v20 }
  0x46   : > { %6873 = vmatmul.msk.f32.gmra.mxu3 %vm539_vm1, %v8092_v19  ;;  %v376_v19 = vld [vmem:[%s7916_s24 + $0xb8] sm:$0x3] }
  0x47   : > { %v495_v54 = vrot.slane %v376_v19, 1  ;;  %v940_v2 = vrot.slane %v376_v19, 2  ;;  %v497_v19 = vrot.slane %v8284_v58, 1 }
  0x49   : > { %v8278_v43 = vsel %vm456_vm2, %v493_v9, %v495_v54  ;;  %v498_v9 = vrot.slane %v8287_v45, 1  ;;  %v963_v54 = vrot.slane %v7925_v11, 2 }
  0x4a   : > { %6883 = vmatmul.msk.f32.gmra.mxu1 %vm539_vm1, %v8066_v5  ;;  %12162 = vst [vmem:[#allocation15_spill] sm:$0xff] %v8278_v43 }
  0x4d   : > { %6850 = vmatmul.msk.f32.gmra.mxu0 %vm539_vm1, %v8111_v31  ;;  %6917 = vmatmul.msk.f32.gmra.mxu2 %vm539_vm1, %v8117_v33 }
  0x4e   : > { %6874 = vmatmul.msk.f32.gmra.mxu3 %vm539_vm1, %v8114_v32 }
  0x52   : > { %6884 = vmatmul.msk.f32.gmra.mxu1 %vm539_vm1, %v8120_v34 }
  0x55   : > { %6851 = vmatmul.msk.f32.gmra.mxu0 %vm539_vm1, %v8138_v51  ;;  %6918 = vmatmul.msk.f32.gmra.mxu2 %vm539_vm1, %v8141_v52 }
  0x56   : > { %6900 = vmatmul.msk.f32.vlgmr.msrb.gmra.mxu3 %vm539_vm1, %v7921_v7 }
  0x57   : > { %6943 = vmatpush.msk.msrb.mxu3 %vm604_vm0, %v6942_v12  ;;  %v938_v12 = vrot.slane %v8244_v53, 2 }
  0x59   : > { %v8266_v32 = vsel %vm901_vm3, %v937_v10, %v938_v12  ;;  %v8281_v10 = vsel %vm901_vm3, %v938_v12, %v940_v2  ;;  %v962_v12 = vrot.slane %v7921_v7, 2  ;;  %v379_v7 = vld [vmem:[%s7916_s24 + $0xd0] sm:$0x3] }
  0x5a   : > { %6885 = vmatmul.msk.f32.gmra.mxu1 %vm539_vm1, %v8123_v35  ;;  %12161 = vst [vmem:[#allocation14_spill] sm:$0xff] %v8266_v32 }
  0x5b   : > { %12163 = vst [vmem:[#allocation16_spill] sm:$0xff] %v8281_v10 }
  0x5d   : > { %6852 = vmatmul.msk.f32.gmra.mxu0 %vm539_vm1, %v8153_v56  ;;  %6919 = vmatmul.msk.f32.gmra.mxu2 %vm539_vm1, %v8156_v60 }
  0x5e   : > { %6901 = vmatmul.msk.f32.gmra.mxu3 %vm539_vm1, %v7925_v11 }
  0x62   : > { %6886 = vmatmul.msk.f32.gmra.mxu1 %vm539_vm1, %v8159_v62 }
  0x65   : > { %6853 = vmatmul.msk.f32.gmra.mxu0 %vm539_vm1, %v8177_v13  ;;  %6920 = vmatmul.msk.f32.gmra.mxu2 %vm539_vm1, %v8180_v14 }
  0x66   : > { %6902 = vmatmul.msk.f32.gmra.mxu3 %vm539_vm1, %v7957_v28 }
  0x6a   : > { %6887 = vmatmul.msk.f32.gmra.mxu1 %vm539_vm1, %v8162_v63 }
  0x6d   : > { %6854 = vmatmul.msk.f32.gmra.mxu0 %vm539_vm1, %v8192_v25  ;;  %6921 = vmatmul.msk.f32.gmra.mxu2 %vm539_vm1, %v8195_v30 }
  0x6e   : > { %6903 = vmatmul.msk.f32.gmra.mxu3 %vm539_vm1, %v7960_v29 }
  0x72   : > { %6888 = vmatmul.msk.f32.gmra.mxu1 %vm539_vm1, %v8198_v39 }
  0x75   : > { %6855 = vmatmul.msk.f32.gmra.mxu0 %vm539_vm1, %v8216_v55  ;;  %6922 = vmatmul.msk.f32.gmra.mxu2 %vm539_vm1, %v8219_v0 }
  0x76   : > { %6904 = vmatmul.msk.f32.gmra.mxu3 %vm539_vm1, %v8012_v49 }
  0x7a   : > { %6889 = vmatmul.msk.f32.gmra.mxu1 %vm539_vm1, %v8201_v41 }
  0x7d   : > { %6856 = vmatmul.msk.f32.gmra.mxu0 %vm539_vm1, %v8235_v21  ;;  %6923 = vmatmul.msk.f32.gmra.mxu2 %vm539_vm1, %v8238_v23 }
  0x7e   : > { %6905 = vmatmul.msk.f32.gmra.mxu3 %vm539_vm1, %v8015_v50 }
  0x82   : > { %6890 = vmatmul.msk.f32.gmra.mxu1 %vm539_vm1, %v8241_v42 }
  0x85   : > { %6857 = vmatmul.msk.f32.gmra.mxu0 %vm539_vm1, %v8263_v15  ;;  %6924 = vmatmul.msk.f32.gmra.mxu2 %vm539_vm1, %v8266_v32  ;;  %v8310_v15 = vsel %vm901_vm3, %v942_v37, %v943_v24  ;;  %v945_v32 = vrot.slane %v379_v7, 2 }
  0x86   : > { %6906 = vmatmul.msk.f32.gmra.mxu3 %vm539_vm1, %v8069_v6  ;;  %12167 = vst [vmem:[#allocation20_spill] sm:$0xff] %v8310_v15 }
  0x8a   : > { %6891 = vmatmul.msk.f32.gmra.mxu1 %vm539_vm1, %v8244_v53 }
  0x8d   : > { %6858 = vmatmul.msk.f32.gmra.mxu0 %vm539_vm1, %v8278_v43  ;;  %6925 = vmatmul.msk.f32.gmra.mxu2 %vm539_vm1, %v8281_v10  ;;  %v8304_v43 = vsel %vm456_vm2, %v497_v19, %v498_v9  ;;  %v8307_v10 = vsel %vm901_vm3, %v962_v12, %v963_v54  ;;  %v500_v19 = vrot.slane %v379_v7, 1  ;;  %v965_v12 = vrot.slane %v7932_v17, 2  ;;  %v8336_v17 = vld [vmem:[%s7916_s24 + $0xd8] sm:$0xff]  ;;  %v8339_v7 = vld [vmem:[%s7916_s24 + $0xe0] sm:$0xff] }
  0x8e   : > { %6907 = vmatmul.msk.f32.gmra.mxu3 %vm539_vm1, %v8072_v8  ;;  %12165 = vst [vmem:[#allocation18_spill] sm:$0xff] %v8304_v43 }
  0x8f   : > { %v805_v2 = vpop.f32.mrf.mxu1  ;;  %12166 = vst [vmem:[#allocation19_spill] sm:$0xff] %v8307_v10 }
  0x90   : > { %12172 = vst [vmem:[#allocation25_spill] sm:$0xff] %v8336_v17 }
  0x92   : > { %v625_v18 = vpop.f32.mrf.mxu0  ;;  %6892 = vmatmul.msk.f32.gmra.mxu1 %vm539_vm1, %v8284_v58 }
  0x93   : > { %v806_v11 = vadd.f32 %v805_v2, %v625_v18  ;;  %v8327_v2 = vsel %vm456_vm2, %v498_v9, %v500_v19  ;;  %v967_v9 = vrot.slane %v7957_v28, 2 }
  0x94   : > { %12169 = vst [vmem:[#allocation22_spill] sm:$0xff] %v8327_v2 }
  0x95   : > { %6859 = vmatmul.msk.f32.gmra.mxu0 %vm539_vm1, %v8304_v43  ;;  %6926 = vmatmul.msk.f32.gmra.mxu2 %vm539_vm1, %v8310_v15  ;;  %v8333_v43 = vsel %vm901_vm3, %v943_v24, %v945_v32  ;;  %v503_v24 = vrot.slane %v8339_v7, 1 }
  0x96   : > { %6934 = vmatmul.msk.f32.vlgmr.msra.gmra.mxu3 %vm539_vm1, %v8307_v10  ;;  %v8330_v10 = vsel %vm901_vm3, %v963_v54, %v965_v12  ;;  %12171 = vst [vmem:[#allocation24_spill] sm:$0xff] %v8333_v43  ;;  %v968_v54 = vrot.slane %v7960_v29, 2 }
  0x97   : > { %v808_v58 = vpop.f32.mrf.mxu1  ;;  %12170 = vst [vmem:[#allocation23_spill] sm:$0xff] %v8330_v10 }
  0x98   : > { %v1068_v53 = vpop.f32.mrf.mxu2  ;;  %v8363_v28 = vsel %vm901_vm3, %v967_v9, %v968_v54  ;;  %v970_v9 = vrot.slane %v7985_v40, 2  ;;  %v8392_v40 = vld [vmem:[%s7916_s24 + $0xf0] sm:$0xff] }
  0x99   : > { %v8320_v37 = vpop.f32.mrf.mxu3  ;;  %v8324_v18 = vadd.f32 %v1068_v53, %v806_v11  ;;  %v502_v53 = vrot.slane %v8336_v17, 1  ;;  %v947_v11 = vrot.slane %v8336_v17, 2  ;;  %12175 = vst [vmem:[#allocation28_spill] sm:$0xff] %v8363_v28 }
  0x9a   : > { %v628_v21 = vpop.f32.mrf.mxu0  ;;  %6893 = vmatmul.msk.f32.gmra.mxu1 %vm539_vm1, %v8287_v45  ;;  %12181 = vst [vmem:[#allocation34_spill] sm:$0xff] %v8392_v40 }
  0x9b   : > { %12168 = vst [vmem:[#allocation21_spill] sm:$0xff] %v8324_v18  ;;  %v809_v15 = vadd.f32 %v808_v58, %v628_v21  ;;  %v948_v58 = vrot.slane %v8339_v7, 2  ;;  %v8360_v18 = vsel %vm456_vm2, %v502_v53, %v503_v24 }
  0x9c   : > { %12174 = vst [vmem:[#allocation27_spill] sm:$0xff] %v8360_v18 }
  0x9d   : > { %6860 = vmatmul.msk.f32.gmra.mxu0 %vm539_vm1, %v8327_v2  ;;  %6927 = vmatmul.msk.f32.gmra.mxu2 %vm539_vm1, %v8333_v43  ;;  %v8366_v29 = vsel %vm901_vm3, %v947_v11, %v948_v58  ;;  %v382_v2 = vld [vmem:[%s7916_s24 + $0xe8] sm:$0x3] }
  0x9e   : > { %6935 = vmatmul.msk.f32.gmra.mxu3 %vm539_vm1, %v8330_v10  ;;  %12176 = vst [vmem:[#allocation29_spill] sm:$0xff] %v8366_v29 }
  0x9f   : > { %v811_v32 = vpop.f32.mrf.mxu1 }
  0xa0   : > { %v1071_v19 = vpop.f32.mrf.mxu2 }
  0xa1   : > { %v8353_v21 = vpop.f32.mrf.mxu3  ;;  %v8357_v10 = vadd.f32 %v1071_v19, %v809_v15  ;;  %v505_v15 = vrot.slane %v382_v2, 1  ;;  %v950_v19 = vrot.slane %v382_v2, 2  ;;  %v8395_v2 = vld [vmem:[%s7916_s24 + $0xf8] sm:$0xff] }
  0xa2   : > { %v631_v12 = vpop.f32.mrf.mxu0  ;;  %6894 = vmatmul.msk.f32.gmra.mxu1 %vm539_vm1, %v8336_v17 }
  0xa3   : > { %12173 = vst [vmem:[#allocation26_spill] sm:$0xff] %v8357_v10  ;;  %v812_v43 = vadd.f32 %v811_v32, %v631_v12  ;;  %v8383_v12 = vsel %vm456_vm2, %v503_v24, %v505_v15  ;;  %v952_v15 = vrot.slane %v8392_v40, 2 }
  0xa4   : > { %12178 = vst [vmem:[#allocation31_spill] sm:$0xff] %v8383_v12 }
  0xa5   : > { %6861 = vmatmul.msk.f32.gmra.mxu0 %vm539_vm1, %v8360_v18  ;;  %6928 = vmatmul.msk.f32.gmra.mxu2 %vm539_vm1, %v8366_v29  ;;  %v8389_v18 = vsel %vm901_vm3, %v948_v58, %v950_v19  ;;  %v973_v58 = vrot.slane %v8015_v50, 2 }
  0xa6   : > { %6936 = vmatmul.msk.f32.gmra.mxu3 %vm539_vm1, %v8363_v28  ;;  %v8386_v28 = vsel %vm901_vm3, %v968_v54, %v970_v9  ;;  %12180 = vst [vmem:[#allocation33_spill] sm:$0xff] %v8389_v18  ;;  %v972_v54 = vrot.slane %v8012_v49, 2 }
  0xa7   : > { %v814_v53 = vpop.f32.mrf.mxu1  ;;  %12179 = vst [vmem:[#allocation32_spill] sm:$0xff] %v8386_v28 }
  0xa8   : > { %v1074_v10 = vpop.f32.mrf.mxu2  ;;  %v8419_v49 = vsel %vm901_vm3, %v972_v54, %v973_v58 }
  0xa9   : > { %v8376_v11 = vpop.f32.mrf.mxu3  ;;  %v8380_v32 = vadd.f32 %v1074_v10, %v812_v43  ;;  %v507_v43 = vrot.slane %v8392_v40, 1  ;;  %v508_v10 = vrot.slane %v8395_v2, 1  ;;  %12184 = vst [vmem:[#allocation37_spill] sm:$0xff] %v8419_v49 }
  0xaa   : > { %v634_v17 = vpop.f32.mrf.mxu0  ;;  %6895 = vmatmul.msk.f32.gmra.mxu1 %vm539_vm1, %v8339_v7 }
  0xab   : > { %12177 = vst [vmem:[#allocation30_spill] sm:$0xff] %v8380_v32  ;;  %v815_v29 = vadd.f32 %v814_v53, %v634_v17  ;;  %v953_v17 = vrot.slane %v8395_v2, 2  ;;  %v8416_v32 = vsel %vm456_vm2, %v507_v43, %v508_v10  ;;  %v7078_v43 = vld [vmem:[%s11924_s2 + $0x1c] sm:$0xf] }
  0xac   : > { %12183 = vst [vmem:[#allocation36_spill] sm:$0xff] %v8416_v32  ;;  %7079 = vmatpush.msk.msra.mxu3 %vm604_vm0, %v7078_v43  ;;  %v8455_v43 = vld [vmem:[%s7916_s24 + $0x110] sm:$0xff] }
  0xad   : > { %6862 = vmatmul.msk.f32.gmra.mxu0 %vm539_vm1, %v8383_v12  ;;  %6929 = vmatmul.msk.f32.gmra.mxu2 %vm539_vm1, %v8389_v18  ;;  %v8422_v50 = vsel %vm901_vm3, %v952_v15, %v953_v17  ;;  %v385_v12 = vld [vmem:[%s7916_s24 + $0x100] sm:$0x3]  ;;  %v975_v15 = vrot.slane %v8042_v61, 2 }
  0xae   : > { %6937 = vmatmul.msk.f32.gmra.mxu3 %vm539_vm1, %v8386_v28  ;;  %12185 = vst [vmem:[#allocation38_spill] sm:$0xff] %v8422_v50 }
  0xaf   : > { %v817_v24 = vpop.f32.mrf.mxu1 }
  0xb0   : > { %v1077_v9 = vpop.f32.mrf.mxu2 }
  0xb1   : > { %v8409_v53 = vpop.f32.mrf.mxu3  ;;  %v8413_v28 = vadd.f32 %v1077_v9, %v815_v29  ;;  %v510_v29 = vrot.slane %v385_v12, 1  ;;  %v955_v9 = vrot.slane %v385_v12, 2  ;;  %v8452_v12 = vld [vmem:[%s7916_s24 + $0x108] sm:$0xff] }
  0xb2   : > { %v637_v19 = vpop.f32.mrf.mxu0  ;;  %6896 = vmatmul.msk.f32.gmra.mxu1 %vm539_vm1, %v8392_v40  ;;  %12190 = vst [vmem:[#allocation43_spill] sm:$0xff] %v8452_v12 }
  0xb3   : > { %12182 = vst [vmem:[#allocation35_spill] sm:$0xff] %v8413_v28  ;;  %v818_v18 = vadd.f32 %v817_v24, %v637_v19  ;;  %v8449_v61 = vsel %vm901_vm3, %v953_v17, %v955_v9  ;;  %v2200_v9 = vld [vmem:[%s11925_s3] sm:$0xf] }
  0xb4   : > { %12189 = vst [vmem:[#allocation42_spill] sm:$0xff] %v8449_v61  ;;  %7146 = vmatpush.msk.msra.mxu1 %vm604_vm0, %v2200_v9 }
  0xb5   : > { %6863 = vmatmul.msk.f32.gmra.mxu0 %vm539_vm1, %v8416_v32  ;;  %6930 = vmatmul.msk.f32.gmra.mxu2 %vm539_vm1, %v8422_v50  ;;  %v8443_v32 = vsel %vm456_vm2, %v508_v10, %v510_v29  ;;  %v8446_v50 = vsel %vm901_vm3, %v973_v58, %v975_v15  ;;  %v513_v10 = vrot.slane %v8455_v43, 1  ;;  %v7112_v58 = vld [vmem:[%s11924_s2 + $0x20] sm:$0xf]  ;;  %v977_v29 = vrot.slane %v8069_v6, 2 }
  0xb6   : > { %6938 = vmatmul.msk.f32.gmra.mxu3 %vm539_vm1, %v8419_v49  ;;  %12187 = vst [vmem:[#allocation40_spill] sm:$0xff] %v8443_v32  ;;  %v958_v15 = vrot.slane %v8455_v43, 2  ;;  %7113 = vmatpush.msk.msra.mxu0 %vm604_vm0, %v7112_v58 }
  0xb7   : > { %v820_v54 = vpop.f32.mrf.mxu1  ;;  %12188 = vst [vmem:[#allocation41_spill] sm:$0xff] %v8446_v50 }
  0xb8   : > { %v1080_v19 = vpop.f32.mrf.mxu2 }
  0xb9   : > { %v8436_v24 = vpop.f32.mrf.mxu3  ;;  %v8440_v28 = vadd.f32 %v1080_v19, %v818_v18  ;;  %v512_v18 = vrot.slane %v8452_v12, 1 }
  0xba   : > { %v640_v49 = vpop.f32.mrf.mxu0  ;;  %6897 = vmatmul.msk.f32.gmra.mxu1 %vm539_vm1, %v8395_v2 }
  0xbb   : > { %12186 = vst [vmem:[#allocation39_spill] sm:$0xff] %v8440_v28  ;;  %v821_v40 = vadd.f32 %v820_v54, %v640_v49  ;;  %v978_v49 = vrot.slane %v8072_v8, 2  ;;  %v957_v54 = vrot.slane %v8452_v12, 2  ;;  %v8484_v8 = vsel %vm456_vm2, %v512_v18, %v513_v10 }
  0xbc   : > { %12192 = vst [vmem:[#allocation45_spill] sm:$0xff] %v8484_v8  ;;  %v980_v18 = vrot.slane %v8099_v22, 2 }
  0xbd   : > { %6864 = vmatmul.msk.f32.gmra.mxu0 %vm539_vm1, %v8443_v32  ;;  %6931 = vmatmul.msk.f32.gmra.mxu2 %vm539_vm1, %v8449_v61  ;;  %v8487_v58 = vsel %vm901_vm3, %v977_v29, %v978_v49  ;;  %v8490_v32 = vsel %vm901_vm3, %v957_v54, %v958_v15  ;;  %v388_v61 = vld [vmem:[%s7916_s24 + $0x118] sm:$0x3] }
  0xbe   : > { %6939 = vmatmul.msk.f32.gmra.mxu3 %vm539_vm1, %v8446_v50  ;;  %12193 = vst [vmem:[#allocation46_spill] sm:$0xff] %v8487_v58  ;;  %v960_v29 = vrot.slane %v388_v61, 2 }
  0xbf   : > { %v823_v17 = vpop.f32.mrf.mxu1  ;;  %12194 = vst [vmem:[#allocation47_spill] sm:$0xff] %v8490_v32 }
  0xc0   : > { %v1083_v50 = vpop.f32.mrf.mxu2 }
  0xc1   : > { %v8477_v19 = vpop.f32.mrf.mxu3  ;;  %v8481_v6 = vadd.f32 %v1083_v50, %v821_v40  ;;  %v515_v40 = vrot.slane %v388_v61, 1 }
  0xc2   : > { %v643_v28 = vpop.f32.mrf.mxu0  ;;  %6898 = vmatmul.msk.f32.gmra.mxu1 %vm539_vm1, %v8452_v12 }
  0xc3   : > { %12191 = vst [vmem:[#allocation44_spill] sm:$0xff] %v8481_v6  ;;  %v824_v9 = vadd.f32 %v823_v17, %v643_v28  ;;  %v8507_v28 = vsel %vm456_vm2, %v513_v10, %v515_v40  ;;  %v8510_v17 = vsel %vm901_vm3, %v978_v49, %v980_v18 }
  0xc4   : > { %12195 = vst [vmem:[#allocation48_spill] sm:$0xff] %v8507_v28 }
  0xc5   : > { %6865 = vmatmul.msk.f32.gmra.mxu0 %vm539_vm1, %v8484_v8  ;;  %6932 = vmatmul.msk.f32.gmra.mxu2 %vm539_vm1, %v8490_v32  ;;  %12196 = vst [vmem:[#allocation49_spill] sm:$0xff] %v8510_v17 }
  0xc6   : > { %6940 = vmatmul.msk.f32.gmra.mxu3 %vm539_vm1, %v8487_v58  ;;  %v8513_v58 = vsel %vm901_vm3, %v958_v15, %v960_v29 }
  0xc7   : > { %v826_v50 = vpop.f32.mrf.mxu1 }
  0xc8   : > { %v1086_v54 = vpop.f32.mrf.mxu2 }
  0xc9   : > { %v8500_v6 = vpop.f32.mrf.mxu3  ;;  %v8504_v8 = vadd.f32 %v1086_v54, %v824_v9 }
  0xca   : > { %v646_v12 = vpop.f32.mrf.mxu0  ;;  %6899 = vmatmul.msk.f32.gmra.mxu1 %vm539_vm1, %v8455_v43 }
  0xcb   : > { %v827_v22 = vadd.f32 %v826_v50, %v646_v12 }
  0xcd   : > { %6866 = vmatmul.msk.f32.gmra.mxu0 %vm539_vm1, %v8507_v28  ;;  %6933 = vmatmul.msk.f32.gmra.mxu2 %vm539_vm1, %v8513_v58 }
  0xce   : > { %6941 = vmatmul.msk.f32.gmra.mxu3 %vm539_vm1, %v8510_v17 }
  0xcf   : > { %v829_v61 = vpop.f32.mrf.mxu1 }
  0xd0   : > { %v1089_v10 = vpop.f32.mrf.mxu2 }
  0xd1   : > { %v8521_v9 = vpop.f32.mrf.mxu3  ;;  %v8525_v49 = vadd.f32 %v1089_v10, %v827_v22 }
  0xd2   : > { %v649_v40 = vpop.f32.mrf.mxu0  ;;  %7012 = vmatmul.msk.f32.vlgmr.msrb.gmra.mxu1 %vm539_vm1, %v7981_v38 }
  0xd3   : > { %v830_v12 = vadd.f32 %v829_v61, %v649_v40 }
  0xd5   : > { %6978 = vmatmul.msk.f32.vlgmr.msrb.gmra.mxu0 %vm539_vm1, %v7975_v36  ;;  %7046 = vmatmul.msk.f32.vlgmr.msrb.gmra.mxu2 %vm539_vm1, %v8006_v47 }
  0xd6   : > { %6944 = vmatmul.msk.f32.vlgmr.msrb.gmra.mxu3 %vm539_vm1, %v7951_v26 }
  0xd7   : > { %v832_v15 = vpop.f32.mrf.mxu1 }
  0xd8   : > { %v1092_v18 = vpop.f32.mrf.mxu2 }
  0xd9   : > { %v877_v50 = vpop.f32.mrf.mxu3  ;;  %v8538_v38 = vadd.f32 %v1092_v18, %v830_v12 }
  0xda   : > { %v8534_v29 = vadd.f32 %v877_v50, %v8320_v37  ;;  %v652_v54 = vpop.f32.mrf.mxu0  ;;  %7013 = vmatmul.msk.f32.gmra.mxu1 %vm539_vm1, %v8003_v46 }
  0xdb   : > { %v833_v36 = vadd.f32 %v832_v15, %v652_v54 }
  0xdd   : > { %6979 = vmatmul.msk.f32.gmra.mxu0 %vm539_vm1, %v7997_v44  ;;  %7047 = vmatmul.msk.f32.gmra.mxu2 %vm539_vm1, %v8009_v48 }
  0xde   : > { %6945 = vmatmul.msk.f32.gmra.mxu3 %vm539_vm1, %v7954_v27 }
  0xdf   : > { %v835_v26 = vpop.f32.mrf.mxu1 }
  0xe0   : > { %v1095_v37 = vpop.f32.mrf.mxu2 }
  0xe1   : > { %v880_v22 = vpop.f32.mrf.mxu3  ;;  %v8551_v46 = vadd.f32 %v1095_v37, %v833_v36 }
  0xe2   : > { %v8547_v61 = vadd.f32 %v880_v22, %v8353_v21  ;;  %v655_v10 = vpop.f32.mrf.mxu0  ;;  %7014 = vmatmul.msk.f32.gmra.mxu1 %vm539_vm1, %v8038_v59 }
  0xe3   : > { %v836_v44 = vadd.f32 %v835_v26, %v655_v10 }
  0xe5   : > { %6980 = vmatmul.msk.f32.gmra.mxu0 %vm539_vm1, %v8032_v57  ;;  %7048 = vmatmul.msk.f32.gmra.mxu2 %vm539_vm1, %v8063_v4 }
  0xe6   : > { %6946 = vmatmul.msk.f32.gmra.mxu3 %vm539_vm1, %v8006_v47 }
  0xe7   : > { %v838_v27 = vpop.f32.mrf.mxu1 }
  0xe8   : > { %v1098_v21 = vpop.f32.mrf.mxu2 }
  0xe9   : > { %v883_v40 = vpop.f32.mrf.mxu3  ;;  %v8564_v50 = vadd.f32 %v1098_v21, %v836_v44 }
  0xea   : > { %v8560_v12 = vadd.f32 %v883_v40, %v8376_v11  ;;  %v658_v15 = vpop.f32.mrf.mxu0  ;;  %7015 = vmatmul.msk.f32.gmra.mxu1 %vm539_vm1, %v8060_v3 }
  0xeb   : > { %v839_v18 = vadd.f32 %v838_v27, %v658_v15 }
  0xed   : > { %6981 = vmatmul.msk.f32.gmra.mxu0 %vm539_vm1, %v8054_v1  ;;  %7049 = vmatmul.msk.f32.gmra.mxu2 %vm539_vm1, %v8066_v5 }
  0xee   : > { %6947 = vmatmul.msk.f32.gmra.mxu3 %vm539_vm1, %v8009_v48 }
  0xef   : > { %v841_v47 = vpop.f32.mrf.mxu1 }
  0xf0   : > { %v1101_v11 = vpop.f32.mrf.mxu2 }
  0xf1   : > { %v886_v54 = vpop.f32.mrf.mxu3  ;;  %v8577_v22 = vadd.f32 %v1101_v11, %v839_v18 }
  0xf2   : > { %v8573_v36 = vadd.f32 %v886_v54, %v8409_v53  ;;  %v661_v26 = vpop.f32.mrf.mxu0  ;;  %7016 = vmatmul.msk.f32.gmra.mxu1 %vm539_vm1, %v8095_v20 }
  0xf3   : > { %v842_v37 = vadd.f32 %v841_v47, %v661_v26 }
  0xf5   : > { %6982 = vmatmul.msk.f32.gmra.mxu0 %vm539_vm1, %v8089_v16  ;;  %7050 = vmatmul.msk.f32.gmra.mxu2 %vm539_vm1, %v8120_v34 }
  0xf6   : > { %6948 = vmatmul.msk.f32.gmra.mxu3 %vm539_vm1, %v8063_v4 }
  0xf7   : > { %v844_v48 = vpop.f32.mrf.mxu1 }
  0xf8   : > { %v1104_v53 = vpop.f32.mrf.mxu2 }
  0xf9   : > { %v889_v10 = vpop.f32.mrf.mxu3  ;;  %v8590_v40 = vadd.f32 %v1104_v53, %v842_v37 }
  0xfa   : > { %v8586_v44 = vadd.f32 %v889_v10, %v8436_v24  ;;  %v664_v27 = vpop.f32.mrf.mxu0  ;;  %7017 = vmatmul.msk.f32.gmra.mxu1 %vm539_vm1, %v8117_v33 }
  0xfb   : > { %v845_v21 = vadd.f32 %v844_v48, %v664_v27 }
  0xfd   : > { %6983 = vmatmul.msk.f32.gmra.mxu0 %vm539_vm1, %v8111_v31  ;;  %7051 = vmatmul.msk.f32.gmra.mxu2 %vm539_vm1, %v8123_v35 }
  0xfe   : > { %6949 = vmatmul.msk.f32.gmra.mxu3 %vm539_vm1, %v8066_v5 }
  0xff   : > { %v847_v4 = vpop.f32.mrf.mxu1 }
 0x100   : > { %v1107_v24 = vpop.f32.mrf.mxu2 }
 0x101   : > { %v892_v15 = vpop.f32.mrf.mxu3  ;;  %v8603_v54 = vadd.f32 %v1107_v24, %v845_v21 }
 0x102   : > { %v8599_v18 = vadd.f32 %v892_v15, %v8477_v19  ;;  %v667_v47 = vpop.f32.mrf.mxu0  ;;  %7018 = vmatmul.msk.f32.gmra.mxu1 %vm539_vm1, %v8141_v52 }
 0x103   : > { %v848_v11 = vadd.f32 %v847_v4, %v667_v47 }
 0x105   : > { %6984 = vmatmul.msk.f32.gmra.mxu0 %vm539_vm1, %v8138_v51  ;;  %7052 = vmatmul.msk.f32.gmra.mxu2 %vm539_vm1, %v8159_v62 }
 0x106   : > { %6950 = vmatmul.msk.f32.gmra.mxu3 %vm539_vm1, %v8120_v34 }
 0x107   : > { %v850_v5 = vpop.f32.mrf.mxu1 }
 0x108   : > { %v1110_v19 = vpop.f32.mrf.mxu2 }
 0x109   : > { %v895_v26 = vpop.f32.mrf.mxu3  ;;  %v8616_v10 = vadd.f32 %v1110_v19, %v848_v11 }
 0x10a   : > { %v8612_v37 = vadd.f32 %v895_v26, %v8500_v6  ;;  %v670_v48 = vpop.f32.mrf.mxu0  ;;  %7019 = vmatmul.msk.f32.gmra.mxu1 %vm539_vm1, %v8156_v60 }
 0x10b   : > { %v851_v53 = vadd.f32 %v850_v5, %v670_v48 }
 0x10d   : > { %6985 = vmatmul.msk.f32.gmra.mxu0 %vm539_vm1, %v8153_v56  ;;  %7053 = vmatmul.msk.f32.gmra.mxu2 %vm539_vm1, %v8162_v63 }
 0x10e   : > { %6951 = vmatmul.msk.f32.gmra.mxu3 %vm539_vm1, %v8123_v35 }
 0x10f   : > { %v853_v34 = vpop.f32.mrf.mxu1 }
 0x110   : > { %v1113_v6 = vpop.f32.mrf.mxu2 }
 0x111   : > { %v898_v27 = vpop.f32.mrf.mxu3  ;;  %v8629_v15 = vadd.f32 %v1113_v6, %v851_v53 }
 0x112   : > { %v8625_v21 = vadd.f32 %v898_v27, %v8521_v9  ;;  %v673_v4 = vpop.f32.mrf.mxu0  ;;  %7020 = vmatmul.msk.f32.gmra.mxu1 %vm539_vm1, %v8180_v14 }
 0x113   : > { %v854_v24 = vadd.f32 %v853_v34, %v673_v4 }
 0x115   : > { %6986 = vmatmul.msk.f32.gmra.mxu0 %vm539_vm1, %v8177_v13  ;;  %7054 = vmatmul.msk.f32.gmra.mxu2 %vm539_vm1, %v8198_v39 }
 0x116   : > { %6952 = vmatmul.msk.f32.gmra.mxu3 %vm539_vm1, %v8159_v62 }
 0x117   : > { %v856_v35 = vpop.f32.mrf.mxu1 }
 0x118   : > { %v1116_v9 = vpop.f32.mrf.mxu2 }
 0x119   : > { %v1140_v47 = vpop.f32.mrf.mxu3  ;;  %v8642_v26 = vadd.f32 %v1116_v9, %v854_v24  ;;  %v12199_v9 = vld [vmem:[#allocation11_spill] sm:$0xff] }
 0x11a   : > { %v8638_v11 = vadd.f32 %v1140_v47, %v8534_v29  ;;  %v676_v5 = vpop.f32.mrf.mxu0  ;;  %7021 = vmatmul.msk.f32.gmra.mxu1 %vm539_vm1, %v8195_v30 }
 0x11b   : > { %v857_v19 = vadd.f32 %v856_v35, %v676_v5 }
 0x11d   : > { %6987 = vmatmul.msk.f32.gmra.mxu0 %vm539_vm1, %v8192_v25  ;;  %7055 = vmatmul.msk.f32.gmra.mxu2 %vm539_vm1, %v8201_v41 }
 0x11e   : > { %6953 = vmatmul.msk.f32.gmra.mxu3 %vm539_vm1, %v8162_v63 }
 0x11f   : > { %v859_v62 = vpop.f32.mrf.mxu1 }
 0x120   : > { %v1119_v29 = vpop.f32.mrf.mxu2 }
 0x121   : > { %v1143_v48 = vpop.f32.mrf.mxu3  ;;  %v8655_v27 = vadd.f32 %v1119_v29, %v857_v19 }
 0x122   : > { %v8651_v53 = vadd.f32 %v1143_v48, %v8547_v61  ;;  %v679_v34 = vpop.f32.mrf.mxu0  ;;  %7022 = vmatmul.msk.f32.gmra.mxu1 %vm539_vm1, %v8219_v0 }
 0x123   : > { %v860_v6 = vadd.f32 %v859_v62, %v679_v34  ;;  %v12202_v34 = vld [vmem:[#allocation14_spill] sm:$0xff] }
 0x124   : > { %12197 = vst [vmem:[#allocation50_spill] sm:$0xff] %v8651_v53 }
 0x125   : > { %6988 = vmatmul.msk.f32.gmra.mxu0 %vm539_vm1, %v8216_v55  ;;  %7056 = vmatmul.msk.f32.gmra.mxu2 %vm539_vm1, %v8241_v42 }
 0x126   : > { %6954 = vmatmul.msk.f32.gmra.mxu3 %vm539_vm1, %v8198_v39  ;;  %v12200_v39 = vld [vmem:[#allocation12_spill] sm:$0xff] }
 0x127   : > { %v862_v63 = vpop.f32.mrf.mxu1 }
 0x128   : > { %v1122_v61 = vpop.f32.mrf.mxu2 }
 0x129   : > { %v1146_v4 = vpop.f32.mrf.mxu3  ;;  %v8668_v47 = vadd.f32 %v1122_v61, %v860_v6 }
 0x12a   : > { %v8664_v24 = vadd.f32 %v1146_v4, %v8560_v12  ;;  %v682_v35 = vpop.f32.mrf.mxu0  ;;  %7023 = vmatmul.msk.f32.gmra.mxu1 %vm539_vm1, %v8238_v23  ;;  %v12203_v4 = vld [vmem:[#allocation13_spill] sm:$0xff] }
 0x12b   : > { %v863_v5 = vadd.f32 %v862_v63, %v682_v35 }
 0x12c   : > { %12198 = vst [vmem:[#allocation51_spill] sm:$0xff] %v8664_v24  ;;  %v12206_v24 = vld [vmem:[#allocation16_spill] sm:$0xff] }
 0x12d   : > { %6989 = vmatmul.msk.f32.gmra.mxu0 %vm539_vm1, %v12199_v9  ;;  %7057 = vmatmul.msk.f32.gmra.mxu2 %vm539_vm1, %v12200_v39 }
 0x12e   : > { %6955 = vmatmul.msk.f32.gmra.mxu3 %vm539_vm1, %v8201_v41  ;;  %v12204_v41 = vld [vmem:[#allocation17_spill] sm:$0xff] }
 0x12f   : > { %v865_v19 = vpop.f32.mrf.mxu1 }
 0x130   : > { %v1125_v12 = vpop.f32.mrf.mxu2 }
 0x131   : > { %v1149_v62 = vpop.f32.mrf.mxu3  ;;  %v8681_v6 = vadd.f32 %v1125_v12, %v863_v5  ;;  %v12207_v12 = vld [vmem:[#allocation15_spill] sm:$0xff] }
 0x132   : > { %v8677_v48 = vadd.f32 %v1149_v62, %v8573_v36  ;;  %v685_v29 = vpop.f32.mrf.mxu0  ;;  %7024 = vmatmul.msk.f32.gmra.mxu1 %vm539_vm1, %v12202_v34 }
 0x133   : > { %v866_v63 = vadd.f32 %v865_v19, %v685_v29 }
 0x134   : > { %12201 = vst [vmem:[#allocation11_spill] sm:$0xff] %v8677_v48 }
 0x135   : > { %6990 = vmatmul.msk.f32.gmra.mxu0 %vm539_vm1, %v12203_v4  ;;  %7058 = vmatmul.msk.f32.gmra.mxu2 %vm539_vm1, %v12204_v41 }
 0x136   : > { %6956 = vmatmul.msk.f32.gmra.mxu3 %vm539_vm1, %v8241_v42  ;;  %v7179_v42 = vld [vmem:[%s11925_s3 + $0x4] sm:$0xf] }
 0x137   : > { %v868_v61 = vpop.f32.mrf.mxu1  ;;  %7180 = vmatpush.msk.msra.mxu2 %vm604_vm0, %v7179_v42 }
 0x138   : > { %v1128_v36 = vpop.f32.mrf.mxu2 }
 0x139   : > { %v1152_v35 = vpop.f32.mrf.mxu3  ;;  %v8694_v5 = vadd.f32 %v1128_v36, %v866_v63 }
 0x13a   : > { %v8690_v62 = vadd.f32 %v1152_v35, %v8586_v44  ;;  %v688_v48 = vpop.f32.mrf.mxu0  ;;  %7025 = vmatmul.msk.f32.gmra.mxu1 %vm539_vm1, %v12206_v24 }
 0x13b   : > { %v869_v19 = vadd.f32 %v868_v61, %v688_v48  ;;  %v12209_v48 = vld [vmem:[#allocation20_spill] sm:$0xff]  ;;  %v12210_v61 = vld [vmem:[#allocation18_spill] sm:$0xff] }
 0x13c   : > { %12205 = vst [vmem:[#allocation12_spill] sm:$0xff] %v8690_v62 }
 0x13d   : > { %6991 = vmatmul.msk.f32.gmra.mxu0 %vm539_vm1, %v12207_v12  ;;  %7059 = vmatmul.msk.f32.gmra.mxu2 %vm539_vm1, %v8287_v45  ;;  %v12211_v12 = vld [vmem:[#allocation25_spill] sm:$0xff] }
 0x13e   : > { %6957 = vmatmul.msk.f32.gmra.mxu3 %vm539_vm1, %v12200_v39 }
 0x13f   : > { %v871_v44 = vpop.f32.mrf.mxu1 }
 0x140   : > { %v1131_v63 = vpop.f32.mrf.mxu2 }
 0x141   : > { %v1155_v29 = vpop.f32.mrf.mxu3  ;;  %v8711_v39 = vadd.f32 %v1131_v63, %v869_v19  ;;  %v12214_v63 = vld [vmem:[#allocation22_spill] sm:$0xff] }
 0x142   : > { %v8707_v35 = vadd.f32 %v1155_v29, %v8599_v18  ;;  %v691_v36 = vpop.f32.mrf.mxu0  ;;  %7026 = vmatmul.msk.f32.gmra.mxu1 %vm539_vm1, %v12209_v48  ;;  %v12213_v48 = vld [vmem:[#allocation24_spill] sm:$0xff] }
 0x143   : > { %v872_v62 = vadd.f32 %v871_v44, %v691_v36 }
 0x144   : > { %12208 = vst [vmem:[#allocation17_spill] sm:$0xff] %v8707_v35 }
 0x145   : > { %6992 = vmatmul.msk.f32.gmra.mxu0 %vm539_vm1, %v12210_v61  ;;  %7060 = vmatmul.msk.f32.gmra.mxu2 %vm539_vm1, %v12211_v12  ;;  %v12220_v61 = vld [vmem:[#allocation33_spill] sm:$0xff] }
 0x146   : > { %6958 = vmatmul.msk.f32.gmra.mxu3 %vm539_vm1, %v12204_v41 }
 0x147   : > { %v874_v42 = vpop.f32.mrf.mxu1 }
 0x148   : > { %v1134_v18 = vpop.f32.mrf.mxu2 }
 0x149   : > { %v1158_v24 = vpop.f32.mrf.mxu3  ;;  %v8724_v19 = vadd.f32 %v1134_v18, %v872_v62  ;;  %v12217_v18 = vld [vmem:[#allocation27_spill] sm:$0xff] }
 0x14a   : > { %v8720_v29 = vadd.f32 %v1158_v24, %v8612_v37  ;;  %v694_v35 = vpop.f32.mrf.mxu0  ;;  %7027 = vmatmul.msk.f32.gmra.mxu1 %vm539_vm1, %v12213_v48  ;;  %v12216_v48 = vld [vmem:[#allocation29_spill] sm:$0xff] }
 0x14b   : > { %v875_v44 = vadd.f32 %v874_v42, %v694_v35 }
 0x14c   : > { %12212 = vst [vmem:[#allocation25_spill] sm:$0xff] %v8720_v29 }
 0x14d   : > { %6993 = vmatmul.msk.f32.gmra.mxu0 %vm539_vm1, %v12214_v63  ;;  %7061 = vmatmul.msk.f32.gmra.mxu2 %vm539_vm1, %v8339_v7 }
 0x14e   : > { %6959 = vmatmul.msk.f32.gmra.mxu3 %vm539_vm1, %v8287_v45  ;;  %v12218_v45 = vld [vmem:[#allocation34_spill] sm:$0xff] }
 0x14f   : > { %v1543_v41 = vpop.f32.mrf.mxu1 }
 0x150   : > { %v1137_v37 = vpop.f32.mrf.mxu2 }
 0x151   : > { %v1161_v36 = vpop.f32.mrf.mxu3  ;;  %v8737_v62 = vadd.f32 %v1137_v37, %v875_v44  ;;  %v12221_v37 = vld [vmem:[#allocation31_spill] sm:$0xff] }
 0x152   : > { %v8733_v24 = vadd.f32 %v1161_v36, %v8625_v21  ;;  %v1384_v29 = vpop.f32.mrf.mxu0  ;;  %7028 = vmatmul.msk.f32.gmra.mxu1 %vm539_vm1, %v12216_v48  ;;  %v12219_v21 = vld [vmem:[#allocation21_spill] sm:$0xff] }
 0x154   : > { %12215 = vst [vmem:[#allocation52_spill] sm:$0xff] %v8733_v24 }
 0x155   : > { %6994 = vmatmul.msk.f32.gmra.mxu0 %vm539_vm1, %v12217_v18  ;;  %7062 = vmatmul.msk.f32.gmra.mxu2 %vm539_vm1, %v12218_v45 }
 0x156   : > { %6960 = vmatmul.msk.f32.gmra.mxu3 %vm539_vm1, %v12211_v12 }
 0x157   : > { %v1546_v35 = vpop.f32.mrf.mxu1 }
 0x158   : > { %v1699_v63 = vpop.f32.mrf.mxu2 }
 0x159   : > { %v1224_v42 = vpop.f32.mrf.mxu3 }
 0x15a   : > { %v1320_v36 = vadd.f32 %v1224_v42, %v12219_v21  ;;  %v1387_v24 = vpop.f32.mrf.mxu0  ;;  %7029 = vmatmul.msk.f32.gmra.mxu1 %vm539_vm1, %v12220_v61  ;;  %v12223_v21 = vld [vmem:[#allocation26_spill] sm:$0xff] }
 0x15b   : > { %v12224_v61 = vld [vmem:[#allocation38_spill] sm:$0xff] }
 0x15c   : > { %v1480_v44 = vadd.f32 %v1384_v29, %v1320_v36  ;;  %v12225_v36 = vld [vmem:[#allocation36_spill] sm:$0xff] }
 0x15d   : > { %6995 = vmatmul.msk.f32.gmra.mxu0 %vm539_vm1, %v12221_v37  ;;  %7063 = vmatmul.msk.f32.gmra.mxu2 %vm539_vm1, %v8395_v2 }
 0x15e   : > { %6961 = vmatmul.msk.f32.gmra.mxu3 %vm539_vm1, %v8339_v7  ;;  %v1639_v12 = vadd.f32 %v1543_v41, %v1480_v44  ;;  %v12226_v41 = vld [vmem:[#allocation43_spill] sm:$0xff] }
 0x15f   : > { %v1549_v18 = vpop.f32.mrf.mxu1 }
 0x160   : > { %v8754_v48 = vadd.f32 %v1699_v63, %v1639_v12  ;;  %v1702_v42 = vpop.f32.mrf.mxu2 }
 0x161   : > { %v1227_v4 = vpop.f32.mrf.mxu3 }
 0x162   : > { %12222 = vst [vmem:[#allocation34_spill] sm:$0xff] %v8754_v48  ;;  %v1321_v34 = vadd.f32 %v1227_v4, %v12223_v21  ;;  %v1390_v53 = vpop.f32.mrf.mxu0  ;;  %7030 = vmatmul.msk.f32.gmra.mxu1 %vm539_vm1, %v12224_v61  ;;  %v12228_v21 = vld [vmem:[#allocation30_spill] sm:$0xff] }
 0x163   : > { %v12229_v61 = vld [vmem:[#allocation42_spill] sm:$0xff] }
 0x164   : > { %v1481_v29 = vadd.f32 %v1387_v24, %v1321_v34  ;;  %v12230_v24 = vld [vmem:[#allocation40_spill] sm:$0xff] }
 0x165   : > { %6996 = vmatmul.msk.f32.gmra.mxu0 %vm539_vm1, %v12225_v36  ;;  %7064 = vmatmul.msk.f32.gmra.mxu2 %vm539_vm1, %v12226_v41 }
 0x166   : > { %6962 = vmatmul.msk.f32.gmra.mxu3 %vm539_vm1, %v12218_v45  ;;  %v1640_v7 = vadd.f32 %v1546_v35, %v1481_v29 }
 0x167   : > { %v1552_v63 = vpop.f32.mrf.mxu1 }
 0x168   : > { %v8765_v44 = vadd.f32 %v1702_v42, %v1640_v7  ;;  %v1705_v4 = vpop.f32.mrf.mxu2 }
 0x169   : > { %v1230_v12 = vpop.f32.mrf.mxu3 }
 0x16a   : > { %12227 = vst [vmem:[#allocation21_spill] sm:$0xff] %v8765_v44  ;;  %v1322_v48 = vadd.f32 %v1230_v12, %v12228_v21  ;;  %v1393_v37 = vpop.f32.mrf.mxu0  ;;  %7031 = vmatmul.msk.f32.gmra.mxu1 %vm539_vm1, %v12229_v61  ;;  %v12232_v12 = vld [vmem:[#allocation35_spill] sm:$0xff] }
 0x16c   : > { %v1482_v34 = vadd.f32 %v1390_v53, %v1322_v48  ;;  %v12233_v48 = vld [vmem:[#allocation45_spill] sm:$0xff] }
 0x16d   : > { %6997 = vmatmul.msk.f32.gmra.mxu0 %vm539_vm1, %v12230_v24  ;;  %7065 = vmatmul.msk.f32.gmra.mxu2 %vm539_vm1, %v8455_v43 }
 0x16e   : > { %6963 = vmatmul.msk.f32.gmra.mxu3 %vm539_vm1, %v8395_v2  ;;  %v1641_v45 = vadd.f32 %v1549_v18, %v1482_v34  ;;  %v7776_v18 = vld [vmem:[%s7916_s24 + $0x120] sm:$0xff] }
 0x16f   : > { %v1555_v35 = vpop.f32.mrf.mxu1 }
 0x170   : > { %v8776_v42 = vadd.f32 %v1705_v4, %v1641_v45  ;;  %v1708_v7 = vpop.f32.mrf.mxu2 }
 0x171   : > { %v1233_v29 = vpop.f32.mrf.mxu3 }
 0x172   : > { %12231 = vst [vmem:[#allocation26_spill] sm:$0xff] %v8776_v42  ;;  %v1323_v21 = vadd.f32 %v1233_v29, %v12232_v12  ;;  %v1396_v44 = vpop.f32.mrf.mxu0  ;;  %7032 = vmatmul.msk.f32.gmra.mxu1 %vm539_vm1, %v8490_v32  ;;  %v12235_v12 = vld [vmem:[#allocation39_spill] sm:$0xff] }
 0x174   : > { %v1483_v53 = vadd.f32 %v1393_v37, %v1323_v21 }
 0x175   : > { %6998 = vmatmul.msk.f32.gmra.mxu0 %vm539_vm1, %v12233_v48  ;;  %7066 = vmatmul.msk.f32.gmra.mxu2 %vm539_vm1, %v7776_v18 }
 0x176   : > { %6964 = vmatmul.msk.f32.gmra.mxu3 %vm539_vm1, %v12226_v41  ;;  %v1642_v2 = vadd.f32 %v1552_v63, %v1483_v53  ;;  %v7777_v63 = vld [vmem:[%s7916_s24 + $0x128] sm:$0xff] }
 0x177   : > { %v1558_v4 = vpop.f32.mrf.mxu1 }
 0x178   : > { %v8787_v34 = vadd.f32 %v1708_v7, %v1642_v2  ;;  %v1711_v29 = vpop.f32.mrf.mxu2 }
 0x179   : > { %v1236_v45 = vpop.f32.mrf.mxu3 }
 0x17a   : > { %12234 = vst [vmem:[#allocation36_spill] sm:$0xff] %v8787_v34  ;;  %v1324_v42 = vadd.f32 %v1236_v45, %v12235_v12  ;;  %v1399_v32 = vpop.f32.mrf.mxu0  ;;  %7033 = vmatmul.msk.f32.gmra.mxu1 %vm539_vm1, %v8513_v58  ;;  %v12237_v45 = vld [vmem:[#allocation44_spill] sm:$0xff] }
 0x17c   : > { %v1484_v37 = vadd.f32 %v1396_v44, %v1324_v42  ;;  %v12238_v44 = vld [vmem:[#allocation19_spill] sm:$0xff] }
 0x17d   : > { %6999 = vmatmul.msk.f32.gmra.mxu0 %vm539_vm1, %v8507_v28  ;;  %7067 = vmatmul.msk.f32.gmra.mxu2 %vm539_vm1, %v7777_v63  ;;  %v12239_v28 = vld [vmem:[#allocation3_spill] sm:$0xff] }
 0x17e   : > { %6965 = vmatmul.msk.f32.gmra.mxu3 %vm539_vm1, %v8455_v43  ;;  %v1643_v41 = vadd.f32 %v1555_v35, %v1484_v37  ;;  %v7778_v35 = vld [vmem:[%s7916_s24 + $0x138] sm:$0xff] }
 0x17f   : > { %v1561_v7 = vpop.f32.mrf.mxu1 }
 0x180   : > { %v8798_v21 = vadd.f32 %v1711_v29, %v1643_v41  ;;  %v1714_v2 = vpop.f32.mrf.mxu2 }
 0x181   : > { %v1239_v53 = vpop.f32.mrf.mxu3 }
 0x182   : > { %12236 = vst [vmem:[#allocation43_spill] sm:$0xff] %v8798_v21  ;;  %v1325_v12 = vadd.f32 %v1239_v53, %v12237_v45  ;;  %v1402_v34 = vpop.f32.mrf.mxu0  ;;  %7034 = vmatmul.msk.f32.gmra.mxu1 %vm539_vm1, %v12238_v44  ;;  %v12241_v44 = vld [vmem:[#allocation23_spill] sm:$0xff] }
 0x184   : > { %v1485_v42 = vadd.f32 %v1399_v32, %v1325_v12  ;;  %v12242_v12 = vld [vmem:[#allocation4_spill] sm:$0xff] }
 0x185   : > { %7000 = vmatmul.msk.f32.gmra.mxu0 %vm539_vm1, %v12239_v28  ;;  %7068 = vmatmul.msk.f32.gmra.mxu2 %vm539_vm1, %v7778_v35 }
 0x186   : > { %6966 = vmatmul.msk.f32.gmra.mxu3 %vm539_vm1, %v7776_v18  ;;  %v1644_v43 = vadd.f32 %v1558_v4, %v1485_v42  ;;  %v7779_v4 = vld [vmem:[%s7916_s24 + $0x140] sm:$0xff] }
 0x187   : > { %v1564_v29 = vpop.f32.mrf.mxu1 }
 0x188   : > { %v8808_v37 = vadd.f32 %v1714_v2, %v1644_v43  ;;  %v1717_v53 = vpop.f32.mrf.mxu2 }
 0x189   : > { %v1242_v41 = vpop.f32.mrf.mxu3 }
 0x18a   : > { %12240 = vst [vmem:[#allocation30_spill] sm:$0xff] %v8808_v37  ;;  %v1326_v45 = vadd.f32 %v1242_v41, %v8504_v8  ;;  %v1405_v21 = vpop.f32.mrf.mxu0  ;;  %7035 = vmatmul.msk.f32.gmra.mxu1 %vm539_vm1, %v12241_v44  ;;  %v12244_v44 = vld [vmem:[#allocation28_spill] sm:$0xff] }
 0x18c   : > { %v1486_v32 = vadd.f32 %v1402_v34, %v1326_v45  ;;  %v12245_v45 = vld [vmem:[#allocation5_spill] sm:$0xff] }
 0x18d   : > { %7001 = vmatmul.msk.f32.gmra.mxu0 %vm539_vm1, %v12242_v12  ;;  %7069 = vmatmul.msk.f32.gmra.mxu2 %vm539_vm1, %v7779_v4 }
 0x18e   : > { %6967 = vmatmul.msk.f32.gmra.mxu3 %vm539_vm1, %v7777_v63  ;;  %v1645_v18 = vadd.f32 %v1561_v7, %v1486_v32  ;;  %v7780_v7 = vld [vmem:[%s7916_s24 + $0x150] sm:$0xff] }
 0x18f   : > { %v1567_v2 = vpop.f32.mrf.mxu1 }
 0x190   : > { %v8818_v42 = vadd.f32 %v1717_v53, %v1645_v18  ;;  %v1720_v8 = vpop.f32.mrf.mxu2 }
 0x191   : > { %v1245_v43 = vpop.f32.mrf.mxu3 }
 0x192   : > { %12243 = vst [vmem:[#allocation42_spill] sm:$0xff] %v8818_v42  ;;  %v1327_v41 = vadd.f32 %v1245_v43, %v8525_v49  ;;  %v1408_v37 = vpop.f32.mrf.mxu0  ;;  %7036 = vmatmul.msk.f32.gmra.mxu1 %vm539_vm1, %v12244_v44  ;;  %v12247_v44 = vld [vmem:[#allocation32_spill] sm:$0xff] }
 0x194   : > { %v1487_v34 = vadd.f32 %v1405_v21, %v1327_v41  ;;  %v12248_v41 = vld [vmem:[#allocation6_spill] sm:$0xff] }
 0x195   : > { %7002 = vmatmul.msk.f32.gmra.mxu0 %vm539_vm1, %v12245_v45  ;;  %7070 = vmatmul.msk.f32.gmra.mxu2 %vm539_vm1, %v7780_v7 }
 0x196   : > { %6968 = vmatmul.msk.f32.gmra.mxu3 %vm539_vm1, %v7778_v35  ;;  %v1646_v63 = vadd.f32 %v1564_v29, %v1487_v34  ;;  %v7781_v29 = vld [vmem:[%s7916_s24 + $0x158] sm:$0xff] }
 0x197   : > { %v1570_v53 = vpop.f32.mrf.mxu1 }
 0x198   : > { %v8828_v32 = vadd.f32 %v1720_v8, %v1646_v63  ;;  %v1723_v49 = vpop.f32.mrf.mxu2 }
 0x199   : > { %v1248_v18 = vpop.f32.mrf.mxu3 }
 0x19a   : > { %12246 = vst [vmem:[#allocation40_spill] sm:$0xff] %v8828_v32  ;;  %v1328_v43 = vadd.f32 %v1248_v18, %v8538_v38  ;;  %v1411_v42 = vpop.f32.mrf.mxu0  ;;  %7037 = vmatmul.msk.f32.gmra.mxu1 %vm539_vm1, %v12247_v44  ;;  %v12250_v44 = vld [vmem:[#allocation37_spill] sm:$0xff] }
 0x19c   : > { %v1488_v21 = vadd.f32 %v1408_v37, %v1328_v43  ;;  %v12251_v43 = vld [vmem:[#allocation7_spill] sm:$0xff] }
 0x19d   : > { %7003 = vmatmul.msk.f32.gmra.mxu0 %vm539_vm1, %v12248_v41  ;;  %7071 = vmatmul.msk.f32.gmra.mxu2 %vm539_vm1, %v7781_v29 }
 0x19e   : > { %6969 = vmatmul.msk.f32.gmra.mxu3 %vm539_vm1, %v7779_v4  ;;  %v1647_v35 = vadd.f32 %v1567_v2, %v1488_v21  ;;  %v7782_v2 = vld [vmem:[%s7916_s24 + $0x168] sm:$0xff] }
 0x19f   : > { %v1573_v8 = vpop.f32.mrf.mxu1 }
 0x1a0   : > { %v8838_v34 = vadd.f32 %v1723_v49, %v1647_v35  ;;  %v1726_v38 = vpop.f32.mrf.mxu2 }
 0x1a1   : > { %v1251_v63 = vpop.f32.mrf.mxu3 }
 0x1a2   : > { %12249 = vst [vmem:[#allocation35_spill] sm:$0xff] %v8838_v34  ;;  %v1329_v18 = vadd.f32 %v1251_v63, %v8551_v46  ;;  %v1414_v32 = vpop.f32.mrf.mxu0  ;;  %7038 = vmatmul.msk.f32.gmra.mxu1 %vm539_vm1, %v12250_v44 }
 0x1a4   : > { %v1489_v37 = vadd.f32 %v1411_v42, %v1329_v18  ;;  %v12253_v42 = vld [vmem:[#allocation41_spill] sm:$0xff] }
 0x1a5   : > { %7004 = vmatmul.msk.f32.gmra.mxu0 %vm539_vm1, %v12251_v43  ;;  %7072 = vmatmul.msk.f32.gmra.mxu2 %vm539_vm1, %v7782_v2  ;;  %v12254_v43 = vld [vmem:[#allocation8_spill] sm:$0xff] }
 0x1a6   : > { %6970 = vmatmul.msk.f32.gmra.mxu3 %vm539_vm1, %v7780_v7  ;;  %v1648_v4 = vadd.f32 %v1570_v53, %v1489_v37  ;;  %v7783_v53 = vld [vmem:[%s7916_s24 + $0x170] sm:$0xff] }
 0x1a7   : > { %v1576_v49 = vpop.f32.mrf.mxu1 }
 0x1a8   : > { %v8848_v21 = vadd.f32 %v1726_v38, %v1648_v4  ;;  %v1729_v46 = vpop.f32.mrf.mxu2 }
 0x1a9   : > { %v1254_v35 = vpop.f32.mrf.mxu3 }
 0x1aa   : > { %12252 = vst [vmem:[#allocation45_spill] sm:$0xff] %v8848_v21  ;;  %v1330_v63 = vadd.f32 %v1254_v35, %v8564_v50  ;;  %v1417_v34 = vpop.f32.mrf.mxu0  ;;  %7039 = vmatmul.msk.f32.gmra.mxu1 %vm539_vm1, %v12253_v42  ;;  %v12256_v42 = vld [vmem:[#allocation46_spill] sm:$0xff] }
 0x1ac   : > { %v1490_v18 = vadd.f32 %v1414_v32, %v1330_v63  ;;  %v401_v32 = vld [vmem:[%s7916_s24 + $0x180] sm:$0xff] }
 0x1ad   : > { %7005 = vmatmul.msk.f32.gmra.mxu0 %vm539_vm1, %v12254_v43  ;;  %7073 = vmatmul.msk.f32.gmra.mxu2 %vm539_vm1, %v7783_v53  ;;  %v12257_v43 = vld [vmem:[#allocation9_spill] sm:$0xff] }
 0x1ae   : > { %6971 = vmatmul.msk.f32.gmra.mxu3 %vm539_vm1, %v7781_v29  ;;  %v1649_v7 = vadd.f32 %v1573_v8, %v1490_v18  ;;  %v7213_v8 = vld [vmem:[%s11925_s3 + $0x8] sm:$0xf] }
 0x1af   : > { %v1579_v38 = vpop.f32.mrf.mxu1  ;;  %7214 = vmatpush.msk.msrb.mxu3 %vm604_vm0, %v7213_v8  ;;  %v402_v18 = vld [vmem:[%s7916_s24 + $0x188] sm:$0xff] }
 0x1b0   : > { %v8858_v37 = vadd.f32 %v1729_v46, %v1649_v7  ;;  %v1732_v4 = vpop.f32.mrf.mxu2 }
 0x1b1   : > { %v1257_v50 = vpop.f32.mrf.mxu3 }
 0x1b2   : > { %12255 = vst [vmem:[#allocation39_spill] sm:$0xff] %v8858_v37  ;;  %v1331_v35 = vadd.f32 %v1257_v50, %v8577_v22  ;;  %v1420_v21 = vpop.f32.mrf.mxu0  ;;  %7040 = vmatmul.msk.f32.gmra.mxu1 %vm539_vm1, %v12256_v42  ;;  %v12259_v37 = vld [vmem:[#allocation10_spill] sm:$0xff] }
 0x1b4   : > { %v1491_v63 = vadd.f32 %v1417_v34, %v1331_v35 }
 0x1b5   : > { %7006 = vmatmul.msk.f32.gmra.mxu0 %vm539_vm1, %v12257_v43  ;;  %7074 = vmatmul.msk.f32.gmra.mxu2 %vm539_vm1, %v401_v32  ;;  %v1353_v43 = vrot.slane %v401_v32, 1 }
 0x1b6   : > { %6972 = vmatmul.msk.f32.gmra.mxu3 %vm539_vm1, %v7782_v2  ;;  %v1650_v29 = vadd.f32 %v1576_v49, %v1491_v63  ;;  %v1512_v2 = vrot.slane %v401_v32, 2  ;;  %v1513_v49 = vrot.slane %v402_v18, 2 }
 0x1b7   : > { %v1582_v46 = vpop.f32.mrf.mxu1 }
 0x1b8   : > { %v8872_v22 = vadd.f32 %v1732_v4, %v1650_v29  ;;  %v1735_v34 = vpop.f32.mrf.mxu2  ;;  %v1354_v29 = vrot.slane %v402_v18, 1 }
 0x1b9   : > { %v1260_v7 = vpop.f32.mrf.mxu3 }
 0x1ba   : > { %12258 = vst [vmem:[#allocation44_spill] sm:$0xff] %v8872_v22  ;;  %v1332_v50 = vadd.f32 %v1260_v7, %v8590_v40  ;;  %v1423_v35 = vpop.f32.mrf.mxu0  ;;  %7041 = vmatmul.msk.f32.gmra.mxu1 %vm539_vm1, %v8510_v17  ;;  %v7247_v40 = vld [vmem:[%s11925_s3 + $0xc] sm:$0xf]  ;;  %v8886_v7 = vsel %vm901_vm3, %v1512_v2, %v1513_v49  ;;  %v8900_v2 = vsel %vm456_vm2, %v1353_v43, %v1354_v29 }
 0x1bb   : > { %12260 = vst [vmem:[#allocation3_spill] sm:$0xff] %v8886_v7  ;;  %7248 = vmatpush.msk.msrb.mxu0 %vm604_vm0, %v7247_v40 }
 0x1bc   : > { %v1492_v63 = vadd.f32 %v1420_v21, %v1332_v50  ;;  %v403_v50 = vld [vmem:[%s7916_s24 + $0x190] sm:$0x3] }
 0x1bd   : > { %7007 = vmatmul.msk.f32.gmra.mxu0 %vm539_vm1, %v12259_v37  ;;  %7075 = vmatmul.msk.f32.gmra.mxu2 %vm539_vm1, %v402_v18 }
 0x1be   : > { %6973 = vmatmul.msk.f32.gmra.mxu3 %vm539_vm1, %v7783_v53  ;;  %v1651_v4 = vadd.f32 %v1579_v38, %v1492_v63  ;;  %v7281_v53 = vld [vmem:[%s11925_s3 + $0x10] sm:$0xf] }
 0x1bf   : > { %v1585_v8 = vpop.f32.mrf.mxu1  ;;  %7282 = vmatpush.msk.msrb.mxu1 %vm604_vm0, %v7281_v53 }
 0x1c0   : > { %v8889_v21 = vadd.f32 %v1735_v34, %v1651_v4  ;;  %v1738_v63 = vpop.f32.mrf.mxu2  ;;  %v1515_v34 = vrot.slane %v403_v50, 2  ;;  %v8903_v4 = vld [vmem:[%s7916_s24 + $0x198] sm:$0xff] }
 0x1c1   : > { %v1263_v38 = vpop.f32.mrf.mxu3 }
 0x1c2   : > { %12261 = vst [vmem:[#allocation4_spill] sm:$0xff] %v8889_v21  ;;  %v1333_v22 = vadd.f32 %v1263_v38, %v8603_v54  ;;  %v1426_v37 = vpop.f32.mrf.mxu0  ;;  %7042 = vmatmul.msk.f32.gmra.mxu1 %vm539_vm1, %v8886_v7  ;;  %v1356_v54 = vrot.slane %v403_v50, 1  ;;  %v8911_v43 = vsel %vm901_vm3, %v1513_v49, %v1515_v34  ;;  %v8932_v50 = vld [vmem:[%s8926_s28 + $0x8] sm:$0xff] }
 0x1c3   : > { %v2462_v34 = vrot.slane %v8932_v50, 1 }
 0x1c4   : > { %v1493_v40 = vadd.f32 %v1423_v35, %v1333_v22 }
 0x1c5   : > { %7008 = vmatmul.msk.f32.gmra.mxu0 %vm539_vm1, %v8900_v2  ;;  %7076 = vmatmul.msk.f32.gmra.mxu2 %vm539_vm1, %v8903_v4 }
 0x1c6   : > { %6974 = vmatmul.msk.f32.gmra.mxu3 %vm539_vm1, %v401_v32  ;;  %v1652_v53 = vadd.f32 %v1582_v46, %v1493_v40  ;;  %v8919_v32 = vsel %vm456_vm2, %v1354_v29, %v1356_v54  ;;  %v8929_v46 = vld [vmem:[%s7916_s24 + $0x1a0] sm:$0xff] }
 0x1c7   : > { %v1588_v38 = vpop.f32.mrf.mxu1  ;;  %v8938_v29 = vld [vmem:[%s8926_s28] sm:$0xff] }
 0x1c8   : > { %v8913_v21 = vadd.f32 %v1738_v63, %v1652_v53  ;;  %v1741_v17 = vpop.f32.mrf.mxu2  ;;  %v2461_v63 = vrot.slane %v8938_v29, 1 }
 0x1c9   : > { %v1266_v7 = vpop.f32.mrf.mxu3 }
 0x1ca   : > { %12262 = vst [vmem:[#allocation5_spill] sm:$0xff] %v8913_v21  ;;  %v1334_v22 = vadd.f32 %v1266_v7, %v8616_v10  ;;  %v1429_v35 = vpop.f32.mrf.mxu0  ;;  %7043 = vmatmul.msk.f32.gmra.mxu1 %vm539_vm1, %v8911_v43 }
 0x1cc   : > { %v1494_v49 = vadd.f32 %v1426_v37, %v1334_v22 }
 0x1cd   : > { %7009 = vmatmul.msk.f32.gmra.mxu0 %vm539_vm1, %v8919_v32  ;;  %7077 = vmatmul.msk.f32.gmra.mxu2 %vm539_vm1, %v8929_v46 }
 0x1ce   : > { %6975 = vmatmul.msk.f32.gmra.mxu3 %vm539_vm1, %v402_v18  ;;  %v1653_v10 = vadd.f32 %v1585_v8, %v1494_v49  ;;  %v2463_v18 = vsel %vm456_vm2, %v2461_v63, %v2462_v34  ;;  %v2148_v49 = vld [vmem:[%s8926_s28 + $0x10] sm:$0x3] }
 0x1cf   : > { %v1591_v7 = vpop.f32.mrf.mxu1 }
 0x1d0   : > { %v8944_v37 = vadd.f32 %v1741_v17, %v1653_v10  ;;  %v1744_v53 = vpop.f32.mrf.mxu2  ;;  %v2464_v10 = vrot.slane %v2148_v49, 1 }
 0x1d1   : > { %v1269_v40 = vpop.f32.mrf.mxu3 }
 0x1d2   : > { %12263 = vst [vmem:[#allocation6_spill] sm:$0xff] %v8944_v37  ;;  %v1335_v54 = vadd.f32 %v1269_v40, %v8629_v15  ;;  %v1432_v22 = vpop.f32.mrf.mxu0  ;;  %7147 = vmatmul.msk.f32.vlgmr.msra.gmra.mxu1 %vm539_vm1, %v8938_v29 }
 0x1d4   : > { %v1495_v8 = vadd.f32 %v1429_v35, %v1335_v54 }
 0x1d5   : > { %7114 = vmatmul.msk.f32.vlgmr.msra.gmra.mxu0 %vm539_vm1, %v8038_v59  ;;  %7181 = vmatmul.msk.f32.vlgmr.msra.gmra.mxu2 %vm539_vm1, %v2463_v18  ;;  %v2465_v59 = vsel %vm456_vm2, %v2462_v34, %v2464_v10 }
 0x1d6   : > { %7080 = vmatmul.msk.f32.vlgmr.msra.gmra.mxu3 %vm539_vm1, %v8032_v57  ;;  %v1654_v17 = vadd.f32 %v1588_v38, %v1495_v8  ;;  %v8963_v57 = vld [vmem:[%s8926_s28 + $0x20] sm:$0xff] }
 0x1d7   : > { %v1594_v15 = vpop.f32.mrf.mxu1  ;;  %v2467_v34 = vrot.slane %v8963_v57, 1 }
 0x1d8   : > { %v8956_v40 = vadd.f32 %v1744_v53, %v1654_v17  ;;  %v1747_v21 = vpop.f32.mrf.mxu2  ;;  %v8970_v53 = vld [vmem:[%s8926_s28 + $0x18] sm:$0xff]  ;;  %v8984_v17 = vld [vmem:[%s8926_s28 + $0x28] sm:$0x3] }
 0x1d9   : > { %v1272_v37 = vpop.f32.mrf.mxu3  ;;  %v2469_v10 = vrot.slane %v8984_v17, 1 }
 0x1da   : > { %v1336_v35 = vadd.f32 %v1272_v37, %v8642_v26  ;;  %v1435_v63 = vpop.f32.mrf.mxu0  ;;  %7148 = vmatmul.msk.f32.gmra.mxu1 %vm539_vm1, %v8932_v50  ;;  %v2466_v37 = vrot.slane %v8970_v53, 1 }
 0x1dc   : > { %v1496_v54 = vadd.f32 %v1432_v22, %v1336_v35 }
 0x1dd   : > { %7115 = vmatmul.msk.f32.gmra.mxu0 %vm539_vm1, %v8060_v3  ;;  %7182 = vmatmul.msk.f32.gmra.mxu2 %vm539_vm1, %v2465_v59 }
 0x1de   : > { %7081 = vmatmul.msk.f32.gmra.mxu3 %vm539_vm1, %v8054_v1  ;;  %v1655_v38 = vadd.f32 %v1591_v7, %v1496_v54  ;;  %v8981_v1 = vsel %vm456_vm2, %v2466_v37, %v2467_v34 }
 0x1df   : > { %v1597_v26 = vpop.f32.mrf.mxu1 }
 0x1e0   : > { %v8975_v22 = vadd.f32 %v1747_v21, %v1655_v38  ;;  %v1750_v8 = vpop.f32.mrf.mxu2 }
 0x1e1   : > { %v1275_v18 = vpop.f32.mrf.mxu3 }
 0x1e2   : > { %v1337_v3 = vadd.f32 %v1275_v18, %v8655_v27  ;;  %v1438_v49 = vpop.f32.mrf.mxu0  ;;  %7149 = vmatmul.msk.f32.gmra.mxu1 %vm539_vm1, %v8970_v53  ;;  %v9009_v18 = vld [vmem:[%s8926_s28 + $0x30] sm:$0xff] }
 0x1e4   : > { %v1497_v7 = vadd.f32 %v1435_v63, %v1337_v3 }
 0x1e5   : > { %7116 = vmatmul.msk.f32.gmra.mxu0 %vm539_vm1, %v8095_v20  ;;  %7183 = vmatmul.msk.f32.gmra.mxu2 %vm539_vm1, %v8981_v1 }
 0x1e6   : > { %7082 = vmatmul.msk.f32.gmra.mxu3 %vm539_vm1, %v8089_v16  ;;  %v1656_v21 = vadd.f32 %v1594_v15, %v1497_v7  ;;  %v8999_v16 = vsel %vm456_vm2, %v2467_v34, %v2469_v10  ;;  %v9002_v15 = vld [vmem:[%s8926_s28 + $0x38] sm:$0xff]  ;;  %v2471_v34 = vrot.slane %v9009_v18, 1  ;;  %v9024_v10 = vld [vmem:[%s8926_s28 + $0x40] sm:$0x3] }
 0x1e7   : > { %v1600_v27 = vpop.f32.mrf.mxu1 }
 0x1e8   : > { %v8993_v35 = vadd.f32 %v1750_v8, %v1656_v21  ;;  %v1753_v59 = vpop.f32.mrf.mxu2  ;;  %v2472_v8 = vrot.slane %v9002_v15, 1 }
 0x1e9   : > { %v1278_v63 = vpop.f32.mrf.mxu3 }
 0x1ea   : > { %v1338_v54 = vadd.f32 %v1278_v63, %v8668_v47  ;;  %v1441_v38 = vpop.f32.mrf.mxu0  ;;  %7150 = vmatmul.msk.f32.gmra.mxu1 %vm539_vm1, %v8963_v57 }
 0x1ec   : > { %v1498_v20 = vadd.f32 %v1438_v49, %v1338_v54 }
 0x1ed   : > { %7117 = vmatmul.msk.f32.gmra.mxu0 %vm539_vm1, %v8117_v33  ;;  %7184 = vmatmul.msk.f32.gmra.mxu2 %vm539_vm1, %v8999_v16 }
 0x1ee   : > { %7083 = vmatmul.msk.f32.gmra.mxu3 %vm539_vm1, %v8111_v31  ;;  %v1657_v37 = vadd.f32 %v1597_v26, %v1498_v20  ;;  %v9021_v31 = vsel %vm456_vm2, %v2471_v34, %v2472_v8 }
 0x1ef   : > { %v1603_v47 = vpop.f32.mrf.mxu1 }
 0x1f0   : > { %v9015_v3 = vadd.f32 %v1753_v59, %v1657_v37  ;;  %v1756_v7 = vpop.f32.mrf.mxu2  ;;  %v2474_v59 = vrot.slane %v9024_v10, 1 }
 0x1f1   : > { %v1281_v49 = vpop.f32.mrf.mxu3 }
 0x1f2   : > { %v1339_v33 = vadd.f32 %v1281_v49, %v8681_v6  ;;  %v1444_v21 = vpop.f32.mrf.mxu0  ;;  %7151 = vmatmul.msk.f32.gmra.mxu1 %vm539_vm1, %v9009_v18 }
 0x1f4   : > { %v1499_v26 = vadd.f32 %v1441_v38, %v1339_v33 }
 0x1f5   : > { %7118 = vmatmul.msk.f32.gmra.mxu0 %vm539_vm1, %v8141_v52  ;;  %7185 = vmatmul.msk.f32.gmra.mxu2 %vm539_vm1, %v9021_v31 }
 0x1f6   : > { %7084 = vmatmul.msk.f32.gmra.mxu3 %vm539_vm1, %v8138_v51  ;;  %v1658_v63 = vadd.f32 %v1600_v27, %v1499_v26  ;;  %v9039_v51 = vsel %vm456_vm2, %v2472_v8, %v2474_v59  ;;  %v9042_v27 = vld [vmem:[%s8926_s28 + $0x50] sm:$0xff] }
 0x1f7   : > { %v1606_v6 = vpop.f32.mrf.mxu1  ;;  %v2477_v33 = vrot.slane %v9042_v27, 1 }
 0x1f8   : > { %v9033_v54 = vadd.f32 %v1756_v7, %v1658_v63  ;;  %v1759_v20 = vpop.f32.mrf.mxu2  ;;  %v9049_v7 = vld [vmem:[%s8926_s28 + $0x48] sm:$0xff] }
 0x1f9   : > { %v1284_v38 = vpop.f32.mrf.mxu3  ;;  %v2476_v8 = vrot.slane %v9049_v7, 1 }
 0x1fa   : > { %v1340_v37 = vadd.f32 %v1284_v38, %v8694_v5  ;;  %v1447_v34 = vpop.f32.mrf.mxu0  ;;  %7152 = vmatmul.msk.f32.gmra.mxu1 %vm539_vm1, %v9002_v15  ;;  %v9064_v38 = vld [vmem:[%s8926_s28 + $0x58] sm:$0x3] }
 0x1fc   : > { %v1500_v52 = vadd.f32 %v1444_v21, %v1340_v37  ;;  %v2479_v37 = vrot.slane %v9064_v38, 1 }
 0x1fd   : > { %7119 = vmatmul.msk.f32.gmra.mxu0 %vm539_vm1, %v8156_v60  ;;  %7186 = vmatmul.msk.f32.gmra.mxu2 %vm539_vm1, %v9039_v51 }
 0x1fe   : > { %7085 = vmatmul.msk.f32.gmra.mxu3 %vm539_vm1, %v8153_v56  ;;  %v1659_v49 = vadd.f32 %v1603_v47, %v1500_v52  ;;  %v9061_v56 = vsel %vm456_vm2, %v2476_v8, %v2477_v33 }
 0x1ff   : > { %v1609_v5 = vpop.f32.mrf.mxu1 }
 0x200   : > { %v9055_v21 = vadd.f32 %v1759_v20, %v1659_v49  ;;  %v1762_v63 = vpop.f32.mrf.mxu2 }
 0x201   : > { %v1287_v26 = vpop.f32.mrf.mxu3 }
 0x202   : > { %v1341_v60 = vadd.f32 %v1287_v26, %v8711_v39  ;;  %v1450_v59 = vpop.f32.mrf.mxu0  ;;  %7153 = vmatmul.msk.f32.gmra.mxu1 %vm539_vm1, %v9049_v7 }
 0x204   : > { %v1501_v47 = vadd.f32 %v1447_v34, %v1341_v60  ;;  %v9089_v60 = vld [vmem:[%s8926_s28 + $0x60] sm:$0xff] }
 0x205   : > { %7120 = vmatmul.msk.f32.gmra.mxu0 %vm539_vm1, %v8180_v14  ;;  %7187 = vmatmul.msk.f32.gmra.mxu2 %vm539_vm1, %v9061_v56 }
 0x206   : > { %7086 = vmatmul.msk.f32.gmra.mxu3 %vm539_vm1, %v8177_v13  ;;  %v1660_v20 = vadd.f32 %v1606_v6, %v1501_v47  ;;  %v9079_v13 = vsel %vm456_vm2, %v2477_v33, %v2479_v37  ;;  %v9082_v6 = vld [vmem:[%s8926_s28 + $0x68] sm:$0xff]  ;;  %v2481_v33 = vrot.slane %v9089_v60, 1 }
 0x207   : > { %v1612_v39 = vpop.f32.mrf.mxu1 }
 0x208   : > { %v9073_v52 = vadd.f32 %v1762_v63, %v1660_v20  ;;  %v1765_v49 = vpop.f32.mrf.mxu2 }
 0x209   : > { %v1290_v34 = vpop.f32.mrf.mxu3 }
 0x20a   : > { %v1342_v8 = vadd.f32 %v1290_v34, %v8724_v19  ;;  %v1453_v26 = vpop.f32.mrf.mxu0  ;;  %7154 = vmatmul.msk.f32.gmra.mxu1 %vm539_vm1, %v9042_v27 }
 0x20c   : > { %v1502_v14 = vadd.f32 %v1450_v59, %v1342_v8  ;;  %v2482_v59 = vrot.slane %v9082_v6, 1  ;;  %v9104_v8 = vld [vmem:[%s8926_s28 + $0x70] sm:$0x3] }
 0x20d   : > { %7121 = vmatmul.msk.f32.gmra.mxu0 %vm539_vm1, %v8195_v30  ;;  %7188 = vmatmul.msk.f32.gmra.mxu2 %vm539_vm1, %v9079_v13 }
 0x20e   : > { %7087 = vmatmul.msk.f32.gmra.mxu3 %vm539_vm1, %v8192_v25  ;;  %v1661_v63 = vadd.f32 %v1609_v5, %v1502_v14  ;;  %v9101_v25 = vsel %vm456_vm2, %v2481_v33, %v2482_v59  ;;  %v2484_v14 = vrot.slane %v9104_v8, 1 }
 0x20f   : > { %v1615_v19 = vpop.f32.mrf.mxu1 }
 0x210   : > { %v9095_v47 = vadd.f32 %v1765_v49, %v1661_v63  ;;  %v1768_v37 = vpop.f32.mrf.mxu2 }
 0x211   : > { %v1293_v20 = vpop.f32.mrf.mxu3 }
 0x212   : > { %12264 = vst [vmem:[#allocation37_spill] sm:$0xff] %v9095_v47  ;;  %v1343_v30 = vadd.f32 %v1293_v20, %v8737_v62  ;;  %v1456_v34 = vpop.f32.mrf.mxu0  ;;  %7155 = vmatmul.msk.f32.gmra.mxu1 %vm539_vm1, %v9089_v60 }
 0x214   : > { %v1503_v5 = vadd.f32 %v1453_v26, %v1343_v30 }
 0x215   : > { %7122 = vmatmul.msk.f32.gmra.mxu0 %vm539_vm1, %v8219_v0  ;;  %7189 = vmatmul.msk.f32.gmra.mxu2 %vm539_vm1, %v9101_v25 }
 0x216   : > { %7088 = vmatmul.msk.f32.gmra.mxu3 %vm539_vm1, %v8216_v55  ;;  %v1662_v49 = vadd.f32 %v1612_v39, %v1503_v5  ;;  %v9119_v55 = vsel %vm456_vm2, %v2482_v59, %v2484_v14  ;;  %v9122_v39 = vld [vmem:[%s8926_s28 + $0x80] sm:$0xff]  ;;  %v9129_v5 = vld [vmem:[%s8926_s28 + $0x78] sm:$0xff] }
 0x217   : > { %v1618_v62 = vpop.f32.mrf.mxu1  ;;  %12266 = vst [vmem:[#allocation53_spill] sm:$0xff] %v9119_v55  ;;  %v2486_v59 = vrot.slane %v9129_v5, 1 }
 0x218   : > { %v9113_v63 = vadd.f32 %v1768_v37, %v1662_v49  ;;  %v1771_v33 = vpop.f32.mrf.mxu2  ;;  %12267 = vst [vmem:[#allocation54_spill] sm:$0xff] %v9122_v39 }
 0x219   : > { %v1296_v26 = vpop.f32.mrf.mxu3  ;;  %12268 = vst [vmem:[#allocation55_spill] sm:$0xff] %v9129_v5 }
 0x21a   : > { %12265 = vst [vmem:[#allocation46_spill] sm:$0xff] %v9113_v63  ;;  %v1344_v20 = vadd.f32 %v1296_v26, %v8638_v11  ;;  %v1459_v30 = vpop.f32.mrf.mxu0  ;;  %7156 = vmatmul.msk.f32.gmra.mxu1 %vm539_vm1, %v9082_v6 }
 0x21c   : > { %v1504_v0 = vadd.f32 %v1456_v34, %v1344_v20  ;;  %v2487_v34 = vrot.slane %v9122_v39, 1 }
 0x21d   : > { %7123 = vmatmul.msk.f32.gmra.mxu0 %vm539_vm1, %v8238_v23  ;;  %7190 = vmatmul.msk.f32.gmra.mxu2 %vm539_vm1, %v9119_v55  ;;  %v12270_v23 = vld [vmem:[#allocation50_spill] sm:$0xff] }
 0x21e   : > { %7089 = vmatmul.msk.f32.gmra.mxu3 %vm539_vm1, %v12199_v9  ;;  %v1663_v37 = vadd.f32 %v1615_v19, %v1504_v0  ;;  %v9141_v9 = vsel %vm456_vm2, %v2486_v59, %v2487_v34  ;;  %v9144_v0 = vld [vmem:[%s8926_s28 + $0x88] sm:$0x3] }
 0x21f   : > { %v1621_v11 = vpop.f32.mrf.mxu1  ;;  %12271 = vst [vmem:[#allocation50_spill] sm:$0xff] %v9141_v9  ;;  %v12273_v55 = vld [vmem:[#allocation14_spill] sm:$0xff] }
 0x220   : > { %v9135_v49 = vadd.f32 %v1771_v33, %v1663_v37  ;;  %v1774_v26 = vpop.f32.mrf.mxu2  ;;  %12272 = vst [vmem:[#allocation57_spill] sm:$0xff] %v9144_v0  ;;  %v12274_v33 = vld [vmem:[#allocation13_spill] sm:$0xff] }
 0x221   : > { %v1299_v14 = vpop.f32.mrf.mxu3 }
 0x222   : > { %12269 = vst [vmem:[#allocation56_spill] sm:$0xff] %v9135_v49  ;;  %v1345_v20 = vadd.f32 %v1299_v14, %v12270_v23  ;;  %v1462_v63 = vpop.f32.mrf.mxu0  ;;  %7157 = vmatmul.msk.f32.gmra.mxu1 %vm539_vm1, %v9129_v5  ;;  %v2489_v23 = vrot.slane %v9144_v0, 1  ;;  %v12276_v49 = vld [vmem:[#allocation51_spill] sm:$0xff] }
 0x223   : > { %v12280_v0 = vld [vmem:[#allocation15_spill] sm:$0xff] }
 0x224   : > { %v1505_v19 = vadd.f32 %v1459_v30, %v1345_v20 }
 0x225   : > { %7124 = vmatmul.msk.f32.gmra.mxu0 %vm539_vm1, %v12273_v55  ;;  %7191 = vmatmul.msk.f32.gmra.mxu2 %vm539_vm1, %v9141_v9  ;;  %v9159_v55 = vsel %vm456_vm2, %v2487_v34, %v2489_v23 }
 0x226   : > { %7090 = vmatmul.msk.f32.gmra.mxu3 %vm539_vm1, %v12274_v33  ;;  %v1664_v37 = vadd.f32 %v1618_v62, %v1505_v19  ;;  %12277 = vst [vmem:[#allocation13_spill] sm:$0xff] %v9159_v55  ;;  %v9162_v19 = vld [vmem:[%s8926_s28 + $0x98] sm:$0xff] }
 0x227   : > { %v1624_v14 = vpop.f32.mrf.mxu1  ;;  %12278 = vst [vmem:[#allocation51_spill] sm:$0xff] %v9162_v19  ;;  %v12279_v33 = vld [vmem:[#allocation16_spill] sm:$0xff] }
 0x228   : > { %v9153_v59 = vadd.f32 %v1774_v26, %v1664_v37  ;;  %v1777_v20 = vpop.f32.mrf.mxu2  ;;  %v9169_v37 = vld [vmem:[%s8926_s28 + $0x90] sm:$0xff] }
 0x229   : > { %v1302_v30 = vpop.f32.mrf.mxu3  ;;  %12281 = vst [vmem:[#allocation16_spill] sm:$0xff] %v9169_v37  ;;  %v2491_v34 = vrot.slane %v9169_v37, 1 }
 0x22a   : > { %12275 = vst [vmem:[#allocation14_spill] sm:$0xff] %v9153_v59  ;;  %v1346_v5 = vadd.f32 %v1302_v30, %v12276_v49  ;;  %v1465_v47 = vpop.f32.mrf.mxu0  ;;  %7158 = vmatmul.msk.f32.gmra.mxu1 %vm539_vm1, %v9122_v39 }
 0x22c   : > { %v1506_v62 = vadd.f32 %v1462_v63, %v1346_v5  ;;  %v2492_v63 = vrot.slane %v9162_v19, 1 }
 0x22d   : > { %7125 = vmatmul.msk.f32.gmra.mxu0 %vm539_vm1, %v12279_v33  ;;  %7192 = vmatmul.msk.f32.gmra.mxu2 %vm539_vm1, %v9159_v55  ;;  %v12283_v33 = vld [vmem:[#allocation11_spill] sm:$0xff]  ;;  %v12286_v55 = vld [vmem:[#allocation20_spill] sm:$0xff] }
 0x22e   : > { %7091 = vmatmul.msk.f32.gmra.mxu3 %vm539_vm1, %v12280_v0  ;;  %v1665_v26 = vadd.f32 %v1621_v11, %v1506_v62  ;;  %v9181_v11 = vsel %vm456_vm2, %v2491_v34, %v2492_v63  ;;  %v9184_v62 = vld [vmem:[%s8926_s28 + $0xa0] sm:$0x3] }
 0x22f   : > { %v1627_v49 = vpop.f32.mrf.mxu1  ;;  %12284 = vst [vmem:[#allocation11_spill] sm:$0xff] %v9181_v11 }
 0x230   : > { %v9175_v5 = vadd.f32 %v1777_v20, %v1665_v26  ;;  %v1780_v30 = vpop.f32.mrf.mxu2  ;;  %12285 = vst [vmem:[#allocation58_spill] sm:$0xff] %v9184_v62  ;;  %v12287_v20 = vld [vmem:[#allocation18_spill] sm:$0xff] }
 0x231   : > { %v1305_v23 = vpop.f32.mrf.mxu3 }
 0x232   : > { %12282 = vst [vmem:[#allocation15_spill] sm:$0xff] %v9175_v5  ;;  %v1347_v59 = vadd.f32 %v1305_v23, %v12283_v33  ;;  %v1468_v9 = vpop.f32.mrf.mxu0  ;;  %7159 = vmatmul.msk.f32.gmra.mxu1 %vm539_vm1, %v9169_v37  ;;  %v2494_v33 = vrot.slane %v9184_v62, 1  ;;  %v12289_v5 = vld [vmem:[#allocation12_spill] sm:$0xff]  ;;  %v12292_v62 = vld [vmem:[#allocation22_spill] sm:$0xff] }
 0x234   : > { %v1507_v0 = vadd.f32 %v1465_v47, %v1347_v59 }
 0x235   : > { %7126 = vmatmul.msk.f32.gmra.mxu0 %vm539_vm1, %v12286_v55  ;;  %7193 = vmatmul.msk.f32.gmra.mxu2 %vm539_vm1, %v9181_v11  ;;  %v9199_v55 = vsel %vm456_vm2, %v2492_v63, %v2494_v33  ;;  %v7315_v63 = vld [vmem:[%s11925_s3 + $0x14] sm:$0xf]  ;;  %v9228_v11 = vld [vmem:[%s8926_s28 + $0xb8] sm:$0x3] }
 0x236   : > { %7092 = vmatmul.msk.f32.gmra.mxu3 %vm539_vm1, %v12287_v20  ;;  %v1666_v26 = vadd.f32 %v1624_v14, %v1507_v0  ;;  %12290 = vst [vmem:[#allocation18_spill] sm:$0xff] %v9199_v55  ;;  %v9202_v0 = vld [vmem:[%s8926_s28 + $0xb0] sm:$0xff]  ;;  %v12291_v20 = vld [vmem:[#allocation24_spill] sm:$0xff]  ;;  %7316 = vmatpush.msk.msrb.mxu2 %vm604_vm0, %v7315_v63 }
 0x237   : > { %v1630_v23 = vpop.f32.mrf.mxu1 }
 0x238   : > { %v9193_v34 = vadd.f32 %v1780_v30, %v1666_v26  ;;  %v1783_v59 = vpop.f32.mrf.mxu2  ;;  %v9209_v26 = vld [vmem:[%s8926_s28 + $0xa8] sm:$0xff] }
 0x239   : > { %v1308_v47 = vpop.f32.mrf.mxu3  ;;  %12293 = vst [vmem:[#allocation12_spill] sm:$0xff] %v9209_v26 }
 0x23a   : > { %12288 = vst [vmem:[#allocation20_spill] sm:$0xff] %v9193_v34  ;;  %v1348_v37 = vadd.f32 %v1308_v47, %v12289_v5  ;;  %v1471_v39 = vpop.f32.mrf.mxu0  ;;  %7160 = vmatmul.msk.f32.gmra.mxu1 %vm539_vm1, %v9162_v19  ;;  %v2497_v5 = vrot.slane %v9202_v0, 1  ;;  %v12295_v47 = vld [vmem:[#allocation17_spill] sm:$0xff] }
 0x23b   : > { %12297 = vst [vmem:[#allocation17_spill] sm:$0xff] %v9228_v11  ;;  %v12298_v19 = vld [vmem:[#allocation29_spill] sm:$0xff] }
 0x23c   : > { %v1508_v14 = vadd.f32 %v1468_v9, %v1348_v37  ;;  %v2496_v37 = vrot.slane %v9209_v26, 1 }
 0x23d   : > { %7127 = vmatmul.msk.f32.gmra.mxu0 %vm539_vm1, %v12291_v20  ;;  %7194 = vmatmul.msk.f32.gmra.mxu2 %vm539_vm1, %v9199_v55 }
 0x23e   : > { %7093 = vmatmul.msk.f32.gmra.mxu3 %vm539_vm1, %v12292_v62  ;;  %v1667_v30 = vadd.f32 %v1627_v49, %v1508_v14  ;;  %v9225_v34 = vsel %vm456_vm2, %v2496_v37, %v2497_v5 }
 0x23f   : > { %v1633_v9 = vpop.f32.mrf.mxu1  ;;  %12296 = vst [vmem:[#allocation22_spill] sm:$0xff] %v9225_v34 }
 0x240   : > { %v9219_v33 = vadd.f32 %v1783_v59, %v1667_v30  ;;  %v1786_v62 = vpop.f32.mrf.mxu2  ;;  %v12299_v59 = vld [vmem:[#allocation27_spill] sm:$0xff] }
 0x241   : > { %v1311_v49 = vpop.f32.mrf.mxu3 }
 0x242   : > { %12294 = vst [vmem:[#allocation24_spill] sm:$0xff] %v9219_v33  ;;  %v1349_v14 = vadd.f32 %v1311_v49, %v12295_v47  ;;  %v1474_v20 = vpop.f32.mrf.mxu0  ;;  %7161 = vmatmul.msk.f32.gmra.mxu1 %vm539_vm1, %v9209_v26  ;;  %v2499_v49 = vrot.slane %v9228_v11, 1  ;;  %v12304_v11 = vld [vmem:[#allocation31_spill] sm:$0xff] }
 0x244   : > { %v1509_v55 = vadd.f32 %v1471_v39, %v1349_v14  ;;  %v12301_v14 = vld [vmem:[#allocation25_spill] sm:$0xff] }
 0x245   : > { %7128 = vmatmul.msk.f32.gmra.mxu0 %vm539_vm1, %v12298_v19  ;;  %7195 = vmatmul.msk.f32.gmra.mxu2 %vm539_vm1, %v9225_v34  ;;  %v9243_v19 = vsel %vm456_vm2, %v2497_v5, %v2499_v49 }
 0x246   : > { %7094 = vmatmul.msk.f32.gmra.mxu3 %vm539_vm1, %v12299_v59  ;;  %v1668_v30 = vadd.f32 %v1630_v23, %v1509_v55  ;;  %12302 = vst [vmem:[#allocation27_spill] sm:$0xff] %v9243_v19  ;;  %v9246_v55 = vld [vmem:[%s8926_s28 + $0xc8] sm:$0xff]  ;;  %v12303_v59 = vld [vmem:[#allocation33_spill] sm:$0xff] }
 0x247   : > { %v1636_v63 = vpop.f32.mrf.mxu1 }
 0x248   : > { %v9237_v37 = vadd.f32 %v1786_v62, %v1668_v30  ;;  %v1789_v47 = vpop.f32.mrf.mxu2  ;;  %v9253_v30 = vld [vmem:[%s8926_s28 + $0xc0] sm:$0xff] }
 0x249   : > { %v1314_v39 = vpop.f32.mrf.mxu3  ;;  %12305 = vst [vmem:[#allocation25_spill] sm:$0xff] %v9253_v30  ;;  %v2501_v5 = vrot.slane %v9253_v30, 1 }
 0x24a   : > { %12300 = vst [vmem:[#allocation29_spill] sm:$0xff] %v9237_v37  ;;  %v1350_v33 = vadd.f32 %v1314_v39, %v12301_v14  ;;  %v1477_v26 = vpop.f32.mrf.mxu0  ;;  %7162 = vmatmul.msk.f32.gmra.mxu1 %vm539_vm1, %v9202_v0 }
 0x24c   : > { %v1510_v23 = vadd.f32 %v1474_v20, %v1350_v33  ;;  %v2502_v33 = vrot.slane %v9246_v55, 1 }
 0x24d   : > { %7129 = vmatmul.msk.f32.gmra.mxu0 %vm539_vm1, %v12303_v59  ;;  %7196 = vmatmul.msk.f32.gmra.mxu2 %vm539_vm1, %v9243_v19  ;;  %v12307_v59 = vld [vmem:[#allocation52_spill] sm:$0xff]  ;;  %v12309_v19 = vld [vmem:[#allocation38_spill] sm:$0xff] }
 0x24e   : > { %7095 = vmatmul.msk.f32.gmra.mxu3 %vm539_vm1, %v12304_v11  ;;  %v1669_v62 = vadd.f32 %v1633_v9, %v1510_v23  ;;  %v9265_v11 = vsel %vm456_vm2, %v2501_v5, %v2502_v33  ;;  %v9268_v23 = vld [vmem:[%s8926_s28 + $0xd0] sm:$0x3] }
 0x24f   : > { %v2317_v39 = vpop.f32.mrf.mxu1  ;;  %12308 = vst [vmem:[#allocation31_spill] sm:$0xff] %v9265_v11 }
 0x250   : > { %v9259_v20 = vadd.f32 %v1789_v47, %v1669_v62  ;;  %v1792_v14 = vpop.f32.mrf.mxu2 }
 0x251   : > { %v1317_v49 = vpop.f32.mrf.mxu3 }
 0x252   : > { %12306 = vst [vmem:[#allocation33_spill] sm:$0xff] %v9259_v20  ;;  %v1351_v37 = vadd.f32 %v1317_v49, %v12307_v59  ;;  %v2018_v34 = vpop.f32.mrf.mxu0  ;;  %7163 = vmatmul.msk.f32.gmra.mxu1 %vm539_vm1, %v9253_v30  ;;  %v2504_v49 = vrot.slane %v9268_v23, 1  ;;  %v12311_v59 = vld [vmem:[#allocation34_spill] sm:$0xff] }
 0x254   : > { %v1511_v9 = vadd.f32 %v1477_v26, %v1351_v37 }
 0x255   : > { %7130 = vmatmul.msk.f32.gmra.mxu0 %vm539_vm1, %v12309_v19  ;;  %7197 = vmatmul.msk.f32.gmra.mxu2 %vm539_vm1, %v9265_v11  ;;  %v9286_v19 = vld [vmem:[%s8926_s28 + $0xe0] sm:$0xff] }
 0x256   : > { %7096 = vmatmul.msk.f32.gmra.mxu3 %vm539_vm1, %v12225_v36  ;;  %v1670_v47 = vadd.f32 %v1636_v63, %v1511_v9  ;;  %v9283_v36 = vsel %vm456_vm2, %v2502_v33, %v2504_v49  ;;  %v9293_v9 = vld [vmem:[%s8926_s28 + $0xd8] sm:$0xff] }
 0x257   : > { %v2320_v62 = vpop.f32.mrf.mxu1  ;;  %12312 = vst [vmem:[#allocation38_spill] sm:$0xff] %v9283_v36  ;;  %v2506_v33 = vrot.slane %v9293_v9, 1 }
 0x258   : > { %v9277_v5 = vadd.f32 %v1792_v14, %v1670_v47  ;;  %v2627_v37 = vpop.f32.mrf.mxu2  ;;  %12313 = vst [vmem:[#allocation34_spill] sm:$0xff] %v9293_v9 }
 0x259   : > { %v1859_v26 = vpop.f32.mrf.mxu3 }
 0x25a   : > { %12310 = vst [vmem:[#allocation52_spill] sm:$0xff] %v9277_v5  ;;  %v1955_v20 = vadd.f32 %v1859_v26, %v12311_v59  ;;  %v2021_v30 = vpop.f32.mrf.mxu0  ;;  %7164 = vmatmul.msk.f32.gmra.mxu1 %vm539_vm1, %v9246_v55 }
 0x25c   : > { %v2114_v63 = vadd.f32 %v2018_v34, %v1955_v20  ;;  %v2507_v34 = vrot.slane %v9286_v19, 1 }
 0x25d   : > { %7131 = vmatmul.msk.f32.gmra.mxu0 %vm539_vm1, %v12229_v61  ;;  %7198 = vmatmul.msk.f32.gmra.mxu2 %vm539_vm1, %v9283_v36  ;;  %v12315_v61 = vld [vmem:[#allocation21_spill] sm:$0xff]  ;;  %v12318_v36 = vld [vmem:[#allocation47_spill] sm:$0xff] }
 0x25e   : > { %7097 = vmatmul.msk.f32.gmra.mxu3 %vm539_vm1, %v12230_v24  ;;  %v2413_v14 = vadd.f32 %v2317_v39, %v2114_v63  ;;  %v9305_v24 = vsel %vm456_vm2, %v2506_v33, %v2507_v34  ;;  %v9308_v63 = vld [vmem:[%s8926_s28 + $0xe8] sm:$0x3] }
 0x25f   : > { %v2323_v47 = vpop.f32.mrf.mxu1  ;;  %12316 = vst [vmem:[#allocation21_spill] sm:$0xff] %v9305_v24 }
 0x260   : > { %v9299_v20 = vadd.f32 %v2627_v37, %v2413_v14  ;;  %v2630_v26 = vpop.f32.mrf.mxu2  ;;  %12317 = vst [vmem:[#allocation60_spill] sm:$0xff] %v9308_v63 }
 0x261   : > { %v1862_v49 = vpop.f32.mrf.mxu3 }
 0x262   : > { %12314 = vst [vmem:[#allocation59_spill] sm:$0xff] %v9299_v20  ;;  %v1956_v59 = vadd.f32 %v1862_v49, %v12315_v61  ;;  %v2024_v5 = vpop.f32.mrf.mxu0  ;;  %7165 = vmatmul.msk.f32.gmra.mxu1 %vm539_vm1, %v9293_v9  ;;  %v2509_v49 = vrot.slane %v9308_v63, 1 }
 0x264   : > { %v2115_v39 = vadd.f32 %v2021_v30, %v1956_v59  ;;  %v12320_v59 = vld [vmem:[#allocation26_spill] sm:$0xff] }
 0x265   : > { %7132 = vmatmul.msk.f32.gmra.mxu0 %vm539_vm1, %v12318_v36  ;;  %7199 = vmatmul.msk.f32.gmra.mxu2 %vm539_vm1, %v9305_v24  ;;  %v9326_v36 = vld [vmem:[%s8926_s28 + $0xf8] sm:$0xff] }
 0x266   : > { %7098 = vmatmul.msk.f32.gmra.mxu3 %vm539_vm1, %v12233_v48  ;;  %v2414_v37 = vadd.f32 %v2320_v62, %v2115_v39  ;;  %v9323_v48 = vsel %vm456_vm2, %v2507_v34, %v2509_v49  ;;  %v12322_v39 = vld [vmem:[#allocation48_spill] sm:$0xff] }
 0x267   : > { %v2326_v14 = vpop.f32.mrf.mxu1  ;;  %12321 = vst [vmem:[#allocation26_spill] sm:$0xff] %v9323_v48 }
 0x268   : > { %v9317_v33 = vadd.f32 %v2630_v26, %v2414_v37  ;;  %v2633_v61 = vpop.f32.mrf.mxu2  ;;  %v9333_v37 = vld [vmem:[%s8926_s28 + $0xf0] sm:$0xff] }
 0x269   : > { %v1865_v30 = vpop.f32.mrf.mxu3  ;;  %12323 = vst [vmem:[#allocation48_spill] sm:$0xff] %v9333_v37  ;;  %v2511_v34 = vrot.slane %v9333_v37, 1 }
 0x26a   : > { %12319 = vst [vmem:[#allocation47_spill] sm:$0xff] %v9317_v33  ;;  %v1957_v20 = vadd.f32 %v1865_v30, %v12320_v59  ;;  %v2027_v9 = vpop.f32.mrf.mxu0  ;;  %7166 = vmatmul.msk.f32.gmra.mxu1 %vm539_vm1, %v9286_v19 }
 0x26c   : > { %v2116_v62 = vadd.f32 %v2024_v5, %v1957_v20  ;;  %v2512_v5 = vrot.slane %v9326_v36, 1 }
 0x26d   : > { %7133 = vmatmul.msk.f32.gmra.mxu0 %vm539_vm1, %v8513_v58  ;;  %7200 = vmatmul.msk.f32.gmra.mxu2 %vm539_vm1, %v9323_v48  ;;  %v12325_v58 = vld [vmem:[#allocation36_spill] sm:$0xff]  ;;  %v12328_v48 = vld [vmem:[#allocation19_spill] sm:$0xff] }
 0x26e   : > { %7099 = vmatmul.msk.f32.gmra.mxu3 %vm539_vm1, %v12322_v39  ;;  %v2415_v26 = vadd.f32 %v2323_v47, %v2116_v62  ;;  %v9345_v47 = vsel %vm456_vm2, %v2511_v34, %v2512_v5  ;;  %v9348_v39 = vld [vmem:[%s8926_s28 + $0x100] sm:$0x3] }
 0x26f   : > { %v2329_v30 = vpop.f32.mrf.mxu1  ;;  %12326 = vst [vmem:[#allocation36_spill] sm:$0xff] %v9345_v47 }
 0x270   : > { %v9339_v20 = vadd.f32 %v2633_v61, %v2415_v26  ;;  %v2636_v59 = vpop.f32.mrf.mxu2  ;;  %12327 = vst [vmem:[#allocation62_spill] sm:$0xff] %v9348_v39 }
 0x271   : > { %v1868_v49 = vpop.f32.mrf.mxu3 }
 0x272   : > { %12324 = vst [vmem:[#allocation61_spill] sm:$0xff] %v9339_v20  ;;  %v1958_v33 = vadd.f32 %v1868_v49, %v12325_v58  ;;  %v2030_v63 = vpop.f32.mrf.mxu0  ;;  %7167 = vmatmul.msk.f32.gmra.mxu1 %vm539_vm1, %v9333_v37  ;;  %v2514_v49 = vrot.slane %v9348_v39, 1  ;;  %v12330_v58 = vld [vmem:[#allocation43_spill] sm:$0xff] }
 0x274   : > { %v2117_v62 = vadd.f32 %v2027_v9, %v1958_v33 }
 0x275   : > { %7134 = vmatmul.msk.f32.gmra.mxu0 %vm539_vm1, %v12328_v48  ;;  %7201 = vmatmul.msk.f32.gmra.mxu2 %vm539_vm1, %v9345_v47  ;;  %v9366_v48 = vld [vmem:[%s8926_s28 + $0x110] sm:$0xff] }
 0x276   : > { %7100 = vmatmul.msk.f32.gmra.mxu3 %vm539_vm1, %v12239_v28  ;;  %v2416_v61 = vadd.f32 %v2326_v14, %v2117_v62  ;;  %v9363_v28 = vsel %vm456_vm2, %v2512_v5, %v2514_v49  ;;  %12332 = vst [vmem:[#allocation63_spill] sm:$0xff] %v9366_v48  ;;  %v12333_v62 = vld [vmem:[#allocation23_spill] sm:$0xff] }
 0x277   : > { %v2332_v26 = vpop.f32.mrf.mxu1  ;;  %12331 = vst [vmem:[#allocation43_spill] sm:$0xff] %v9363_v28 }
 0x278   : > { %v9357_v34 = vadd.f32 %v2636_v59, %v2416_v61  ;;  %v2639_v33 = vpop.f32.mrf.mxu2  ;;  %v9373_v61 = vld [vmem:[%s8926_s28 + $0x108] sm:$0xff] }
 0x279   : > { %v1871_v9 = vpop.f32.mrf.mxu3  ;;  %12334 = vst [vmem:[#allocation23_spill] sm:$0xff] %v9373_v61  ;;  %v2516_v5 = vrot.slane %v9373_v61, 1 }
 0x27a   : > { %12329 = vst [vmem:[#allocation19_spill] sm:$0xff] %v9357_v34  ;;  %v1959_v20 = vadd.f32 %v1871_v9, %v12330_v58  ;;  %v2033_v37 = vpop.f32.mrf.mxu0  ;;  %7168 = vmatmul.msk.f32.gmra.mxu1 %vm539_vm1, %v9326_v36 }
 0x27c   : > { %v2118_v14 = vadd.f32 %v2030_v63, %v1959_v20  ;;  %v2517_v63 = vrot.slane %v9366_v48, 1 }
 0x27d   : > { %7135 = vmatmul.msk.f32.gmra.mxu0 %vm539_vm1, %v12333_v62  ;;  %7202 = vmatmul.msk.f32.gmra.mxu2 %vm539_vm1, %v9363_v28  ;;  %v12336_v62 = vld [vmem:[#allocation30_spill] sm:$0xff]  ;;  %v12339_v28 = vld [vmem:[#allocation28_spill] sm:$0xff] }
 0x27e   : > { %7101 = vmatmul.msk.f32.gmra.mxu3 %vm539_vm1, %v12242_v12  ;;  %v2417_v59 = vadd.f32 %v2329_v30, %v2118_v14  ;;  %v9385_v12 = vsel %vm456_vm2, %v2516_v5, %v2517_v63  ;;  %v9388_v14 = vld [vmem:[%s8926_s28 + $0x118] sm:$0x3] }
 0x27f   : > { %v2335_v9 = vpop.f32.mrf.mxu1  ;;  %12337 = vst [vmem:[#allocation30_spill] sm:$0xff] %v9385_v12 }
 0x280   : > { %v9379_v20 = vadd.f32 %v2639_v33, %v2417_v59  ;;  %v2642_v58 = vpop.f32.mrf.mxu2  ;;  %12338 = vst [vmem:[#allocation65_spill] sm:$0xff] %v9388_v14 }
 0x281   : > { %v1874_v49 = vpop.f32.mrf.mxu3 }
 0x282   : > { %12335 = vst [vmem:[#allocation64_spill] sm:$0xff] %v9379_v20  ;;  %v1960_v34 = vadd.f32 %v1874_v49, %v12336_v62  ;;  %v2036_v39 = vpop.f32.mrf.mxu0  ;;  %7169 = vmatmul.msk.f32.gmra.mxu1 %vm539_vm1, %v9373_v61  ;;  %v2519_v49 = vrot.slane %v9388_v14, 1  ;;  %v12341_v62 = vld [vmem:[#allocation42_spill] sm:$0xff] }
 0x284   : > { %v2119_v30 = vadd.f32 %v2033_v37, %v1960_v34 }
 0x285   : > { %7136 = vmatmul.msk.f32.gmra.mxu0 %vm539_vm1, %v12339_v28  ;;  %7203 = vmatmul.msk.f32.gmra.mxu2 %vm539_vm1, %v9385_v12  ;;  %v9406_v28 = vld [vmem:[%s8926_s28 + $0x128] sm:$0xff] }
 0x286   : > { %7102 = vmatmul.msk.f32.gmra.mxu3 %vm539_vm1, %v12245_v45  ;;  %v2418_v33 = vadd.f32 %v2332_v26, %v2119_v30  ;;  %v9403_v45 = vsel %vm456_vm2, %v2517_v63, %v2519_v49  ;;  %12343 = vst [vmem:[#allocation66_spill] sm:$0xff] %v9406_v28  ;;  %v12344_v30 = vld [vmem:[#allocation32_spill] sm:$0xff] }
 0x287   : > { %v2338_v59 = vpop.f32.mrf.mxu1  ;;  %12342 = vst [vmem:[#allocation42_spill] sm:$0xff] %v9403_v45 }
 0x288   : > { %v9397_v5 = vadd.f32 %v2642_v58, %v2418_v33  ;;  %v2645_v34 = vpop.f32.mrf.mxu2  ;;  %v9413_v33 = vld [vmem:[%s8926_s28 + $0x120] sm:$0xff] }
 0x289   : > { %v1877_v37 = vpop.f32.mrf.mxu3  ;;  %12345 = vst [vmem:[#allocation32_spill] sm:$0xff] %v9413_v33  ;;  %v2521_v63 = vrot.slane %v9413_v33, 1 }
 0x28a   : > { %12340 = vst [vmem:[#allocation28_spill] sm:$0xff] %v9397_v5  ;;  %v1961_v20 = vadd.f32 %v1877_v37, %v12341_v62  ;;  %v2039_v61 = vpop.f32.mrf.mxu0  ;;  %7170 = vmatmul.msk.f32.gmra.mxu1 %vm539_vm1, %v9366_v48  ;;  %v9472_v48 = vld [vmem:[%s8926_s28 + $0x148] sm:$0x3] }
 0x28c   : > { %v2120_v26 = vadd.f32 %v2036_v39, %v1961_v20  ;;  %v2522_v39 = vrot.slane %v9406_v28, 1 }
 0x28d   : > { %7137 = vmatmul.msk.f32.gmra.mxu0 %vm539_vm1, %v12344_v30  ;;  %7204 = vmatmul.msk.f32.gmra.mxu2 %vm539_vm1, %v9403_v45  ;;  %v12347_v30 = vld [vmem:[#allocation40_spill] sm:$0xff] }
 0x28e   : > { %7103 = vmatmul.msk.f32.gmra.mxu3 %vm539_vm1, %v12248_v41  ;;  %v2419_v58 = vadd.f32 %v2335_v9, %v2120_v26  ;;  %v9425_v41 = vsel %vm456_vm2, %v2521_v63, %v2522_v39  ;;  %v9428_v26 = vld [vmem:[%s8926_s28 + $0x130] sm:$0x3] }
 0x28f   : > { %v2341_v37 = vpop.f32.mrf.mxu1  ;;  %12348 = vst [vmem:[#allocation40_spill] sm:$0xff] %v9425_v41 }
 0x290   : > { %v9419_v20 = vadd.f32 %v2645_v34, %v2419_v58  ;;  %v2648_v62 = vpop.f32.mrf.mxu2  ;;  %12349 = vst [vmem:[#allocation68_spill] sm:$0xff] %v9428_v26  ;;  %v12350_v34 = vld [vmem:[#allocation7_spill] sm:$0xff] }
 0x291   : > { %v1880_v49 = vpop.f32.mrf.mxu3 }
 0x292   : > { %12346 = vst [vmem:[#allocation67_spill] sm:$0xff] %v9419_v20  ;;  %v1962_v5 = vadd.f32 %v1880_v49, %v12347_v30  ;;  %v2042_v14 = vpop.f32.mrf.mxu0  ;;  %7171 = vmatmul.msk.f32.gmra.mxu1 %vm539_vm1, %v9413_v33  ;;  %v2524_v30 = vrot.slane %v9428_v26, 1  ;;  %v12352_v20 = vld [vmem:[#allocation35_spill] sm:$0xff]  ;;  %v12355_v26 = vld [vmem:[#allocation8_spill] sm:$0xff] }
 0x294   : > { %v2121_v9 = vadd.f32 %v2039_v61, %v1962_v5 }
 0x295   : > { %7138 = vmatmul.msk.f32.gmra.mxu0 %vm539_vm1, %v12250_v44  ;;  %7205 = vmatmul.msk.f32.gmra.mxu2 %vm539_vm1, %v9425_v41  ;;  %v9443_v44 = vsel %vm456_vm2, %v2522_v39, %v2524_v30  ;;  %v12069_v30 = vrot.slane %v8929_v46, 1 }
 0x296   : > { %7104 = vmatmul.msk.f32.gmra.mxu3 %vm539_vm1, %v12350_v34  ;;  %v2420_v58 = vadd.f32 %v2338_v59, %v2121_v9  ;;  %12353 = vst [vmem:[#allocation35_spill] sm:$0xff] %v9443_v44  ;;  %v9446_v9 = vld [vmem:[%s8926_s28 + $0x140] sm:$0xff] }
 0x297   : > { %v2344_v49 = vpop.f32.mrf.mxu1  ;;  %v12354_v34 = vld [vmem:[#allocation41_spill] sm:$0xff] }
 0x298   : > { %v9437_v63 = vadd.f32 %v2648_v62, %v2420_v58  ;;  %v2651_v5 = vpop.f32.mrf.mxu2  ;;  %v9453_v58 = vld [vmem:[%s8926_s28 + $0x138] sm:$0xff] }
 0x299   : > { %v1883_v61 = vpop.f32.mrf.mxu3  ;;  %v2526_v39 = vrot.slane %v9453_v58, 1 }
 0x29a   : > { %12351 = vst [vmem:[#allocation7_spill] sm:$0xff] %v9437_v63  ;;  %v1963_v33 = vadd.f32 %v1883_v61, %v12352_v20  ;;  %v2045_v45 = vpop.f32.mrf.mxu0  ;;  %7172 = vmatmul.msk.f32.gmra.mxu1 %vm539_vm1, %v9406_v28  ;;  %v12357_v63 = vld [vmem:[#allocation45_spill] sm:$0xff] }
 0x29b   : > { %12359 = vst [vmem:[#allocation45_spill] sm:$0xff] %v9472_v48 }
 0x29c   : > { %v2122_v59 = vadd.f32 %v2042_v14, %v1963_v33  ;;  %v2527_v14 = vrot.slane %v9446_v9, 1  ;;  %v1828_v33 = vrot.slane %v8903_v4, 1 }
 0x29d   : > { %7139 = vmatmul.msk.f32.gmra.mxu0 %vm539_vm1, %v12354_v34  ;;  %7206 = vmatmul.msk.f32.gmra.mxu2 %vm539_vm1, %v9443_v44 }
 0x29e   : > { %7105 = vmatmul.msk.f32.gmra.mxu3 %vm539_vm1, %v12355_v26  ;;  %v2421_v62 = vadd.f32 %v2341_v37, %v2122_v59  ;;  %v1987_v26 = vrot.slane %v8903_v4, 2  ;;  %v12070_v37 = vrot.slane %v8929_v46, 2  ;;  %v9469_v28 = vsel %vm456_vm2, %v2526_v39, %v2527_v14 }
 0x29f   : > { %v2347_v20 = vpop.f32.mrf.mxu1  ;;  %12358 = vst [vmem:[#allocation8_spill] sm:$0xff] %v9469_v28  ;;  %v9477_v4 = vsel %vm456_vm2, %v1828_v33, %v12069_v30 }
 0x2a0   : > { %v9461_v61 = vadd.f32 %v2651_v5, %v2421_v62  ;;  %v2654_v34 = vpop.f32.mrf.mxu2  ;;  %v12360_v5 = vld [vmem:[#allocation9_spill] sm:$0xff]  ;;  %v2529_v62 = vrot.slane %v9472_v48, 1 }
 0x2a1   : > { %v1886_v59 = vpop.f32.mrf.mxu3 }
 0x2a2   : > { %12356 = vst [vmem:[#allocation41_spill] sm:$0xff] %v9461_v61  ;;  %v1964_v44 = vadd.f32 %v1886_v59, %v12357_v63  ;;  %v2048_v41 = vpop.f32.mrf.mxu0  ;;  %7173 = vmatmul.msk.f32.gmra.mxu1 %vm539_vm1, %v9453_v58  ;;  %v9484_v63 = vsel %vm901_vm3, %v1987_v26, %v12070_v37  ;;  %v12362_v59 = vld [vmem:[#allocation39_spill] sm:$0xff]  ;;  %v9497_v26 = vsel %vm456_vm2, %v2527_v14, %v2529_v62  ;;  %v12365_v37 = vld [vmem:[#allocation10_spill] sm:$0xff]  ;;  %v12076_v62 = vrot.slane %v8932_v50, 2 }
 0x2a3   : > { %12363 = vst [vmem:[#allocation39_spill] sm:$0xff] %v9497_v26 }
 0x2a4   : > { %v2123_v12 = vadd.f32 %v2045_v45, %v1964_v44 }
 0x2a5   : > { %7140 = vmatmul.msk.f32.gmra.mxu0 %vm539_vm1, %v12256_v42  ;;  %7207 = vmatmul.msk.f32.gmra.mxu2 %vm539_vm1, %v9469_v28  ;;  %v9524_v28 = vld [vmem:[%s8926_s28 + $0x160] sm:$0x3] }
 0x2a6   : > { %7106 = vmatmul.msk.f32.gmra.mxu3 %vm539_vm1, %v12360_v5  ;;  %v2422_v45 = vadd.f32 %v2344_v49, %v2123_v12  ;;  %v9500_v49 = vld [vmem:[%s8926_s28 + $0x158] sm:$0xff]  ;;  %v12364_v5 = vld [vmem:[#allocation49_spill] sm:$0xff] }
 0x2a7   : > { %v2350_v44 = vpop.f32.mrf.mxu1 }
 0x2a8   : > { %v9491_v39 = vadd.f32 %v2654_v34, %v2422_v45  ;;  %v2657_v42 = vpop.f32.mrf.mxu2  ;;  %v9507_v45 = vld [vmem:[%s8926_s28 + $0x150] sm:$0xff] }
 0x2a9   : > { %v1889_v33 = vpop.f32.mrf.mxu3  ;;  %v2531_v14 = vrot.slane %v9507_v45, 1 }
 0x2aa   : > { %12361 = vst [vmem:[#allocation9_spill] sm:$0xff] %v9491_v39  ;;  %v1965_v30 = vadd.f32 %v1889_v33, %v12362_v59  ;;  %v2051_v61 = vpop.f32.mrf.mxu0  ;;  %7174 = vmatmul.msk.f32.gmra.mxu1 %vm539_vm1, %v9446_v9 }
 0x2ac   : > { %v2124_v12 = vadd.f32 %v2048_v41, %v1965_v30  ;;  %v2532_v41 = vrot.slane %v9500_v49, 1  ;;  %v2755_v30 = vrot.slane %v8938_v29, 2 }
 0x2ad   : > { %7141 = vmatmul.msk.f32.gmra.mxu0 %vm539_vm1, %v12364_v5  ;;  %7208 = vmatmul.msk.f32.gmra.mxu2 %vm539_vm1, %v9497_v26 }
 0x2ae   : > { %7107 = vmatmul.msk.f32.gmra.mxu3 %vm539_vm1, %v12365_v37  ;;  %v2423_v34 = vadd.f32 %v2347_v20, %v2124_v12  ;;  %v12367_v20 = vld [vmem:[#allocation44_spill] sm:$0xff]  ;;  %v9521_v26 = vsel %vm456_vm2, %v2531_v14, %v2532_v41  ;;  %v9529_v29 = vsel %vm901_vm3, %v2755_v30, %v12076_v62  ;;  %v2534_v30 = vrot.slane %v9524_v28, 1 }
 0x2af   : > { %v2353_v33 = vpop.f32.mrf.mxu1  ;;  %12368 = vst [vmem:[#allocation10_spill] sm:$0xff] %v9521_v26 }
 0x2b0   : > { %v9515_v59 = vadd.f32 %v2657_v42, %v2423_v34  ;;  %v2660_v37 = vpop.f32.mrf.mxu2  ;;  %12369 = vst [vmem:[#allocation44_spill] sm:$0xff] %v9524_v28  ;;  %v12370_v42 = vld [vmem:[#allocation3_spill] sm:$0xff] }
 0x2b1   : > { %v1892_v5 = vpop.f32.mrf.mxu3 }
 0x2b2   : > { %12366 = vst [vmem:[#allocation49_spill] sm:$0xff] %v9515_v59  ;;  %v1966_v12 = vadd.f32 %v1892_v5, %v12367_v20  ;;  %v2054_v39 = vpop.f32.mrf.mxu0  ;;  %7175 = vmatmul.msk.f32.gmra.mxu1 %vm539_vm1, %v9507_v45  ;;  %v9551_v59 = vld [vmem:[%s8926_s28 + $0x170] sm:$0xff] }
 0x2b4   : > { %v2125_v48 = vadd.f32 %v2051_v61, %v1966_v12  ;;  %v7349_v61 = vld [vmem:[%s11925_s3 + $0x18] sm:$0xf] }
 0x2b5   : > { %7142 = vmatmul.msk.f32.gmra.mxu0 %vm539_vm1, %v12370_v42  ;;  %7209 = vmatmul.msk.f32.gmra.mxu2 %vm539_vm1, %v9521_v26  ;;  %v12372_v42 = vld [vmem:[#allocation4_spill] sm:$0xff] }
 0x2b6   : > { %7108 = vmatmul.msk.f32.gmra.mxu3 %vm539_vm1, %v8900_v2  ;;  %v2424_v34 = vadd.f32 %v2350_v44, %v2125_v48  ;;  %v9548_v44 = vsel %vm456_vm2, %v2532_v41, %v2534_v30  ;;  %v7383_v41 = vld [vmem:[%s11925_s3 + $0x1c] sm:$0xf] }
 0x2b7   : > { %v2356_v14 = vpop.f32.mrf.mxu1  ;;  %7350 = vmatpush.msk.msra.mxu3 %vm604_vm0, %v7349_v61  ;;  %12373 = vst [vmem:[#allocation4_spill] sm:$0xff] %v9548_v44  ;;  %7384 = vmatpush.msk.msra.mxu0 %vm604_vm0, %v7383_v41  ;;  %v406_v41 = vld [vmem:[%s7916_s24 + $0x1a8] sm:$0x3] }
 0x2b8   : > { %v9542_v5 = vadd.f32 %v2660_v37, %v2424_v34  ;;  %v2663_v12 = vpop.f32.mrf.mxu2  ;;  %v9558_v34 = vld [vmem:[%s8926_s28 + $0x168] sm:$0xff] }
 0x2b9   : > { %v1895_v20 = vpop.f32.mrf.mxu3  ;;  %12374 = vst [vmem:[#allocation69_spill] sm:$0xff] %v9558_v34  ;;  %v2536_v61 = vrot.slane %v9558_v34, 1 }
 0x2ba   : > { %12371 = vst [vmem:[#allocation3_spill] sm:$0xff] %v9542_v5  ;;  %v1967_v2 = vadd.f32 %v1895_v20, %v12372_v42  ;;  %v2057_v48 = vpop.f32.mrf.mxu0  ;;  %7176 = vmatmul.msk.f32.gmra.mxu1 %vm539_vm1, %v9500_v49  ;;  %v12376_v20 = vld [vmem:[#allocation5_spill] sm:$0xff] }
 0x2bc   : > { %v2126_v62 = vadd.f32 %v2054_v39, %v1967_v2 }
 0x2bd   : > { %7143 = vmatmul.msk.f32.gmra.mxu0 %vm539_vm1, %v8911_v43  ;;  %7210 = vmatmul.msk.f32.gmra.mxu2 %vm539_vm1, %v9548_v44  ;;  %v2537_v43 = vrot.slane %v9551_v59, 1  ;;  %v12378_v44 = vld [vmem:[#allocation6_spill] sm:$0xff] }
 0x2be   : > { %7109 = vmatmul.msk.f32.gmra.mxu3 %vm539_vm1, %v8919_v32  ;;  %v2425_v37 = vadd.f32 %v2353_v33, %v2126_v62  ;;  %v7417_v33 = vld [vmem:[%s11925_s3 + $0x20] sm:$0xf] }
 0x2bf   : > { %v2359_v39 = vpop.f32.mrf.mxu1  ;;  %7418 = vmatpush.msk.msra.mxu1 %vm604_vm0, %v7417_v33  ;;  %v9578_v5 = vsel %vm456_vm2, %v2536_v61, %v2537_v43 }
 0x2c0   : > { %v9568_v32 = vadd.f32 %v2663_v12, %v2425_v37  ;;  %v2666_v30 = vpop.f32.mrf.mxu2  ;;  %12377 = vst [vmem:[#allocation5_spill] sm:$0xff] %v9578_v5  ;;  %v9582_v37 = vld [vmem:[%s8926_s28 + $0x178] sm:$0x3] }
 0x2c1   : > { %v1898_v62 = vpop.f32.mrf.mxu3  ;;  %v2539_v61 = vrot.slane %v9582_v37, 1 }
 0x2c2   : > { %12375 = vst [vmem:[#allocation70_spill] sm:$0xff] %v9568_v32  ;;  %v1968_v42 = vadd.f32 %v1898_v62, %v12376_v20  ;;  %v2060_v2 = vpop.f32.mrf.mxu0  ;;  %7177 = vmatmul.msk.f32.gmra.mxu1 %vm539_vm1, %v9558_v34  ;;  %v1990_v62 = vrot.slane %v406_v41, 2  ;;  %v1831_v32 = vrot.slane %v406_v41, 1 }
 0x2c4   : > { %v2127_v12 = vadd.f32 %v2057_v48, %v1968_v42 }
 0x2c5   : > { %7144 = vmatmul.msk.f32.gmra.mxu0 %vm539_vm1, %v9484_v63  ;;  %7211 = vmatmul.msk.f32.gmra.mxu2 %vm539_vm1, %v9578_v5 }
 0x2c6   : > { %7110 = vmatmul.msk.f32.gmra.mxu3 %vm539_vm1, %v9477_v4  ;;  %v2426_v33 = vadd.f32 %v2356_v14, %v2127_v12  ;;  %v12379_v4 = vrot.slane %v8929_v46, 2  ;;  %v12380_v14 = vrot.slane %v8929_v46, 1  ;;  %v9603_v12 = vsel %vm456_vm2, %v2537_v43, %v2539_v61 }
 0x2c7   : > { %v2362_v20 = vpop.f32.mrf.mxu1  ;;  %12381 = vst [vmem:[#allocation6_spill] sm:$0xff] %v9603_v12 }
 0x2c8   : > { %v9591_v34 = vadd.f32 %v2666_v30, %v2426_v33  ;;  %v2669_v42 = vpop.f32.mrf.mxu2  ;;  %v1991_v63 = vsel %vm901_vm3, %v12379_v4, %v1990_v62  ;;  %v1832_v41 = vsel %vm456_vm2, %v12380_v14, %v1831_v32  ;;  %v2760_v33 = vrot.slane %v8970_v53, 2  ;;  %v7784_v4 = vld [vmem:[%s8926_s28 + $0x18] sm:$0xff] }
 0x2c9   : > { %v1901_v48 = vpop.f32.mrf.mxu3  ;;  %v2761_v62 = vrot.slane %v8963_v57, 2 }
 0x2ca   : > { %v1969_v28 = vadd.f32 %v1901_v48, %v12378_v44  ;;  %v2063_v26 = vpop.f32.mrf.mxu0  ;;  %7178 = vmatmul.msk.f32.gmra.mxu1 %vm539_vm1, %v9551_v59 }
 0x2cc   : > { %v2128_v30 = vadd.f32 %v2060_v2, %v1969_v28 }
 0x2cd   : > { %7145 = vmatmul.msk.f32.gmra.mxu0 %vm539_vm1, %v1991_v63  ;;  %7212 = vmatmul.msk.f32.gmra.mxu2 %vm539_vm1, %v9603_v12  ;;  %v2763_v63 = vrot.slane %v8984_v17, 2 }
 0x2ce   : > { %7111 = vmatmul.msk.f32.gmra.mxu3 %vm539_vm1, %v1832_v41  ;;  %v2427_v44 = vadd.f32 %v2359_v39, %v2128_v30  ;;  %v2762_v39 = vsel %vm901_vm3, %v2760_v33, %v2761_v62 }
 0x2cf   : > { %v2365_v46 = vpop.f32.mrf.mxu1 }
 0x2d0   : > { %v9611_v32 = vadd.f32 %v2669_v42, %v2427_v44  ;;  %v2672_v61 = vpop.f32.mrf.mxu2  ;;  %v7785_v42 = vld [vmem:[%s8926_s28 + $0x10] sm:$0x3]  ;;  %v2764_v44 = vsel %vm901_vm3, %v2761_v62, %v2763_v63 }
 0x2d1   : > { %v1904_v43 = vpop.f32.mrf.mxu3 }
 0x2d2   : > { %v1970_v28 = vadd.f32 %v1904_v43, %v8956_v40  ;;  %v2066_v2 = vpop.f32.mrf.mxu0  ;;  %7283 = vmatmul.msk.f32.vlgmr.msrb.gmra.mxu1 %vm539_vm1, %v8981_v1  ;;  %v2758_v40 = vrot.slane %v7785_v42, 2  ;;  %v7786_v43 = vld [vmem:[%s8926_s28 + $0x20] sm:$0xff] }
 0x2d4   : > { %v2129_v48 = vadd.f32 %v2063_v26, %v1970_v28 }
 0x2d5   : > { %7249 = vmatmul.msk.f32.vlgmr.msrb.gmra.mxu0 %vm539_vm1, %v7784_v4  ;;  %7317 = vmatmul.msk.f32.vlgmr.msrb.gmra.mxu2 %vm539_vm1, %v2762_v39 }
 0x2d6   : > { %7215 = vmatmul.msk.f32.vlgmr.msrb.gmra.mxu3 %vm539_vm1, %v9529_v29  ;;  %v2428_v57 = vadd.f32 %v2362_v20, %v2129_v48  ;;  %v12382_v29 = vrot.slane %v8932_v50, 2 }
 0x2d7   : > { %v2368_v53 = vpop.f32.mrf.mxu1 }
 0x2d8   : > { %v9624_v14 = vadd.f32 %v2672_v61, %v2428_v57  ;;  %v2675_v41 = vpop.f32.mrf.mxu2  ;;  %v2759_v20 = vsel %vm901_vm3, %v12382_v29, %v2758_v40  ;;  %v2765_v61 = vrot.slane %v9009_v18, 2  ;;  %v9648_v57 = vld [vmem:[%s8926_s28 + $0x30] sm:$0xff]  ;;  %v2768_v18 = vrot.slane %v9024_v10, 2 }
 0x2d9   : > { %v1907_v1 = vpop.f32.mrf.mxu3  ;;  %v2771_v29 = vrot.slane %v9042_v27, 2 }
 0x2da   : > { %v1971_v26 = vadd.f32 %v1907_v1, %v8975_v22  ;;  %v2069_v30 = vpop.f32.mrf.mxu0  ;;  %7284 = vmatmul.msk.f32.gmra.mxu1 %vm539_vm1, %v8999_v16  ;;  %v2766_v16 = vrot.slane %v9002_v15, 2 }
 0x2dc   : > { %v2130_v33 = vadd.f32 %v2066_v2, %v1971_v26  ;;  %v9645_v4 = vsel %vm901_vm3, %v2765_v61, %v2766_v16  ;;  %v9662_v26 = vsel %vm901_vm3, %v2766_v16, %v2768_v18  ;;  %v2773_v16 = vrot.slane %v9064_v38, 2 }
 0x2dd   : > { %7250 = vmatmul.msk.f32.gmra.mxu0 %vm539_vm1, %v7786_v43  ;;  %7318 = vmatmul.msk.f32.gmra.mxu2 %vm539_vm1, %v2764_v44  ;;  %v2775_v18 = vrot.slane %v9089_v60, 2 }
 0x2de   : > { %7216 = vmatmul.msk.f32.gmra.mxu3 %vm539_vm1, %v2759_v20  ;;  %v2429_v17 = vadd.f32 %v2365_v46, %v2130_v33 }
 0x2df   : > { %v2371_v22 = vpop.f32.mrf.mxu1 }
 0x2e0   : > { %v9639_v50 = vadd.f32 %v2675_v41, %v2429_v17  ;;  %v2678_v48 = vpop.f32.mrf.mxu2 }
 0x2e1   : > { %v1910_v28 = vpop.f32.mrf.mxu3 }
 0x2e2   : > { %v1972_v62 = vadd.f32 %v1910_v28, %v8993_v35  ;;  %v2072_v2 = vpop.f32.mrf.mxu0  ;;  %7285 = vmatmul.msk.f32.gmra.mxu1 %vm539_vm1, %v9021_v31 }
 0x2e4   : > { %v2131_v46 = vadd.f32 %v2069_v30, %v1972_v62  ;;  %v2770_v30 = vrot.slane %v9049_v7, 2 }
 0x2e5   : > { %7251 = vmatmul.msk.f32.gmra.mxu0 %vm539_vm1, %v9648_v57  ;;  %7319 = vmatmul.msk.f32.gmra.mxu2 %vm539_vm1, %v9645_v4 }
 0x2e6   : > { %7217 = vmatmul.msk.f32.gmra.mxu3 %vm539_vm1, %v2762_v39  ;;  %v2430_v15 = vadd.f32 %v2368_v53, %v2131_v46  ;;  %v9665_v53 = vld [vmem:[%s8926_s28 + $0x38] sm:$0xff] }
 0x2e7   : > { %v2374_v35 = vpop.f32.mrf.mxu1 }
 0x2e8   : > { %v9656_v42 = vadd.f32 %v2678_v48, %v2430_v15  ;;  %v2681_v63 = vpop.f32.mrf.mxu2 }
 0x2e9   : > { %v1913_v40 = vpop.f32.mrf.mxu3 }
 0x2ea   : > { %v1973_v1 = vadd.f32 %v1913_v40, %v9015_v3  ;;  %v2075_v41 = vpop.f32.mrf.mxu0  ;;  %7286 = vmatmul.msk.f32.gmra.mxu1 %vm539_vm1, %v9039_v51  ;;  %v2776_v40 = vrot.slane %v9082_v6, 2 }
 0x2ec   : > { %v2132_v39 = vadd.f32 %v2072_v2, %v1973_v1 }
 0x2ed   : > { %7252 = vmatmul.msk.f32.gmra.mxu0 %vm539_vm1, %v9665_v53  ;;  %7320 = vmatmul.msk.f32.gmra.mxu2 %vm539_vm1, %v9662_v26 }
 0x2ee   : > { %7218 = vmatmul.msk.f32.gmra.mxu3 %vm539_vm1, %v2764_v44  ;;  %v2431_v10 = vadd.f32 %v2371_v22, %v2132_v39  ;;  %v9680_v44 = vsel %vm901_vm3, %v2770_v30, %v2771_v29 }
 0x2ef   : > { %v2377_v3 = vpop.f32.mrf.mxu1 }
 0x2f0   : > { %v9674_v20 = vadd.f32 %v2681_v63, %v2431_v10  ;;  %v2684_v43 = vpop.f32.mrf.mxu2 }
 0x2f1   : > { %v1916_v33 = vpop.f32.mrf.mxu3 }
 0x2f2   : > { %v1974_v17 = vadd.f32 %v1916_v33, %v9033_v54  ;;  %v2078_v61 = vpop.f32.mrf.mxu0  ;;  %7287 = vmatmul.msk.f32.gmra.mxu1 %vm539_vm1, %v9061_v56 }
 0x2f4   : > { %v2133_v22 = vadd.f32 %v2075_v41, %v1974_v17 }
 0x2f5   : > { %7253 = vmatmul.msk.f32.gmra.mxu0 %vm539_vm1, %v9049_v7  ;;  %7321 = vmatmul.msk.f32.gmra.mxu2 %vm539_vm1, %v9680_v44  ;;  %v9695_v7 = vsel %vm901_vm3, %v2771_v29, %v2773_v16  ;;  %v2778_v29 = vrot.slane %v9104_v8, 2  ;;  %v12384_v16 = vld [vmem:[#allocation53_spill] sm:$0xff] }
 0x2f6   : > { %7219 = vmatmul.msk.f32.gmra.mxu3 %vm539_vm1, %v9645_v4  ;;  %v2432_v27 = vadd.f32 %v2374_v35, %v2133_v22  ;;  %v9698_v35 = vld [vmem:[%s8926_s28 + $0x50] sm:$0xff] }
 0x2f7   : > { %v2380_v54 = vpop.f32.mrf.mxu1 }
 0x2f8   : > { %v9689_v28 = vadd.f32 %v2684_v43, %v2432_v27  ;;  %v2687_v62 = vpop.f32.mrf.mxu2 }
 0x2f9   : > { %v1919_v48 = vpop.f32.mrf.mxu3 }
 0x2fa   : > { %v1975_v2 = vadd.f32 %v1919_v48, %v9055_v21  ;;  %v2081_v46 = vpop.f32.mrf.mxu0  ;;  %7288 = vmatmul.msk.f32.gmra.mxu1 %vm539_vm1, %v9079_v13  ;;  %v9732_v48 = vld [vmem:[%s8926_s28 + $0x68] sm:$0xff] }
 0x2fc   : > { %v2134_v15 = vadd.f32 %v2078_v61, %v1975_v2  ;;  %v12383_v61 = vld [vmem:[#allocation37_spill] sm:$0xff]  ;;  %v12385_v2 = vld [vmem:[#allocation55_spill] sm:$0xff] }
 0x2fd   : > { %7254 = vmatmul.msk.f32.gmra.mxu0 %vm539_vm1, %v9698_v35  ;;  %7322 = vmatmul.msk.f32.gmra.mxu2 %vm539_vm1, %v9695_v7 }
 0x2fe   : > { %7220 = vmatmul.msk.f32.gmra.mxu3 %vm539_vm1, %v9662_v26  ;;  %v2433_v38 = vadd.f32 %v2377_v3, %v2134_v15  ;;  %v9714_v3 = vsel %vm901_vm3, %v2775_v18, %v2776_v40  ;;  %v12386_v15 = vld [vmem:[#allocation54_spill] sm:$0xff] }
 0x2ff   : > { %v2383_v21 = vpop.f32.mrf.mxu1 }
 0x300   : > { %v9708_v63 = vadd.f32 %v2687_v62, %v2433_v38  ;;  %v2690_v41 = vpop.f32.mrf.mxu2  ;;  %v2781_v38 = vrot.slane %v12386_v15, 2 }
 0x301   : > { %v1922_v1 = vpop.f32.mrf.mxu3 }
 0x302   : > { %v1976_v39 = vadd.f32 %v1922_v1, %v9073_v52  ;;  %v2084_v10 = vpop.f32.mrf.mxu0  ;;  %7289 = vmatmul.msk.f32.gmra.mxu1 %vm539_vm1, %v9101_v25 }
 0x304   : > { %v2135_v30 = vadd.f32 %v2081_v46, %v1976_v39  ;;  %v2780_v46 = vrot.slane %v12385_v2, 2 }
 0x305   : > { %7255 = vmatmul.msk.f32.gmra.mxu0 %vm539_vm1, %v9089_v60  ;;  %7323 = vmatmul.msk.f32.gmra.mxu2 %vm539_vm1, %v9714_v3  ;;  %v9729_v60 = vsel %vm901_vm3, %v2776_v40, %v2778_v29 }
 0x306   : > { %7221 = vmatmul.msk.f32.gmra.mxu3 %vm539_vm1, %v9680_v44  ;;  %v2434_v6 = vadd.f32 %v2380_v54, %v2135_v30  ;;  %v12388_v30 = vld [vmem:[#allocation50_spill] sm:$0xff] }
 0x307   : > { %v2386_v52 = vpop.f32.mrf.mxu1 }
 0x308   : > { %v9723_v33 = vadd.f32 %v2690_v41, %v2434_v6  ;;  %v2693_v17 = vpop.f32.mrf.mxu2  ;;  %v12387_v41 = vld [vmem:[#allocation46_spill] sm:$0xff] }
 0x309   : > { %v1925_v43 = vpop.f32.mrf.mxu3 }
 0x30a   : > { %v1977_v22 = vadd.f32 %v1925_v43, %v12383_v61  ;;  %v2087_v27 = vpop.f32.mrf.mxu0  ;;  %7290 = vmatmul.msk.f32.gmra.mxu1 %vm539_vm1, %v12384_v16 }
 0x30c   : > { %v2136_v54 = vadd.f32 %v2084_v10, %v1977_v22 }
 0x30d   : > { %7256 = vmatmul.msk.f32.gmra.mxu0 %vm539_vm1, %v9732_v48  ;;  %7324 = vmatmul.msk.f32.gmra.mxu2 %vm539_vm1, %v9729_v60 }
 0x30e   : > { %7222 = vmatmul.msk.f32.gmra.mxu3 %vm539_vm1, %v9695_v7  ;;  %v2435_v8 = vadd.f32 %v2383_v21, %v2136_v54  ;;  %v9748_v21 = vsel %vm901_vm3, %v2780_v46, %v2781_v38  ;;  %v12391_v46 = vld [vmem:[#allocation56_spill] sm:$0xff] }
 0x30f   : > { %v2389_v62 = vpop.f32.mrf.mxu1 }
 0x310   : > { %v9742_v18 = vadd.f32 %v2693_v17, %v2435_v8  ;;  %v2696_v1 = vpop.f32.mrf.mxu2  ;;  %v12389_v17 = vld [vmem:[#allocation57_spill] sm:$0xff] }
 0x311   : > { %v1928_v40 = vpop.f32.mrf.mxu3  ;;  %v2783_v61 = vrot.slane %v12389_v17, 2  ;;  %v12396_v17 = vld [vmem:[#allocation51_spill] sm:$0xff] }
 0x312   : > { %v1978_v39 = vadd.f32 %v1928_v40, %v12387_v41  ;;  %v2090_v10 = vpop.f32.mrf.mxu0  ;;  %7291 = vmatmul.msk.f32.gmra.mxu1 %vm539_vm1, %v12388_v30  ;;  %v12392_v40 = vld [vmem:[#allocation13_spill] sm:$0xff] }
 0x313   : > { %v9766_v41 = vld [vmem:[%s8926_s28 + $0x80] sm:$0xff] }
 0x314   : > { %v2137_v6 = vadd.f32 %v2087_v27, %v1978_v39  ;;  %12394 = vst [vmem:[#allocation55_spill] sm:$0xff] %v9766_v41 }
 0x315   : > { %7257 = vmatmul.msk.f32.gmra.mxu0 %vm539_vm1, %v12385_v2  ;;  %7325 = vmatmul.msk.f32.gmra.mxu2 %vm539_vm1, %v9748_v21  ;;  %v9763_v2 = vsel %vm901_vm3, %v2781_v38, %v2783_v61 }
 0x316   : > { %7223 = vmatmul.msk.f32.gmra.mxu3 %vm539_vm1, %v9714_v3  ;;  %v2436_v29 = vadd.f32 %v2386_v52, %v2137_v6  ;;  %12393 = vst [vmem:[#allocation53_spill] sm:$0xff] %v9763_v2  ;;  %v12395_v6 = vld [vmem:[#allocation16_spill] sm:$0xff] }
 0x317   : > { %v2392_v43 = vpop.f32.mrf.mxu1 }
 0x318   : > { %v9757_v22 = vadd.f32 %v2696_v1, %v2436_v29  ;;  %v2699_v8 = vpop.f32.mrf.mxu2  ;;  %v2785_v29 = vrot.slane %v12395_v6, 2 }
 0x319   : > { %v1931_v54 = vpop.f32.mrf.mxu3 }
 0x31a   : > { %12390 = vst [vmem:[#allocation37_spill] sm:$0xff] %v9757_v22  ;;  %v1979_v15 = vadd.f32 %v1931_v54, %v12391_v46  ;;  %v2093_v27 = vpop.f32.mrf.mxu0  ;;  %7292 = vmatmul.msk.f32.gmra.mxu1 %vm539_vm1, %v12392_v40  ;;  %v2786_v54 = vrot.slane %v12396_v17, 2  ;;  %v12398_v46 = vld [vmem:[#allocation14_spill] sm:$0xff] }
 0x31b   : > { %v12400_v17 = vld [vmem:[#allocation58_spill] sm:$0xff] }
 0x31c   : > { %v2138_v52 = vadd.f32 %v2090_v10, %v1979_v15 }
 0x31d   : > { %7258 = vmatmul.msk.f32.gmra.mxu0 %vm539_vm1, %v9766_v41  ;;  %7326 = vmatmul.msk.f32.gmra.mxu2 %vm539_vm1, %v9763_v2  ;;  %v12399_v41 = vld [vmem:[#allocation11_spill] sm:$0xff] }
 0x31e   : > { %7224 = vmatmul.msk.f32.gmra.mxu3 %vm539_vm1, %v9729_v60  ;;  %v2437_v1 = vadd.f32 %v2389_v62, %v2138_v52  ;;  %v9782_v62 = vsel %vm901_vm3, %v2785_v29, %v2786_v54 }
 0x31f   : > { %v2395_v39 = vpop.f32.mrf.mxu1 }
 0x320   : > { %v9776_v38 = vadd.f32 %v2699_v8, %v2437_v1  ;;  %v2702_v61 = vpop.f32.mrf.mxu2 }
 0x321   : > { %v1934_v10 = vpop.f32.mrf.mxu3 }
 0x322   : > { %12397 = vst [vmem:[#allocation54_spill] sm:$0xff] %v9776_v38  ;;  %v1980_v15 = vadd.f32 %v1934_v10, %v12398_v46  ;;  %v2096_v22 = vpop.f32.mrf.mxu0  ;;  %7293 = vmatmul.msk.f32.gmra.mxu1 %vm539_vm1, %v12399_v41  ;;  %v2788_v10 = vrot.slane %v12400_v17, 2  ;;  %v12402_v41 = vld [vmem:[#allocation15_spill] sm:$0xff]  ;;  %v2791_v17 = vrot.slane %v9202_v0, 2 }
 0x324   : > { %v2139_v52 = vadd.f32 %v2093_v27, %v1980_v15  ;;  %v12403_v15 = vld [vmem:[#allocation18_spill] sm:$0xff] }
 0x325   : > { %7259 = vmatmul.msk.f32.gmra.mxu0 %vm539_vm1, %v12395_v6  ;;  %7327 = vmatmul.msk.f32.gmra.mxu2 %vm539_vm1, %v9782_v62  ;;  %v9797_v6 = vsel %vm901_vm3, %v2786_v54, %v2788_v10  ;;  %v12407_v10 = vld [vmem:[#allocation20_spill] sm:$0xff] }
 0x326   : > { %7225 = vmatmul.msk.f32.gmra.mxu3 %vm539_vm1, %v9748_v21  ;;  %v2438_v8 = vadd.f32 %v2392_v43, %v2139_v52  ;;  %v9800_v52 = vld [vmem:[%s8926_s28 + $0x98] sm:$0xff] }
 0x327   : > { %v2398_v1 = vpop.f32.mrf.mxu1  ;;  %12404 = vst [vmem:[#allocation50_spill] sm:$0xff] %v9800_v52 }
 0x328   : > { %v9791_v46 = vadd.f32 %v2702_v61, %v2438_v8  ;;  %v2705_v29 = vpop.f32.mrf.mxu2 }
 0x329   : > { %v1937_v38 = vpop.f32.mrf.mxu3 }
 0x32a   : > { %12401 = vst [vmem:[#allocation46_spill] sm:$0xff] %v9791_v46  ;;  %v1981_v40 = vadd.f32 %v1937_v38, %v12402_v41  ;;  %v2099_v27 = vpop.f32.mrf.mxu0  ;;  %7294 = vmatmul.msk.f32.gmra.mxu1 %vm539_vm1, %v12403_v15  ;;  %v12405_v38 = vld [vmem:[#allocation12_spill] sm:$0xff] }
 0x32b   : > { %v2790_v8 = vrot.slane %v12405_v38, 2 }
 0x32c   : > { %v2140_v43 = vadd.f32 %v2096_v22, %v1981_v40 }
 0x32d   : > { %7260 = vmatmul.msk.f32.gmra.mxu0 %vm539_vm1, %v9800_v52  ;;  %7328 = vmatmul.msk.f32.gmra.mxu2 %vm539_vm1, %v9797_v6  ;;  %v12408_v52 = vld [vmem:[#allocation22_spill] sm:$0xff] }
 0x32e   : > { %7226 = vmatmul.msk.f32.gmra.mxu3 %vm539_vm1, %v9763_v2  ;;  %v2439_v61 = vadd.f32 %v2395_v39, %v2140_v43  ;;  %v9816_v39 = vsel %vm901_vm3, %v2790_v8, %v2791_v17 }
 0x32f   : > { %v2401_v41 = vpop.f32.mrf.mxu1 }
 0x330   : > { %v9810_v54 = vadd.f32 %v2705_v29, %v2439_v61  ;;  %v2708_v40 = vpop.f32.mrf.mxu2  ;;  %v12409_v61 = vld [vmem:[#allocation17_spill] sm:$0xff] }
 0x331   : > { %v1940_v22 = vpop.f32.mrf.mxu3 }
 0x332   : > { %12406 = vst [vmem:[#allocation57_spill] sm:$0xff] %v9810_v54  ;;  %v1982_v46 = vadd.f32 %v1940_v22, %v12407_v10  ;;  %v2102_v15 = vpop.f32.mrf.mxu0  ;;  %7295 = vmatmul.msk.f32.gmra.mxu1 %vm539_vm1, %v12408_v52  ;;  %v2793_v22 = vrot.slane %v12409_v61, 2  ;;  %v12411_v52 = vld [vmem:[#allocation24_spill] sm:$0xff] }
 0x334   : > { %v2141_v43 = vadd.f32 %v2099_v27, %v1982_v46  ;;  %v12412_v27 = vld [vmem:[#allocation27_spill] sm:$0xff] }
 0x335   : > { %7261 = vmatmul.msk.f32.gmra.mxu0 %vm539_vm1, %v12405_v38  ;;  %7329 = vmatmul.msk.f32.gmra.mxu2 %vm539_vm1, %v9816_v39  ;;  %v9831_v38 = vsel %vm901_vm3, %v2791_v17, %v2793_v22  ;;  %v12414_v17 = vld [vmem:[#allocation25_spill] sm:$0xff] }
 0x336   : > { %7227 = vmatmul.msk.f32.gmra.mxu3 %vm539_vm1, %v9782_v62  ;;  %v2440_v0 = vadd.f32 %v2398_v1, %v2141_v43  ;;  %v9834_v43 = vld [vmem:[%s8926_s28 + $0xb0] sm:$0xff] }
 0x337   : > { %v2404_v29 = vpop.f32.mrf.mxu1  ;;  %12413 = vst [vmem:[#allocation16_spill] sm:$0xff] %v9834_v43 }
 0x338   : > { %v9825_v10 = vadd.f32 %v2708_v40, %v2440_v0  ;;  %v2711_v8 = vpop.f32.mrf.mxu2  ;;  %v2795_v0 = vrot.slane %v12414_v17, 2 }
 0x339   : > { %v1943_v54 = vpop.f32.mrf.mxu3 }
 0x33a   : > { %12410 = vst [vmem:[#allocation56_spill] sm:$0xff] %v9825_v10  ;;  %v1983_v2 = vadd.f32 %v1943_v54, %v12411_v52  ;;  %v2105_v46 = vpop.f32.mrf.mxu0  ;;  %7296 = vmatmul.msk.f32.gmra.mxu1 %vm539_vm1, %v12412_v27  ;;  %v7451_v52 = vld [vmem:[%s11928_s6 + $0x4] sm:$0xf] }
 0x33b   : > { %7452 = vmatpush.msk.msra.mxu2 %vm604_vm0, %v7451_v52  ;;  %v12416_v10 = vld [vmem:[#allocation29_spill] sm:$0xff] }
 0x33c   : > { %v2142_v1 = vadd.f32 %v2102_v15, %v1983_v2  ;;  %v2796_v2 = vrot.slane %v9246_v55, 2 }
 0x33d   : > { %7262 = vmatmul.msk.f32.gmra.mxu0 %vm539_vm1, %v9834_v43  ;;  %7330 = vmatmul.msk.f32.gmra.mxu2 %vm539_vm1, %v9831_v38 }
 0x33e   : > { %7228 = vmatmul.msk.f32.gmra.mxu3 %vm539_vm1, %v9797_v6  ;;  %v2441_v40 = vadd.f32 %v2401_v41, %v2142_v1  ;;  %v9854_v43 = vsel %vm901_vm3, %v2795_v0, %v2796_v2 }
 0x33f   : > { %v2407_v54 = vpop.f32.mrf.mxu1 }
 0x340   : > { %v9848_v15 = vadd.f32 %v2711_v8, %v2441_v40  ;;  %v2714_v22 = vpop.f32.mrf.mxu2  ;;  %v2798_v8 = vrot.slane %v9268_v23, 2 }
 0x341   : > { %v1946_v61 = vpop.f32.mrf.mxu3 }
 0x342   : > { %12415 = vst [vmem:[#allocation51_spill] sm:$0xff] %v9848_v15  ;;  %v1984_v41 = vadd.f32 %v1946_v61, %v12416_v10  ;;  %v2108_v1 = vpop.f32.mrf.mxu0  ;;  %7297 = vmatmul.msk.f32.gmra.mxu1 %vm539_vm1, %v9265_v11  ;;  %v12418_v61 = vld [vmem:[#allocation33_spill] sm:$0xff] }
 0x344   : > { %v2143_v27 = vadd.f32 %v2105_v46, %v1984_v41  ;;  %v12419_v41 = vld [vmem:[#allocation38_spill] sm:$0xff] }
 0x345   : > { %7263 = vmatmul.msk.f32.gmra.mxu0 %vm539_vm1, %v12414_v17  ;;  %7331 = vmatmul.msk.f32.gmra.mxu2 %vm539_vm1, %v9854_v43  ;;  %v9869_v17 = vsel %vm901_vm3, %v2796_v2, %v2798_v8  ;;  %v12423_v8 = vld [vmem:[#allocation52_spill] sm:$0xff] }
 0x346   : > { %7229 = vmatmul.msk.f32.gmra.mxu3 %vm539_vm1, %v9816_v39  ;;  %v2442_v55 = vadd.f32 %v2404_v29, %v2143_v27  ;;  %v9872_v27 = vld [vmem:[%s8926_s28 + $0xc8] sm:$0xff] }
 0x347   : > { %v2410_v10 = vpop.f32.mrf.mxu1  ;;  %12420 = vst [vmem:[#allocation58_spill] sm:$0xff] %v9872_v27 }
 0x348   : > { %v9863_v40 = vadd.f32 %v2714_v22, %v2442_v55  ;;  %v2717_v0 = vpop.f32.mrf.mxu2  ;;  %v12421_v55 = vld [vmem:[#allocation34_spill] sm:$0xff] }
 0x349   : > { %v1949_v52 = vpop.f32.mrf.mxu3 }
 0x34a   : > { %12417 = vst [vmem:[#allocation14_spill] sm:$0xff] %v9863_v40  ;;  %v1985_v15 = vadd.f32 %v1949_v52, %v12418_v61  ;;  %v2111_v46 = vpop.f32.mrf.mxu0  ;;  %7298 = vmatmul.msk.f32.gmra.mxu1 %vm539_vm1, %v12419_v41  ;;  %v2800_v52 = vrot.slane %v12421_v55, 2  ;;  %v2801_v61 = vrot.slane %v9286_v19, 2 }
 0x34c   : > { %v2144_v29 = vadd.f32 %v2108_v1, %v1985_v15 }
 0x34d   : > { %7264 = vmatmul.msk.f32.gmra.mxu0 %vm539_vm1, %v9872_v27  ;;  %7332 = vmatmul.msk.f32.gmra.mxu2 %vm539_vm1, %v9869_v17 }
 0x34e   : > { %7230 = vmatmul.msk.f32.gmra.mxu3 %vm539_vm1, %v9831_v38  ;;  %v2443_v23 = vadd.f32 %v2407_v54, %v2144_v29  ;;  %v9888_v54 = vsel %vm901_vm3, %v2800_v52, %v2801_v61  ;;  %v12427_v52 = vld [vmem:[#allocation59_spill] sm:$0xff] }
 0x34f   : > { %v3237_v22 = vpop.f32.mrf.mxu1  ;;  %12424 = vst [vmem:[#allocation12_spill] sm:$0xff] %v9888_v54 }
 0x350   : > { %v9882_v2 = vadd.f32 %v2717_v0, %v2443_v23  ;;  %v2720_v1 = vpop.f32.mrf.mxu2 }
 0x351   : > { %v1952_v15 = vpop.f32.mrf.mxu3 }
 0x352   : > { %12422 = vst [vmem:[#allocation15_spill] sm:$0xff] %v9882_v2  ;;  %v1986_v40 = vadd.f32 %v1952_v15, %v12423_v8  ;;  %v3077_v41 = vpop.f32.mrf.mxu0  ;;  %7299 = vmatmul.msk.f32.gmra.mxu1 %vm539_vm1, %v9305_v24  ;;  %v12425_v15 = vld [vmem:[#allocation60_spill] sm:$0xff] }
 0x353   : > { %v2803_v8 = vrot.slane %v12425_v15, 2  ;;  %v2806_v15 = vrot.slane %v9326_v36, 2 }
 0x354   : > { %v2145_v29 = vadd.f32 %v2111_v46, %v1986_v40  ;;  %v12428_v46 = vld [vmem:[#allocation26_spill] sm:$0xff] }
 0x355   : > { %7265 = vmatmul.msk.f32.gmra.mxu0 %vm539_vm1, %v12421_v55  ;;  %7333 = vmatmul.msk.f32.gmra.mxu2 %vm539_vm1, %v9888_v54  ;;  %v9903_v55 = vsel %vm901_vm3, %v2801_v61, %v2803_v8 }
 0x356   : > { %7231 = vmatmul.msk.f32.gmra.mxu3 %vm539_vm1, %v9854_v43  ;;  %v2444_v0 = vadd.f32 %v2410_v10, %v2145_v29  ;;  %12429 = vst [vmem:[#allocation17_spill] sm:$0xff] %v9903_v55 }
 0x357   : > { %v3240_v23 = vpop.f32.mrf.mxu1 }
 0x358   : > { %v9897_v2 = vadd.f32 %v2720_v1, %v2444_v0  ;;  %v3396_v27 = vpop.f32.mrf.mxu2 }
 0x359   : > { %v2921_v24 = vpop.f32.mrf.mxu3 }
 0x35a   : > { %12426 = vst [vmem:[#allocation20_spill] sm:$0xff] %v9897_v2  ;;  %v3017_v11 = vadd.f32 %v2921_v24, %v12427_v52  ;;  %v3080_v40 = vpop.f32.mrf.mxu0  ;;  %7300 = vmatmul.msk.f32.gmra.mxu1 %vm539_vm1, %v12428_v46  ;;  %v12430_v24 = vld [vmem:[#allocation48_spill] sm:$0xff] }
 0x35b   : > { %v2805_v0 = vrot.slane %v12430_v24, 2 }
 0x35c   : > { %v3173_v10 = vadd.f32 %v3077_v41, %v3017_v11  ;;  %v12432_v11 = vld [vmem:[#allocation47_spill] sm:$0xff] }
 0x35d   : > { %7266 = vmatmul.msk.f32.gmra.mxu0 %vm539_vm1, %v9286_v19  ;;  %7334 = vmatmul.msk.f32.gmra.mxu2 %vm539_vm1, %v9903_v55  ;;  %v9919_v19 = vsel %vm901_vm3, %v2805_v0, %v2806_v15  ;;  %v12436_v0 = vld [vmem:[#allocation61_spill] sm:$0xff] }
 0x35e   : > { %7232 = vmatmul.msk.f32.gmra.mxu3 %vm539_vm1, %v9869_v17  ;;  %v3333_v1 = vadd.f32 %v3237_v22, %v3173_v10  ;;  %12433 = vst [vmem:[#allocation25_spill] sm:$0xff] %v9919_v19 }
 0x35f   : > { %v3243_v29 = vpop.f32.mrf.mxu1 }
 0x360   : > { %v9913_v52 = vadd.f32 %v3396_v27, %v3333_v1  ;;  %v3399_v8 = vpop.f32.mrf.mxu2  ;;  %v12434_v1 = vld [vmem:[#allocation62_spill] sm:$0xff] }
 0x361   : > { %v2924_v61 = vpop.f32.mrf.mxu3 }
 0x362   : > { %12431 = vst [vmem:[#allocation24_spill] sm:$0xff] %v9913_v52  ;;  %v3018_v41 = vadd.f32 %v2924_v61, %v12432_v11  ;;  %v3083_v2 = vpop.f32.mrf.mxu0  ;;  %7301 = vmatmul.msk.f32.gmra.mxu1 %vm539_vm1, %v9345_v47  ;;  %v2808_v61 = vrot.slane %v12434_v1, 2  ;;  %v12440_v1 = vld [vmem:[#allocation63_spill] sm:$0xff] }
 0x364   : > { %v3174_v22 = vadd.f32 %v3080_v40, %v3018_v41  ;;  %v12437_v41 = vld [vmem:[#allocation43_spill] sm:$0xff] }
 0x365   : > { %7267 = vmatmul.msk.f32.gmra.mxu0 %vm539_vm1, %v12430_v24  ;;  %7335 = vmatmul.msk.f32.gmra.mxu2 %vm539_vm1, %v9919_v19  ;;  %v9934_v24 = vsel %vm901_vm3, %v2806_v15, %v2808_v61 }
 0x366   : > { %7233 = vmatmul.msk.f32.gmra.mxu3 %vm539_vm1, %v9888_v54  ;;  %v3334_v27 = vadd.f32 %v3240_v23, %v3174_v22  ;;  %12438 = vst [vmem:[#allocation33_spill] sm:$0xff] %v9934_v24 }
 0x367   : > { %v3246_v10 = vpop.f32.mrf.mxu1 }
 0x368   : > { %v9928_v11 = vadd.f32 %v3399_v8, %v3334_v27  ;;  %v3402_v47 = vpop.f32.mrf.mxu2 }
 0x369   : > { %v2927_v52 = vpop.f32.mrf.mxu3 }
 0x36a   : > { %12435 = vst [vmem:[#allocation29_spill] sm:$0xff] %v9928_v11  ;;  %v3019_v46 = vadd.f32 %v2927_v52, %v12436_v0  ;;  %v3086_v40 = vpop.f32.mrf.mxu0  ;;  %7302 = vmatmul.msk.f32.gmra.mxu1 %vm539_vm1, %v12437_v41  ;;  %v12439_v52 = vld [vmem:[#allocation23_spill] sm:$0xff]  ;;  %v2811_v0 = vrot.slane %v12440_v1, 2 }
 0x36b   : > { %v2810_v27 = vrot.slane %v12439_v52, 2 }
 0x36c   : > { %v3175_v23 = vadd.f32 %v3083_v2, %v3019_v46  ;;  %v12442_v2 = vld [vmem:[#allocation19_spill] sm:$0xff] }
 0x36d   : > { %7268 = vmatmul.msk.f32.gmra.mxu0 %vm539_vm1, %v9326_v36  ;;  %7336 = vmatmul.msk.f32.gmra.mxu2 %vm539_vm1, %v9934_v24  ;;  %v12443_v36 = vld [vmem:[#allocation30_spill] sm:$0xff] }
 0x36e   : > { %7234 = vmatmul.msk.f32.gmra.mxu3 %vm539_vm1, %v9903_v55  ;;  %v3335_v8 = vadd.f32 %v3243_v29, %v3175_v23  ;;  %v9950_v29 = vsel %vm901_vm3, %v2810_v27, %v2811_v0  ;;  %v12446_v27 = vld [vmem:[#allocation64_spill] sm:$0xff] }
 0x36f   : > { %v3249_v22 = vpop.f32.mrf.mxu1 }
 0x370   : > { %v9944_v11 = vadd.f32 %v3402_v47, %v3335_v8  ;;  %v3405_v61 = vpop.f32.mrf.mxu2 }
 0x371   : > { %v2930_v15 = vpop.f32.mrf.mxu3 }
 0x372   : > { %12441 = vst [vmem:[#allocation34_spill] sm:$0xff] %v9944_v11  ;;  %v3020_v46 = vadd.f32 %v2930_v15, %v12442_v2  ;;  %v3089_v41 = vpop.f32.mrf.mxu0  ;;  %7303 = vmatmul.msk.f32.gmra.mxu1 %vm539_vm1, %v12443_v36  ;;  %v12444_v15 = vld [vmem:[#allocation65_spill] sm:$0xff] }
 0x373   : > { %v2813_v2 = vrot.slane %v12444_v15, 2  ;;  %v12449_v15 = vld [vmem:[#allocation66_spill] sm:$0xff] }
 0x374   : > { %v3176_v23 = vadd.f32 %v3086_v40, %v3020_v46  ;;  %v12447_v46 = vld [vmem:[#allocation42_spill] sm:$0xff] }
 0x375   : > { %7269 = vmatmul.msk.f32.gmra.mxu0 %vm539_vm1, %v12439_v52  ;;  %7337 = vmatmul.msk.f32.gmra.mxu2 %vm539_vm1, %v9950_v29  ;;  %v9965_v52 = vsel %vm901_vm3, %v2811_v0, %v2813_v2 }
 0x376   : > { %7235 = vmatmul.msk.f32.gmra.mxu3 %vm539_vm1, %v9919_v19  ;;  %v3336_v47 = vadd.f32 %v3246_v10, %v3176_v23 }
 0x377   : > { %v3252_v8 = vpop.f32.mrf.mxu1 }
 0x378   : > { %v9959_v11 = vadd.f32 %v3405_v61, %v3336_v47  ;;  %v3408_v55 = vpop.f32.mrf.mxu2 }
 0x379   : > { %v2933_v36 = vpop.f32.mrf.mxu3 }
 0x37a   : > { %12445 = vst [vmem:[#allocation52_spill] sm:$0xff] %v9959_v11  ;;  %v3021_v54 = vadd.f32 %v2933_v36, %v12446_v27  ;;  %v3092_v40 = vpop.f32.mrf.mxu0  ;;  %7304 = vmatmul.msk.f32.gmra.mxu1 %vm539_vm1, %v12447_v46  ;;  %v12448_v36 = vld [vmem:[#allocation32_spill] sm:$0xff]  ;;  %v2816_v27 = vrot.slane %v12449_v15, 2 }
 0x37b   : > { %v2815_v47 = vrot.slane %v12448_v36, 2 }
 0x37c   : > { %v3177_v10 = vadd.f32 %v3089_v41, %v3021_v54  ;;  %v12451_v54 = vld [vmem:[#allocation28_spill] sm:$0xff] }
 0x37d   : > { %7270 = vmatmul.msk.f32.gmra.mxu0 %vm539_vm1, %v12440_v1  ;;  %7338 = vmatmul.msk.f32.gmra.mxu2 %vm539_vm1, %v9965_v52  ;;  %v12452_v1 = vld [vmem:[#allocation40_spill] sm:$0xff] }
 0x37e   : > { %7236 = vmatmul.msk.f32.gmra.mxu3 %vm539_vm1, %v9934_v24  ;;  %v3337_v61 = vadd.f32 %v3249_v22, %v3177_v10  ;;  %v9981_v22 = vsel %vm901_vm3, %v2815_v47, %v2816_v27  ;;  %v12455_v24 = vld [vmem:[#allocation67_spill] sm:$0xff] }
 0x37f   : > { %v3255_v23 = vpop.f32.mrf.mxu1 }
 0x380   : > { %v9975_v11 = vadd.f32 %v3408_v55, %v3337_v61  ;;  %v3411_v2 = vpop.f32.mrf.mxu2 }
 0x381   : > { %v2936_v0 = vpop.f32.mrf.mxu3 }
 0x382   : > { %12450 = vst [vmem:[#allocation60_spill] sm:$0xff] %v9975_v11  ;;  %v3022_v41 = vadd.f32 %v2936_v0, %v12451_v54  ;;  %v3095_v46 = vpop.f32.mrf.mxu0  ;;  %7305 = vmatmul.msk.f32.gmra.mxu1 %vm539_vm1, %v12452_v1  ;;  %v12453_v0 = vld [vmem:[#allocation68_spill] sm:$0xff] }
 0x383   : > { %v2818_v54 = vrot.slane %v12453_v0, 2  ;;  %v12458_v0 = vld [vmem:[#allocation7_spill] sm:$0xff] }
 0x384   : > { %v3178_v10 = vadd.f32 %v3092_v40, %v3022_v41  ;;  %v12456_v40 = vld [vmem:[#allocation35_spill] sm:$0xff] }
 0x385   : > { %7271 = vmatmul.msk.f32.gmra.mxu0 %vm539_vm1, %v12448_v36  ;;  %7339 = vmatmul.msk.f32.gmra.mxu2 %vm539_vm1, %v9981_v22  ;;  %v9996_v41 = vsel %vm901_vm3, %v2816_v27, %v2818_v54 }
 0x386   : > { %7237 = vmatmul.msk.f32.gmra.mxu3 %vm539_vm1, %v9950_v29  ;;  %v3338_v55 = vadd.f32 %v3252_v8, %v3178_v10  ;;  %v2821_v10 = vrot.slane %v9446_v9, 2 }
 0x387   : > { %v3258_v61 = vpop.f32.mrf.mxu1 }
 0x388   : > { %v9990_v11 = vadd.f32 %v3411_v2, %v3338_v55  ;;  %v3414_v36 = vpop.f32.mrf.mxu2 }
 0x389   : > { %v2939_v1 = vpop.f32.mrf.mxu3 }
 0x38a   : > { %12454 = vst [vmem:[#allocation59_spill] sm:$0xff] %v9990_v11  ;;  %v3023_v47 = vadd.f32 %v2939_v1, %v12455_v24  ;;  %v3098_v19 = vpop.f32.mrf.mxu0  ;;  %7306 = vmatmul.msk.f32.gmra.mxu1 %vm539_vm1, %v12456_v40  ;;  %v2820_v1 = vrot.slane %v9453_v58, 2 }
 0x38c   : > { %v3179_v8 = vadd.f32 %v3095_v46, %v3023_v47  ;;  %v12459_v47 = vld [vmem:[#allocation8_spill] sm:$0xff] }
 0x38d   : > { %7272 = vmatmul.msk.f32.gmra.mxu0 %vm539_vm1, %v12449_v15  ;;  %7340 = vmatmul.msk.f32.gmra.mxu2 %vm539_vm1, %v9996_v41  ;;  %v10012_v15 = vsel %vm901_vm3, %v2820_v1, %v2821_v10  ;;  %v12462_v1 = vld [vmem:[#allocation41_spill] sm:$0xff] }
 0x38e   : > { %7238 = vmatmul.msk.f32.gmra.mxu3 %vm539_vm1, %v9965_v52  ;;  %v3339_v2 = vadd.f32 %v3255_v23, %v3179_v8 }
 0x38f   : > { %v3261_v24 = vpop.f32.mrf.mxu1 }
 0x390   : > { %v10006_v55 = vadd.f32 %v3414_v36, %v3339_v2  ;;  %v3417_v8 = vpop.f32.mrf.mxu2 }
 0x391   : > { %v2942_v27 = vpop.f32.mrf.mxu3 }
 0x392   : > { %12457 = vst [vmem:[#allocation48_spill] sm:$0xff] %v10006_v55  ;;  %v3024_v46 = vadd.f32 %v2942_v27, %v12458_v0  ;;  %v3101_v54 = vpop.f32.mrf.mxu0  ;;  %7307 = vmatmul.msk.f32.gmra.mxu1 %vm539_vm1, %v12459_v47  ;;  %v12460_v27 = vld [vmem:[#allocation45_spill] sm:$0xff] }
 0x393   : > { %v2823_v0 = vrot.slane %v12460_v27, 2 }
 0x394   : > { %v3180_v23 = vadd.f32 %v3098_v19, %v3024_v46  ;;  %v12463_v46 = vld [vmem:[#allocation39_spill] sm:$0xff] }
 0x395   : > { %7273 = vmatmul.msk.f32.gmra.mxu0 %vm539_vm1, %v9453_v58  ;;  %7341 = vmatmul.msk.f32.gmra.mxu2 %vm539_vm1, %v10012_v15  ;;  %v10027_v58 = vsel %vm901_vm3, %v2821_v10, %v2823_v0  ;;  %v12465_v10 = vld [vmem:[#allocation9_spill] sm:$0xff] }
 0x396   : > { %7239 = vmatmul.msk.f32.gmra.mxu3 %vm539_vm1, %v9981_v22  ;;  %v3340_v36 = vadd.f32 %v3258_v61, %v3180_v23  ;;  %v2825_v23 = vrot.slane %v9507_v45, 2 }
 0x397   : > { %v3264_v2 = vpop.f32.mrf.mxu1 }
 0x398   : > { %v10021_v55 = vadd.f32 %v3417_v8, %v3340_v36  ;;  %v2826_v8 = vrot.slane %v9500_v49, 2 }
 0x399   : > { %v2945_v47 = vpop.f32.mrf.mxu3 }
 0x39a   : > { %12461 = vst [vmem:[#allocation47_spill] sm:$0xff] %v10021_v55  ;;  %v3025_v11 = vadd.f32 %v2945_v47, %v12462_v1  ;;  %v3104_v19 = vpop.f32.mrf.mxu0  ;;  %7308 = vmatmul.msk.f32.gmra.mxu1 %vm539_vm1, %v12463_v46  ;;  %v12468_v1 = vld [vmem:[#allocation44_spill] sm:$0xff] }
 0x39b   : > { %v12470_v55 = vld [vmem:[#allocation4_spill] sm:$0xff] }
 0x39c   : > { %v3181_v40 = vadd.f32 %v3101_v54, %v3025_v11  ;;  %v12466_v54 = vld [vmem:[#allocation10_spill] sm:$0xff] }
 0x39d   : > { %7274 = vmatmul.msk.f32.gmra.mxu0 %vm539_vm1, %v9446_v9  ;;  %7342 = vmatmul.msk.f32.gmra.mxu2 %vm539_vm1, %v10027_v58  ;;  %v10043_v9 = vsel %vm901_vm3, %v2825_v23, %v2826_v8 }
 0x39e   : > { %7240 = vmatmul.msk.f32.gmra.mxu3 %vm539_vm1, %v9996_v41  ;;  %v10033_v61 = vadd.f32 %v3261_v24, %v3181_v40 }
 0x39f   : > { %v3267_v47 = vpop.f32.mrf.mxu1 }
 0x3a0   : > { %12464 = vst [vmem:[#allocation62_spill] sm:$0xff] %v10033_v61  ;;  %v12469_v61 = vld [vmem:[#allocation49_spill] sm:$0xff] }
 0x3a1   : > { %v2948_v36 = vpop.f32.mrf.mxu3 }
 0x3a2   : > { %v3026_v27 = vadd.f32 %v2948_v36, %v12465_v10  ;;  %v3107_v11 = vpop.f32.mrf.mxu0  ;;  %7309 = vmatmul.msk.f32.gmra.mxu1 %vm539_vm1, %v12466_v54  ;;  %v2828_v36 = vrot.slane %v12468_v1, 2 }
 0x3a4   : > { %v3182_v40 = vadd.f32 %v3104_v19, %v3026_v27  ;;  %v12472_v27 = vld [vmem:[#allocation69_spill] sm:$0xff] }
 0x3a5   : > { %7275 = vmatmul.msk.f32.gmra.mxu0 %vm539_vm1, %v9507_v45  ;;  %7343 = vmatmul.msk.f32.gmra.mxu2 %vm539_vm1, %v10043_v9  ;;  %v10058_v45 = vsel %vm901_vm3, %v2826_v8, %v2828_v36  ;;  %v2831_v8 = vrot.slane %v9551_v59, 2 }
 0x3a6   : > { %7241 = vmatmul.msk.f32.gmra.mxu3 %vm539_vm1, %v10012_v15  ;;  %v10049_v24 = vadd.f32 %v3264_v2, %v3182_v40  ;;  %v2830_v40 = vrot.slane %v12472_v27, 2 }
 0x3a7   : > { %v3270_v0 = vpop.f32.mrf.mxu1 }
 0x3a8   : > { %12467 = vst [vmem:[#allocation61_spill] sm:$0xff] %v10049_v24 }
 0x3a9   : > { %v2951_v10 = vpop.f32.mrf.mxu3 }
 0x3aa   : > { %v3027_v54 = vadd.f32 %v2951_v10, %v12469_v61  ;;  %v3110_v23 = vpop.f32.mrf.mxu0  ;;  %7310 = vmatmul.msk.f32.gmra.mxu1 %vm539_vm1, %v12470_v55 }
 0x3ac   : > { %v3183_v19 = vadd.f32 %v3107_v11, %v3027_v54  ;;  %v12473_v11 = vld [vmem:[#allocation3_spill] sm:$0xff] }
 0x3ad   : > { %7276 = vmatmul.msk.f32.gmra.mxu0 %vm539_vm1, %v9500_v49  ;;  %7344 = vmatmul.msk.f32.gmra.mxu2 %vm539_vm1, %v10058_v45  ;;  %v10074_v49 = vsel %vm901_vm3, %v2830_v40, %v2831_v8 }
 0x3ae   : > { %7242 = vmatmul.msk.f32.gmra.mxu3 %vm539_vm1, %v10027_v58  ;;  %v10064_v2 = vadd.f32 %v3267_v47, %v3183_v19 }
 0x3af   : > { %v3273_v61 = vpop.f32.mrf.mxu1 }
 0x3b0   : > { %12471 = vst [vmem:[#allocation23_spill] sm:$0xff] %v10064_v2  ;;  %v10089_v2 = vld [vmem:[%s8926_s28 + $0x188] sm:$0xff] }
 0x3b1   : > { %v2954_v1 = vpop.f32.mrf.mxu3 }
 0x3b2   : > { %v3028_v54 = vadd.f32 %v2954_v1, %v12473_v11  ;;  %v3113_v36 = vpop.f32.mrf.mxu0  ;;  %7311 = vmatmul.msk.f32.gmra.mxu1 %vm539_vm1, %v9578_v5  ;;  %v2833_v1 = vrot.slane %v9582_v37, 2  ;;  %v10086_v11 = vld [vmem:[%s8926_s28 + $0x180] sm:$0xff] }
 0x3b4   : > { %v3184_v47 = vadd.f32 %v3110_v23, %v3028_v54  ;;  %v12475_v23 = vld [vmem:[#allocation70_spill] sm:$0xff] }
 0x3b5   : > { %7277 = vmatmul.msk.f32.gmra.mxu0 %vm539_vm1, %v12472_v27  ;;  %7345 = vmatmul.msk.f32.gmra.mxu2 %vm539_vm1, %v10074_v49 }
 0x3b6   : > { %7243 = vmatmul.msk.f32.gmra.mxu3 %vm539_vm1, %v10043_v9  ;;  %v10080_v10 = vadd.f32 %v3270_v0, %v3184_v47  ;;  %v3206_v0 = vrot.slane %v10086_v11, 1  ;;  %v3207_v47 = vrot.slane %v10089_v2, 1 }
 0x3b7   : > { %v3276_v19 = vpop.f32.mrf.mxu1 }
 0x3b8   : > { %12474 = vst [vmem:[#allocation63_spill] sm:$0xff] %v10080_v10  ;;  %v10097_v10 = vsel %vm901_vm3, %v2831_v8, %v2833_v1  ;;  %v3366_v8 = vrot.slane %v10089_v2, 2 }
 0x3b9   : > { %v2957_v40 = vpop.f32.mrf.mxu3 }
 0x3ba   : > { %v3029_v54 = vadd.f32 %v2957_v40, %v12475_v23  ;;  %v3116_v27 = vpop.f32.mrf.mxu0  ;;  %7312 = vmatmul.msk.f32.gmra.mxu1 %vm539_vm1, %v9603_v12  ;;  %v10108_v23 = vsel %vm456_vm2, %v3206_v0, %v3207_v47  ;;  %v3365_v12 = vrot.slane %v10086_v11, 2 }
 0x3bb   : > { %12477 = vst [vmem:[#allocation65_spill] sm:$0xff] %v10108_v23 }
 0x3bc   : > { %v3185_v37 = vadd.f32 %v3113_v36, %v3029_v54  ;;  %v2196_v36 = vld [vmem:[%s8926_s28 + $0x190] sm:$0x3] }
 0x3bd   : > { %7278 = vmatmul.msk.f32.gmra.mxu0 %vm539_vm1, %v9551_v59  ;;  %7346 = vmatmul.msk.f32.gmra.mxu2 %vm539_vm1, %v10097_v10 }
 0x3be   : > { %7244 = vmatmul.msk.f32.gmra.mxu3 %vm539_vm1, %v10058_v45  ;;  %v10103_v5 = vadd.f32 %v3273_v61, %v3185_v37  ;;  %v3209_v61 = vrot.slane %v2196_v36, 1  ;;  %v10117_v37 = vsel %vm901_vm3, %v3365_v12, %v3366_v8 }
 0x3bf   : > { %v3279_v40 = vpop.f32.mrf.mxu1 }
 0x3c0   : > { %12476 = vst [vmem:[#allocation19_spill] sm:$0xff] %v10103_v5 }
 0x3c1   : > { %v2960_v1 = vpop.f32.mrf.mxu3 }
 0x3c2   : > { %v3030_v59 = vadd.f32 %v2960_v1, %v9591_v34  ;;  %v3119_v54 = vpop.f32.mrf.mxu0  ;;  %7313 = vmatmul.msk.f32.gmra.mxu1 %vm539_vm1, %v10108_v23  ;;  %v10128_v1 = vsel %vm456_vm2, %v3207_v47, %v3209_v61  ;;  %v3368_v23 = vrot.slane %v2196_v36, 2 }
 0x3c4   : > { %v3186_v5 = vadd.f32 %v3116_v27, %v3030_v59  ;;  %v10134_v59 = vsel %vm901_vm3, %v3366_v8, %v3368_v23 }
 0x3c5   : > { %7279 = vmatmul.msk.f32.gmra.mxu0 %vm539_vm1, %v10086_v11  ;;  %7347 = vmatmul.msk.f32.gmra.mxu2 %vm539_vm1, %v10117_v37 }
 0x3c6   : > { %7245 = vmatmul.msk.f32.gmra.mxu3 %vm539_vm1, %v10074_v49  ;;  %v10123_v0 = vadd.f32 %v3276_v19, %v3186_v5 }
 0x3c7   : > { %v3282_v34 = vpop.f32.mrf.mxu1 }
 0x3c9   : > { %v2963_v24 = vpop.f32.mrf.mxu3 }
 0x3ca   : > { %v3031_v12 = vadd.f32 %v2963_v24, %v9611_v32  ;;  %v3122_v27 = vpop.f32.mrf.mxu0  ;;  %7314 = vmatmul.msk.f32.gmra.mxu1 %vm539_vm1, %v10128_v1 }
 0x3cc   : > { %v3187_v5 = vadd.f32 %v3119_v54, %v3031_v12 }
 0x3cd   : > { %7280 = vmatmul.msk.f32.gmra.mxu0 %vm539_vm1, %v10089_v2  ;;  %7348 = vmatmul.msk.f32.gmra.mxu2 %vm539_vm1, %v10134_v59 }
 0x3ce   : > { %7246 = vmatmul.msk.f32.gmra.mxu3 %vm539_vm1, %v10097_v10  ;;  %v10140_v19 = vadd.f32 %v3279_v40, %v3187_v5 }
 0x3cf   : > { %v3285_v32 = vpop.f32.mrf.mxu1 }
 0x3d1   : > { %v2966_v24 = vpop.f32.mrf.mxu3 }
 0x3d2   : > { %v3032_v47 = vadd.f32 %v2966_v24, %v9624_v14  ;;  %v3125_v36 = vpop.f32.mrf.mxu0  ;;  %7419 = vmatmul.msk.f32.vlgmr.msra.gmra.mxu1 %vm539_vm1, %v9645_v4 }
 0x3d4   : > { %v3188_v23 = vadd.f32 %v3122_v27, %v3032_v47 }
 0x3d5   : > { %7385 = vmatmul.msk.f32.vlgmr.msra.gmra.mxu0 %vm539_vm1, %v9021_v31 }
 0x3d6   : > { %7351 = vmatmul.msk.f32.vlgmr.msra.gmra.mxu3 %vm539_vm1, %v9648_v57  ;;  %v10151_v40 = vadd.f32 %v3282_v34, %v3188_v23 }
 0x3d7   : > { %v3288_v8 = vpop.f32.mrf.mxu1 }
 0x3d9   : > { %v2969_v54 = vpop.f32.mrf.mxu3 }
 0x3da   : > { %v3033_v61 = vadd.f32 %v2969_v54, %v9639_v50  ;;  %v3128_v12 = vpop.f32.mrf.mxu0  ;;  %7420 = vmatmul.msk.f32.gmra.mxu1 %vm539_vm1, %v9662_v26  ;;  %v7795_v26 = vld [vmem:[%s8926_s28 + $0x48] sm:$0xff] }
 0x3dc   : > { %v3189_v14 = vadd.f32 %v3125_v36, %v3033_v61 }
 0x3dd   : > { %7386 = vmatmul.msk.f32.gmra.mxu0 %vm539_vm1, %v9039_v51 }
 0x3de   : > { %7352 = vmatmul.msk.f32.gmra.mxu3 %vm539_vm1, %v9665_v53  ;;  %v10160_v31 = vadd.f32 %v3285_v32, %v3189_v14 }
 0x3df   : > { %v3291_v4 = vpop.f32.mrf.mxu1 }
 0x3e1   : > { %v2972_v57 = vpop.f32.mrf.mxu3 }
 0x3e2   : > { %v3034_v34 = vadd.f32 %v2972_v57, %v9656_v42  ;;  %v3131_v27 = vpop.f32.mrf.mxu0  ;;  %7421 = vmatmul.msk.f32.gmra.mxu1 %vm539_vm1, %v9680_v44  ;;  %v10180_v44 = vpop.f32.mrf.mxu2 }
 0x3e4   : > { %v3190_v50 = vadd.f32 %v3128_v12, %v3034_v34 }
 0x3e5   : > { %7387 = vmatmul.msk.f32.gmra.mxu0 %vm539_vm1, %v9061_v56 }
 0x3e6   : > { %7353 = vmatmul.msk.f32.gmra.mxu3 %vm539_vm1, %v7795_v26  ;;  %v10169_v51 = vadd.f32 %v3288_v8, %v3190_v50 }
 0x3e7   : > { %v3294_v53 = vpop.f32.mrf.mxu1 }
 0x3e9   : > { %v2975_v5 = vpop.f32.mrf.mxu3 }
 0x3ea   : > { %v3035_v32 = vadd.f32 %v2975_v5, %v9674_v20  ;;  %v3134_v24 = vpop.f32.mrf.mxu0  ;;  %7422 = vmatmul.msk.f32.gmra.mxu1 %vm539_vm1, %v9695_v7  ;;  %v10191_v54 = vpop.f32.mrf.mxu2 }
 0x3ec   : > { %v3191_v42 = vadd.f32 %v3131_v27, %v3035_v32  ;;  %v12479_v32 = vld [vmem:[#allocation13_spill] sm:$0xff] }
 0x3ed   : > { %7388 = vmatmul.msk.f32.gmra.mxu0 %vm539_vm1, %v9079_v13  ;;  %v7796_v13 = vld [vmem:[%s8926_s28 + $0x60] sm:$0xff] }
 0x3ee   : > { %7354 = vmatmul.msk.f32.gmra.mxu3 %vm539_vm1, %v9698_v35  ;;  %v10178_v56 = vadd.f32 %v3291_v4, %v3191_v42 }
 0x3ef   : > { %v3297_v47 = vpop.f32.mrf.mxu1 }
 0x3f1   : > { %v2978_v36 = vpop.f32.mrf.mxu3 }
 0x3f2   : > { %v3036_v23 = vadd.f32 %v2978_v36, %v9689_v28  ;;  %v3137_v20 = vpop.f32.mrf.mxu0  ;;  %7423 = vmatmul.msk.f32.gmra.mxu1 %vm539_vm1, %v9714_v3  ;;  %v12481_v36 = vld [vmem:[#allocation37_spill] sm:$0xff] }
 0x3f4   : > { %v3192_v7 = vadd.f32 %v3134_v24, %v3036_v23 }
 0x3f5   : > { %7389 = vmatmul.msk.f32.gmra.mxu0 %vm539_vm1, %v9101_v25 }
 0x3f6   : > { %7355 = vmatmul.msk.f32.gmra.mxu3 %vm539_vm1, %v7796_v13  ;;  %v10189_v35 = vadd.f32 %v3294_v53, %v3192_v7  ;;  %v12478_v53 = vld [vmem:[#allocation53_spill] sm:$0xff]  ;;  %v12482_v7 = vld [vmem:[#allocation11_spill] sm:$0xff] }
 0x3f7   : > { %v3300_v8 = vpop.f32.mrf.mxu1  ;;  %v7798_v13 = vld [vmem:[%s8926_s28 + $0x90] sm:$0xff] }
 0x3f9   : > { %v2981_v61 = vpop.f32.mrf.mxu3 }
 0x3fa   : > { %v3037_v28 = vadd.f32 %v2981_v61, %v9708_v63  ;;  %v3140_v12 = vpop.f32.mrf.mxu0  ;;  %7424 = vmatmul.msk.f32.gmra.mxu1 %vm539_vm1, %v9729_v60  ;;  %v10205_v63 = vpop.f32.mrf.mxu2 }
 0x3fc   : > { %v3193_v3 = vadd.f32 %v3137_v20, %v3037_v28 }
 0x3fd   : > { %7390 = vmatmul.msk.f32.gmra.mxu0 %vm539_vm1, %v12384_v16  ;;  %v7797_v16 = vld [vmem:[%s8926_s28 + $0x78] sm:$0xff] }
 0x3fe   : > { %7356 = vmatmul.msk.f32.gmra.mxu3 %vm539_vm1, %v9732_v48  ;;  %v10200_v25 = vadd.f32 %v3297_v47, %v3193_v3  ;;  %v12483_v3 = vld [vmem:[#allocation54_spill] sm:$0xff] }
 0x3ff   : > { %v3303_v14 = vpop.f32.mrf.mxu1 }
 0x401   : > { %v2984_v4 = vpop.f32.mrf.mxu3 }
 0x402   : > { %v3038_v57 = vadd.f32 %v2984_v4, %v9723_v33  ;;  %v3143_v34 = vpop.f32.mrf.mxu0  ;;  %7425 = vmatmul.msk.f32.gmra.mxu1 %vm539_vm1, %v9748_v21  ;;  %v10216_v5 = vpop.f32.mrf.mxu2 }
 0x404   : > { %v3194_v60 = vadd.f32 %v3140_v12, %v3038_v57  ;;  %v12484_v57 = vld [vmem:[#allocation18_spill] sm:$0xff] }
 0x405   : > { %7391 = vmatmul.msk.f32.gmra.mxu0 %vm539_vm1, %v12388_v30  ;;  %v12480_v30 = vld [vmem:[#allocation55_spill] sm:$0xff] }
 0x406   : > { %7357 = vmatmul.msk.f32.gmra.mxu3 %vm539_vm1, %v7797_v16  ;;  %v10211_v48 = vadd.f32 %v3300_v8, %v3194_v60 }
 0x407   : > { %v3306_v27 = vpop.f32.mrf.mxu1 }
 0x409   : > { %v2987_v50 = vpop.f32.mrf.mxu3 }
 0x40a   : > { %v3039_v33 = vadd.f32 %v2987_v50, %v9742_v18  ;;  %v3146_v26 = vpop.f32.mrf.mxu0  ;;  %7426 = vmatmul.msk.f32.gmra.mxu1 %vm539_vm1, %v12478_v53  ;;  %v10233_v61 = vpop.f32.mrf.mxu2 }
 0x40c   : > { %v3195_v21 = vadd.f32 %v3143_v34, %v3039_v33  ;;  %v12485_v34 = vld [vmem:[#allocation50_spill] sm:$0xff] }
 0x40d   : > { %7392 = vmatmul.msk.f32.gmra.mxu0 %vm539_vm1, %v12479_v32  ;;  %v12486_v33 = vld [vmem:[#allocation46_spill] sm:$0xff] }
 0x40e   : > { %7358 = vmatmul.msk.f32.gmra.mxu3 %vm539_vm1, %v12480_v30  ;;  %v10222_v24 = vadd.f32 %v3303_v14, %v3195_v21  ;;  %v12487_v21 = vld [vmem:[#allocation22_spill] sm:$0xff] }
 0x40f   : > { %v3309_v42 = vpop.f32.mrf.mxu1  ;;  %v7799_v32 = vld [vmem:[%s8926_s28 + $0xa8] sm:$0xff] }
 0x411   : > { %v2990_v47 = vpop.f32.mrf.mxu3 }
 0x412   : > { %v3040_v23 = vadd.f32 %v2990_v47, %v12481_v36  ;;  %v3149_v18 = vpop.f32.mrf.mxu0  ;;  %7427 = vmatmul.msk.f32.gmra.mxu1 %vm539_vm1, %v9782_v62  ;;  %v12488_v36 = vld [vmem:[#allocation57_spill] sm:$0xff] }
 0x414   : > { %v3196_v20 = vadd.f32 %v3146_v26, %v3040_v23 }
 0x415   : > { %7393 = vmatmul.msk.f32.gmra.mxu0 %vm539_vm1, %v12482_v7  ;;  %v12489_v7 = vld [vmem:[#allocation27_spill] sm:$0xff] }
 0x416   : > { %7359 = vmatmul.msk.f32.gmra.mxu3 %vm539_vm1, %v7798_v13  ;;  %v10231_v8 = vadd.f32 %v3306_v27, %v3196_v20  ;;  %v10244_v27 = vpop.f32.mrf.mxu2  ;;  %v12490_v13 = vld [vmem:[#allocation16_spill] sm:$0xff] }
 0x417   : > { %v3312_v28 = vpop.f32.mrf.mxu1 }
 0x419   : > { %v2993_v12 = vpop.f32.mrf.mxu3 }
 0x41a   : > { %v3041_v14 = vadd.f32 %v2993_v12, %v12483_v3  ;;  %v3152_v4 = vpop.f32.mrf.mxu0  ;;  %7428 = vmatmul.msk.f32.gmra.mxu1 %vm539_vm1, %v9797_v6 }
 0x41c   : > { %v3197_v62 = vadd.f32 %v3149_v18, %v3041_v14  ;;  %v12491_v14 = vld [vmem:[#allocation56_spill] sm:$0xff] }
 0x41d   : > { %7394 = vmatmul.msk.f32.gmra.mxu0 %vm539_vm1, %v12484_v57 }
 0x41e   : > { %7360 = vmatmul.msk.f32.gmra.mxu3 %vm539_vm1, %v12485_v34  ;;  %v10242_v60 = vadd.f32 %v3309_v42, %v3197_v62  ;;  %v10258_v20 = vpop.f32.mrf.mxu2  ;;  %v12492_v34 = vld [vmem:[#allocation31_spill] sm:$0xff] }
 0x41f   : > { %v3315_v16 = vpop.f32.mrf.mxu1 }
 0x421   : > { %v2996_v50 = vpop.f32.mrf.mxu3 }
 0x422   : > { %v3042_v26 = vadd.f32 %v2996_v50, %v12486_v33  ;;  %v3155_v53 = vpop.f32.mrf.mxu0  ;;  %7429 = vmatmul.msk.f32.gmra.mxu1 %vm539_vm1, %v9816_v39  ;;  %v7800_v50 = vld [vmem:[%s8926_s28 + $0xc0] sm:$0xff] }
 0x424   : > { %v3198_v6 = vadd.f32 %v3152_v4, %v3042_v26 }
 0x425   : > { %7395 = vmatmul.msk.f32.gmra.mxu0 %vm539_vm1, %v12487_v21 }
 0x426   : > { %7361 = vmatmul.msk.f32.gmra.mxu3 %vm539_vm1, %v7799_v32  ;;  %v10253_v30 = vadd.f32 %v3312_v28, %v3198_v6  ;;  %v10269_v57 = vpop.f32.mrf.mxu2  ;;  %v12493_v6 = vld [vmem:[#allocation51_spill] sm:$0xff] }
 0x427   : > { %v3318_v42 = vpop.f32.mrf.mxu1 }
 0x429   : > { %v2999_v47 = vpop.f32.mrf.mxu3 }
 0x42a   : > { %v3043_v23 = vadd.f32 %v2999_v47, %v12488_v36  ;;  %v3158_v18 = vpop.f32.mrf.mxu0  ;;  %7430 = vmatmul.msk.f32.gmra.mxu1 %vm539_vm1, %v9831_v38  ;;  %v12494_v47 = vld [vmem:[#allocation38_spill] sm:$0xff] }
 0x42b   : > { %v12495_v36 = vld [vmem:[#allocation58_spill] sm:$0xff] }
 0x42c   : > { %v3199_v39 = vadd.f32 %v3155_v53, %v3043_v23 }
 0x42d   : > { %7396 = vmatmul.msk.f32.gmra.mxu0 %vm539_vm1, %v12489_v7 }
 0x42e   : > { %7362 = vmatmul.msk.f32.gmra.mxu3 %vm539_vm1, %v12490_v13  ;;  %v10264_v28 = vadd.f32 %v3315_v16, %v3199_v39  ;;  %v7827_v16 = vmov 0.0   ;;  %v10308_v23 = vpop.f32.mrf.mxu2  ;;  %v12496_v13 = vld [vmem:[#allocation14_spill] sm:$0xff] }
 0x42f   : > { %v3321_v12 = vpop.f32.mrf.mxu1  ;;  %4107 = vst.msk [vmem:[#allocation2 + $0x18] sm:$0xff] %vm539_vm1, %v7827_v16 }
 0x430   : > { %4108 = vst.msk [vmem:[#allocation2 + $0x20] sm:$0xff] %vm539_vm1, %v7827_v16 }
 0x431   : > { %v3002_v3 = vpop.f32.mrf.mxu3  ;;  %4103 = vst.msk [vmem:[#allocation2] sm:$0xff] %vm539_vm1, %v7827_v16 }
 0x432   : > { %v3044_v4 = vadd.f32 %v3002_v3, %v12491_v14  ;;  %v3161_v62 = vpop.f32.mrf.mxu0  ;;  %7431 = vmatmul.msk.f32.gmra.mxu1 %vm539_vm1, %v9854_v43  ;;  %v4223_v43 = vld [vmem:[%s11928_s6] sm:$0xf]  ;;  %4104 = vst.msk [vmem:[#allocation2 + $0x8] sm:$0xff] %vm539_vm1, %v7827_v16  ;;  %v12497_v14 = vld [vmem:[#allocation12_spill] sm:$0xff] }
 0x433   : > { %7485 = vmatpush.msk.msrb.mxu3 %vm604_vm0, %v4223_v43  ;;  %4110 = vst.msk [vmem:[#allocation2 + $0x30] sm:$0xff] %vm539_vm1, %v7827_v16  ;;  %v7518_v43 = vld [vmem:[%s11928_s6 + $0x8] sm:$0xf] }
 0x434   : > { %v3200_v38 = vadd.f32 %v3158_v18, %v3044_v4  ;;  %4111 = vst.msk [vmem:[#allocation2 + $0x38] sm:$0xff] %vm539_vm1, %v7827_v16  ;;  %7519 = vmatpush.msk.msrb.mxu0 %vm604_vm0, %v7518_v43 }
 0x435   : > { %7397 = vmatmul.msk.f32.gmra.mxu0 %vm539_vm1, %v12492_v34  ;;  %4113 = vst.msk [vmem:[#allocation2 + $0x48] sm:$0xff] %vm539_vm1, %v7827_v16 }
 0x436   : > { %7363 = vmatmul.msk.f32.gmra.mxu3 %vm539_vm1, %v7800_v50  ;;  %v10275_v33 = vadd.f32 %v3318_v42, %v3200_v38  ;;  %4114 = vst.msk [vmem:[#allocation2 + $0x50] sm:$0xff] %vm539_vm1, %v7827_v16  ;;  %v7801_v38 = vld [vmem:[%s8926_s28 + $0xd8] sm:$0xff]  ;;  %v7586_v50 = vld [vmem:[%s11928_s6 + $0x10] sm:$0xf] }
 0x437   : > { %v3324_v26 = vpop.f32.mrf.mxu1  ;;  %4116 = vst.msk [vmem:[#allocation2 + $0x60] sm:$0xff] %vm539_vm1, %v7827_v16  ;;  %7587 = vmatpush.msk.msrb.mxu2 %vm604_vm0, %v7586_v50 }
 0x438   : > { %4117 = vst.msk [vmem:[#allocation2 + $0x68] sm:$0xff] %vm539_vm1, %v7827_v16 }
 0x439   : > { %v3005_v53 = vpop.f32.mrf.mxu3  ;;  %4119 = vst.msk [vmem:[#allocation2 + $0x78] sm:$0xff] %vm539_vm1, %v7827_v16  ;;  %v4224_v39 = vld [vmem:[#allocation2 + $0x1] sm:$0xff] }
 0x43a   : > { %v3045_v21 = vadd.f32 %v3005_v53, %v12493_v6  ;;  %v3164_v32 = vpop.f32.mrf.mxu0  ;;  %7432 = vmatmul.msk.f32.gmra.mxu1 %vm539_vm1, %v9869_v17  ;;  %4120 = vst.msk [vmem:[#allocation2 + $0x80] sm:$0xff] %vm539_vm1, %v7827_v16  ;;  %7453 = vmatmul.msk.f32.vlgmr.msra.gmra.mxu2 %vm539_vm1, %v4224_v39  ;;  %v12501_v39 = vld [vmem:[#allocation26_spill] sm:$0xff] }
 0x43b   : > { %4122 = vst.msk [vmem:[#allocation2 + $0x90] sm:$0xff] %vm539_vm1, %v7827_v16 }
 0x43c   : > { %v3201_v42 = vadd.f32 %v3161_v62, %v3045_v21  ;;  %4123 = vst.msk [vmem:[#allocation2 + $0x98] sm:$0xff] %vm539_vm1, %v7827_v16  ;;  %v12498_v62 = vld [vmem:[#allocation21_spill] sm:$0xff]  ;;  %v12499_v21 = vld [vmem:[#allocation15_spill] sm:$0xff] }
 0x43d   : > { %7398 = vmatmul.msk.f32.gmra.mxu0 %vm539_vm1, %v12494_v47  ;;  %4125 = vst.msk [vmem:[#allocation2 + $0xa8] sm:$0xff] %vm539_vm1, %v7827_v16  ;;  %v12500_v47 = vld [vmem:[#allocation17_spill] sm:$0xff] }
 0x43e   : > { %7364 = vmatmul.msk.f32.gmra.mxu3 %vm539_vm1, %v12495_v36  ;;  %v10304_v17 = vadd.f32 %v3321_v12, %v3201_v42  ;;  %4126 = vst.msk [vmem:[#allocation2 + $0xb0] sm:$0xff] %vm539_vm1, %v7827_v16 }
 0x43f   : > { %v3327_v18 = vpop.f32.mrf.mxu1  ;;  %4128 = vst.msk [vmem:[#allocation2 + $0xc0] sm:$0xff] %vm539_vm1, %v7827_v16 }
 0x440   : > { %4129 = vst.msk [vmem:[#allocation2 + $0xc8] sm:$0xff] %vm539_vm1, %v7827_v16 }
 0x441   : > { %v3008_v7 = vpop.f32.mrf.mxu3  ;;  %4131 = vst.msk [vmem:[#allocation2 + $0xd8] sm:$0xff] %vm539_vm1, %v7827_v16 }
 0x442   : > { %v3046_v12 = vadd.f32 %v3008_v7, %v12496_v13  ;;  %v3167_v3 = vpop.f32.mrf.mxu0  ;;  %7433 = vmatmul.msk.f32.gmra.mxu1 %vm539_vm1, %v12497_v14  ;;  %4132 = vst.msk [vmem:[#allocation2 + $0xe0] sm:$0xff] %vm539_vm1, %v7827_v16  ;;  %v7802_v7 = vld [vmem:[%s8926_s28 + $0xe0] sm:$0xff] }
 0x443   : > { %4134 = vst.msk [vmem:[#allocation2 + $0xf0] sm:$0xff] %vm539_vm1, %v7827_v16 }
 0x444   : > { %v3202_v4 = vadd.f32 %v3164_v32, %v3046_v12  ;;  %4135 = vst.msk [vmem:[#allocation2 + $0xf8] sm:$0xff] %vm539_vm1, %v7827_v16  ;;  %v7552_v12 = vld [vmem:[%s11928_s6 + $0xc] sm:$0xf] }
 0x445   : > { %7399 = vmatmul.msk.f32.gmra.mxu0 %vm539_vm1, %v12498_v62  ;;  %4137 = vst.msk [vmem:[#allocation2 + $0x108] sm:$0xff] %vm539_vm1, %v7827_v16  ;;  %7553 = vmatpush.msk.msrb.mxu1 %vm604_vm0, %v7552_v12 }
 0x446   : > { %7365 = vmatmul.msk.f32.gmra.mxu3 %vm539_vm1, %v7801_v38  ;;  %v10332_v34 = vadd.f32 %v3324_v26, %v3202_v4  ;;  %v10348_v26 = vpop.f32.mrf.mxu2  ;;  %4138 = vst.msk [vmem:[#allocation2 + $0x110] sm:$0xff] %vm539_vm1, %v7827_v16  ;;  %v12503_v38 = vld [vmem:[#allocation25_spill] sm:$0xff] }
 0x447   : > { %v3330_v53 = vpop.f32.mrf.mxu1  ;;  %4140 = vst.msk [vmem:[#allocation2 + $0x120] sm:$0xff] %vm539_vm1, %v7827_v16 }
 0x448   : > { %4141 = vst.msk [vmem:[#allocation2 + $0x128] sm:$0xff] %vm539_vm1, %v7827_v16 }
 0x449   : > { %v3011_v6 = vpop.f32.mrf.mxu3  ;;  %4143 = vst.msk [vmem:[#allocation2 + $0x138] sm:$0xff] %vm539_vm1, %v7827_v16 }
 0x44a   : > { %v3047_v32 = vadd.f32 %v3011_v6, %v12499_v21  ;;  %v3170_v42 = vpop.f32.mrf.mxu0  ;;  %7434 = vmatmul.msk.f32.gmra.mxu1 %vm539_vm1, %v12500_v47  ;;  %4144 = vst.msk [vmem:[#allocation2 + $0x140] sm:$0xff] %vm539_vm1, %v7827_v16  ;;  %v12504_v6 = vld [vmem:[#allocation36_spill] sm:$0xff]  ;;  %v7803_v21 = vld [vmem:[%s8926_s28 + $0xf0] sm:$0xff] }
 0x44b   : > { %4146 = vst.msk [vmem:[#allocation2 + $0x150] sm:$0xff] %vm539_vm1, %v7827_v16 }
 0x44c   : > { %v3203_v36 = vadd.f32 %v3167_v3, %v3047_v32  ;;  %4147 = vst.msk [vmem:[#allocation2 + $0x158] sm:$0xff] %vm539_vm1, %v7827_v16 }
 0x44d   : > { %7400 = vmatmul.msk.f32.gmra.mxu0 %vm539_vm1, %v12501_v39  ;;  %4149 = vst.msk [vmem:[#allocation2 + $0x168] sm:$0xff] %vm539_vm1, %v7827_v16 }
 0x44e   : > { %7366 = vmatmul.msk.f32.gmra.mxu3 %vm539_vm1, %v7802_v7  ;;  %v10367_v13 = vadd.f32 %v3327_v18, %v3203_v36  ;;  %v12502_v18 = vld [vmem:[#allocation20_spill] sm:$0xff]  ;;  %v10386_v50 = vpop.f32.mrf.mxu2  ;;  %4150 = vst.msk [vmem:[#allocation2 + $0x170] sm:$0xff] %vm539_vm1, %v7827_v16  ;;  %v12507_v7 = vld [vmem:[#allocation33_spill] sm:$0xff] }
 0x44f   : > { %v3871_v3 = vpop.f32.mrf.mxu1  ;;  %4152 = vst.msk [vmem:[#allocation2 + $0x180] sm:$0xff] %vm539_vm1, %v7827_v16  ;;  %v12506_v36 = vld [vmem:[#allocation24_spill] sm:$0xff] }
 0x450   : > { %4153 = vst.msk [vmem:[#allocation2 + $0x188] sm:$0xff] %vm539_vm1, %v7827_v16 }
 0x451   : > { %v3014_v14 = vpop.f32.mrf.mxu3  ;;  %4155 = vst.msk [vmem:[#allocation2 + $0x198] sm:$0xff] %vm539_vm1, %v7827_v16 }
 0x452   : > { %v3048_v4 = vadd.f32 %v3014_v14, %v12502_v18  ;;  %v3712_v62 = vpop.f32.mrf.mxu0  ;;  %7435 = vmatmul.msk.f32.gmra.mxu1 %vm539_vm1, %v12503_v38  ;;  %4156 = vst.msk [vmem:[#allocation2 + $0x1a0] sm:$0xff] %vm539_vm1, %v7827_v16  ;;  %v10418_v14 = vld [vmem:[%s11926_s4] ss:$0 sm:$0xff] }
 0x453   : > { %4109 = vst.msk [vmem:[#allocation2 + $0x28] sm:$0x3] %vm4105_vm4, %v7827_v16 }
 0x454   : > { %v3204_v43 = vadd.f32 %v3170_v42, %v3048_v4  ;;  %4106 = vst.msk [vmem:[#allocation2 + $0x10] sm:$0x3] %vm4105_vm4, %v7827_v16  ;;  %v12508_v4 = vld [vmem:[#allocation43_spill] sm:$0xff] }
 0x455   : > { %7401 = vmatmul.msk.f32.gmra.mxu0 %vm539_vm1, %v12504_v6  ;;  %4112 = vst.msk [vmem:[#allocation2 + $0x40] sm:$0x3] %vm4105_vm4, %v7827_v16 }
 0x456   : > { %7367 = vmatmul.msk.f32.gmra.mxu3 %vm539_vm1, %v7803_v21  ;;  %v10398_v32 = vadd.f32 %v3330_v53, %v3204_v43  ;;  %v10422_v18 = vpop.f32.mrf.mxu2  ;;  %4115 = vst.msk [vmem:[#allocation2 + $0x58] sm:$0x3] %vm4105_vm4, %v7827_v16  ;;  %v7804_v43 = vld [vmem:[%s8926_s28 + $0xf8] sm:$0xff] }
 0x457   : > { %v3874_v47 = vpop.f32.mrf.mxu1  ;;  %4118 = vst.msk [vmem:[#allocation2 + $0x70] sm:$0x3] %vm4105_vm4, %v7827_v16 }
 0x458   : > { %12505 = vst [vmem:[#allocation64_spill] sm:$0xff] %v10398_v32 }
 0x459   : > { %v3552_v42 = vpop.f32.mrf.mxu3  ;;  %4121 = vst.msk [vmem:[#allocation2 + $0x88] sm:$0x3] %vm4105_vm4, %v7827_v16 }
 0x45a   : > { %v3648_v39 = vadd.f32 %v3552_v42, %v12506_v36  ;;  %v3715_v53 = vpop.f32.mrf.mxu0  ;;  %7436 = vmatmul.msk.f32.gmra.mxu1 %vm539_vm1, %v12507_v7  ;;  %4124 = vst.msk [vmem:[#allocation2 + $0xa0] sm:$0x3] %vm4105_vm4, %v7827_v16  ;;  %v12509_v36 = vld [vmem:[#allocation29_spill] sm:$0xff] }
 0x45b   : > { %4127 = vst.msk [vmem:[#allocation2 + $0xb8] sm:$0x3] %vm4105_vm4, %v7827_v16 }
 0x45c   : > { %v3808_v12 = vadd.f32 %v3712_v62, %v3648_v39  ;;  %v10431_v62 = vld [vmem:[%s11927_s5] ss:$0 sm:$0xff]  ;;  %4130 = vst.msk [vmem:[#allocation2 + $0xd0] sm:$0x3] %vm4105_vm4, %v7827_v16 }
 0x45d   : > { %7402 = vmatmul.msk.f32.gmra.mxu0 %vm539_vm1, %v12508_v4  ;;  %4133 = vst.msk [vmem:[#allocation2 + $0xe8] sm:$0x3] %vm4105_vm4, %v7827_v16 }
 0x45e   : > { %v3967_v38 = vadd.f32 %v3871_v3, %v3808_v12  ;;  %7368 = vmatmul.msk.f32.gmra.mxu3 %vm539_vm1, %v7804_v43  ;;  %v4225_v12 = vld [vmem:[#allocation2 + $0x9] sm:$0xff]  ;;  %4136 = vst.msk [vmem:[#allocation2 + $0x100] sm:$0x3] %vm4105_vm4, %v7827_v16 }
 0x45f   : > { %v3877_v6 = vpop.f32.mrf.mxu1  ;;  %7454 = vmatmul.msk.f32.gmra.mxu2 %vm539_vm1, %v4225_v12  ;;  %4139 = vst.msk [vmem:[#allocation2 + $0x118] sm:$0x3] %vm4105_vm4, %v7827_v16  ;;  %v12510_v43 = vld [vmem:[#allocation30_spill] sm:$0xff] }
 0x460   : > { %v4003_v21 = vmul.f32 %v10418_v14, %v3967_v38  ;;  %4142 = vst.msk [vmem:[#allocation2 + $0x130] sm:$0x3] %vm4105_vm4, %v7827_v16 }
 0x461   : > { %v3555_v3 = vpop.f32.mrf.mxu3  ;;  %4145 = vst.msk [vmem:[#allocation2 + $0x148] sm:$0x3] %vm4105_vm4, %v7827_v16 }
 0x462   : > { %v4039_v42 = vadd.f32 %v10431_v62, %v4003_v21  ;;  %v3649_v39 = vadd.f32 %v3555_v3, %v12509_v36  ;;  %v3718_v7 = vpop.f32.mrf.mxu0  ;;  %7437 = vmatmul.msk.f32.gmra.mxu1 %vm539_vm1, %v9950_v29  ;;  %v7805_v21 = vld [vmem:[%s8926_s28 + $0x108] sm:$0xff]  ;;  %v10462_v3 = vpop.f32.mrf.mxu2  ;;  %4148 = vst.msk [vmem:[#allocation2 + $0x160] sm:$0x3] %vm4105_vm4, %v7827_v16 }
 0x463   : > { %4151 = vst.msk [vmem:[#allocation2 + $0x178] sm:$0x3] %vm4105_vm4, %v7827_v16 }
 0x464   : > { %v4071_v4 = vmax.f32 %v4039_v42, 0.0  ;;  %v3809_v38 = vadd.f32 %v3715_v53, %v3649_v39  ;;  %v12511_v39 = vld [vmem:[#allocation34_spill] sm:$0xff]  ;;  %4154 = vst.msk [vmem:[#allocation2 + $0x190] sm:$0x3] %vm4105_vm4, %v7827_v16 }
 0x465   : > { %7403 = vmatmul.msk.f32.gmra.mxu0 %vm539_vm1, %v12510_v43  ;;  %4157 = vst.msk [vmem:[#allocation2 + $0x1a8] sm:$0x3] %vm4105_vm4, %v7827_v16 }
 0x466   : > { %4159 = vst.msk [vmem:[#allocation2 + $0x19] sm:$0xff] %vm539_vm1, %v4071_v4  ;;  %v3968_v29 = vadd.f32 %v3874_v47, %v3809_v38  ;;  %7369 = vmatmul.msk.f32.gmra.mxu3 %vm539_vm1, %v7805_v21 }
 0x467   : > { %v3880_v53 = vpop.f32.mrf.mxu1 }
 0x468   : > { %v4004_v42 = vmul.f32 %v10418_v14, %v3968_v29  ;;  %v12512_v29 = vld [vmem:[#allocation42_spill] sm:$0xff] }
 0x469   : > { %v3558_v36 = vpop.f32.mrf.mxu3 }
 0x46a   : > { %v4040_v47 = vadd.f32 %v10431_v62, %v4004_v42  ;;  %v3650_v12 = vadd.f32 %v3558_v36, %v12511_v39  ;;  %v3721_v4 = vpop.f32.mrf.mxu0  ;;  %7438 = vmatmul.msk.f32.gmra.mxu1 %vm539_vm1, %v9965_v52  ;;  %v7806_v36 = vld [vmem:[%s8926_s28 + $0x110] sm:$0xff]  ;;  %v10488_v39 = vpop.f32.mrf.mxu2 }
 0x46c   : > { %v4072_v38 = vmax.f32 %v4040_v47, 0.0  ;;  %v3810_v43 = vadd.f32 %v3718_v7, %v3650_v12  ;;  %v12513_v12 = vld [vmem:[#allocation52_spill] sm:$0xff] }
 0x46d   : > { %7404 = vmatmul.msk.f32.gmra.mxu0 %vm539_vm1, %v12512_v29  ;;  %v4226_v21 = vld [vmem:[#allocation2 + $0x19] sm:$0xff] }
 0x46e   : > { %4160 = vst.msk [vmem:[#allocation2 + $0x21] sm:$0xff] %vm539_vm1, %v4072_v38  ;;  %v3969_v42 = vadd.f32 %v3877_v6, %v3810_v43  ;;  %7370 = vmatmul.msk.f32.gmra.mxu3 %vm539_vm1, %v7806_v36  ;;  %7455 = vmatmul.msk.f32.gmra.mxu2 %vm539_vm1, %v4226_v21  ;;  %v12514_v43 = vld [vmem:[#allocation40_spill] sm:$0xff]  ;;  %v7807_v36 = vld [vmem:[%s8926_s28 + $0x120] sm:$0xff] }
 0x46f   : > { %v3883_v52 = vpop.f32.mrf.mxu1 }
 0x470   : > { %v4005_v47 = vmul.f32 %v10418_v14, %v3969_v42 }
 0x471   : > { %v3561_v16 = vpop.f32.mrf.mxu3 }
 0x472   : > { %v4041_v7 = vadd.f32 %v10431_v62, %v4005_v47  ;;  %v3651_v29 = vadd.f32 %v3561_v16, %v12513_v12  ;;  %v3724_v32 = vpop.f32.mrf.mxu0  ;;  %7439 = vmatmul.msk.f32.gmra.mxu1 %vm539_vm1, %v9981_v22 }
 0x474   : > { %v4073_v6 = vmax.f32 %v4041_v7, 0.0  ;;  %v3811_v38 = vadd.f32 %v3721_v4, %v3651_v29  ;;  %v12515_v4 = vld [vmem:[#allocation60_spill] sm:$0xff] }
 0x475   : > { %7405 = vmatmul.msk.f32.gmra.mxu0 %vm539_vm1, %v12514_v43  ;;  %v4227_v21 = vld [vmem:[#allocation2 + $0x21] sm:$0xff]  ;;  %v12516_v43 = vld [vmem:[#allocation35_spill] sm:$0xff] }
 0x476   : > { %4161 = vst.msk [vmem:[#allocation2 + $0x31] sm:$0xff] %vm539_vm1, %v4073_v6  ;;  %v3970_v42 = vadd.f32 %v3880_v53, %v3811_v38  ;;  %7371 = vmatmul.msk.f32.gmra.mxu3 %vm539_vm1, %v7807_v36  ;;  %7456 = vmatmul.msk.f32.gmra.mxu2 %vm539_vm1, %v4227_v21  ;;  %v10505_v6 = vpop.f32.mrf.mxu2  ;;  %v7808_v36 = vld [vmem:[%s8926_s28 + $0x128] sm:$0xff] }
 0x477   : > { %v3886_v47 = vpop.f32.mrf.mxu1 }
 0x478   : > { %v4006_v16 = vmul.f32 %v10418_v14, %v3970_v42 }
 0x479   : > { %v3564_v12 = vpop.f32.mrf.mxu3 }
 0x47a   : > { %v4042_v22 = vadd.f32 %v10431_v62, %v4006_v16  ;;  %v3652_v7 = vadd.f32 %v3564_v12, %v12515_v4  ;;  %v3727_v29 = vpop.f32.mrf.mxu0  ;;  %7440 = vmatmul.msk.f32.gmra.mxu1 %vm539_vm1, %v9996_v41 }
 0x47c   : > { %v4074_v53 = vmax.f32 %v4042_v22, 0.0  ;;  %v3812_v38 = vadd.f32 %v3724_v32, %v3652_v7  ;;  %v12517_v32 = vld [vmem:[#allocation59_spill] sm:$0xff] }
 0x47d   : > { %7406 = vmatmul.msk.f32.gmra.mxu0 %vm539_vm1, %v12516_v43  ;;  %v4228_v21 = vld [vmem:[#allocation2 + $0x31] sm:$0xff] }
 0x47e   : > { %4162 = vst.msk [vmem:[#allocation2 + $0x39] sm:$0xff] %vm539_vm1, %v4074_v53  ;;  %v3971_v42 = vadd.f32 %v3883_v52, %v3812_v38  ;;  %7372 = vmatmul.msk.f32.gmra.mxu3 %vm539_vm1, %v7808_v36  ;;  %7457 = vmatmul.msk.f32.gmra.mxu2 %vm539_vm1, %v4228_v21  ;;  %v10518_v38 = vpop.f32.mrf.mxu2  ;;  %v12518_v43 = vld [vmem:[#allocation8_spill] sm:$0xff] }
 0x47f   : > { %v3889_v16 = vpop.f32.mrf.mxu1  ;;  %v7809_v36 = vld [vmem:[%s8926_s28 + $0x138] sm:$0xff] }
 0x480   : > { %v4007_v41 = vmul.f32 %v10418_v14, %v3971_v42 }
 0x481   : > { %v3567_v12 = vpop.f32.mrf.mxu3 }
 0x482   : > { %v4043_v22 = vadd.f32 %v10431_v62, %v4007_v41  ;;  %v3653_v4 = vadd.f32 %v3567_v12, %v12517_v32  ;;  %v3730_v7 = vpop.f32.mrf.mxu0  ;;  %7441 = vmatmul.msk.f32.gmra.mxu1 %vm539_vm1, %v10012_v15 }
 0x484   : > { %v4075_v53 = vmax.f32 %v4043_v22, 0.0  ;;  %v3813_v52 = vadd.f32 %v3727_v29, %v3653_v4  ;;  %v12519_v22 = vld [vmem:[#allocation48_spill] sm:$0xff] }
 0x485   : > { %7407 = vmatmul.msk.f32.gmra.mxu0 %vm539_vm1, %v12518_v43  ;;  %v4229_v21 = vld [vmem:[#allocation2 + $0x39] sm:$0xff] }
 0x486   : > { %4163 = vst.msk [vmem:[#allocation2 + $0x49] sm:$0xff] %vm539_vm1, %v4075_v53  ;;  %v3972_v42 = vadd.f32 %v3886_v47, %v3813_v52  ;;  %7373 = vmatmul.msk.f32.gmra.mxu3 %vm539_vm1, %v7809_v36  ;;  %7458 = vmatmul.msk.f32.gmra.mxu2 %vm539_vm1, %v4229_v21  ;;  %v7810_v21 = vld [vmem:[%s8926_s28 + $0x140] sm:$0xff] }
 0x487   : > { %v3892_v41 = vpop.f32.mrf.mxu1 }
 0x488   : > { %v4008_v15 = vmul.f32 %v10418_v14, %v3972_v42  ;;  %v10537_v42 = vpop.f32.mrf.mxu2 }
 0x489   : > { %v3570_v12 = vpop.f32.mrf.mxu3 }
 0x48a   : > { %v4044_v29 = vadd.f32 %v10431_v62, %v4008_v15  ;;  %v3654_v32 = vadd.f32 %v3570_v12, %v12519_v22  ;;  %v3733_v4 = vpop.f32.mrf.mxu0  ;;  %7442 = vmatmul.msk.f32.gmra.mxu1 %vm539_vm1, %v10027_v58  ;;  %v12520_v12 = vld [vmem:[#allocation47_spill] sm:$0xff] }
 0x48c   : > { %v4076_v53 = vmax.f32 %v4044_v29, 0.0  ;;  %v3814_v47 = vadd.f32 %v3730_v7, %v3654_v32  ;;  %v12521_v32 = vld [vmem:[#allocation10_spill] sm:$0xff] }
 0x48d   : > { %7408 = vmatmul.msk.f32.gmra.mxu0 %vm539_vm1, %v12463_v46  ;;  %v4230_v52 = vld [vmem:[#allocation2 + $0x49] sm:$0xff] }
 0x48e   : > { %4164 = vst.msk [vmem:[#allocation2 + $0x51] sm:$0xff] %vm539_vm1, %v4076_v53  ;;  %v3973_v43 = vadd.f32 %v3889_v16, %v3814_v47  ;;  %7374 = vmatmul.msk.f32.gmra.mxu3 %vm539_vm1, %v7810_v21  ;;  %7459 = vmatmul.msk.f32.gmra.mxu2 %vm539_vm1, %v4230_v52  ;;  %v7811_v52 = vld [vmem:[%s8926_s28 + $0x150] sm:$0xff]  ;;  %v12522_v21 = vld [vmem:[#allocation62_spill] sm:$0xff] }
 0x48f   : > { %v3895_v36 = vpop.f32.mrf.mxu1 }
 0x490   : > { %v4009_v58 = vmul.f32 %v10418_v14, %v3973_v43 }
 0x491   : > { %v3573_v15 = vpop.f32.mrf.mxu3 }
 0x492   : > { %v4045_v7 = vadd.f32 %v10431_v62, %v4009_v58  ;;  %v3655_v46 = vadd.f32 %v3573_v15, %v12520_v12  ;;  %v3736_v29 = vpop.f32.mrf.mxu0  ;;  %7443 = vmatmul.msk.f32.gmra.mxu1 %vm539_vm1, %v10043_v9  ;;  %v3500_v58 = vadd.f32 %v10180_v44, %v12522_v21 }
 0x494   : > { %v4077_v16 = vmax.f32 %v4045_v7, 0.0  ;;  %v3815_v22 = vadd.f32 %v3733_v4, %v3655_v46  ;;  %v10553_v4 = vpop.f32.mrf.mxu2 }
 0x495   : > { %7409 = vmatmul.msk.f32.gmra.mxu0 %vm539_vm1, %v12521_v32  ;;  %v4231_v53 = vld [vmem:[#allocation2 + $0x51] sm:$0xff] }
 0x496   : > { %4165 = vst.msk [vmem:[#allocation2 + $0x61] sm:$0xff] %vm539_vm1, %v4077_v16  ;;  %v3974_v47 = vadd.f32 %v3892_v41, %v3815_v22  ;;  %7375 = vmatmul.msk.f32.gmra.mxu3 %vm539_vm1, %v7811_v52  ;;  %7460 = vmatmul.msk.f32.gmra.mxu2 %vm539_vm1, %v4231_v53  ;;  %v7812_v32 = vld [vmem:[%s8926_s28 + $0x158] sm:$0xff] }
 0x497   : > { %v3898_v43 = vpop.f32.mrf.mxu1 }
 0x498   : > { %v4010_v9 = vmul.f32 %v10418_v14, %v3974_v47  ;;  %v12523_v47 = vld [vmem:[#allocation61_spill] sm:$0xff] }
 0x499   : > { %v3576_v15 = vpop.f32.mrf.mxu3  ;;  %v3501_v52 = vadd.f32 %v10191_v54, %v12523_v47 }
 0x49a   : > { %v4046_v7 = vadd.f32 %v10431_v62, %v4010_v9  ;;  %v3656_v12 = vadd.f32 %v3576_v15, %v3500_v58  ;;  %v3739_v46 = vpop.f32.mrf.mxu0  ;;  %7444 = vmatmul.msk.f32.gmra.mxu1 %vm539_vm1, %v10058_v45 }
 0x49c   : > { %v4078_v41 = vmax.f32 %v4046_v7, 0.0  ;;  %v3816_v16 = vadd.f32 %v3736_v29, %v3656_v12  ;;  %v12524_v7 = vld [vmem:[#allocation5_spill] sm:$0xff] }
 0x49d   : > { %7410 = vmatmul.msk.f32.gmra.mxu0 %vm539_vm1, %v12470_v55  ;;  %v4232_v22 = vld [vmem:[#allocation2 + $0x61] sm:$0xff] }
 0x49e   : > { %4166 = vst.msk [vmem:[#allocation2 + $0x69] sm:$0xff] %vm539_vm1, %v4078_v41  ;;  %v3975_v44 = vadd.f32 %v3895_v36, %v3816_v16  ;;  %7376 = vmatmul.msk.f32.gmra.mxu3 %vm539_vm1, %v7812_v32  ;;  %7461 = vmatmul.msk.f32.gmra.mxu2 %vm539_vm1, %v4232_v22  ;;  %v10570_v36 = vpop.f32.mrf.mxu2  ;;  %v7813_v41 = vld [vmem:[%s8926_s28 + $0x168] sm:$0xff]  ;;  %v12525_v22 = vld [vmem:[#allocation23_spill] sm:$0xff] }
 0x49f   : > { %v3901_v53 = vpop.f32.mrf.mxu1 }
 0x4a0   : > { %v4011_v45 = vmul.f32 %v10418_v14, %v3975_v44 }
 0x4a1   : > { %v3579_v29 = vpop.f32.mrf.mxu3 }
 0x4a2   : > { %v4047_v21 = vadd.f32 %v10431_v62, %v4011_v45  ;;  %v3657_v55 = vadd.f32 %v3579_v29, %v3501_v52  ;;  %v3742_v58 = vpop.f32.mrf.mxu0  ;;  %7445 = vmatmul.msk.f32.gmra.mxu1 %vm539_vm1, %v10074_v49  ;;  %v3502_v49 = vadd.f32 %v10205_v63, %v12525_v22 }
 0x4a4   : > { %v4079_v9 = vmax.f32 %v4047_v21, 0.0  ;;  %v3817_v15 = vadd.f32 %v3739_v46, %v3657_v55  ;;  %v12526_v21 = vld [vmem:[#allocation6_spill] sm:$0xff] }
 0x4a5   : > { %7411 = vmatmul.msk.f32.gmra.mxu0 %vm539_vm1, %v12524_v7  ;;  %v4233_v12 = vld [vmem:[#allocation2 + $0x69] sm:$0xff] }
 0x4a6   : > { %4167 = vst.msk [vmem:[#allocation2 + $0x79] sm:$0xff] %vm539_vm1, %v4079_v9  ;;  %v3976_v54 = vadd.f32 %v3898_v43, %v3817_v15  ;;  %7377 = vmatmul.msk.f32.gmra.mxu3 %vm539_vm1, %v7813_v41  ;;  %7462 = vmatmul.msk.f32.gmra.mxu2 %vm539_vm1, %v4233_v12  ;;  %v10584_v29 = vpop.f32.mrf.mxu2  ;;  %v7814_v9 = vld [vmem:[%s8926_s28 + $0x170] sm:$0xff] }
 0x4a7   : > { %v3904_v16 = vpop.f32.mrf.mxu1  ;;  %v12527_v7 = vld [vmem:[#allocation63_spill] sm:$0xff] }
 0x4a8   : > { %v4012_v44 = vmul.f32 %v10418_v14, %v3976_v54 }
 0x4a9   : > { %v3582_v46 = vpop.f32.mrf.mxu3 }
 0x4aa   : > { %v4048_v32 = vadd.f32 %v10431_v62, %v4012_v44  ;;  %v3658_v47 = vadd.f32 %v3582_v46, %v3502_v49  ;;  %v3745_v52 = vpop.f32.mrf.mxu0  ;;  %7446 = vmatmul.msk.f32.gmra.mxu1 %vm539_vm1, %v10097_v10  ;;  %v3503_v10 = vadd.f32 %v10216_v5, %v12527_v7  ;;  %v12528_v44 = vld [vmem:[#allocation65_spill] sm:$0xff] }
 0x4ac   : > { %v4080_v43 = vmax.f32 %v4048_v32, 0.0  ;;  %v3818_v45 = vadd.f32 %v3742_v58, %v3658_v47 }
 0x4ad   : > { %7412 = vmatmul.msk.f32.gmra.mxu0 %vm539_vm1, %v12526_v21  ;;  %v4234_v55 = vld [vmem:[#allocation2 + $0x79] sm:$0xff] }
 0x4ae   : > { %4168 = vst.msk [vmem:[#allocation2 + $0x81] sm:$0xff] %vm539_vm1, %v4080_v43  ;;  %v3977_v63 = vadd.f32 %v3901_v53, %v3818_v45  ;;  %7378 = vmatmul.msk.f32.gmra.mxu3 %vm539_vm1, %v7814_v9  ;;  %7463 = vmatmul.msk.f32.gmra.mxu2 %vm539_vm1, %v4234_v55  ;;  %v10604_v32 = vpop.f32.mrf.mxu2  ;;  %v12529_v43 = vld [vmem:[#allocation19_spill] sm:$0xff]  ;;  %v2197_v45 = vld [vmem:[%s8926_s28 + $0x198] sm:$0xff]  ;;  %v2198_v21 = vld [vmem:[%s8926_s28 + $0x1a0] sm:$0xff] }
 0x4af   : > { %v3907_v15 = vpop.f32.mrf.mxu1  ;;  %v3841_v7 = vrot.slane %v2198_v21, 2 }
 0x4b0   : > { %v4013_v58 = vmul.f32 %v10418_v14, %v3977_v63 }
 0x4b1   : > { %v3585_v12 = vpop.f32.mrf.mxu3 }
 0x4b2   : > { %v4049_v54 = vadd.f32 %v10431_v62, %v4013_v58  ;;  %v3659_v41 = vadd.f32 %v3585_v12, %v3503_v10  ;;  %v3748_v22 = vpop.f32.mrf.mxu0  ;;  %7447 = vmatmul.msk.f32.gmra.mxu1 %vm539_vm1, %v10117_v37  ;;  %v3504_v37 = vadd.f32 %v10233_v61, %v12529_v43 }
 0x4b4   : > { %v4081_v53 = vmax.f32 %v4049_v54, 0.0  ;;  %v3819_v49 = vadd.f32 %v3745_v52, %v3659_v41  ;;  %v3681_v54 = vrot.slane %v2197_v45, 1  ;;  %v3682_v41 = vrot.slane %v2198_v21, 1 }
 0x4b5   : > { %7413 = vmatmul.msk.f32.gmra.mxu0 %vm539_vm1, %v12528_v44  ;;  %v4235_v46 = vld [vmem:[#allocation2 + $0x81] sm:$0xff] }
 0x4b6   : > { %4169 = vst.msk [vmem:[#allocation2 + $0x91] sm:$0xff] %vm539_vm1, %v4081_v53  ;;  %v3978_v5 = vadd.f32 %v3904_v16, %v3819_v49  ;;  %7379 = vmatmul.msk.f32.gmra.mxu3 %vm539_vm1, %v10086_v11  ;;  %7464 = vmatmul.msk.f32.gmra.mxu2 %vm539_vm1, %v4235_v46  ;;  %v3840_v11 = vrot.slane %v2197_v45, 2  ;;  %v10625_v44 = vpop.f32.mrf.mxu2  ;;  %v3683_v43 = vsel %vm456_vm2, %v3681_v54, %v3682_v41 }
 0x4b7   : > { %v3910_v47 = vpop.f32.mrf.mxu1 }
 0x4b8   : > { %v4014_v52 = vmul.f32 %v10418_v14, %v3978_v5  ;;  %v3842_v53 = vsel %vm901_vm3, %v3840_v11, %v3841_v7 }
 0x4b9   : > { %v3588_v55 = vpop.f32.mrf.mxu3 }
 0x4ba   : > { %v4050_v63 = vadd.f32 %v10431_v62, %v4014_v52  ;;  %v3660_v9 = vadd.f32 %v3588_v55, %v3504_v37  ;;  %v3751_v16 = vpop.f32.mrf.mxu0  ;;  %7448 = vmatmul.msk.f32.gmra.mxu1 %vm539_vm1, %v10134_v59 }
 0x4bc   : > { %v4082_v10 = vmax.f32 %v4050_v63, 0.0  ;;  %v3820_v58 = vadd.f32 %v3748_v22, %v3660_v9  ;;  %v3505_v22 = vadd.f32 %v10244_v27, %v10123_v0 }
 0x4bd   : > { %7414 = vmatmul.msk.f32.gmra.mxu0 %vm539_vm1, %v10128_v1  ;;  %v4236_v61 = vld [vmem:[#allocation2 + $0x91] sm:$0xff]  ;;  %v2199_v1 = vld [vmem:[%s8926_s28 + $0x1a8] sm:$0x3]  ;;  %s11701_s28 = scalar_lea.vmem %s11931_s9, %s7758_s29 }
 0x4be   : > { %4170 = vst.msk [vmem:[#allocation2 + $0x99] sm:$0xff] %vm539_vm1, %v4082_v10  ;;  %v3979_v12 = vadd.f32 %v3907_v15, %v3820_v58  ;;  %7380 = vmatmul.msk.f32.gmra.mxu3 %vm539_vm1, %v10089_v2  ;;  %7465 = vmatmul.msk.f32.gmra.mxu2 %vm539_vm1, %v4236_v61  ;;  %v3843_v37 = vrot.slane %v2199_v1, 2  ;;  %v3684_v63 = vrot.slane %v2199_v1, 1  ;;  %v3506_v10 = vadd.f32 %v10258_v20, %v10140_v19 }
 0x4bf   : > { %v3913_v59 = vpop.f32.mrf.mxu1 }
 0x4c0   : > { %v4015_v49 = vmul.f32 %v10418_v14, %v3979_v12  ;;  %v3844_v11 = vsel %vm901_vm3, %v3841_v7, %v3843_v37 }
 0x4c1   : > { %v3591_v46 = vpop.f32.mrf.mxu3 }
 0x4c2   : > { %v4051_v15 = vadd.f32 %v10431_v62, %v4015_v49  ;;  %v3661_v5 = vadd.f32 %v3591_v46, %v3505_v22  ;;  %v3754_v2 = vpop.f32.mrf.mxu0  ;;  %7449 = vmatmul.msk.f32.gmra.mxu1 %vm539_vm1, %v3842_v53  ;;  %v3507_v49 = vadd.f32 %v10269_v57, %v10151_v40  ;;  %v4960_v46 = vld [vmem:[#allocation2 + $0x18] sm:$0xff] }
 0x4c4   : > { %v4083_v52 = vmax.f32 %v4051_v15, 0.0  ;;  %v3821_v55 = vadd.f32 %v3751_v16, %v3661_v5 }
 0x4c5   : > { %7415 = vmatmul.msk.f32.gmra.mxu0 %vm539_vm1, %v3683_v43  ;;  %v4237_v0 = vld [vmem:[#allocation2 + $0x99] sm:$0xff]  ;;  %v4682_v43 = vld [vmem:[#allocation2 + $0x2] sm:$0xff] }
 0x4c6   : > { %4171 = vst.msk [vmem:[#allocation2 + $0xa9] sm:$0xff] %vm539_vm1, %v4083_v52  ;;  %v3980_v27 = vadd.f32 %v3910_v47, %v3821_v55  ;;  %7381 = vmatmul.msk.f32.gmra.mxu3 %vm539_vm1, %v2197_v45  ;;  %7466 = vmatmul.msk.f32.gmra.mxu2 %vm539_vm1, %v4237_v0  ;;  %v3685_v47 = vsel %vm456_vm2, %v3682_v41, %v3684_v63  ;;  %v10641_v45 = vpop.f32.mrf.mxu2 }
 0x4c7   : > { %v3916_v9 = vpop.f32.mrf.mxu1  ;;  %v3508_v0 = vadd.f32 %v10308_v23, %v10160_v31 }
 0x4c8   : > { %v4016_v58 = vmul.f32 %v10418_v14, %v3980_v27 }
 0x4c9   : > { %v3594_v16 = vpop.f32.mrf.mxu3 }
 0x4ca   : > { %v4052_v61 = vadd.f32 %v10431_v62, %v4016_v58  ;;  %v3662_v12 = vadd.f32 %v3594_v16, %v3506_v10  ;;  %v3757_v54 = vpop.f32.mrf.mxu0  ;;  %7450 = vmatmul.msk.f32.gmra.mxu1 %vm539_vm1, %v3844_v11  ;;  %v4961_v11 = vld [vmem:[#allocation2 + $0x20] sm:$0xff] }
 0x4cc   : > { %v4084_v53 = vmax.f32 %v4052_v61, 0.0  ;;  %v3822_v22 = vadd.f32 %v3754_v2, %v3662_v12  ;;  %v4683_v61 = vld [vmem:[#allocation2 + $0xa] sm:$0xff] }
 0x4cd   : > { %7416 = vmatmul.msk.f32.gmra.mxu0 %vm539_vm1, %v3685_v47  ;;  %v4238_v7 = vld [vmem:[#allocation2 + $0xa9] sm:$0xff] }
 0x4ce   : > { %4172 = vst.msk [vmem:[#allocation2 + $0xb1] sm:$0xff] %vm539_vm1, %v4084_v53  ;;  %v3981_v19 = vadd.f32 %v3913_v59, %v3822_v22  ;;  %7382 = vmatmul.msk.f32.gmra.mxu3 %vm539_vm1, %v2198_v21  ;;  %7467 = vmatmul.msk.f32.gmra.mxu2 %vm539_vm1, %v4238_v7  ;;  %v4191_v59 = vld [vmem:[#allocation2] sm:$0xff]  ;;  %v10652_v52 = vpop.f32.mrf.mxu2  ;;  %v3509_v22 = vadd.f32 %v10348_v26, %v10169_v51 }
 0x4cf   : > { %v3919_v20 = vpop.f32.mrf.mxu1 }
 0x4d0   : > { %v4017_v41 = vmul.f32 %v10418_v14, %v3981_v19 }
 0x4d1   : > { %v3597_v1 = vpop.f32.mrf.mxu3 }
 0x4d2   : > { %v4053_v15 = vadd.f32 %v10431_v62, %v4017_v41  ;;  %v3663_v5 = vadd.f32 %v3597_v1, %v3507_v49  ;;  %v3760_v2 = vpop.f32.mrf.mxu0  ;;  %7554 = vmatmul.msk.f32.vlgmr.msrb.gmra.mxu1 %vm539_vm1, %v4960_v46  ;;  %v10675_v49 = vld [vmem:[#allocation2 + $0x30] sm:$0xff] }
 0x4d4   : > { %v4085_v37 = vmax.f32 %v4053_v15, 0.0  ;;  %v3823_v21 = vadd.f32 %v3757_v54, %v3663_v5 }
 0x4d5   : > { %v4239_v55 = vld [vmem:[#allocation2 + $0xb1] sm:$0xff]  ;;  %7520 = vmatmul.msk.f32.vlgmr.msrb.gmra.mxu0 %vm539_vm1, %v4682_v43 }
 0x4d6   : > { %4173 = vst.msk [vmem:[#allocation2 + $0xc1] sm:$0xff] %vm539_vm1, %v4085_v37  ;;  %v3982_v40 = vadd.f32 %v3916_v9, %v3823_v21  ;;  %7468 = vmatmul.msk.f32.gmra.mxu2 %vm539_vm1, %v4239_v55  ;;  %7486 = vmatmul.msk.f32.vlgmr.msrb.gmra.mxu3 %vm539_vm1, %v4191_v59  ;;  %v4192_v9 = vld [vmem:[#allocation2 + $0x8] sm:$0xff]  ;;  %v10666_v53 = vpop.f32.mrf.mxu2  ;;  %v3510_v37 = vadd.f32 %v10386_v50, %v10178_v56 }
 0x4d7   : > { %v3922_v57 = vpop.f32.mrf.mxu1 }
 0x4d8   : > { %v4018_v27 = vmul.f32 %v10418_v14, %v3982_v40  ;;  %v10695_v40 = vld [vmem:[#allocation2 + $0x38] sm:$0xff] }
 0x4d9   : > { %v3600_v63 = vpop.f32.mrf.mxu3 }
 0x4da   : > { %v4054_v10 = vadd.f32 %v10431_v62, %v4018_v27  ;;  %v3664_v58 = vadd.f32 %v3600_v63, %v3508_v0  ;;  %v3763_v16 = vpop.f32.mrf.mxu0  ;;  %7555 = vmatmul.msk.f32.gmra.mxu1 %vm539_vm1, %v4961_v11 }
 0x4dc   : > { %v4086_v12 = vmax.f32 %v4054_v10, 0.0  ;;  %v3824_v54 = vadd.f32 %v3760_v2, %v3664_v58  ;;  %v10680_v2 = vld [vmem:[#allocation2 + $0x1a] sm:$0xff]  ;;  %v10700_v10 = vld [vmem:[#allocation2 + $0x22] sm:$0xff] }
 0x4dd   : > { %v10663_v47 = vld [vmem:[#allocation2 + $0xc1] sm:$0xff]  ;;  %7521 = vmatmul.msk.f32.gmra.mxu0 %vm539_vm1, %v4683_v61 }
 0x4de   : > { %4174 = vst.msk [vmem:[#allocation2 + $0xc9] sm:$0xff] %vm539_vm1, %v4086_v12  ;;  %v3983_v31 = vadd.f32 %v3919_v20, %v3824_v54  ;;  %7469 = vmatmul.msk.f32.gmra.mxu2 %vm539_vm1, %v10663_v47  ;;  %7487 = vmatmul.msk.f32.gmra.mxu3 %vm539_vm1, %v4192_v9  ;;  %v10715_v54 = vld [vmem:[#allocation2 + $0x48] sm:$0xff] }
 0x4df   : > { %v3925_v23 = vpop.f32.mrf.mxu1 }
 0x4e0   : > { %v4019_v7 = vmul.f32 %v10418_v14, %v3983_v31 }
 0x4e1   : > { %v3603_v19 = vpop.f32.mrf.mxu3 }
 0x4e2   : > { %v4055_v41 = vadd.f32 %v10431_v62, %v4019_v7  ;;  %v3665_v1 = vadd.f32 %v3603_v19, %v3509_v22  ;;  %v3766_v15 = vpop.f32.mrf.mxu0  ;;  %7556 = vmatmul.msk.f32.gmra.mxu1 %vm539_vm1, %v10675_v49  ;;  %v10690_v59 = vpop.f32.mrf.mxu2  ;;  %v10720_v19 = vld [vmem:[#allocation2 + $0x32] sm:$0xff] }
 0x4e4   : > { %v4087_v20 = vmax.f32 %v4055_v41, 0.0  ;;  %v3825_v5 = vadd.f32 %v3763_v16, %v3665_v1  ;;  %v3511_v16 = vadd.f32 %v10422_v18, %v10189_v35  ;;  %v3512_v1 = vadd.f32 %v10462_v3, %v10200_v25 }
 0x4e5   : > { %v10682_v43 = vld [vmem:[#allocation2 + $0xc9] sm:$0xff]  ;;  %7522 = vmatmul.msk.f32.gmra.mxu0 %vm539_vm1, %v10680_v2 }
 0x4e6   : > { %4175 = vst.msk [vmem:[#allocation2 + $0xd9] sm:$0xff] %vm539_vm1, %v4087_v20  ;;  %v3984_v51 = vadd.f32 %v3922_v57, %v3825_v5  ;;  %7470 = vmatmul.msk.f32.gmra.mxu2 %vm539_vm1, %v10682_v43  ;;  %7488 = vmatmul.msk.f32.gmra.mxu3 %vm539_vm1, %v4960_v46 }
 0x4e7   : > { %v3928_v26 = vpop.f32.mrf.mxu1 }
 0x4e8   : > { %v4020_v21 = vmul.f32 %v10418_v14, %v3984_v51  ;;  %v10736_v51 = vld [vmem:[#allocation2 + $0x50] sm:$0xff] }
 0x4e9   : > { %v3606_v55 = vpop.f32.mrf.mxu3 }
 0x4ea   : > { %v4056_v0 = vadd.f32 %v10431_v62, %v4020_v21  ;;  %v3666_v27 = vadd.f32 %v3606_v55, %v3510_v37  ;;  %v3769_v57 = vpop.f32.mrf.mxu0  ;;  %7557 = vmatmul.msk.f32.gmra.mxu1 %vm539_vm1, %v10695_v40 }
 0x4ec   : > { %v4088_v63 = vmax.f32 %v4056_v0, 0.0  ;;  %v3826_v46 = vadd.f32 %v3766_v15, %v3666_v27  ;;  %v10741_v27 = vld [vmem:[#allocation2 + $0x3a] sm:$0xff] }
 0x4ed   : > { %v10702_v58 = vld [vmem:[#allocation2 + $0xd9] sm:$0xff]  ;;  %7523 = vmatmul.msk.f32.gmra.mxu0 %vm539_vm1, %v10700_v10 }
 0x4ee   : > { %4176 = vst.msk [vmem:[#allocation2 + $0xe1] sm:$0xff] %vm539_vm1, %v4088_v63  ;;  %v3985_v56 = vadd.f32 %v3925_v23, %v3826_v46  ;;  %7471 = vmatmul.msk.f32.gmra.mxu2 %vm539_vm1, %v10702_v58  ;;  %7489 = vmatmul.msk.f32.gmra.mxu3 %vm539_vm1, %v4961_v11  ;;  %v3513_v63 = vadd.f32 %v10488_v39, %v10211_v48 }
 0x4ef   : > { %v3931_v50 = vpop.f32.mrf.mxu1 }
 0x4f0   : > { %v4021_v61 = vmul.f32 %v10418_v14, %v3985_v56 }
 0x4f1   : > { %v3609_v9 = vpop.f32.mrf.mxu3  ;;  %v10713_v12 = vpop.f32.mrf.mxu2 }
 0x4f2   : > { %v4057_v31 = vadd.f32 %v10431_v62, %v4021_v61  ;;  %v3667_v22 = vadd.f32 %v3609_v9, %v3511_v16  ;;  %v3772_v23 = vpop.f32.mrf.mxu0  ;;  %7558 = vmatmul.msk.f32.gmra.mxu1 %vm539_vm1, %v10715_v54  ;;  %v10757_v61 = vld [vmem:[#allocation2 + $0x60] sm:$0xff] }
 0x4f4   : > { %v4089_v7 = vmax.f32 %v4057_v31, 0.0  ;;  %v3827_v11 = vadd.f32 %v3769_v57, %v3667_v22 }
 0x4f5   : > { %v10722_v41 = vld [vmem:[#allocation2 + $0xe1] sm:$0xff]  ;;  %7524 = vmatmul.msk.f32.gmra.mxu0 %vm539_vm1, %v10720_v19 }
 0x4f6   : > { %4177 = vst.msk [vmem:[#allocation2 + $0xf1] sm:$0xff] %vm539_vm1, %v4089_v7  ;;  %v3986_v35 = vadd.f32 %v3928_v26, %v3827_v11  ;;  %7472 = vmatmul.msk.f32.gmra.mxu2 %vm539_vm1, %v10722_v41  ;;  %7490 = vmatmul.msk.f32.gmra.mxu3 %vm539_vm1, %v10675_v49  ;;  %v10762_v7 = vld [vmem:[#allocation2 + $0x4a] sm:$0xff] }
 0x4f7   : > { %v3934_v18 = vpop.f32.mrf.mxu1 }
 0x4f8   : > { %v4022_v15 = vmul.f32 %v10418_v14, %v3986_v35  ;;  %v3514_v35 = vadd.f32 %v10505_v6, %v10222_v24 }
 0x4f9   : > { %v3612_v20 = vpop.f32.mrf.mxu3  ;;  %v10734_v5 = vpop.f32.mrf.mxu2 }
 0x4fa   : > { %v4058_v37 = vadd.f32 %v10431_v62, %v4022_v15  ;;  %v3668_v26 = vadd.f32 %v3612_v20, %v3512_v1  ;;  %v3775_v21 = vpop.f32.mrf.mxu0  ;;  %7559 = vmatmul.msk.f32.gmra.mxu1 %vm539_vm1, %v10736_v51 }
 0x4fc   : > { %v4090_v55 = vmax.f32 %v4058_v37, 0.0  ;;  %v3828_v0 = vadd.f32 %v3772_v23, %v3668_v26  ;;  %v10778_v37 = vld [vmem:[#allocation2 + $0x68] sm:$0xff] }
 0x4fd   : > { %v10743_v57 = vld [vmem:[#allocation2 + $0xf1] sm:$0xff]  ;;  %7525 = vmatmul.msk.f32.gmra.mxu0 %vm539_vm1, %v10741_v27 }
 0x4fe   : > { %4178 = vst.msk [vmem:[#allocation2 + $0xf9] sm:$0xff] %vm539_vm1, %v4090_v55  ;;  %v3987_v25 = vadd.f32 %v3931_v50, %v3828_v0  ;;  %7473 = vmatmul.msk.f32.gmra.mxu2 %vm539_vm1, %v10743_v57  ;;  %7491 = vmatmul.msk.f32.gmra.mxu3 %vm539_vm1, %v10695_v40 }
 0x4ff   : > { %v3937_v3 = vpop.f32.mrf.mxu1 }
 0x500   : > { %v4023_v46 = vmul.f32 %v10418_v14, %v3987_v25  ;;  %v10783_v25 = vld [vmem:[#allocation2 + $0x52] sm:$0xff] }
 0x501   : > { %v3615_v56 = vpop.f32.mrf.mxu3  ;;  %v10755_v16 = vpop.f32.mrf.mxu2 }
 0x502   : > { %v4059_v9 = vadd.f32 %v10431_v62, %v4023_v46  ;;  %v3669_v50 = vadd.f32 %v3615_v56, %v3513_v63  ;;  %v3778_v31 = vpop.f32.mrf.mxu0  ;;  %7560 = vmatmul.msk.f32.gmra.mxu1 %vm539_vm1, %v10757_v61  ;;  %v3515_v46 = vadd.f32 %v10518_v38, %v10231_v8 }
 0x504   : > { %v4091_v22 = vmax.f32 %v4059_v9, 0.0  ;;  %v3829_v23 = vadd.f32 %v3775_v21, %v3669_v50 }
 0x505   : > { %v10764_v11 = vld [vmem:[#allocation2 + $0xf9] sm:$0xff]  ;;  %7526 = vmatmul.msk.f32.gmra.mxu0 %vm539_vm1, %v10762_v7 }
 0x506   : > { %4179 = vst.msk [vmem:[#allocation2 + $0x109] sm:$0xff] %vm539_vm1, %v4091_v22  ;;  %v3988_v48 = vadd.f32 %v3934_v18, %v3829_v23  ;;  %7474 = vmatmul.msk.f32.gmra.mxu2 %vm539_vm1, %v10764_v11  ;;  %7492 = vmatmul.msk.f32.gmra.mxu3 %vm539_vm1, %v10715_v54 }
 0x507   : > { %v3940_v39 = vpop.f32.mrf.mxu1 }
 0x508   : > { %v4024_v1 = vmul.f32 %v10418_v14, %v3988_v48 }
 0x509   : > { %v3618_v15 = vpop.f32.mrf.mxu3  ;;  %v10776_v20 = vpop.f32.mrf.mxu2 }
 0x50a   : > { %v4060_v26 = vadd.f32 %v10431_v62, %v4024_v1  ;;  %v3670_v18 = vadd.f32 %v3618_v15, %v3514_v35  ;;  %v3781_v21 = vpop.f32.mrf.mxu0  ;;  %7561 = vmatmul.msk.f32.gmra.mxu1 %vm539_vm1, %v10778_v37  ;;  %v10804_v1 = vld [vmem:[#allocation2 + $0x62] sm:$0xff] }
 0x50c   : > { %v4092_v55 = vmax.f32 %v4060_v26, 0.0  ;;  %v3830_v0 = vadd.f32 %v3778_v31, %v3670_v18  ;;  %v10799_v31 = vld [vmem:[#allocation2 + $0x78] sm:$0xff]  ;;  %v3516_v26 = vadd.f32 %v10537_v42, %v10242_v60 }
 0x50d   : > { %v10785_v63 = vld [vmem:[#allocation2 + $0x109] sm:$0xff]  ;;  %7527 = vmatmul.msk.f32.gmra.mxu0 %vm539_vm1, %v10783_v25 }
 0x50e   : > { %4180 = vst.msk [vmem:[#allocation2 + $0x111] sm:$0xff] %vm539_vm1, %v4092_v55  ;;  %v3989_v24 = vadd.f32 %v3937_v3, %v3830_v0  ;;  %7475 = vmatmul.msk.f32.gmra.mxu2 %vm539_vm1, %v10785_v63  ;;  %7493 = vmatmul.msk.f32.gmra.mxu3 %vm539_vm1, %v10736_v51  ;;  %v10820_v0 = vld [vmem:[#allocation2 + $0x80] sm:$0xff] }
 0x50f   : > { %v3943_v6 = vpop.f32.mrf.mxu1  ;;  %12530 = vst [vmem:[#allocation32_spill] sm:$0xff] %v10820_v0 }
 0x510   : > { %v4025_v56 = vmul.f32 %v10418_v14, %v3989_v24 }
 0x511   : > { %v3621_v9 = vpop.f32.mrf.mxu3  ;;  %v10797_v50 = vpop.f32.mrf.mxu2 }
 0x512   : > { %v4061_v22 = vadd.f32 %v10431_v62, %v4025_v56  ;;  %v3671_v3 = vadd.f32 %v3621_v9, %v3515_v46  ;;  %v3784_v23 = vpop.f32.mrf.mxu0  ;;  %7562 = vmatmul.msk.f32.gmra.mxu1 %vm539_vm1, %v10799_v31 }
 0x514   : > { %v4093_v48 = vmax.f32 %v4061_v22, 0.0  ;;  %v3831_v35 = vadd.f32 %v3781_v21, %v3671_v3  ;;  %v10825_v22 = vld [vmem:[#allocation2 + $0x6a] sm:$0xff] }
 0x515   : > { %v10806_v15 = vld [vmem:[#allocation2 + $0x111] sm:$0xff]  ;;  %7528 = vmatmul.msk.f32.gmra.mxu0 %vm539_vm1, %v10804_v1  ;;  %12531 = vst [vmem:[#allocation66_spill] sm:$0xff] %v10825_v22 }
 0x516   : > { %4181 = vst.msk [vmem:[#allocation2 + $0x121] sm:$0xff] %vm539_vm1, %v4093_v48  ;;  %v3990_v8 = vadd.f32 %v3940_v39, %v3831_v35  ;;  %7476 = vmatmul.msk.f32.gmra.mxu2 %vm539_vm1, %v10806_v15  ;;  %7494 = vmatmul.msk.f32.gmra.mxu3 %vm539_vm1, %v10757_v61 }
 0x517   : > { %v3946_v38 = vpop.f32.mrf.mxu1 }
 0x518   : > { %v4026_v18 = vmul.f32 %v10418_v14, %v3990_v8 }
 0x519   : > { %v3624_v21 = vpop.f32.mrf.mxu3  ;;  %v10818_v55 = vpop.f32.mrf.mxu2 }
 0x51a   : > { %v4062_v24 = vadd.f32 %v10431_v62, %v4026_v18  ;;  %v3672_v39 = vadd.f32 %v3624_v21, %v3516_v26  ;;  %v3787_v46 = vpop.f32.mrf.mxu0  ;;  %7563 = vmatmul.msk.f32.gmra.mxu1 %vm539_vm1, %v10820_v0  ;;  %v10841_v26 = vld [vmem:[#allocation2 + $0x90] sm:$0xff] }
 0x51b   : > { %12533 = vst [vmem:[#allocation68_spill] sm:$0xff] %v10841_v26 }
 0x51c   : > { %v4094_v56 = vmax.f32 %v4062_v24, 0.0  ;;  %v3832_v9 = vadd.f32 %v3784_v23, %v3672_v39  ;;  %v3517_v23 = vadd.f32 %v10553_v4, %v10253_v30 }
 0x51d   : > { %v10827_v3 = vld [vmem:[#allocation2 + $0x121] sm:$0xff]  ;;  %7529 = vmatmul.msk.f32.gmra.mxu0 %vm539_vm1, %v10825_v22  ;;  %v11121_v22 = vld [vmem:[#allocation2 + $0x112] sm:$0xff] }
 0x51e   : > { %12532 = vst [vmem:[#allocation28_spill] sm:$0xff] %v10827_v3  ;;  %v3991_v60 = vadd.f32 %v3943_v6, %v3832_v9  ;;  %7477 = vmatmul.msk.f32.gmra.mxu2 %vm539_vm1, %v10827_v3  ;;  %7495 = vmatmul.msk.f32.gmra.mxu3 %vm539_vm1, %v10778_v37 }
 0x51f   : > { %4182 = vst.msk [vmem:[#allocation2 + $0x129] sm:$0xff] %vm539_vm1, %v4094_v56  ;;  %v3949_v42 = vpop.f32.mrf.mxu1  ;;  %v10846_v56 = vld [vmem:[#allocation2 + $0x7a] sm:$0xff] }
 0x520   : > { %v4027_v48 = vmul.f32 %v10418_v14, %v3991_v60  ;;  %12534 = vst [vmem:[#allocation67_spill] sm:$0xff] %v10846_v56 }
 0x521   : > { %v3627_v35 = vpop.f32.mrf.mxu3  ;;  %v10839_v8 = vpop.f32.mrf.mxu2  ;;  %12569 = vst [vmem:[#allocation17_spill] sm:$0xff] %v11121_v22 }
 0x522   : > { %v4063_v18 = vadd.f32 %v10431_v62, %v4027_v48  ;;  %v3673_v6 = vadd.f32 %v3627_v35, %v3517_v23  ;;  %v3790_v21 = vpop.f32.mrf.mxu0  ;;  %7564 = vmatmul.msk.f32.gmra.mxu1 %vm539_vm1, %v10841_v26  ;;  %v10862_v35 = vld [vmem:[#allocation2 + $0x98] sm:$0xff] }
 0x523   : > { %12536 = vst [vmem:[#allocation45_spill] sm:$0xff] %v10862_v35 }
 0x524   : > { %v4095_v24 = vmax.f32 %v4063_v18, 0.0  ;;  %v3833_v39 = vadd.f32 %v3787_v46, %v3673_v6  ;;  %v3518_v46 = vadd.f32 %v10570_v36, %v10264_v28 }
 0x525   : > { %7530 = vmatmul.msk.f32.gmra.mxu0 %vm539_vm1, %v10846_v56  ;;  %v10867_v56 = vld [vmem:[#allocation2 + $0x82] sm:$0xff] }
 0x526   : > { %v10848_v9 = vld [vmem:[#allocation2 + $0x129] sm:$0xff]  ;;  %4183 = vst.msk [vmem:[#allocation2 + $0x139] sm:$0xff] %vm539_vm1, %v4095_v24  ;;  %v3992_v30 = vadd.f32 %v3946_v38, %v3833_v39  ;;  %7496 = vmatmul.msk.f32.gmra.mxu3 %vm539_vm1, %v10799_v31 }
 0x527   : > { %12535 = vst [vmem:[#allocation7_spill] sm:$0xff] %v10848_v9  ;;  %7478 = vmatmul.msk.f32.gmra.mxu2 %vm539_vm1, %v10848_v9  ;;  %v3952_v4 = vpop.f32.mrf.mxu1 }
 0x528   : > { %v4028_v60 = vmul.f32 %v10418_v14, %v3992_v30  ;;  %12537 = vst [vmem:[#allocation41_spill] sm:$0xff] %v10867_v56 }
 0x529   : > { %v3630_v23 = vpop.f32.mrf.mxu3  ;;  %v10860_v48 = vpop.f32.mrf.mxu2 }
 0x52a   : > { %v4064_v18 = vadd.f32 %v10431_v62, %v4028_v60  ;;  %v3674_v38 = vadd.f32 %v3630_v23, %v3518_v46  ;;  %v3793_v6 = vpop.f32.mrf.mxu0  ;;  %7565 = vmatmul.msk.f32.gmra.mxu1 %vm539_vm1, %v10862_v35  ;;  %v10883_v23 = vld [vmem:[#allocation2 + $0xa8] sm:$0xff] }
 0x52b   : > { %12539 = vst [vmem:[#allocation9_spill] sm:$0xff] %v10883_v23 }
 0x52c   : > { %v4096_v24 = vmax.f32 %v4064_v18, 0.0  ;;  %v3834_v39 = vadd.f32 %v3790_v21, %v3674_v38  ;;  %v3519_v21 = vadd.f32 %v10584_v29, %v10275_v33  ;;  %v3520_v29 = vadd.f32 %v10604_v32, %v10304_v17 }
 0x52d   : > { %v10869_v9 = vld [vmem:[#allocation2 + $0x139] sm:$0xff]  ;;  %7531 = vmatmul.msk.f32.gmra.mxu0 %vm539_vm1, %v10867_v56 }
 0x52e   : > { %12538 = vst [vmem:[#allocation39_spill] sm:$0xff] %v10869_v9  ;;  %v3993_v28 = vadd.f32 %v3949_v42, %v3834_v39  ;;  %7497 = vmatmul.msk.f32.gmra.mxu3 %vm539_vm1, %v10820_v0  ;;  %v10888_v56 = vld [vmem:[#allocation2 + $0x92] sm:$0xff]  ;;  %v11140_v0 = vld [vmem:[#allocation2 + $0x122] sm:$0xff] }
 0x52f   : > { %4184 = vst.msk [vmem:[#allocation2 + $0x141] sm:$0xff] %vm539_vm1, %v4096_v24  ;;  %7479 = vmatmul.msk.f32.gmra.mxu2 %vm539_vm1, %v10869_v9  ;;  %v3955_v36 = vpop.f32.mrf.mxu1 }
 0x530   : > { %v4029_v30 = vmul.f32 %v10418_v14, %v3993_v28  ;;  %12540 = vst [vmem:[#allocation44_spill] sm:$0xff] %v10888_v56 }
 0x531   : > { %v3633_v46 = vpop.f32.mrf.mxu3  ;;  %v10881_v60 = vpop.f32.mrf.mxu2  ;;  %12572 = vst [vmem:[#allocation25_spill] sm:$0xff] %v11140_v0 }
 0x532   : > { %v4065_v18 = vadd.f32 %v10431_v62, %v4029_v30  ;;  %v3675_v42 = vadd.f32 %v3633_v46, %v3519_v21  ;;  %v3796_v38 = vpop.f32.mrf.mxu0  ;;  %7566 = vmatmul.msk.f32.gmra.mxu1 %vm539_vm1, %v10883_v23 }
 0x534   : > { %v4097_v24 = vmax.f32 %v4065_v18, 0.0  ;;  %v3835_v39 = vadd.f32 %v3793_v6, %v3675_v42  ;;  %v10904_v6 = vld [vmem:[%s11926_s4] ss:$0 sm:$0xff] }
 0x535   : > { %7532 = vmatmul.msk.f32.gmra.mxu0 %vm539_vm1, %v10888_v56  ;;  %v10973_v56 = vld [vmem:[#allocation2 + $0xb2] sm:$0xff] }
 0x536   : > { %v10890_v9 = vld [vmem:[#allocation2 + $0x141] sm:$0xff]  ;;  %4185 = vst.msk [vmem:[#allocation2 + $0x151] sm:$0xff] %vm539_vm1, %v4097_v24  ;;  %v3994_v33 = vadd.f32 %v3952_v4, %v3835_v39  ;;  %7498 = vmatmul.msk.f32.gmra.mxu3 %vm539_vm1, %v10841_v26  ;;  %v10909_v4 = vld [vmem:[#allocation2 + $0xb0] sm:$0xff] }
 0x537   : > { %12541 = vst [vmem:[#allocation49_spill] sm:$0xff] %v10890_v9  ;;  %7480 = vmatmul.msk.f32.gmra.mxu2 %vm539_vm1, %v10890_v9  ;;  %v3958_v14 = vpop.f32.mrf.mxu1  ;;  %v10914_v24 = vld [vmem:[#allocation2 + $0x9a] sm:$0xff] }
 0x538   : > { %v4030_v28 = vmul.f32 %v10904_v6, %v3994_v33  ;;  %12542 = vst [vmem:[#allocation4_spill] sm:$0xff] %v10909_v4 }
 0x539   : > { %v3636_v21 = vpop.f32.mrf.mxu3  ;;  %v10907_v30 = vpop.f32.mrf.mxu2  ;;  %12543 = vst [vmem:[#allocation69_spill] sm:$0xff] %v10914_v24 }
 0x53a   : > { %v4066_v46 = vadd.f32 %v10431_v62, %v4030_v28  ;;  %v3676_v18 = vadd.f32 %v3636_v21, %v3520_v29  ;;  %v3799_v42 = vpop.f32.mrf.mxu0  ;;  %7567 = vmatmul.msk.f32.gmra.mxu1 %vm539_vm1, %v10909_v4  ;;  %v7620_v62 = vld [vmem:[%s11928_s6 + $0x14] sm:$0xf]  ;;  %v3521_v28 = vadd.f32 %v10625_v44, %v10332_v34  ;;  %12549 = vst [vmem:[#allocation37_spill] sm:$0xff] %v10973_v56 }
 0x53b   : > { %7621 = vmatpush.msk.msra.mxu3 %vm604_vm0, %v7620_v62 }
 0x53c   : > { %v4098_v17 = vmax.f32 %v4066_v46, 0.0  ;;  %v3836_v32 = vadd.f32 %v3796_v38, %v3676_v18  ;;  %v7722_v38 = vld [vmem:[%s11928_s6 + $0x20] sm:$0xf] }
 0x53d   : > { %v10916_v39 = vld [vmem:[#allocation2 + $0x151] sm:$0xff]  ;;  %7533 = vmatmul.msk.f32.gmra.mxu0 %vm539_vm1, %v10914_v24  ;;  %7723 = vmatpush.msk.msra.mxu2 %vm604_vm0, %v7722_v38 }
 0x53e   : > { %12544 = vst [vmem:[#allocation3_spill] sm:$0xff] %v10916_v39  ;;  %v3995_v33 = vadd.f32 %v3955_v36, %v3836_v32  ;;  %7499 = vmatmul.msk.f32.gmra.mxu3 %vm539_vm1, %v10862_v35  ;;  %v7654_v36 = vld [vmem:[%s11928_s6 + $0x18] sm:$0xf]  ;;  %v7816_v32 = vld [vmem:[%s11927_s5] ss:$0 sm:$0xff]  ;;  %v11102_v35 = vld [vmem:[#allocation2 + $0x10a] sm:$0xff] }
 0x53f   : > { %4186 = vst.msk [vmem:[#allocation2 + $0x159] sm:$0xff] %vm539_vm1, %v4098_v17  ;;  %7481 = vmatmul.msk.f32.gmra.mxu2 %vm539_vm1, %v10916_v39  ;;  %v3961_v29 = vpop.f32.mrf.mxu1  ;;  %7655 = vmatpush.msk.msra.mxu0 %vm604_vm0, %v7654_v36  ;;  %v10942_v17 = vld [vmem:[#allocation2 + $0xc0] sm:$0xff]  ;;  %v7688_v36 = vld [vmem:[%s11928_s6 + $0x1c] sm:$0xf] }
 0x540   : > { %v4031_v21 = vmul.f32 %v10904_v6, %v3995_v33  ;;  %12545 = vst [vmem:[#allocation70_spill] sm:$0xff] %v10942_v17  ;;  %v10949_v33 = vld [vmem:[#allocation2 + $0xaa] sm:$0xff]  ;;  %7689 = vmatpush.msk.msra.mxu1 %vm604_vm0, %v7688_v36 }
 0x541   : > { %v3639_v46 = vpop.f32.mrf.mxu3  ;;  %v10940_v18 = vpop.f32.mrf.mxu2  ;;  %12546 = vst [vmem:[#allocation53_spill] sm:$0xff] %v10949_v33 }
 0x542   : > { %v4067_v62 = vadd.f32 %v7816_v32, %v4031_v21  ;;  %v3677_v38 = vadd.f32 %v3639_v46, %v3521_v28  ;;  %v3802_v24 = vpop.f32.mrf.mxu0  ;;  %7568 = vmatmul.msk.f32.gmra.mxu1 %vm539_vm1, %v10942_v17  ;;  %v3522_v21 = vadd.f32 %v10641_v45, %v10367_v13  ;;  %12566 = vst [vmem:[#allocation12_spill] sm:$0xff] %v11102_v35 }
 0x544   : > { %v4099_v34 = vmax.f32 %v4067_v62, 0.0  ;;  %v3837_v44 = vadd.f32 %v3799_v42, %v3677_v38 }
 0x545   : > { %7534 = vmatmul.msk.f32.gmra.mxu0 %vm539_vm1, %v10949_v33  ;;  %v10969_v33 = vld [vmem:[#allocation2 + $0xc8] sm:$0xff] }
 0x546   : > { %v10954_v39 = vld [vmem:[#allocation2 + $0x159] sm:$0xff]  ;;  %4187 = vst.msk [vmem:[#allocation2 + $0x169] sm:$0xff] %vm539_vm1, %v4099_v34  ;;  %v3996_v28 = vadd.f32 %v3958_v14, %v3837_v44  ;;  %7500 = vmatmul.msk.f32.gmra.mxu3 %vm539_vm1, %v10883_v23 }
 0x547   : > { %12547 = vst [vmem:[#allocation13_spill] sm:$0xff] %v10954_v39  ;;  %7482 = vmatmul.msk.f32.gmra.mxu2 %vm539_vm1, %v10954_v39  ;;  %v3964_v42 = vpop.f32.mrf.mxu1 }
 0x548   : > { %v4032_v46 = vmul.f32 %v10904_v6, %v3996_v28  ;;  %12548 = vst [vmem:[#allocation55_spill] sm:$0xff] %v10969_v33  ;;  %v12551_v28 = vld [vmem:[#allocation64_spill] sm:$0xff] }
 0x549   : > { %v3642_v62 = vpop.f32.mrf.mxu3  ;;  %v10967_v38 = vpop.f32.mrf.mxu2 }
 0x54a   : > { %v4068_v36 = vadd.f32 %v7816_v32, %v4032_v46  ;;  %v3678_v34 = vadd.f32 %v3642_v62, %v3522_v21  ;;  %v3805_v14 = vpop.f32.mrf.mxu0  ;;  %7569 = vmatmul.msk.f32.gmra.mxu1 %vm539_vm1, %v10969_v33 }
 0x54c   : > { %v4100_v44 = vmax.f32 %v4068_v36, 0.0  ;;  %v3838_v39 = vadd.f32 %v3802_v24, %v3678_v34  ;;  %v3523_v24 = vadd.f32 %v10652_v52, %v12551_v28  ;;  %v10989_v36 = vld [vmem:[#allocation2 + $0xd8] sm:$0xff] }
 0x54d   : > { %v10975_v9 = vld [vmem:[#allocation2 + $0x169] sm:$0xff]  ;;  %7535 = vmatmul.msk.f32.gmra.mxu0 %vm539_vm1, %v10973_v56  ;;  %12552 = vst [vmem:[#allocation54_spill] sm:$0xff] %v10989_v36 }
 0x54e   : > { %12550 = vst [vmem:[#allocation11_spill] sm:$0xff] %v10975_v9  ;;  %v3997_v13 = vadd.f32 %v3961_v29, %v3838_v39  ;;  %7501 = vmatmul.msk.f32.gmra.mxu3 %vm539_vm1, %v10909_v4 }
 0x54f   : > { %4188 = vst.msk [vmem:[#allocation2 + $0x171] sm:$0xff] %vm539_vm1, %v4100_v44  ;;  %7483 = vmatmul.msk.f32.gmra.mxu2 %vm539_vm1, %v10975_v9  ;;  %v5110_v45 = vpop.f32.mrf.mxu1  ;;  %v10993_v9 = vld [vmem:[#allocation2 + $0xc2] sm:$0xff] }
 0x550   : > { %v4033_v21 = vmul.f32 %v10904_v6, %v3997_v13  ;;  %12553 = vst [vmem:[#allocation18_spill] sm:$0xff] %v10993_v9 }
 0x551   : > { %v3645_v46 = vpop.f32.mrf.mxu3  ;;  %v10987_v62 = vpop.f32.mrf.mxu2 }
 0x552   : > { %v4069_v34 = vadd.f32 %v7816_v32, %v4033_v21  ;;  %v3679_v44 = vadd.f32 %v3645_v46, %v3523_v24  ;;  %v4832_v39 = vpop.f32.mrf.mxu0  ;;  %7570 = vmatmul.msk.f32.gmra.mxu1 %vm539_vm1, %v10989_v36  ;;  %v11007_v21 = vld [vmem:[#allocation2 + $0xe0] sm:$0xff] }
 0x553   : > { %12555 = vst [vmem:[#allocation46_spill] sm:$0xff] %v11007_v21 }
 0x554   : > { %v4101_v29 = vmax.f32 %v4069_v34, 0.0  ;;  %v3839_v56 = vadd.f32 %v3805_v14, %v3679_v44 }
 0x555   : > { %7536 = vmatmul.msk.f32.gmra.mxu0 %vm539_vm1, %v10993_v9  ;;  %v11045_v9 = vld [vmem:[#allocation2 + $0xe2] sm:$0xff] }
 0x556   : > { %v10995_v4 = vld [vmem:[#allocation2 + $0x171] sm:$0xff]  ;;  %4189 = vst.msk [vmem:[#allocation2 + $0x181] sm:$0xff] %vm539_vm1, %v4101_v29  ;;  %v3998_v52 = vadd.f32 %v3964_v42, %v3839_v56  ;;  %7502 = vmatmul.msk.f32.gmra.mxu3 %vm539_vm1, %v10942_v17  ;;  %v11083_v17 = vld [vmem:[#allocation2 + $0xfa] sm:$0xff] }
 0x557   : > { %12554 = vst [vmem:[#allocation50_spill] sm:$0xff] %v10995_v4  ;;  %7484 = vmatmul.msk.f32.gmra.mxu2 %vm539_vm1, %v10995_v4  ;;  %v5113_v13 = vpop.f32.mrf.mxu1  ;;  %v11012_v29 = vld [vmem:[#allocation2 + $0xca] sm:$0xff] }
 0x558   : > { %v4034_v28 = vmul.f32 %v10904_v6, %v3998_v52  ;;  %12556 = vst [vmem:[#allocation22_spill] sm:$0xff] %v11012_v29  ;;  %v5238_v6 = vld [vmem:[#allocation2 + $0x19] sm:$0xff] }
 0x559   : > { %v11005_v14 = vpop.f32.mrf.mxu2  ;;  %v4586_v24 = vpop.f32.mrf.mxu3  ;;  %12560 = vst [vmem:[#allocation56_spill] sm:$0xff] %v11045_v9 }
 0x55a   : > { %v4070_v46 = vadd.f32 %v7816_v32, %v4034_v28  ;;  %v4587_v34 = vadd.f32 %v4586_v24, %v10666_v53  ;;  %v4835_v44 = vpop.f32.mrf.mxu0  ;;  %7571 = vmatmul.msk.f32.gmra.mxu1 %vm539_vm1, %v11007_v21  ;;  %12564 = vst [vmem:[#allocation58_spill] sm:$0xff] %v11083_v17 }
 0x55c   : > { %v4102_v56 = vmax.f32 %v4070_v46, 0.0  ;;  %v4928_v42 = vadd.f32 %v4832_v39, %v4587_v34  ;;  %v11024_v39 = vld [vmem:[#allocation2 + $0xf0] sm:$0xff] }
 0x55d   : > { %7537 = vmatmul.msk.f32.gmra.mxu0 %vm539_vm1, %v11012_v29  ;;  %12557 = vst [vmem:[#allocation57_spill] sm:$0xff] %v11024_v39  ;;  %v11040_v29 = vld [vmem:[#allocation2 + $0xf8] sm:$0xff] }
 0x55e   : > { %4190 = vst.msk [vmem:[#allocation2 + $0x189] sm:$0xff] %vm539_vm1, %v4102_v56  ;;  %7503 = vmatmul.msk.f32.gmra.mxu3 %vm539_vm1, %v10969_v33  ;;  %v11020_v53 = vadd.f32 %v5110_v45, %v4928_v42  ;;  %v11029_v56 = vld [vmem:[#allocation2 + $0xda] sm:$0xff] }
 0x55f   : > { %7588 = vmatmul.msk.f32.vlgmr.msrb.gmra.mxu2 %vm539_vm1, %v5238_v6  ;;  %v5116_v32 = vpop.f32.mrf.mxu1  ;;  %12558 = vst [vmem:[#allocation27_spill] sm:$0xff] %v11029_v56  ;;  %v5239_v45 = vld [vmem:[#allocation2 + $0x21] sm:$0xff] }
 0x560   : > { %12559 = vst [vmem:[#allocation16_spill] sm:$0xff] %v11040_v29 }
 0x561   : > { %v11022_v52 = vpop.f32.mrf.mxu2  ;;  %v4589_v28 = vpop.f32.mrf.mxu3 }
 0x562   : > { %v4590_v24 = vadd.f32 %v4589_v28, %v10690_v59  ;;  %v4838_v46 = vpop.f32.mrf.mxu0  ;;  %7572 = vmatmul.msk.f32.gmra.mxu1 %vm539_vm1, %v11024_v39 }
 0x564   : > { %v4929_v34 = vadd.f32 %v4835_v44, %v4590_v24 }
 0x565   : > { %7538 = vmatmul.msk.f32.gmra.mxu0 %vm539_vm1, %v11029_v56 }
 0x566   : > { %7504 = vmatmul.msk.f32.gmra.mxu3 %vm539_vm1, %v10989_v36  ;;  %v11036_v42 = vadd.f32 %v5113_v13, %v4929_v34  ;;  %v11049_v13 = vld [vmem:[#allocation2 + $0x31] sm:$0xff] }
 0x567   : > { %7589 = vmatmul.msk.f32.gmra.mxu2 %vm539_vm1, %v5239_v45  ;;  %v5119_v6 = vpop.f32.mrf.mxu1  ;;  %v11064_v36 = vld [vmem:[#allocation2 + $0xf2] sm:$0xff] }
 0x568   : > { %12562 = vst [vmem:[#allocation51_spill] sm:$0xff] %v11064_v36 }
 0x569   : > { %v11038_v59 = vpop.f32.mrf.mxu2  ;;  %v4592_v28 = vpop.f32.mrf.mxu3 }
 0x56a   : > { %v4593_v44 = vadd.f32 %v4592_v28, %v10713_v12  ;;  %v4841_v24 = vpop.f32.mrf.mxu0  ;;  %7573 = vmatmul.msk.f32.gmra.mxu1 %vm539_vm1, %v11040_v29 }
 0x56c   : > { %v4930_v56 = vadd.f32 %v4838_v46, %v4593_v44  ;;  %v11059_v46 = vld [vmem:[#allocation2 + $0x108] sm:$0xff] }
 0x56d   : > { %7539 = vmatmul.msk.f32.gmra.mxu0 %vm539_vm1, %v11045_v9  ;;  %12561 = vst [vmem:[#allocation31_spill] sm:$0xff] %v11059_v46 }
 0x56e   : > { %7505 = vmatmul.msk.f32.gmra.mxu3 %vm539_vm1, %v11007_v21  ;;  %v11055_v34 = vadd.f32 %v5116_v32, %v4930_v56  ;;  %v11068_v32 = vld [vmem:[#allocation2 + $0x39] sm:$0xff] }
 0x56f   : > { %7590 = vmatmul.msk.f32.gmra.mxu2 %vm539_vm1, %v11049_v13  ;;  %v5122_v12 = vpop.f32.mrf.mxu1 }
 0x571   : > { %v11057_v45 = vpop.f32.mrf.mxu2  ;;  %v4595_v28 = vpop.f32.mrf.mxu3 }
 0x572   : > { %v4596_v44 = vadd.f32 %v4595_v28, %v10734_v5  ;;  %v4844_v4 = vpop.f32.mrf.mxu0  ;;  %7574 = vmatmul.msk.f32.gmra.mxu1 %vm539_vm1, %v11059_v46 }
 0x574   : > { %v4931_v9 = vadd.f32 %v4841_v24, %v4596_v44  ;;  %v11078_v24 = vld [vmem:[#allocation2 + $0x110] sm:$0xff] }
 0x575   : > { %7540 = vmatmul.msk.f32.gmra.mxu0 %vm539_vm1, %v11064_v36  ;;  %12563 = vst [vmem:[#allocation38_spill] sm:$0xff] %v11078_v24 }
 0x576   : > { %7506 = vmatmul.msk.f32.gmra.mxu3 %vm539_vm1, %v11024_v39  ;;  %v11074_v56 = vadd.f32 %v5119_v6, %v4931_v9  ;;  %v11087_v9 = vld [vmem:[#allocation2 + $0x49] sm:$0xff] }
 0x577   : > { %7591 = vmatmul.msk.f32.gmra.mxu2 %vm539_vm1, %v11068_v32  ;;  %v5125_v5 = vpop.f32.mrf.mxu1 }
 0x579   : > { %v11076_v28 = vpop.f32.mrf.mxu2  ;;  %v4598_v21 = vpop.f32.mrf.mxu3 }
 0x57a   : > { %v4599_v44 = vadd.f32 %v4598_v21, %v10755_v16  ;;  %v4847_v33 = vpop.f32.mrf.mxu0  ;;  %7575 = vmatmul.msk.f32.gmra.mxu1 %vm539_vm1, %v11078_v24 }
 0x57c   : > { %v4932_v36 = vadd.f32 %v4844_v4, %v4599_v44  ;;  %v11097_v4 = vld [vmem:[#allocation2 + $0x120] sm:$0xff] }
 0x57d   : > { %7541 = vmatmul.msk.f32.gmra.mxu0 %vm539_vm1, %v11083_v17  ;;  %12565 = vst [vmem:[#allocation14_spill] sm:$0xff] %v11097_v4 }
 0x57e   : > { %7507 = vmatmul.msk.f32.gmra.mxu3 %vm539_vm1, %v11040_v29  ;;  %v11093_v6 = vadd.f32 %v5122_v12, %v4932_v36  ;;  %v11106_v36 = vld [vmem:[#allocation2 + $0x51] sm:$0xff] }
 0x57f   : > { %7592 = vmatmul.msk.f32.gmra.mxu2 %vm539_vm1, %v11087_v9  ;;  %v5128_v16 = vpop.f32.mrf.mxu1 }
 0x581   : > { %v11095_v21 = vpop.f32.mrf.mxu2  ;;  %v4601_v39 = vpop.f32.mrf.mxu3 }
 0x582   : > { %v4602_v44 = vadd.f32 %v4601_v39, %v10776_v20  ;;  %v4850_v23 = vpop.f32.mrf.mxu0  ;;  %7576 = vmatmul.msk.f32.gmra.mxu1 %vm539_vm1, %v11097_v4 }
 0x584   : > { %v4933_v17 = vadd.f32 %v4847_v33, %v4602_v44  ;;  %v11116_v33 = vld [vmem:[#allocation2 + $0x128] sm:$0xff] }
 0x585   : > { %7542 = vmatmul.msk.f32.gmra.mxu0 %vm539_vm1, %v11102_v35  ;;  %12568 = vst [vmem:[#allocation15_spill] sm:$0xff] %v11116_v33 }
 0x586   : > { %7508 = vmatmul.msk.f32.gmra.mxu3 %vm539_vm1, %v11059_v46  ;;  %v11112_v12 = vadd.f32 %v5125_v5, %v4933_v17  ;;  %v11125_v17 = vld [vmem:[#allocation2 + $0x61] sm:$0xff] }
 0x587   : > { %7593 = vmatmul.msk.f32.gmra.mxu2 %vm539_vm1, %v11106_v36  ;;  %v5131_v20 = vpop.f32.mrf.mxu1 }
 0x588   : > { %12567 = vst [vmem:[#allocation21_spill] sm:$0xff] %v11112_v12  ;;  %v11159_v12 = vld [vmem:[#allocation2 + $0x12a] sm:$0xff] }
 0x589   : > { %v11114_v39 = vpop.f32.mrf.mxu2  ;;  %v4604_v29 = vpop.f32.mrf.mxu3  ;;  %12576 = vst [vmem:[#allocation43_spill] sm:$0xff] %v11159_v12 }
 0x58a   : > { %v4605_v44 = vadd.f32 %v4604_v29, %v10797_v50  ;;  %v4853_v26 = vpop.f32.mrf.mxu0  ;;  %7577 = vmatmul.msk.f32.gmra.mxu1 %vm539_vm1, %v11116_v33 }
 0x58c   : > { %v4934_v35 = vadd.f32 %v4850_v23, %v4605_v44  ;;  %v11135_v23 = vld [vmem:[#allocation2 + $0x138] sm:$0xff] }
 0x58d   : > { %7543 = vmatmul.msk.f32.gmra.mxu0 %vm539_vm1, %v11121_v22  ;;  %12571 = vst [vmem:[#allocation20_spill] sm:$0xff] %v11135_v23 }
 0x58e   : > { %7509 = vmatmul.msk.f32.gmra.mxu3 %vm539_vm1, %v11078_v24  ;;  %v11131_v5 = vadd.f32 %v5128_v16, %v4934_v35  ;;  %v11144_v35 = vld [vmem:[#allocation2 + $0x69] sm:$0xff] }
 0x58f   : > { %7594 = vmatmul.msk.f32.gmra.mxu2 %vm539_vm1, %v11125_v17  ;;  %v5134_v50 = vpop.f32.mrf.mxu1 }
 0x590   : > { %12570 = vst [vmem:[#allocation26_spill] sm:$0xff] %v11131_v5 }
 0x591   : > { %v11133_v29 = vpop.f32.mrf.mxu2  ;;  %v4607_v46 = vpop.f32.mrf.mxu3 }
 0x592   : > { %v4608_v44 = vadd.f32 %v4607_v46, %v10818_v55  ;;  %v4856_v3 = vpop.f32.mrf.mxu0  ;;  %7578 = vmatmul.msk.f32.gmra.mxu1 %vm539_vm1, %v11135_v23 }
 0x594   : > { %v4935_v22 = vadd.f32 %v4853_v26, %v4608_v44  ;;  %v11154_v26 = vld [vmem:[#allocation2 + $0x140] sm:$0xff] }
 0x595   : > { %7544 = vmatmul.msk.f32.gmra.mxu0 %vm539_vm1, %v11140_v0  ;;  %12575 = vst [vmem:[#allocation33_spill] sm:$0xff] %v11154_v26 }
 0x596   : > { %7510 = vmatmul.msk.f32.gmra.mxu3 %vm539_vm1, %v11097_v4  ;;  %v11150_v16 = vadd.f32 %v5131_v20, %v4935_v22  ;;  %v11163_v22 = vld [vmem:[#allocation2 + $0x79] sm:$0xff] }
 0x597   : > { %7595 = vmatmul.msk.f32.gmra.mxu2 %vm539_vm1, %v11144_v35  ;;  %v5137_v55 = vpop.f32.mrf.mxu1 }
 0x598   : > { %12573 = vst [vmem:[#allocation36_spill] sm:$0xff] %v11150_v16 }
 0x599   : > { %v11152_v46 = vpop.f32.mrf.mxu2  ;;  %v4610_v24 = vpop.f32.mrf.mxu3 }
 0x59a   : > { %12574 = vst [vmem:[#allocation24_spill] sm:$0xff] %v11152_v46  ;;  %v4611_v44 = vadd.f32 %v4610_v24, %v10839_v8  ;;  %v4859_v5 = vpop.f32.mrf.mxu0  ;;  %7579 = vmatmul.msk.f32.gmra.mxu1 %vm539_vm1, %v11154_v26  ;;  %v11178_v46 = vld [vmem:[#allocation2 + $0x13a] sm:$0xff] }
 0x59b   : > { %12580 = vst [vmem:[#allocation42_spill] sm:$0xff] %v11178_v46 }
 0x59c   : > { %v4936_v0 = vadd.f32 %v4856_v3, %v4611_v44  ;;  %v11173_v3 = vld [vmem:[#allocation2 + $0x150] sm:$0xff] }
 0x59d   : > { %7545 = vmatmul.msk.f32.gmra.mxu0 %vm539_vm1, %v11159_v12  ;;  %12579 = vst [vmem:[#allocation34_spill] sm:$0xff] %v11173_v3 }
 0x59e   : > { %7511 = vmatmul.msk.f32.gmra.mxu3 %vm539_vm1, %v11116_v33  ;;  %v11169_v20 = vadd.f32 %v5134_v50, %v4936_v0  ;;  %v11182_v0 = vld [vmem:[#allocation2 + $0x81] sm:$0xff] }
 0x59f   : > { %7596 = vmatmul.msk.f32.gmra.mxu2 %vm539_vm1, %v11163_v22  ;;  %v5140_v8 = vpop.f32.mrf.mxu1 }
 0x5a0   : > { %12577 = vst [vmem:[#allocation29_spill] sm:$0xff] %v11169_v20 }
 0x5a1   : > { %v11171_v24 = vpop.f32.mrf.mxu2  ;;  %v4613_v4 = vpop.f32.mrf.mxu3 }
 0x5a2   : > { %12578 = vst [vmem:[#allocation30_spill] sm:$0xff] %v11171_v24  ;;  %v4614_v44 = vadd.f32 %v4613_v4, %v10860_v48  ;;  %v4862_v16 = vpop.f32.mrf.mxu0  ;;  %7580 = vmatmul.msk.f32.gmra.mxu1 %vm539_vm1, %v11173_v3  ;;  %v11197_v24 = vld [vmem:[#allocation2 + $0x142] sm:$0xff] }
 0x5a3   : > { %12584 = vst [vmem:[#allocation35_spill] sm:$0xff] %v11197_v24 }
 0x5a4   : > { %v4937_v12 = vadd.f32 %v4859_v5, %v4614_v44  ;;  %v11192_v5 = vld [vmem:[#allocation2 + $0x158] sm:$0xff] }
 0x5a5   : > { %7546 = vmatmul.msk.f32.gmra.mxu0 %vm539_vm1, %v11178_v46  ;;  %12583 = vst [vmem:[#allocation60_spill] sm:$0xff] %v11192_v5 }
 0x5a6   : > { %7512 = vmatmul.msk.f32.gmra.mxu3 %vm539_vm1, %v11135_v23  ;;  %v11188_v50 = vadd.f32 %v5137_v55, %v4937_v12  ;;  %v11201_v12 = vld [vmem:[#allocation2 + $0x91] sm:$0xff] }
 0x5a7   : > { %7597 = vmatmul.msk.f32.gmra.mxu2 %vm539_vm1, %v11182_v0  ;;  %v5143_v48 = vpop.f32.mrf.mxu1 }
 0x5a8   : > { %12581 = vst [vmem:[#allocation52_spill] sm:$0xff] %v11188_v50 }
 0x5a9   : > { %v4616_v33 = vpop.f32.mrf.mxu3 }
 0x5aa   : > { %v11190_v4 = vpop.f32.mrf.mxu2  ;;  %v4617_v44 = vadd.f32 %v4616_v33, %v10881_v60  ;;  %v4865_v20 = vpop.f32.mrf.mxu0  ;;  %7581 = vmatmul.msk.f32.gmra.mxu1 %vm539_vm1, %v11192_v5 }
 0x5ab   : > { %12582 = vst [vmem:[#allocation40_spill] sm:$0xff] %v11190_v4  ;;  %v11216_v4 = vld [vmem:[#allocation2 + $0x152] sm:$0xff] }
 0x5ac   : > { %v4938_v46 = vadd.f32 %v4862_v16, %v4617_v44  ;;  %v11211_v16 = vld [vmem:[#allocation2 + $0x168] sm:$0xff]  ;;  %12587 = vst [vmem:[#allocation48_spill] sm:$0xff] %v11216_v4 }
 0x5ad   : > { %7547 = vmatmul.msk.f32.gmra.mxu0 %vm539_vm1, %v11197_v24 }
 0x5ae   : > { %7513 = vmatmul.msk.f32.gmra.mxu3 %vm539_vm1, %v11154_v26  ;;  %v11207_v55 = vadd.f32 %v5140_v8, %v4938_v46  ;;  %v11220_v46 = vld [vmem:[#allocation2 + $0x99] sm:$0xff] }
 0x5af   : > { %7598 = vmatmul.msk.f32.gmra.mxu2 %vm539_vm1, %v11201_v12  ;;  %v5146_v60 = vpop.f32.mrf.mxu1 }
 0x5b0   : > { %12585 = vst [vmem:[#allocation59_spill] sm:$0xff] %v11207_v55 }
 0x5b1   : > { %v4619_v23 = vpop.f32.mrf.mxu3 }
 0x5b2   : > { %v11209_v33 = vpop.f32.mrf.mxu2  ;;  %v4620_v44 = vadd.f32 %v4619_v23, %v10907_v30  ;;  %v4868_v50 = vpop.f32.mrf.mxu0  ;;  %7582 = vmatmul.msk.f32.gmra.mxu1 %vm539_vm1, %v11211_v16 }
 0x5b3   : > { %12586 = vst [vmem:[#allocation8_spill] sm:$0xff] %v11209_v33  ;;  %v11235_v33 = vld [vmem:[#allocation2 + $0x15a] sm:$0xff] }
 0x5b4   : > { %v4939_v24 = vadd.f32 %v4865_v20, %v4620_v44  ;;  %v11230_v20 = vld [vmem:[#allocation2 + $0x170] sm:$0xff]  ;;  %12590 = vst [vmem:[#allocation62_spill] sm:$0xff] %v11235_v33 }
 0x5b5   : > { %7548 = vmatmul.msk.f32.gmra.mxu0 %vm539_vm1, %v11216_v4 }
 0x5b6   : > { %7514 = vmatmul.msk.f32.gmra.mxu3 %vm539_vm1, %v11173_v3  ;;  %v11226_v8 = vadd.f32 %v5143_v48, %v4939_v24  ;;  %v7817_v24 = vld [vmem:[#allocation2 + $0xa9] sm:$0xff] }
 0x5b7   : > { %7599 = vmatmul.msk.f32.gmra.mxu2 %vm539_vm1, %v11220_v46  ;;  %v5149_v30 = vpop.f32.mrf.mxu1 }
 0x5b8   : > { %12588 = vst [vmem:[#allocation47_spill] sm:$0xff] %v11226_v8  ;;  %v11246_v8 = vld [vmem:[#allocation2 + $0x180] sm:$0xff] }
 0x5b9   : > { %v4622_v26 = vpop.f32.mrf.mxu3  ;;  %12591 = vst [vmem:[#allocation61_spill] sm:$0xff] %v11246_v8 }
 0x5ba   : > { %v11228_v23 = vpop.f32.mrf.mxu2  ;;  %v4623_v44 = vadd.f32 %v4622_v26, %v10940_v18  ;;  %v4871_v55 = vpop.f32.mrf.mxu0  ;;  %7583 = vmatmul.msk.f32.gmra.mxu1 %vm539_vm1, %v11230_v20 }
 0x5bb   : > { %12589 = vst [vmem:[#allocation10_spill] sm:$0xff] %v11228_v23  ;;  %v11251_v23 = vld [vmem:[#allocation2 + $0x16a] sm:$0xff] }
 0x5bc   : > { %v4940_v4 = vadd.f32 %v4868_v50, %v4623_v44  ;;  %12592 = vst [vmem:[#allocation5_spill] sm:$0xff] %v11251_v23 }
 0x5bd   : > { %7549 = vmatmul.msk.f32.gmra.mxu0 %vm539_vm1, %v11235_v33 }
 0x5be   : > { %7515 = vmatmul.msk.f32.gmra.mxu3 %vm539_vm1, %v11192_v5  ;;  %v11242_v48 = vadd.f32 %v5146_v60, %v4940_v4  ;;  %v7818_v4 = vld [vmem:[#allocation2 + $0xb1] sm:$0xff]  ;;  %v11262_v5 = vld [vmem:[#allocation2 + $0x188] sm:$0xff] }
 0x5bf   : > { %7600 = vmatmul.msk.f32.gmra.mxu2 %vm539_vm1, %v7817_v24  ;;  %v5152_v3 = vpop.f32.mrf.mxu1 }
 0x5c1   : > { %v4625_v26 = vpop.f32.mrf.mxu3 }
 0x5c2   : > { %v11244_v18 = vpop.f32.mrf.mxu2  ;;  %v4626_v50 = vadd.f32 %v4625_v26, %v10967_v38  ;;  %v4874_v44 = vpop.f32.mrf.mxu0  ;;  %7584 = vmatmul.msk.f32.gmra.mxu1 %vm539_vm1, %v11246_v8  ;;  %v11267_v8 = vld [vmem:[#allocation2 + $0x172] sm:$0xff] }
 0x5c3   : > { %12593 = vst [vmem:[#allocation23_spill] sm:$0xff] %v11267_v8 }
 0x5c4   : > { %v4941_v33 = vadd.f32 %v4871_v55, %v4626_v50 }
 0x5c5   : > { %7550 = vmatmul.msk.f32.gmra.mxu0 %vm539_vm1, %v11251_v23 }
 0x5c6   : > { %7516 = vmatmul.msk.f32.gmra.mxu3 %vm539_vm1, %v11211_v16  ;;  %v11258_v60 = vadd.f32 %v5149_v30, %v4941_v33 }
 0x5c7   : > { %7601 = vmatmul.msk.f32.gmra.mxu2 %vm539_vm1, %v7818_v4  ;;  %v5155_v24 = vpop.f32.mrf.mxu1 }
 0x5c9   : > { %v4628_v26 = vpop.f32.mrf.mxu3 }
 0x5ca   : > { %v11260_v38 = vpop.f32.mrf.mxu2  ;;  %v4629_v55 = vadd.f32 %v4628_v26, %v10987_v62  ;;  %v4877_v50 = vpop.f32.mrf.mxu0  ;;  %7585 = vmatmul.msk.f32.gmra.mxu1 %vm539_vm1, %v11262_v5 }
 0x5cc   : > { %v4942_v23 = vadd.f32 %v4874_v44, %v4629_v55 }
 0x5cd   : > { %7551 = vmatmul.msk.f32.gmra.mxu0 %vm539_vm1, %v11267_v8 }
 0x5ce   : > { %7517 = vmatmul.msk.f32.gmra.mxu3 %vm539_vm1, %v11230_v20  ;;  %v11275_v33 = vadd.f32 %v5152_v3, %v4942_v23 }
 0x5cf   : > { %7602 = vmatmul.msk.f32.gmra.mxu2 %vm539_vm1, %v10663_v47  ;;  %v5158_v30 = vpop.f32.mrf.mxu1 }
 0x5d1   : > { %v4631_v4 = vpop.f32.mrf.mxu3 }
 0x5d2   : > { %v11277_v62 = vpop.f32.mrf.mxu2  ;;  %v4632_v26 = vadd.f32 %v4631_v4, %v11005_v14  ;;  %v4880_v44 = vpop.f32.mrf.mxu0  ;;  %7690 = vmatmul.msk.f32.vlgmr.msra.gmra.mxu1 %vm539_vm1, %v11049_v13 }
 0x5d4   : > { %v4943_v55 = vadd.f32 %v4877_v50, %v4632_v26 }
 0x5d5   : > { %7656 = vmatmul.msk.f32.vlgmr.msra.gmra.mxu0 %vm539_vm1, %v10675_v49 }
 0x5d6   : > { %7622 = vmatmul.msk.f32.vlgmr.msra.gmra.mxu3 %vm539_vm1, %v10680_v2  ;;  %v11288_v47 = vadd.f32 %v5155_v24, %v4943_v55 }
 0x5d7   : > { %7603 = vmatmul.msk.f32.gmra.mxu2 %vm539_vm1, %v10682_v43  ;;  %v5161_v3 = vpop.f32.mrf.mxu1 }
 0x5d9   : > { %v4634_v14 = vpop.f32.mrf.mxu3 }
 0x5da   : > { %v11290_v23 = vpop.f32.mrf.mxu2  ;;  %v4635_v4 = vadd.f32 %v4634_v14, %v11022_v52  ;;  %v4883_v8 = vpop.f32.mrf.mxu0  ;;  %7691 = vmatmul.msk.f32.gmra.mxu1 %vm539_vm1, %v11068_v32 }
 0x5dc   : > { %v4944_v13 = vadd.f32 %v4880_v44, %v4635_v4 }
 0x5dd   : > { %7657 = vmatmul.msk.f32.gmra.mxu0 %vm539_vm1, %v10695_v40 }
 0x5de   : > { %7623 = vmatmul.msk.f32.gmra.mxu3 %vm539_vm1, %v10700_v10  ;;  %v11301_v49 = vadd.f32 %v5158_v30, %v4944_v13 }
 0x5df   : > { %7604 = vmatmul.msk.f32.gmra.mxu2 %vm539_vm1, %v10702_v58  ;;  %v5164_v2 = vpop.f32.mrf.mxu1 }
 0x5e1   : > { %v4637_v43 = vpop.f32.mrf.mxu3 }
 0x5e2   : > { %v5388_v24 = vpop.f32.mrf.mxu2  ;;  %v4638_v52 = vadd.f32 %v4637_v43, %v11038_v59  ;;  %v4886_v32 = vpop.f32.mrf.mxu0  ;;  %7692 = vmatmul.msk.f32.gmra.mxu1 %vm539_vm1, %v11087_v9 }
 0x5e3   : > { %v11305_v50 = vadd.f32 %v5388_v24, %v11020_v53  ;;  %v12595_v24 = vld [vmem:[#allocation32_spill] sm:$0xff] }
 0x5e4   : > { %v4945_v40 = vadd.f32 %v4883_v8, %v4638_v52 }
 0x5e5   : > { %7658 = vmatmul.msk.f32.gmra.mxu0 %vm539_vm1, %v10715_v54 }
 0x5e6   : > { %7624 = vmatmul.msk.f32.gmra.mxu3 %vm539_vm1, %v10720_v19  ;;  %v11315_v10 = vadd.f32 %v5161_v3, %v4945_v40 }
 0x5e7   : > { %7605 = vmatmul.msk.f32.gmra.mxu2 %vm539_vm1, %v10722_v41  ;;  %v5167_v58 = vpop.f32.mrf.mxu1 }
 0x5e9   : > { %v4640_v59 = vpop.f32.mrf.mxu3 }
 0x5ea   : > { %v5391_v53 = vpop.f32.mrf.mxu2  ;;  %v4641_v30 = vadd.f32 %v4640_v59, %v11057_v45  ;;  %v4889_v9 = vpop.f32.mrf.mxu0  ;;  %7693 = vmatmul.msk.f32.gmra.mxu1 %vm539_vm1, %v11106_v36 }
 0x5eb   : > { %v11319_v26 = vadd.f32 %v5391_v53, %v11036_v42  ;;  %v12599_v53 = vld [vmem:[#allocation26_spill] sm:$0xff] }
 0x5ec   : > { %v4946_v54 = vadd.f32 %v4886_v32, %v4641_v30 }
 0x5ed   : > { %7659 = vmatmul.msk.f32.gmra.mxu0 %vm539_vm1, %v10736_v51 }
 0x5ee   : > { %7625 = vmatmul.msk.f32.gmra.mxu3 %vm539_vm1, %v10741_v27  ;;  %v11329_v19 = vadd.f32 %v5164_v2, %v4946_v54  ;;  %v12594_v2 = vld [vmem:[#allocation21_spill] sm:$0xff]  ;;  %v12600_v54 = vld [vmem:[#allocation68_spill] sm:$0xff] }
 0x5ef   : > { %7606 = vmatmul.msk.f32.gmra.mxu2 %vm539_vm1, %v10743_v57  ;;  %v5170_v41 = vpop.f32.mrf.mxu1 }
 0x5f1   : > { %v4643_v45 = vpop.f32.mrf.mxu3 }
 0x5f2   : > { %v5394_v42 = vpop.f32.mrf.mxu2  ;;  %v4644_v8 = vadd.f32 %v4643_v45, %v11076_v28  ;;  %v4892_v36 = vpop.f32.mrf.mxu0  ;;  %7694 = vmatmul.msk.f32.gmra.mxu1 %vm539_vm1, %v11125_v17  ;;  %v12602_v45 = vld [vmem:[#allocation67_spill] sm:$0xff] }
 0x5f3   : > { %v11333_v44 = vadd.f32 %v5394_v42, %v11055_v34 }
 0x5f4   : > { %v4947_v51 = vadd.f32 %v4889_v9, %v4644_v8 }
 0x5f5   : > { %7660 = vmatmul.msk.f32.gmra.mxu0 %vm539_vm1, %v10757_v61 }
 0x5f6   : > { %7626 = vmatmul.msk.f32.gmra.mxu3 %vm539_vm1, %v10762_v7  ;;  %v11343_v27 = vadd.f32 %v5167_v58, %v4947_v51  ;;  %v12598_v58 = vld [vmem:[#allocation24_spill] sm:$0xff] }
 0x5f7   : > { %7607 = vmatmul.msk.f32.gmra.mxu2 %vm539_vm1, %v10764_v11  ;;  %v5173_v57 = vpop.f32.mrf.mxu1 }
 0x5f9   : > { %v4646_v28 = vpop.f32.mrf.mxu3 }
 0x5fa   : > { %v5397_v34 = vpop.f32.mrf.mxu2  ;;  %v4647_v55 = vadd.f32 %v4646_v28, %v11095_v21  ;;  %v4895_v17 = vpop.f32.mrf.mxu0  ;;  %7695 = vmatmul.msk.f32.gmra.mxu1 %vm539_vm1, %v11144_v35 }
 0x5fb   : > { %v11347_v3 = vadd.f32 %v5397_v34, %v11074_v56  ;;  %v12604_v34 = vld [vmem:[#allocation36_spill] sm:$0xff] }
 0x5fc   : > { %v4948_v61 = vadd.f32 %v4892_v36, %v4647_v55 }
 0x5fd   : > { %7661 = vmatmul.msk.f32.gmra.mxu0 %vm539_vm1, %v10778_v37 }
 0x5fe   : > { %7627 = vmatmul.msk.f32.gmra.mxu3 %vm539_vm1, %v10783_v25  ;;  %v11357_v7 = vadd.f32 %v5170_v41, %v4948_v61  ;;  %v12601_v41 = vld [vmem:[#allocation7_spill] sm:$0xff]  ;;  %v12605_v61 = vld [vmem:[#allocation45_spill] sm:$0xff] }
 0x5ff   : > { %7608 = vmatmul.msk.f32.gmra.mxu2 %vm539_vm1, %v10785_v63  ;;  %v5176_v11 = vpop.f32.mrf.mxu1 }
 0x601   : > { %v4649_v21 = vpop.f32.mrf.mxu3 }
 0x602   : > { %v5400_v56 = vpop.f32.mrf.mxu2  ;;  %v4650_v14 = vadd.f32 %v4649_v21, %v11114_v39  ;;  %v4898_v35 = vpop.f32.mrf.mxu0  ;;  %7696 = vmatmul.msk.f32.gmra.mxu1 %vm539_vm1, %v11163_v22  ;;  %v12607_v21 = vld [vmem:[#allocation41_spill] sm:$0xff] }
 0x603   : > { %v11361_v4 = vadd.f32 %v5400_v56, %v11093_v6 }
 0x604   : > { %v4949_v37 = vadd.f32 %v4895_v17, %v4650_v14 }
 0x605   : > { %7662 = vmatmul.msk.f32.gmra.mxu0 %vm539_vm1, %v10799_v31 }
 0x606   : > { %7628 = vmatmul.msk.f32.gmra.mxu3 %vm539_vm1, %v10804_v1  ;;  %v11371_v25 = vadd.f32 %v5173_v57, %v4949_v37  ;;  %v12597_v1 = vld [vmem:[#allocation66_spill] sm:$0xff] }
 0x607   : > { %7609 = vmatmul.msk.f32.gmra.mxu2 %vm539_vm1, %v10806_v15  ;;  %v5179_v63 = vpop.f32.mrf.mxu1  ;;  %v12596_v15 = vld [vmem:[#allocation28_spill] sm:$0xff]  ;;  %v12603_v57 = vld [vmem:[#allocation30_spill] sm:$0xff] }
 0x609   : > { %v4652_v39 = vpop.f32.mrf.mxu3 }
 0x60a   : > { %v5403_v6 = vpop.f32.mrf.mxu2  ;;  %v4653_v13 = vadd.f32 %v4652_v39, %v11133_v29  ;;  %v4901_v22 = vpop.f32.mrf.mxu0  ;;  %7697 = vmatmul.msk.f32.gmra.mxu1 %vm539_vm1, %v11182_v0  ;;  %v12608_v39 = vld [vmem:[#allocation40_spill] sm:$0xff] }
 0x60b   : > { %v11375_v43 = vadd.f32 %v5403_v6, %v12594_v2 }
 0x60c   : > { %v4950_v31 = vadd.f32 %v4898_v35, %v4653_v13  ;;  %v12609_v13 = vld [vmem:[#allocation29_spill] sm:$0xff] }
 0x60d   : > { %7663 = vmatmul.msk.f32.gmra.mxu0 %vm539_vm1, %v12595_v24  ;;  %v12611_v24 = vld [vmem:[#allocation49_spill] sm:$0xff] }
 0x60e   : > { %7629 = vmatmul.msk.f32.gmra.mxu3 %vm539_vm1, %v12597_v1  ;;  %v11385_v52 = vadd.f32 %v5176_v11, %v4950_v31  ;;  %v12606_v11 = vld [vmem:[#allocation39_spill] sm:$0xff]  ;;  %v12610_v31 = vld [vmem:[#allocation9_spill] sm:$0xff] }
 0x60f   : > { %7610 = vmatmul.msk.f32.gmra.mxu2 %vm539_vm1, %v12596_v15  ;;  %v5182_v29 = vpop.f32.mrf.mxu1  ;;  %v12612_v15 = vld [vmem:[#allocation44_spill] sm:$0xff] }
 0x611   : > { %v4655_v32 = vpop.f32.mrf.mxu3 }
 0x612   : > { %v5406_v40 = vpop.f32.mrf.mxu2  ;;  %v4656_v59 = vadd.f32 %v4655_v32, %v12598_v58  ;;  %v4904_v0 = vpop.f32.mrf.mxu0  ;;  %7698 = vmatmul.msk.f32.gmra.mxu1 %vm539_vm1, %v11201_v12  ;;  %v6084_v58 = vld [vmem:[#allocation2 + $0xb1] sm:$0xff] }
 0x613   : > { %v11389_v30 = vadd.f32 %v5406_v40, %v12599_v53 }
 0x614   : > { %v4951_v9 = vadd.f32 %v4901_v22, %v4656_v59  ;;  %v12613_v59 = vld [vmem:[#allocation8_spill] sm:$0xff] }
 0x615   : > { %7664 = vmatmul.msk.f32.gmra.mxu0 %vm539_vm1, %v12600_v54 }
 0x616   : > { %7630 = vmatmul.msk.f32.gmra.mxu3 %vm539_vm1, %v12602_v45  ;;  %v11399_v42 = vadd.f32 %v5179_v63, %v4951_v9  ;;  %v6083_v63 = vld [vmem:[#allocation2 + $0xa9] sm:$0xff]  ;;  %v12615_v45 = vld [vmem:[#allocation4_spill] sm:$0xff] }
 0x617   : > { %7611 = vmatmul.msk.f32.gmra.mxu2 %vm539_vm1, %v12601_v41  ;;  %v5185_v8 = vpop.f32.mrf.mxu1 }
 0x619   : > { %v4658_v36 = vpop.f32.mrf.mxu3 }
 0x61a   : > { %v5409_v51 = vpop.f32.mrf.mxu2  ;;  %v4659_v28 = vadd.f32 %v4658_v36, %v12603_v57  ;;  %v4907_v12 = vpop.f32.mrf.mxu0  ;;  %7699 = vmatmul.msk.f32.gmra.mxu1 %vm539_vm1, %v11220_v46  ;;  %v12616_v36 = vld [vmem:[#allocation3_spill] sm:$0xff] }
 0x61b   : > { %v11403_v55 = vadd.f32 %v5409_v51, %v12604_v34 }
 0x61c   : > { %v4952_v17 = vadd.f32 %v4904_v0, %v4659_v28  ;;  %v12614_v0 = vld [vmem:[#allocation52_spill] sm:$0xff] }
 0x61d   : > { %7665 = vmatmul.msk.f32.gmra.mxu0 %vm539_vm1, %v12605_v61 }
 0x61e   : > { %7631 = vmatmul.msk.f32.gmra.mxu3 %vm539_vm1, %v12607_v21  ;;  %v11413_v56 = vadd.f32 %v5182_v29, %v4952_v17  ;;  %v12618_v17 = vld [vmem:[#allocation10_spill] sm:$0xff] }
 0x61f   : > { %7612 = vmatmul.msk.f32.gmra.mxu2 %vm539_vm1, %v12606_v11  ;;  %v5188_v14 = vpop.f32.mrf.mxu1  ;;  %v12619_v11 = vld [vmem:[#allocation59_spill] sm:$0xff] }
 0x621   : > { %v4661_v35 = vpop.f32.mrf.mxu3 }
 0x622   : > { %v5412_v37 = vpop.f32.mrf.mxu2  ;;  %v4662_v6 = vadd.f32 %v4661_v35, %v12608_v39  ;;  %v4910_v2 = vpop.f32.mrf.mxu0  ;;  %7700 = vmatmul.msk.f32.gmra.mxu1 %vm539_vm1, %v6083_v63  ;;  %v12620_v63 = vld [vmem:[#allocation70_spill] sm:$0xff]  ;;  %v12621_v39 = vld [vmem:[#allocation13_spill] sm:$0xff] }
 0x623   : > { %v11417_v46 = vadd.f32 %v5412_v37, %v12609_v13 }
 0x624   : > { %v4953_v22 = vadd.f32 %v4907_v12, %v4662_v6  ;;  %v6085_v12 = vld [vmem:[#allocation2 + $0xc1] sm:$0xff] }
 0x625   : > { %7666 = vmatmul.msk.f32.gmra.mxu0 %vm539_vm1, %v12610_v31  ;;  %v6086_v31 = vld [vmem:[#allocation2 + $0xc9] sm:$0xff] }
 0x626   : > { %7632 = vmatmul.msk.f32.gmra.mxu3 %vm539_vm1, %v12612_v15  ;;  %v11426_v1 = vadd.f32 %v5185_v8, %v4953_v22  ;;  %v12617_v8 = vld [vmem:[#allocation69_spill] sm:$0xff]  ;;  %v12623_v15 = vld [vmem:[#allocation47_spill] sm:$0xff] }
 0x627   : > { %7613 = vmatmul.msk.f32.gmra.mxu2 %vm539_vm1, %v12611_v24  ;;  %v5191_v29 = vpop.f32.mrf.mxu1 }
 0x629   : > { %v4664_v32 = vpop.f32.mrf.mxu3 }
 0x62a   : > { %v5415_v40 = vpop.f32.mrf.mxu2  ;;  %v4665_v53 = vadd.f32 %v4664_v32, %v12613_v59  ;;  %v4913_v54 = vpop.f32.mrf.mxu0  ;;  %7701 = vmatmul.msk.f32.gmra.mxu1 %vm539_vm1, %v6084_v58  ;;  %v12624_v59 = vld [vmem:[#allocation55_spill] sm:$0xff] }
 0x62b   : > { %v11430_v9 = vadd.f32 %v5415_v40, %v12614_v0 }
 0x62c   : > { %v4954_v41 = vadd.f32 %v4910_v2, %v4665_v53  ;;  %v12625_v53 = vld [vmem:[#allocation11_spill] sm:$0xff] }
 0x62d   : > { %7667 = vmatmul.msk.f32.gmra.mxu0 %vm539_vm1, %v12615_v45  ;;  %v6087_v45 = vld [vmem:[#allocation2 + $0xd9] sm:$0xff] }
 0x62e   : > { %7633 = vmatmul.msk.f32.gmra.mxu3 %vm539_vm1, %v12617_v8  ;;  %v11439_v51 = vadd.f32 %v5188_v14, %v4954_v41  ;;  %v12622_v14 = vld [vmem:[#allocation53_spill] sm:$0xff] }
 0x62f   : > { %7614 = vmatmul.msk.f32.gmra.mxu2 %vm539_vm1, %v12616_v36  ;;  %v5194_v57 = vpop.f32.mrf.mxu1 }
 0x631   : > { %v4667_v28 = vpop.f32.mrf.mxu3 }
 0x632   : > { %v5418_v34 = vpop.f32.mrf.mxu2  ;;  %v4668_v61 = vadd.f32 %v4667_v28, %v12618_v17  ;;  %v4916_v35 = vpop.f32.mrf.mxu0  ;;  %7702 = vmatmul.msk.f32.gmra.mxu1 %vm539_vm1, %v6085_v12  ;;  %v12627_v12 = vld [vmem:[#allocation54_spill] sm:$0xff] }
 0x633   : > { %v11443_v21 = vadd.f32 %v5418_v34, %v12619_v11  ;;  %v12628_v17 = vld [vmem:[#allocation50_spill] sm:$0xff] }
 0x634   : > { %v4955_v37 = vadd.f32 %v4913_v54, %v4668_v61 }
 0x635   : > { %7668 = vmatmul.msk.f32.gmra.mxu0 %vm539_vm1, %v12620_v63 }
 0x636   : > { %7634 = vmatmul.msk.f32.gmra.mxu3 %vm539_vm1, %v12622_v14  ;;  %v11452_v6 = vadd.f32 %v5191_v29, %v4955_v37  ;;  %v12626_v29 = vld [vmem:[#allocation37_spill] sm:$0xff] }
 0x637   : > { %7615 = vmatmul.msk.f32.gmra.mxu2 %vm539_vm1, %v12621_v39  ;;  %v5197_v13 = vpop.f32.mrf.mxu1 }
 0x639   : > { %v4670_v2 = vpop.f32.mrf.mxu3 }
 0x63a   : > { %v5421_v22 = vpop.f32.mrf.mxu2  ;;  %v4671_v24 = vadd.f32 %v4670_v2, %v11244_v18  ;;  %v4919_v40 = vpop.f32.mrf.mxu0  ;;  %7703 = vmatmul.msk.f32.gmra.mxu1 %vm539_vm1, %v6086_v31  ;;  %v11485_v2 = vld [vmem:[#allocation2 + $0x181] sm:$0xff] }
 0x63b   : > { %v11456_v32 = vadd.f32 %v5421_v22, %v12623_v15  ;;  %v12630_v22 = vld [vmem:[#allocation46_spill] sm:$0xff]  ;;  %v6089_v15 = vld [vmem:[#allocation2 + $0xf1] sm:$0xff] }
 0x63c   : > { %v4956_v58 = vadd.f32 %v4916_v35, %v4671_v24 }
 0x63d   : > { %7669 = vmatmul.msk.f32.gmra.mxu0 %vm539_vm1, %v12624_v59 }
 0x63e   : > { %7635 = vmatmul.msk.f32.gmra.mxu3 %vm539_vm1, %v12626_v29  ;;  %v11465_v0 = vadd.f32 %v5194_v57, %v4956_v58  ;;  %v12629_v57 = vld [vmem:[#allocation18_spill] sm:$0xff] }
 0x63f   : > { %7616 = vmatmul.msk.f32.gmra.mxu2 %vm539_vm1, %v12625_v53  ;;  %v5200_v54 = vpop.f32.mrf.mxu1  ;;  %v11500_v29 = vld [vmem:[#allocation2 + $0x189] sm:$0xff] }
 0x641   : > { %v4673_v18 = vpop.f32.mrf.mxu3 }
 0x642   : > { %v5424_v41 = vpop.f32.mrf.mxu2  ;;  %v4674_v36 = vadd.f32 %v4673_v18, %v11260_v38  ;;  %v4922_v28 = vpop.f32.mrf.mxu0  ;;  %7704 = vmatmul.msk.f32.gmra.mxu1 %vm539_vm1, %v6087_v45  ;;  %v12632_v18 = vld [vmem:[#allocation57_spill] sm:$0xff] }
 0x643   : > { %v11469_v8 = vadd.f32 %v5424_v41, %v11242_v48  ;;  %v6088_v48 = vld [vmem:[#allocation2 + $0xe1] sm:$0xff] }
 0x644   : > { %v4957_v34 = vadd.f32 %v4919_v40, %v4674_v36  ;;  %v6090_v36 = vld [vmem:[#allocation2 + $0xf9] sm:$0xff] }
 0x645   : > { %7670 = vmatmul.msk.f32.gmra.mxu0 %vm539_vm1, %v12627_v12 }
 0x646   : > { %7636 = vmatmul.msk.f32.gmra.mxu3 %vm539_vm1, %v12629_v57  ;;  %v11478_v61 = vadd.f32 %v5197_v13, %v4957_v34  ;;  %v12631_v13 = vld [vmem:[#allocation22_spill] sm:$0xff]  ;;  %v12634_v57 = vld [vmem:[#allocation16_spill] sm:$0xff] }
 0x647   : > { %7617 = vmatmul.msk.f32.gmra.mxu2 %vm539_vm1, %v12628_v17  ;;  %v5203_v11 = vpop.f32.mrf.mxu1 }
 0x649   : > { %v4676_v38 = vpop.f32.mrf.mxu3 }
 0x64a   : > { %v5427_v35 = vpop.f32.mrf.mxu2  ;;  %v4677_v37 = vadd.f32 %v4676_v38, %v11277_v62  ;;  %v4925_v39 = vpop.f32.mrf.mxu0  ;;  %7705 = vmatmul.msk.f32.gmra.mxu1 %vm539_vm1, %v6088_v48  ;;  %v6351_v38 = vld [vmem:[#allocation2 + $0x32] sm:$0xff] }
 0x64b   : > { %v11482_v63 = vadd.f32 %v5427_v35, %v11258_v60  ;;  %v12635_v35 = vld [vmem:[#allocation56_spill] sm:$0xff] }
 0x64c   : > { %v4958_v14 = vadd.f32 %v4922_v28, %v4677_v37  ;;  %v6091_v37 = vld [vmem:[#allocation2 + $0x109] sm:$0xff] }
 0x64d   : > { %7671 = vmatmul.msk.f32.gmra.mxu0 %vm539_vm1, %v12630_v22 }
 0x64e   : > { %7637 = vmatmul.msk.f32.gmra.mxu3 %vm539_vm1, %v12631_v13  ;;  %v11493_v31 = vadd.f32 %v5200_v54, %v4958_v14  ;;  %v12633_v54 = vld [vmem:[#allocation27_spill] sm:$0xff] }
 0x64f   : > { %7618 = vmatmul.msk.f32.gmra.mxu2 %vm539_vm1, %v11485_v2  ;;  %v6223_v62 = vpop.f32.mrf.mxu1 }
 0x651   : > { %v4679_v60 = vpop.f32.mrf.mxu3 }
 0x652   : > { %v5430_v24 = vpop.f32.mrf.mxu2  ;;  %v4680_v40 = vadd.f32 %v4679_v60, %v11290_v23  ;;  %v5945_v59 = vpop.f32.mrf.mxu0  ;;  %7706 = vmatmul.msk.f32.gmra.mxu1 %vm539_vm1, %v6089_v15  ;;  %v12636_v60 = vld [vmem:[#allocation31_spill] sm:$0xff] }
 0x653   : > { %v11497_v58 = vadd.f32 %v5430_v24, %v11275_v33  ;;  %v6352_v24 = vld [vmem:[#allocation2 + $0x3a] sm:$0xff]  ;;  %v12637_v15 = vld [vmem:[#allocation51_spill] sm:$0xff] }
 0x654   : > { %v4959_v53 = vadd.f32 %v4925_v39, %v4680_v40 }
 0x655   : > { %7672 = vmatmul.msk.f32.gmra.mxu0 %vm539_vm1, %v12632_v18 }
 0x656   : > { %7638 = vmatmul.msk.f32.gmra.mxu3 %vm539_vm1, %v12633_v54  ;;  %v11508_v41 = vadd.f32 %v5203_v11, %v4959_v53 }
 0x657   : > { %7619 = vmatmul.msk.f32.gmra.mxu2 %vm539_vm1, %v11500_v29  ;;  %v6226_v23 = vpop.f32.mrf.mxu1 }
 0x659   : > { %v5666_v45 = vpop.f32.mrf.mxu3 }
 0x65a   : > { %v5433_v33 = vpop.f32.mrf.mxu2  ;;  %v5762_v34 = vadd.f32 %v5666_v45, %v11305_v50  ;;  %v5948_v12 = vpop.f32.mrf.mxu0  ;;  %7707 = vmatmul.msk.f32.gmra.mxu1 %vm539_vm1, %v6090_v36  ;;  %v12638_v45 = vld [vmem:[#allocation38_spill] sm:$0xff] }
 0x65b   : > { %v11511_v28 = vadd.f32 %v5433_v33, %v11288_v47  ;;  %v6353_v36 = vld [vmem:[#allocation2 + $0x4a] sm:$0xff] }
 0x65c   : > { %v6041_v17 = vadd.f32 %v5945_v59, %v5762_v34  ;;  %v6092_v59 = vld [vmem:[#allocation2 + $0x111] sm:$0xff]  ;;  %v12639_v34 = vld [vmem:[#allocation58_spill] sm:$0xff] }
 0x65d   : > { %7673 = vmatmul.msk.f32.gmra.mxu0 %vm539_vm1, %v12634_v57 }
 0x65e   : > { %7639 = vmatmul.msk.f32.gmra.mxu3 %vm539_vm1, %v12635_v35  ;;  %v11520_v11 = vadd.f32 %v6223_v62, %v6041_v17  ;;  %v6093_v17 = vld [vmem:[#allocation2 + $0x121] sm:$0xff] }
 0x65f   : > { %7724 = vmatmul.msk.f32.vlgmr.msra.gmra.mxu2 %vm539_vm1, %v6351_v38  ;;  %v6229_v39 = vpop.f32.mrf.mxu1 }
 0x661   : > { %v5669_v47 = vpop.f32.mrf.mxu3 }
 0x662   : > { %v5436_v48 = vpop.f32.mrf.mxu2  ;;  %v5763_v14 = vadd.f32 %v5669_v47, %v11319_v26  ;;  %v5951_v22 = vpop.f32.mrf.mxu0  ;;  %7708 = vmatmul.msk.f32.gmra.mxu1 %vm539_vm1, %v6091_v37  ;;  %v6354_v47 = vld [vmem:[#allocation2 + $0x52] sm:$0xff] }
 0x663   : > { %v11523_v50 = vadd.f32 %v5436_v48, %v11301_v49  ;;  %v12640_v48 = vld [vmem:[#allocation14_spill] sm:$0xff] }
 0x664   : > { %v6042_v13 = vadd.f32 %v5948_v12, %v5763_v14  ;;  %v12641_v14 = vld [vmem:[#allocation12_spill] sm:$0xff] }
 0x665   : > { %7674 = vmatmul.msk.f32.gmra.mxu0 %vm539_vm1, %v12636_v60 }
 0x666   : > { %7640 = vmatmul.msk.f32.gmra.mxu3 %vm539_vm1, %v12637_v15  ;;  %v11532_v62 = vadd.f32 %v6226_v23, %v6042_v13  ;;  %v6094_v13 = vld [vmem:[#allocation2 + $0x129] sm:$0xff] }
 0x667   : > { %7725 = vmatmul.msk.f32.gmra.mxu2 %vm539_vm1, %v6352_v24  ;;  %v6232_v54 = vpop.f32.mrf.mxu1  ;;  %v12642_v15 = vld [vmem:[#allocation15_spill] sm:$0xff] }
 0x669   : > { %v5672_v49 = vpop.f32.mrf.mxu3 }
 0x66a   : > { %v5439_v40 = vpop.f32.mrf.mxu2  ;;  %v5764_v53 = vadd.f32 %v5672_v49, %v11333_v44  ;;  %v5954_v18 = vpop.f32.mrf.mxu0  ;;  %7709 = vmatmul.msk.f32.gmra.mxu1 %vm539_vm1, %v6092_v59  ;;  %v12643_v59 = vld [vmem:[#allocation17_spill] sm:$0xff] }
 0x66b   : > { %v11535_v26 = vadd.f32 %v5439_v40, %v11315_v10  ;;  %v6355_v40 = vld [vmem:[#allocation2 + $0x62] sm:$0xff] }
 0x66c   : > { %v6043_v33 = vadd.f32 %v5951_v22, %v5764_v53 }
 0x66d   : > { %7675 = vmatmul.msk.f32.gmra.mxu0 %vm539_vm1, %v12638_v45 }
 0x66e   : > { %7641 = vmatmul.msk.f32.gmra.mxu3 %vm539_vm1, %v12639_v34  ;;  %v11544_v23 = vadd.f32 %v6229_v39, %v6043_v33  ;;  %v6095_v33 = vld [vmem:[#allocation2 + $0x139] sm:$0xff] }
 0x66f   : > { %7726 = vmatmul.msk.f32.gmra.mxu2 %vm539_vm1, %v6353_v36  ;;  %v6235_v37 = vpop.f32.mrf.mxu1  ;;  %v12644_v34 = vld [vmem:[#allocation20_spill] sm:$0xff] }
 0x671   : > { %v5675_v12 = vpop.f32.mrf.mxu3 }
 0x672   : > { %v5442_v10 = vpop.f32.mrf.mxu2  ;;  %v5765_v57 = vadd.f32 %v5675_v12, %v11347_v3  ;;  %7710 = vmatmul.msk.f32.gmra.mxu1 %vm539_vm1, %v6093_v17  ;;  %v5957_v35 = vpop.f32.mrf.mxu0  ;;  %v12645_v12 = vld [vmem:[#allocation25_spill] sm:$0xff] }
 0x673   : > { %v11547_v44 = vadd.f32 %v5442_v10, %v11329_v19  ;;  %v6356_v10 = vld [vmem:[#allocation2 + $0x6a] sm:$0xff] }
 0x674   : > { %v6044_v38 = vadd.f32 %v5954_v18, %v5765_v57 }
 0x675   : > { %7676 = vmatmul.msk.f32.gmra.mxu0 %vm539_vm1, %v12640_v48 }
 0x676   : > { %7642 = vmatmul.msk.f32.gmra.mxu3 %vm539_vm1, %v12641_v14  ;;  %v11556_v39 = vadd.f32 %v6232_v54, %v6044_v38  ;;  %v12646_v14 = vld [vmem:[#allocation33_spill] sm:$0xff] }
 0x677   : > { %7727 = vmatmul.msk.f32.gmra.mxu2 %vm539_vm1, %v6354_v47  ;;  %v6238_v18 = vpop.f32.mrf.mxu1 }
 0x679   : > { %v5678_v22 = vpop.f32.mrf.mxu3 }
 0x67a   : > { %v5445_v19 = vpop.f32.mrf.mxu2  ;;  %v5766_v60 = vadd.f32 %v5678_v22, %v11361_v4  ;;  %7711 = vmatmul.msk.f32.gmra.mxu1 %vm539_vm1, %v6094_v13  ;;  %v5960_v49 = vpop.f32.mrf.mxu0  ;;  %v12647_v22 = vld [vmem:[#allocation43_spill] sm:$0xff] }
 0x67b   : > { %v11559_v3 = vadd.f32 %v5445_v19, %v11343_v27  ;;  %v6357_v19 = vld [vmem:[#allocation2 + $0x7a] sm:$0xff] }
 0x67c   : > { %v6045_v24 = vadd.f32 %v5957_v35, %v5766_v60  ;;  %v6096_v35 = vld [vmem:[#allocation2 + $0x141] sm:$0xff] }
 0x67d   : > { %7677 = vmatmul.msk.f32.gmra.mxu0 %vm539_vm1, %v12642_v15 }
 0x67e   : > { %7643 = vmatmul.msk.f32.gmra.mxu3 %vm539_vm1, %v12643_v59  ;;  %v11568_v53 = vadd.f32 %v6235_v37, %v6045_v24  ;;  %v6097_v24 = vld [vmem:[#allocation2 + $0x151] sm:$0xff] }
 0x67f   : > { %7728 = vmatmul.msk.f32.gmra.mxu2 %vm539_vm1, %v6355_v40  ;;  %v6241_v47 = vpop.f32.mrf.mxu1 }
 0x681   : > { %v5681_v54 = vpop.f32.mrf.mxu3 }
 0x682   : > { %v5448_v27 = vpop.f32.mrf.mxu2  ;;  %v5767_v45 = vadd.f32 %v5681_v54, %v11375_v43  ;;  %7712 = vmatmul.msk.f32.gmra.mxu1 %vm539_vm1, %v6095_v33  ;;  %v5963_v57 = vpop.f32.mrf.mxu0  ;;  %v12649_v54 = vld [vmem:[#allocation42_spill] sm:$0xff] }
 0x683   : > { %v11571_v4 = vadd.f32 %v5448_v27, %v11357_v7  ;;  %v6358_v27 = vld [vmem:[#allocation2 + $0x82] sm:$0xff] }
 0x684   : > { %v6046_v36 = vadd.f32 %v5960_v49, %v5767_v45  ;;  %v6098_v45 = vld [vmem:[#allocation2 + $0x159] sm:$0xff] }
 0x685   : > { %7678 = vmatmul.msk.f32.gmra.mxu0 %vm539_vm1, %v12644_v34  ;;  %v6359_v34 = vld [vmem:[#allocation2 + $0x92] sm:$0xff] }
 0x686   : > { %7644 = vmatmul.msk.f32.gmra.mxu3 %vm539_vm1, %v12645_v12  ;;  %v11580_v17 = vadd.f32 %v6238_v18, %v6046_v36  ;;  %v12648_v18 = vld [vmem:[#allocation34_spill] sm:$0xff]  ;;  %v12650_v36 = vld [vmem:[#allocation60_spill] sm:$0xff] }
 0x687   : > { %7729 = vmatmul.msk.f32.gmra.mxu2 %vm539_vm1, %v6356_v10  ;;  %v6244_v59 = vpop.f32.mrf.mxu1  ;;  %v12651_v10 = vld [vmem:[#allocation35_spill] sm:$0xff] }
 0x689   : > { %v5684_v7 = vpop.f32.mrf.mxu3 }
 0x68a   : > { %v5451_v38 = vpop.f32.mrf.mxu2  ;;  %v5768_v48 = vadd.f32 %v5684_v7, %v11389_v30  ;;  %7713 = vmatmul.msk.f32.gmra.mxu1 %vm539_vm1, %v6096_v35  ;;  %v5966_v40 = vpop.f32.mrf.mxu0  ;;  %v12652_v7 = vld [vmem:[#allocation48_spill] sm:$0xff] }
 0x68b   : > { %v11583_v43 = vadd.f32 %v5451_v38, %v11371_v25 }
 0x68c   : > { %v6047_v37 = vadd.f32 %v5963_v57, %v5768_v48  ;;  %v6099_v57 = vld [vmem:[#allocation2 + $0x169] sm:$0xff]  ;;  %v6100_v48 = vld [vmem:[#allocation2 + $0x171] sm:$0xff] }
 0x68d   : > { %7679 = vmatmul.msk.f32.gmra.mxu0 %vm539_vm1, %v12646_v14 }
 0x68e   : > { %7645 = vmatmul.msk.f32.gmra.mxu3 %vm539_vm1, %v12647_v22  ;;  %v11592_v13 = vadd.f32 %v6241_v47, %v6047_v37  ;;  %v12653_v37 = vld [vmem:[#allocation62_spill] sm:$0xff]  ;;  %v12655_v22 = vld [vmem:[#allocation5_spill] sm:$0xff] }
 0x68f   : > { %7730 = vmatmul.msk.f32.gmra.mxu2 %vm539_vm1, %v6357_v19  ;;  %v6362_v19 = vld [vmem:[#allocation2 + $0xb2] sm:$0xff] }
 0x691   : > { %v5687_v25 = vpop.f32.mrf.mxu3 }
 0x692   : > { %v5454_v60 = vpop.f32.mrf.mxu2  ;;  %v5769_v15 = vadd.f32 %v5687_v25, %v11403_v55  ;;  %7714 = vmatmul.msk.f32.gmra.mxu1 %vm539_vm1, %v6097_v24  ;;  %v6103_v25 = vld [vmem:[#allocation2 + $0x199] sm:$0xff] }
 0x693   : > { %v11595_v30 = vadd.f32 %v5454_v60, %v11385_v52 }
 0x694   : > { %v6048_v49 = vadd.f32 %v5966_v40, %v5769_v15  ;;  %v5825_v40 = vld [vmem:[#allocation2 + $0x198] sm:$0xff] }
 0x695   : > { %7680 = vmatmul.msk.f32.gmra.mxu0 %vm539_vm1, %v12648_v18  ;;  %v11667_v18 = vld [vmem:[#allocation2 + $0x18a] sm:$0xff] }
 0x696   : > { %7646 = vmatmul.msk.f32.gmra.mxu3 %vm539_vm1, %v12649_v54  ;;  %v11604_v33 = vadd.f32 %v6244_v59, %v6048_v49 }
 0x697   : > { %7731 = vmatmul.msk.f32.gmra.mxu2 %vm539_vm1, %v6358_v27  ;;  %v6365_v27 = vld [vmem:[#allocation2 + $0xda] sm:$0xff] }
 0x69a   : > { %v5457_v52 = vpop.f32.mrf.mxu2  ;;  %7715 = vmatmul.msk.f32.gmra.mxu1 %vm539_vm1, %v6098_v45 }
 0x69b   : > { %v11607_v55 = vadd.f32 %v5457_v52, %v11399_v42  ;;  %v6360_v42 = vld [vmem:[#allocation2 + $0x9a] sm:$0xff] }
 0x69d   : > { %7681 = vmatmul.msk.f32.gmra.mxu0 %vm539_vm1, %v12650_v36 }
 0x69e   : > { %7647 = vmatmul.msk.f32.gmra.mxu3 %vm539_vm1, %v12651_v10  ;;  %v11684_v10 = vld [vmem:[%s11929_s7] ss:$0 sm:$0xff] }
 0x69f   : > { %7732 = vmatmul.msk.f32.gmra.mxu2 %vm539_vm1, %v6359_v34  ;;  %v6367_v34 = vld [vmem:[#allocation2 + $0xf2] sm:$0xff] }
 0x6a2   : > { %v5460_v12 = vpop.f32.mrf.mxu2  ;;  %7716 = vmatmul.msk.f32.gmra.mxu1 %vm539_vm1, %v6099_v57 }
 0x6a3   : > { %v11616_v38 = vadd.f32 %v5460_v12, %v11413_v56  ;;  %v6361_v56 = vld [vmem:[#allocation2 + $0xaa] sm:$0xff] }
 0x6a5   : > { %7682 = vmatmul.msk.f32.gmra.mxu0 %vm539_vm1, %v11211_v16 }
 0x6a6   : > { %7648 = vmatmul.msk.f32.gmra.mxu3 %vm539_vm1, %v12652_v7 }
 0x6a7   : > { %7733 = vmatmul.msk.f32.gmra.mxu2 %vm539_vm1, %v6360_v42  ;;  %v6368_v42 = vld [vmem:[#allocation2 + $0xfa] sm:$0xff] }
 0x6aa   : > { %v5463_v35 = vpop.f32.mrf.mxu2  ;;  %7717 = vmatmul.msk.f32.gmra.mxu1 %vm539_vm1, %v6100_v48 }
 0x6ab   : > { %v11625_v47 = vadd.f32 %v5463_v35, %v11426_v1  ;;  %v12654_v1 = vld [vmem:[#allocation61_spill] sm:$0xff]  ;;  %v11696_v35 = vpop.f32.mrf.mxu3 }
 0x6ad   : > { %7683 = vmatmul.msk.f32.gmra.mxu0 %vm539_vm1, %v11230_v20 }
 0x6ae   : > { %7649 = vmatmul.msk.f32.gmra.mxu3 %vm539_vm1, %v12653_v37 }
 0x6af   : > { %7734 = vmatmul.msk.f32.gmra.mxu2 %vm539_vm1, %v6361_v56 }
 0x6b2   : > { %v5466_v16 = vpop.f32.mrf.mxu2  ;;  %7718 = vmatmul.msk.f32.gmra.mxu1 %vm539_vm1, %v11485_v2  ;;  %v12656_v2 = vld [vmem:[#allocation23_spill] sm:$0xff] }
 0x6b3   : > { %v11634_v14 = vadd.f32 %v5466_v16, %v11439_v51  ;;  %v6363_v51 = vld [vmem:[#allocation2 + $0xc2] sm:$0xff]  ;;  %v11707_v16 = vpop.f32.mrf.mxu0 }
 0x6b5   : > { %7684 = vmatmul.msk.f32.gmra.mxu0 %vm539_vm1, %v12654_v1  ;;  %v6369_v1 = vld [vmem:[#allocation2 + $0x10a] sm:$0xff] }
 0x6b6   : > { %7650 = vmatmul.msk.f32.gmra.mxu3 %vm539_vm1, %v12655_v22  ;;  %v11711_v22 = vpop.f32.mrf.mxu1 }
 0x6b7   : > { %7735 = vmatmul.msk.f32.gmra.mxu2 %vm539_vm1, %v6362_v19 }
 0x6ba   : > { %v5469_v20 = vpop.f32.mrf.mxu2  ;;  %7719 = vmatmul.msk.f32.gmra.mxu1 %vm539_vm1, %v11500_v29  ;;  %v6364_v29 = vld [vmem:[#allocation2 + $0xca] sm:$0xff] }
 0x6bb   : > { %v11644_v60 = vadd.f32 %v5469_v20, %v11452_v6  ;;  %v11657_v6 = vld [vmem:[#allocation2 + $0x182] sm:$0xff] }
 0x6bd   : > { %7685 = vmatmul.msk.f32.gmra.mxu0 %vm539_vm1, %v11262_v5  ;;  %v6104_v5 = vld [vmem:[#allocation2 + $0x1a1] sm:$0xff] }
 0x6be   : > { %7651 = vmatmul.msk.f32.gmra.mxu3 %vm539_vm1, %v12656_v2 }
 0x6bf   : > { %7736 = vmatmul.msk.f32.gmra.mxu2 %vm539_vm1, %v6363_v51  ;;  %v11713_v51 = vpop.f32.mrf.mxu3 }
 0x6c2   : > { %v5472_v24 = vpop.f32.mrf.mxu2  ;;  %7720 = vmatmul.msk.f32.gmra.mxu1 %vm539_vm1, %v6103_v25 }
 0x6c3   : > { %v11654_v15 = vadd.f32 %v5472_v24, %v11465_v0  ;;  %v5826_v0 = vld [vmem:[#allocation2 + $0x1a0] sm:$0xff]  ;;  %v6370_v24 = vld [vmem:[#allocation2 + $0x112] sm:$0xff] }
 0x6c5   : > { %7686 = vmatmul.msk.f32.gmra.mxu0 %vm539_vm1, %v5825_v40 }
 0x6c6   : > { %7652 = vmatmul.msk.f32.gmra.mxu3 %vm539_vm1, %v11657_v6 }
 0x6c7   : > { %7737 = vmatmul.msk.f32.gmra.mxu2 %vm539_vm1, %v6364_v29  ;;  %v11721_v29 = vpop.f32.mrf.mxu0 }
 0x6ca   : > { %v5475_v49 = vpop.f32.mrf.mxu2  ;;  %7721 = vmatmul.msk.f32.gmra.mxu1 %vm539_vm1, %v6104_v5 }
 0x6cb   : > { %v11664_v59 = vadd.f32 %v5475_v49, %v11478_v61  ;;  %v6366_v61 = vld [vmem:[#allocation2 + $0xe2] sm:$0xff] }
 0x6cd   : > { %7687 = vmatmul.msk.f32.gmra.mxu0 %vm539_vm1, %v5826_v0  ;;  %v11723_v0 = vpop.f32.mrf.mxu1 }
 0x6ce   : > { %7653 = vmatmul.msk.f32.gmra.mxu3 %vm539_vm1, %v11667_v18 }
 0x6cf   : > { %7738 = vmatmul.msk.f32.gmra.mxu2 %vm539_vm1, %v6365_v27 }
 0x6d2   : > { %v5478_v54 = vpop.f32.mrf.mxu2 }
 0x6d3   : > { %v11674_v52 = vadd.f32 %v5478_v54, %v11493_v31  ;;  %v11690_v31 = vld [vmem:[%s11930_s8] ss:$0 sm:$0xff]  ;;  %v5696_v54 = vpop.f32.mrf.mxu3 }
 0x6d7   : > { %7739 = vmatmul.msk.f32.gmra.mxu2 %vm539_vm1, %v6366_v61  ;;  %v6371_v61 = vld [vmem:[#allocation2 + $0x122] sm:$0xff] }
 0x6da   : > { %v5481_v45 = vpop.f32.mrf.mxu2 }
 0x6db   : > { %v11678_v36 = vadd.f32 %v5481_v45, %v11508_v41 }
 0x6df   : > { %7740 = vmatmul.msk.f32.gmra.mxu2 %vm539_vm1, %v6367_v34 }
 0x6e2   : > { %v6501_v12 = vpop.f32.mrf.mxu2 }
 0x6e3   : > { %v6597_v57 = vadd.f32 %v6501_v12, %v11520_v11  ;;  %v11731_v12 = vpop.f32.mrf.mxu0 }
 0x6e5   : > { %v6633_v41 = vmul.f32 %v11684_v10, %v6597_v57 }
 0x6e7   : > { %v6669_v7 = vadd.f32 %v11690_v31, %v6633_v41  ;;  %7741 = vmatmul.msk.f32.gmra.mxu2 %vm539_vm1, %v6368_v42  ;;  %v11736_v42 = vpop.f32.mrf.mxu1 }
 0x6e9   : > { %v6701_v11 = vmax.f32 %v6669_v7, 0.0  ;;  %v11739_v7 = vpop.f32.mrf.mxu3 }
 0x6ea   : > { %v6504_v48 = vpop.f32.mrf.mxu2 }
 0x6eb   : > { %6733 = vst.msk [vmem:[%s11701_s28] sm:$0xff] %vm539_vm1, %v6701_v11  ;;  %v6598_v56 = vadd.f32 %v6504_v48, %v11532_v62  ;;  %v6372_v11 = vld [vmem:[#allocation2 + $0x12a] sm:$0xff] }
 0x6ed   : > { %v6634_v37 = vmul.f32 %v11684_v10, %v6598_v56 }
 0x6ef   : > { %v6670_v19 = vadd.f32 %v11690_v31, %v6634_v37  ;;  %7742 = vmatmul.msk.f32.gmra.mxu2 %vm539_vm1, %v6369_v1 }
 0x6f1   : > { %v6702_v20 = vmax.f32 %v6670_v19, 0.0  ;;  %v11746_v19 = vpop.f32.mrf.mxu0 }
 0x6f2   : > { %v6507_v2 = vpop.f32.mrf.mxu2 }
 0x6f3   : > { %6734 = vst.msk [vmem:[%s11701_s28 + $0x8] sm:$0xff] %vm539_vm1, %v6702_v20  ;;  %v6599_v62 = vadd.f32 %v6507_v2, %v11544_v23  ;;  %v6373_v20 = vld [vmem:[#allocation2 + $0x13a] sm:$0xff]  ;;  %v11749_v2 = vpop.f32.mrf.mxu1 }
 0x6f5   : > { %v6635_v25 = vmul.f32 %v11684_v10, %v6599_v62 }
 0x6f7   : > { %v6671_v40 = vadd.f32 %v11690_v31, %v6635_v25  ;;  %7743 = vmatmul.msk.f32.gmra.mxu2 %vm539_vm1, %v6370_v24  ;;  %v11753_v25 = vpop.f32.mrf.mxu3 }
 0x6f9   : > { %v6703_v5 = vmax.f32 %v6671_v40, 0.0 }
 0x6fa   : > { %v6510_v49 = vpop.f32.mrf.mxu2 }
 0x6fb   : > { %6735 = vst.msk [vmem:[%s11701_s28 + $0x10] sm:$0xff] %vm539_vm1, %v6703_v5  ;;  %v6600_v27 = vadd.f32 %v6510_v49, %v11556_v39  ;;  %v11759_v49 = vpop.f32.mrf.mxu0 }
 0x6fd   : > { %v6636_v23 = vmul.f32 %v11684_v10, %v6600_v27  ;;  %v6374_v27 = vld [vmem:[#allocation2 + $0x142] sm:$0xff] }
 0x6ff   : > { %v6672_v45 = vadd.f32 %v11690_v31, %v6636_v23  ;;  %7744 = vmatmul.msk.f32.gmra.mxu2 %vm539_vm1, %v6371_v61  ;;  %v5770_v61 = vadd.f32 %v11696_v35, %v11417_v46  ;;  %v5771_v35 = vadd.f32 %v11713_v51, %v11430_v9  ;;  %v5772_v9 = vadd.f32 %v5696_v54, %v11443_v21 }
 0x700   : > { %v5773_v21 = vadd.f32 %v11739_v7, %v11456_v32 }
 0x701   : > { %v6704_v34 = vmax.f32 %v6672_v45, 0.0  ;;  %v11765_v45 = vpop.f32.mrf.mxu1 }
 0x702   : > { %v6513_v57 = vpop.f32.mrf.mxu2 }
 0x703   : > { %6736 = vst.msk [vmem:[%s11701_s28 + $0x18] sm:$0xff] %vm539_vm1, %v6704_v34  ;;  %v6601_v41 = vadd.f32 %v6513_v57, %v11568_v53  ;;  %v5705_v57 = vpop.f32.mrf.mxu3  ;;  %v5984_v46 = vpop.f32.mrf.mxu0 }
 0x705   : > { %v6637_v39 = vmul.f32 %v11684_v10, %v6601_v41 }
 0x707   : > { %v6673_v48 = vadd.f32 %v11690_v31, %v6637_v39  ;;  %7745 = vmatmul.msk.f32.gmra.mxu2 %vm539_vm1, %v6372_v11  ;;  %v6049_v39 = vadd.f32 %v11707_v16, %v5770_v61 }
 0x709   : > { %v6705_v56 = vmax.f32 %v6673_v48, 0.0  ;;  %v6375_v48 = vld [vmem:[#allocation2 + $0x152] sm:$0xff] }
 0x70a   : > { %v6516_v37 = vpop.f32.mrf.mxu2 }
 0x70b   : > { %6737 = vst.msk [vmem:[%s11701_s28 + $0x20] sm:$0xff] %vm539_vm1, %v6705_v56  ;;  %v6602_v1 = vadd.f32 %v6516_v37, %v11580_v17  ;;  %v5708_v16 = vpop.f32.mrf.mxu3 }
 0x70d   : > { %v6638_v53 = vmul.f32 %v11684_v10, %v6602_v1  ;;  %v6327_v1 = vadd.f32 %v11711_v22, %v6049_v39 }
 0x70f   : > { %v6674_v62 = vadd.f32 %v11690_v31, %v6638_v53  ;;  %7746 = vmatmul.msk.f32.gmra.mxu2 %vm539_vm1, %v6373_v20  ;;  %v11777_v20 = vpop.f32.mrf.mxu1 }
 0x711   : > { %v6706_v24 = vmax.f32 %v6674_v62, 0.0  ;;  %v6050_v62 = vadd.f32 %v11721_v29, %v5771_v35  ;;  %v6051_v29 = vadd.f32 %v11731_v12, %v5772_v9 }
 0x712   : > { %v6519_v40 = vpop.f32.mrf.mxu2 }
 0x713   : > { %6738 = vst.msk [vmem:[%s11701_s28 + $0x28] sm:$0xff] %vm539_vm1, %v6706_v24  ;;  %v6603_v17 = vadd.f32 %v6519_v40, %v11592_v13  ;;  %v6376_v40 = vld [vmem:[#allocation2 + $0x15a] sm:$0xff]  ;;  %v6328_v51 = vadd.f32 %v11723_v0, %v6050_v62  ;;  %v6329_v54 = vadd.f32 %v11736_v42, %v6051_v29  ;;  %v5774_v42 = vadd.f32 %v11753_v25, %v11469_v8 }
 0x714   : > { %v5775_v8 = vadd.f32 %v5705_v57, %v11482_v63  ;;  %v5776_v63 = vadd.f32 %v5708_v16, %v11497_v58 }
 0x715   : > { %v6639_v5 = vmul.f32 %v11684_v10, %v6603_v17 }
 0x717   : > { %v6675_v23 = vadd.f32 %v11690_v31, %v6639_v5  ;;  %7747 = vmatmul.msk.f32.gmra.mxu2 %vm539_vm1, %v6374_v27  ;;  %v5987_v5 = vpop.f32.mrf.mxu0  ;;  %v6265_v61 = vpop.f32.mrf.mxu1 }
 0x719   : > { %v6707_v34 = vmax.f32 %v6675_v23, 0.0 }
 0x71a   : > { %v6522_v41 = vpop.f32.mrf.mxu2 }
 0x71b   : > { %6739 = vst.msk [vmem:[%s11701_s28 + $0x30] sm:$0xff] %vm539_vm1, %v6707_v34  ;;  %v6604_v13 = vadd.f32 %v6522_v41, %v11604_v33  ;;  %v5711_v41 = vpop.f32.mrf.mxu3 }
 0x71c   : > { %v5777_v58 = vadd.f32 %v5711_v41, %v11511_v28 }
 0x71d   : > { %v6640_v11 = vmul.f32 %v11684_v10, %v6604_v13  ;;  %v6377_v13 = vld [vmem:[#allocation2 + $0x16a] sm:$0xff] }
 0x71f   : > { %v6676_v56 = vadd.f32 %v11690_v31, %v6640_v11  ;;  %7748 = vmatmul.msk.f32.gmra.mxu2 %vm539_vm1, %v6375_v48  ;;  %v5990_v48 = vpop.f32.mrf.mxu0 }
 0x721   : > { %v6708_v37 = vmax.f32 %v6676_v56, 0.0  ;;  %v6052_v56 = vadd.f32 %v11746_v19, %v5773_v21 }
 0x722   : > { %v6525_v53 = vpop.f32.mrf.mxu2 }
 0x723   : > { %6740 = vst.msk [vmem:[%s11701_s28 + $0x38] sm:$0xff] %vm539_vm1, %v6708_v37  ;;  %v6605_v33 = vadd.f32 %v6525_v53, %v6327_v1  ;;  %v6378_v37 = vld [vmem:[#allocation2 + $0x172] sm:$0xff]  ;;  %v6268_v1 = vpop.f32.mrf.mxu1  ;;  %v5714_v32 = vpop.f32.mrf.mxu3 }
 0x724   : > { %v5778_v28 = vadd.f32 %v5714_v32, %v11523_v50 }
 0x725   : > { %v6641_v24 = vmul.f32 %v11684_v10, %v6605_v33  ;;  %v6330_v33 = vadd.f32 %v11749_v2, %v6052_v56 }
 0x727   : > { %v6677_v17 = vadd.f32 %v11690_v31, %v6641_v24  ;;  %7749 = vmatmul.msk.f32.gmra.mxu2 %vm539_vm1, %v6376_v40  ;;  %v6053_v24 = vadd.f32 %v11759_v49, %v5774_v42 }
 0x729   : > { %v6709_v22 = vmax.f32 %v6677_v17, 0.0  ;;  %v5993_v17 = vpop.f32.mrf.mxu0  ;;  %v6331_v2 = vadd.f32 %v11765_v45, %v6053_v24 }
 0x72a   : > { %v6528_v27 = vpop.f32.mrf.mxu2 }
 0x72b   : > { %6741 = vst.msk [vmem:[%s11701_s28 + $0x40] sm:$0xff] %vm539_vm1, %v6709_v22  ;;  %v6606_v23 = vadd.f32 %v6528_v27, %v6328_v51  ;;  %v6271_v25 = vpop.f32.mrf.mxu1  ;;  %v5717_v51 = vpop.f32.mrf.mxu3 }
 0x72d   : > { %v6642_v34 = vmul.f32 %v11684_v10, %v6606_v23  ;;  %v6054_v23 = vadd.f32 %v5984_v46, %v5775_v8 }
 0x72f   : > { %v6678_v39 = vadd.f32 %v11690_v31, %v6642_v34  ;;  %7750 = vmatmul.msk.f32.gmra.mxu2 %vm539_vm1, %v6377_v13  ;;  %v6332_v13 = vadd.f32 %v11777_v20, %v6054_v23 }
 0x731   : > { %v6710_v0 = vmax.f32 %v6678_v39, 0.0 }
 0x732   : > { %v6531_v11 = vpop.f32.mrf.mxu2 }
 0x733   : > { %6742 = vst.msk [vmem:[%s11701_s28 + $0x48] sm:$0xff] %vm539_vm1, %v6710_v0  ;;  %v6607_v12 = vadd.f32 %v6531_v11, %v6329_v54  ;;  %v6274_v39 = vpop.f32.mrf.mxu1  ;;  %v5720_v46 = vpop.f32.mrf.mxu3  ;;  %v6381_v0 = vld [vmem:[#allocation2 + $0x19a] sm:$0xff]  ;;  %v6055_v54 = vadd.f32 %v5987_v5, %v5776_v63 }
 0x735   : > { %v6643_v35 = vmul.f32 %v11684_v10, %v6607_v12  ;;  %v6333_v16 = vadd.f32 %v6265_v61, %v6055_v54 }
 0x737   : > { %v6679_v53 = vadd.f32 %v11690_v31, %v6643_v35  ;;  %7751 = vmatmul.msk.f32.gmra.mxu2 %vm539_vm1, %v6378_v37  ;;  %v6382_v37 = vld [vmem:[#allocation2 + $0x1a2] sm:$0xff] }
 0x739   : > { %v6711_v7 = vmax.f32 %v6679_v53, 0.0  ;;  %v6056_v53 = vadd.f32 %v5990_v48, %v5777_v58 }
 0x73a   : > { %v6534_v62 = vpop.f32.mrf.mxu2 }
 0x73b   : > { %6743 = vst.msk [vmem:[%s11701_s28 + $0x50] sm:$0xff] %vm539_vm1, %v6711_v7  ;;  %v6608_v19 = vadd.f32 %v6534_v62, %v6330_v33  ;;  %v6277_v42 = vpop.f32.mrf.mxu1  ;;  %v5723_v7 = vpop.f32.mrf.mxu3  ;;  %v6334_v41 = vadd.f32 %v6268_v1, %v6056_v53 }
 0x73c   : > { %v5781_v54 = vadd.f32 %v5723_v7, %v11559_v3 }
 0x73d   : > { %v6644_v40 = vmul.f32 %v11684_v10, %v6608_v19 }
 0x73f   : > { %v6680_v9 = vadd.f32 %v11690_v31, %v6644_v40  ;;  %7752 = vmatmul.msk.f32.gmra.mxu2 %vm539_vm1, %v11657_v6  ;;  %v5996_v6 = vpop.f32.mrf.mxu0  ;;  %v6057_v40 = vadd.f32 %v5993_v17, %v5778_v28 }
 0x741   : > { %v6712_v22 = vmax.f32 %v6680_v9, 0.0  ;;  %v6335_v50 = vadd.f32 %v6271_v25, %v6057_v40 }
 0x742   : > { %v6537_v27 = vpop.f32.mrf.mxu2 }
 0x743   : > { %6744 = vst.msk [vmem:[%s11701_s28 + $0x58] sm:$0xff] %vm539_vm1, %v6712_v22  ;;  %v6609_v49 = vadd.f32 %v6537_v27, %v6331_v2  ;;  %v6280_v9 = vpop.f32.mrf.mxu1  ;;  %v5726_v22 = vpop.f32.mrf.mxu3  ;;  %v5779_v2 = vadd.f32 %v5717_v51, %v11535_v26 }
 0x745   : > { %v6645_v29 = vmul.f32 %v11684_v10, %v6609_v49  ;;  %v6058_v49 = vadd.f32 %v5996_v6, %v5779_v2 }
 0x747   : > { %v6681_v34 = vadd.f32 %v11690_v31, %v6645_v29  ;;  %7753 = vmatmul.msk.f32.gmra.mxu2 %vm539_vm1, %v11667_v18  ;;  %v5999_v20 = vpop.f32.mrf.mxu0 }
 0x749   : > { %v6713_v57 = vmax.f32 %v6681_v34, 0.0  ;;  %v5780_v34 = vadd.f32 %v5720_v46, %v11547_v44 }
 0x74a   : > { %v6540_v45 = vpop.f32.mrf.mxu2 }
 0x74b   : > { %6745 = vst.msk [vmem:[%s11701_s28 + $0x60] sm:$0xff] %vm539_vm1, %v6713_v57  ;;  %v6610_v21 = vadd.f32 %v6540_v45, %v6332_v13  ;;  %v6283_v63 = vpop.f32.mrf.mxu1  ;;  %v6336_v13 = vadd.f32 %v6274_v39, %v6058_v49  ;;  %v5729_v26 = vpop.f32.mrf.mxu3  ;;  %v6059_v45 = vadd.f32 %v5999_v20, %v5780_v34 }
 0x74d   : > { %v6646_v11 = vmul.f32 %v11684_v10, %v6610_v21  ;;  %v6337_v44 = vadd.f32 %v6277_v42, %v6059_v45 }
 0x74f   : > { %v6682_v12 = vadd.f32 %v11690_v31, %v6646_v11  ;;  %7754 = vmatmul.msk.f32.gmra.mxu2 %vm539_vm1, %v6381_v0  ;;  %v6002_v24 = vpop.f32.mrf.mxu0 }
 0x751   : > { %v6714_v18 = vmax.f32 %v6682_v12, 0.0 }
 0x752   : > { %v6543_v56 = vpop.f32.mrf.mxu2 }
 0x753   : > { %6746 = vst.msk [vmem:[%s11701_s28 + $0x68] sm:$0xff] %vm539_vm1, %v6714_v18  ;;  %v6611_v35 = vadd.f32 %v6543_v56, %v6333_v16  ;;  %v6286_v12 = vpop.f32.mrf.mxu1  ;;  %v5732_v58 = vpop.f32.mrf.mxu3  ;;  %v6060_v18 = vadd.f32 %v6002_v24, %v5781_v54  ;;  %v5782_v56 = vadd.f32 %v5726_v22, %v11571_v4 }
 0x755   : > { %v6647_v5 = vmul.f32 %v11684_v10, %v6611_v35 }
 0x757   : > { %v6683_v33 = vadd.f32 %v11690_v31, %v6647_v5  ;;  %7755 = vmatmul.msk.f32.gmra.mxu2 %vm539_vm1, %v6382_v37  ;;  %v6005_v29 = vpop.f32.mrf.mxu0  ;;  %v6338_v37 = vadd.f32 %v6280_v9, %v6060_v18 }
 0x758   : > { %v6061_v5 = vadd.f32 %v6005_v29, %v5782_v56 }
 0x759   : > { %v6715_v61 = vmax.f32 %v6683_v33, 0.0 }
 0x75a   : > { %v6546_v62 = vpop.f32.mrf.mxu2  ;;  %v6339_v4 = vadd.f32 %v6283_v63, %v6061_v5 }
 0x75b   : > { %6747 = vst.msk [vmem:[%s11701_s28 + $0x70] sm:$0xff] %vm539_vm1, %v6715_v61  ;;  %v6612_v19 = vadd.f32 %v6546_v62, %v6334_v41  ;;  %v6289_v7 = vpop.f32.mrf.mxu1  ;;  %v5735_v28 = vpop.f32.mrf.mxu3  ;;  %v5783_v41 = vadd.f32 %v5729_v26, %v11583_v43 }
 0x75c   : > { %v5785_v63 = vadd.f32 %v5735_v28, %v11607_v55 }
 0x75d   : > { %v6648_v48 = vmul.f32 %v11684_v10, %v6612_v19 }
 0x75f   : > { %v6684_v8 = vadd.f32 %v11690_v31, %v6648_v48  ;;  %v6008_v0 = vpop.f32.mrf.mxu0 }
 0x760   : > { %v6062_v48 = vadd.f32 %v6008_v0, %v5783_v41 }
 0x761   : > { %v6716_v27 = vmax.f32 %v6684_v8, 0.0 }
 0x762   : > { %v6549_v32 = vpop.f32.mrf.mxu2  ;;  %v6340_v43 = vadd.f32 %v6286_v12, %v6062_v48 }
 0x763   : > { %6748 = vst.msk [vmem:[%s11701_s28 + $0x78] sm:$0xff] %vm539_vm1, %v6716_v27  ;;  %v6613_v1 = vadd.f32 %v6549_v32, %v6335_v50  ;;  %v6292_v8 = vpop.f32.mrf.mxu1  ;;  %v5738_v2 = vpop.f32.mrf.mxu3  ;;  %v5784_v27 = vadd.f32 %v5732_v58, %v11595_v30 }
 0x764   : > { %v5786_v0 = vadd.f32 %v5738_v2, %v11616_v38 }
 0x765   : > { %v6649_v23 = vmul.f32 %v11684_v10, %v6613_v1 }
 0x767   : > { %v6685_v17 = vadd.f32 %v11690_v31, %v6649_v23  ;;  %v6011_v3 = vpop.f32.mrf.mxu0 }
 0x768   : > { %v6063_v49 = vadd.f32 %v6011_v3, %v5784_v27 }
 0x769   : > { %v6717_v57 = vmax.f32 %v6685_v17, 0.0 }
 0x76a   : > { %v6552_v51 = vpop.f32.mrf.mxu2 }
 0x76b   : > { %6749 = vst.msk [vmem:[%s11701_s28 + $0x80] sm:$0xff] %vm539_vm1, %v6717_v57  ;;  %v6614_v25 = vadd.f32 %v6552_v51, %v6336_v13  ;;  %v6295_v34 = vpop.f32.mrf.mxu1  ;;  %v6341_v13 = vadd.f32 %v6289_v7, %v6063_v49  ;;  %v5741_v30 = vpop.f32.mrf.mxu3 }
 0x76d   : > { %v6650_v21 = vmul.f32 %v11684_v10, %v6614_v25 }
 0x76f   : > { %v6686_v6 = vadd.f32 %v11690_v31, %v6650_v21  ;;  %v6014_v40 = vpop.f32.mrf.mxu0 }
 0x770   : > { %v6064_v25 = vadd.f32 %v6014_v40, %v5785_v63 }
 0x771   : > { %v6718_v11 = vmax.f32 %v6686_v6, 0.0 }
 0x772   : > { %v6555_v46 = vpop.f32.mrf.mxu2 }
 0x773   : > { %6750 = vst.msk [vmem:[%s11701_s28 + $0x88] sm:$0xff] %vm539_vm1, %v6718_v11  ;;  %v6615_v39 = vadd.f32 %v6555_v46, %v6337_v44  ;;  %v6342_v11 = vadd.f32 %v6292_v8, %v6064_v25  ;;  %v6298_v44 = vpop.f32.mrf.mxu1  ;;  %v5744_v12 = vpop.f32.mrf.mxu3 }
 0x775   : > { %v6651_v16 = vmul.f32 %v11684_v10, %v6615_v39 }
 0x777   : > { %v6687_v20 = vadd.f32 %v11690_v31, %v6651_v16  ;;  %v6017_v29 = vpop.f32.mrf.mxu0  ;;  %v5787_v16 = vadd.f32 %v5741_v30, %v11625_v47 }
 0x778   : > { %v6065_v39 = vadd.f32 %v6017_v29, %v5786_v0 }
 0x779   : > { %v6719_v35 = vmax.f32 %v6687_v20, 0.0 }
 0x77a   : > { %v6558_v53 = vpop.f32.mrf.mxu2  ;;  %v6343_v56 = vadd.f32 %v6295_v34, %v6065_v39 }
 0x77b   : > { %6751 = vst.msk [vmem:[%s11701_s28 + $0x90] sm:$0xff] %vm539_vm1, %v6719_v35  ;;  %v6616_v42 = vadd.f32 %v6558_v53, %v6338_v37  ;;  %v6301_v3 = vpop.f32.mrf.mxu1  ;;  %v5747_v5 = vpop.f32.mrf.mxu3 }
 0x77d   : > { %v6652_v33 = vmul.f32 %v11684_v10, %v6616_v42 }
 0x77f   : > { %v6688_v61 = vadd.f32 %v11690_v31, %v6652_v33  ;;  %v6020_v6 = vpop.f32.mrf.mxu0  ;;  %v5788_v33 = vadd.f32 %v5744_v12, %v11634_v14 }
 0x780   : > { %v6066_v53 = vadd.f32 %v6020_v6, %v5787_v16 }
 0x781   : > { %v6720_v62 = vmax.f32 %v6688_v61, 0.0 }
 0x782   : > { %v6561_v19 = vpop.f32.mrf.mxu2  ;;  %v6344_v47 = vadd.f32 %v6298_v44, %v6066_v53 }
 0x783   : > { %6752 = vst.msk [vmem:[%s11701_s28 + $0x98] sm:$0xff] %vm539_vm1, %v6720_v62  ;;  %v6617_v24 = vadd.f32 %v6561_v19, %v6339_v4  ;;  %v5750_v48 = vpop.f32.mrf.mxu3 }
 0x784   : > { %v5790_v49 = vadd.f32 %v5750_v48, %v11654_v15 }
 0x785   : > { %v6653_v9 = vmul.f32 %v11684_v10, %v6617_v24  ;;  %v6304_v24 = vpop.f32.mrf.mxu1 }
 0x787   : > { %v6689_v22 = vadd.f32 %v11690_v31, %v6653_v9  ;;  %v6023_v38 = vpop.f32.mrf.mxu0  ;;  %v5789_v9 = vadd.f32 %v5747_v5, %v11644_v60 }
 0x788   : > { %v6067_v4 = vadd.f32 %v6023_v38, %v5788_v33 }
 0x789   : > { %v6721_v50 = vmax.f32 %v6689_v22, 0.0 }
 0x78a   : > { %v6564_v32 = vpop.f32.mrf.mxu2  ;;  %v6345_v14 = vadd.f32 %v6301_v3, %v6067_v4 }
 0x78b   : > { %6753 = vst.msk [vmem:[%s11701_s28 + $0xa0] sm:$0xff] %vm539_vm1, %v6721_v50  ;;  %v6618_v1 = vadd.f32 %v6564_v32, %v6340_v43  ;;  %v5753_v60 = vpop.f32.mrf.mxu3 }
 0x78d   : > { %v6654_v23 = vmul.f32 %v11684_v10, %v6618_v1  ;;  %v6307_v1 = vpop.f32.mrf.mxu1 }
 0x78f   : > { %v6690_v17 = vadd.f32 %v11690_v31, %v6654_v23  ;;  %v6026_v62 = vpop.f32.mrf.mxu0 }
 0x790   : > { %v6068_v27 = vadd.f32 %v6026_v62, %v5789_v9 }
 0x791   : > { %v6722_v57 = vmax.f32 %v6690_v17, 0.0 }
 0x792   : > { %v6567_v26 = vpop.f32.mrf.mxu2  ;;  %v6346_v29 = vadd.f32 %v6304_v24, %v6068_v27 }
 0x793   : > { %6754 = vst.msk [vmem:[%s11701_s28 + $0xa8] sm:$0xff] %vm539_vm1, %v6722_v57  ;;  %v6619_v51 = vadd.f32 %v6567_v26, %v6341_v13  ;;  %v5791_v26 = vadd.f32 %v5753_v60, %v11664_v59  ;;  %v5756_v6 = vpop.f32.mrf.mxu3 }
 0x794   : > { %v5792_v44 = vadd.f32 %v5756_v6, %v11674_v52 }
 0x795   : > { %v6655_v45 = vmul.f32 %v11684_v10, %v6619_v51 }
 0x797   : > { %v6691_v21 = vadd.f32 %v11690_v31, %v6655_v45  ;;  %v6029_v43 = vpop.f32.mrf.mxu0 }
 0x798   : > { %v6069_v63 = vadd.f32 %v6029_v43, %v5790_v49 }
 0x799   : > { %v6723_v54 = vmax.f32 %v6691_v21, 0.0  ;;  %v6310_v21 = vpop.f32.mrf.mxu1 }
 0x79a   : > { %v6570_v55 = vpop.f32.mrf.mxu2  ;;  %v6347_v25 = vadd.f32 %v6307_v1, %v6069_v63 }
 0x79b   : > { %6755 = vst.msk [vmem:[%s11701_s28 + $0xb0] sm:$0xff] %vm539_vm1, %v6723_v54  ;;  %v6620_v46 = vadd.f32 %v6570_v55, %v6342_v11 }
 0x79d   : > { %v6656_v58 = vmul.f32 %v11684_v10, %v6620_v46 }
 0x79f   : > { %v6692_v18 = vadd.f32 %v11690_v31, %v6656_v58  ;;  %v6032_v30 = vpop.f32.mrf.mxu0 }
 0x7a0   : > { %v6070_v0 = vadd.f32 %v6032_v30, %v5791_v26 }
 0x7a1   : > { %v6724_v20 = vmax.f32 %v6692_v18, 0.0  ;;  %v6313_v58 = vpop.f32.mrf.mxu1 }
 0x7a2   : > { %v6573_v35 = vpop.f32.mrf.mxu2  ;;  %v6348_v59 = vadd.f32 %v6310_v21, %v6070_v0 }
 0x7a3   : > { %6756 = vst.msk [vmem:[%s11701_s28 + $0xb8] sm:$0xff] %vm539_vm1, %v6724_v20  ;;  %v6621_v37 = vadd.f32 %v6573_v35, %v6343_v56  ;;  %v5759_v20 = vpop.f32.mrf.mxu3 }
 0x7a4   : > { %v5793_v35 = vadd.f32 %v5759_v20, %v11678_v36 }
 0x7a5   : > { %v6657_v42 = vmul.f32 %v11684_v10, %v6621_v37 }
 0x7a7   : > { %v6693_v7 = vadd.f32 %v11690_v31, %v6657_v42  ;;  %v6035_v55 = vpop.f32.mrf.mxu0 }
 0x7a8   : > { %v6071_v18 = vadd.f32 %v6035_v55, %v5792_v44 }
 0x7a9   : > { %v6725_v28 = vmax.f32 %v6693_v7, 0.0  ;;  %v6316_v7 = vpop.f32.mrf.mxu1 }
 0x7aa   : > { %v6576_v61 = vpop.f32.mrf.mxu2  ;;  %v6349_v38 = vadd.f32 %v6313_v58, %v6071_v18 }
 0x7ab   : > { %6757 = vst.msk [vmem:[%s11701_s28 + $0xc0] sm:$0xff] %vm539_vm1, %v6725_v28  ;;  %v6622_v41 = vadd.f32 %v6576_v61, %v6344_v47 }
 0x7ad   : > { %v6658_v19 = vmul.f32 %v11684_v10, %v6622_v41 }
 0x7af   : > { %v6694_v40 = vadd.f32 %v11690_v31, %v6658_v19  ;;  %v6038_v52 = vpop.f32.mrf.mxu0 }
 0x7b0   : > { %v6072_v42 = vadd.f32 %v6038_v52, %v5793_v35 }
 0x7b1   : > { %v6726_v8 = vmax.f32 %v6694_v40, 0.0 }
 0x7b2   : > { %v6579_v22 = vpop.f32.mrf.mxu2  ;;  %v6350_v28 = vadd.f32 %v6316_v7, %v6072_v42 }
 0x7b3   : > { %6758 = vst.msk [vmem:[%s11701_s28 + $0xc8] sm:$0xff] %vm539_vm1, %v6726_v8  ;;  %v6623_v2 = vadd.f32 %v6579_v22, %v6345_v14 }
 0x7b5   : > { %v6659_v50 = vmul.f32 %v11684_v10, %v6623_v2 }
 0x7b7   : > { %v6695_v32 = vadd.f32 %v11690_v31, %v6659_v50 }
 0x7b9   : > { %v6727_v23 = vmax.f32 %v6695_v32, 0.0 }
 0x7ba   : > { %v6582_v17 = vpop.f32.mrf.mxu2 }
 0x7bb   : > { %6759 = vst.msk [vmem:[%s11701_s28 + $0xd0] sm:$0xff] %vm539_vm1, %v6727_v23  ;;  %v6624_v34 = vadd.f32 %v6582_v17, %v6346_v29 }
 0x7bd   : > { %v6660_v57 = vmul.f32 %v11684_v10, %v6624_v34 }
 0x7bf   : > { %v6696_v13 = vadd.f32 %v11690_v31, %v6660_v57 }
 0x7c1   : > { %v6728_v51 = vmax.f32 %v6696_v13, 0.0 }
 0x7c2   : > { %v6585_v45 = vpop.f32.mrf.mxu2 }
 0x7c3   : > { %6760 = vst.msk [vmem:[%s11701_s28 + $0xd8] sm:$0xff] %vm539_vm1, %v6728_v51  ;;  %v6625_v15 = vadd.f32 %v6585_v45, %v6347_v25 }
 0x7c5   : > { %v6661_v54 = vmul.f32 %v11684_v10, %v6625_v15 }
 0x7c7   : > { %v6697_v11 = vadd.f32 %v11690_v31, %v6661_v54 }
 0x7c9   : > { %v6729_v46 = vmax.f32 %v6697_v11, 0.0 }
 0x7ca   : > { %v6588_v12 = vpop.f32.mrf.mxu2 }
 0x7cb   : > { %6761 = vst.msk [vmem:[%s11701_s28 + $0xe0] sm:$0xff] %vm539_vm1, %v6729_v46  ;;  %v6626_v39 = vadd.f32 %v6588_v12, %v6348_v59 }
 0x7cd   : > { %v6662_v16 = vmul.f32 %v11684_v10, %v6626_v39 }
 0x7cf   : > { %v6698_v56 = vadd.f32 %v11690_v31, %v6662_v16 }
 0x7d1   : > { %v6730_v37 = vmax.f32 %v6698_v56, 0.0 }
 0x7d2   : > { %v6591_v3 = vpop.f32.mrf.mxu2 }
 0x7d3   : > { %6762 = vst.msk [vmem:[%s11701_s28 + $0xe8] sm:$0xff] %vm539_vm1, %v6730_v37  ;;  %v6627_v53 = vadd.f32 %v6591_v3, %v6349_v38 }
 0x7d5   : > { %v6663_v5 = vmul.f32 %v11684_v10, %v6627_v53 }
 0x7d7   : > { %v6699_v33 = vadd.f32 %v11690_v31, %v6663_v5 }
 0x7d9   : > { %v6731_v47 = vmax.f32 %v6699_v33, 0.0 }
 0x7da   : > { %v6594_v61 = vpop.f32.mrf.mxu2 }
 0x7db   : > { %6763 = vst.msk [vmem:[%s11701_s28 + $0xf0] sm:$0xff] %vm539_vm1, %v6731_v47  ;;  %v6628_v41 = vadd.f32 %v6594_v61, %v6350_v28 }
 0x7dd   : > { %v6664_v36 = vmul.f32 %v11684_v10, %v6628_v41 }
 0x7df   : > { %v6700_v62 = vadd.f32 %v11690_v31, %v6664_v36 }
 0x7e1   : > { %v6732_v4 = vmax.f32 %v6700_v62, 0.0 }
 0x7e3   : > { %6764 = vst.msk [vmem:[%s11701_s28 + $0xf8] sm:$0xff] %vm539_vm1, %v6732_v4 }
 0x7e4 PF: > { %s19_s30 = sadd.s32 1, %s7825_s30  }
 0x7e5   : > { %p16_p4 = scmp.ge.s32.totalorder %s19_s30, 4  }
 0x7e7   :  { %18 = sbr.rel (!%p16_p4) target bundleno = 1 (0x1), region = 115 }

</bundles_post_ra>
